<compile_context>
chip_gen: v7x
topology: tpu7x:2x2x1
jax: 0.10.0
libtpu: 0.0.40
codegen_flags: <defaults>
</compile_context>

<pallas_src>
import functools

import numpy as np
import jax
import jax.numpy as jnp
from jax import lax
from jax.experimental import pallas as pl
from jax.experimental.pallas import tpu as pltpu


def sar_decoder_kernel(
    feat_flat_ref, out_enc_ref, attn_key_ref,
    wf1_ref, b1_ref, wf2_ref, b2_ref,
    wq_ref, bq_ref, ws_ref, bs_ref,
    emb_ref, wpred_ref, bpred_ref,
    out_ref,
    *, seq_len, start_idx):
  f32 = jnp.float32
  TB = feat_flat_ref.shape[0]
  HW = feat_flat_ref.shape[1]
  E = out_enc_ref.shape[1]
  NCP = wpred_ref.shape[1]
  cd = wf1_ref.dtype                      # matmul compute dtype (f32 or bf16)

  feat_flat = feat_flat_ref[...]          # (TB, HW, C), in cd
  attn_key = attn_key_ref[...]            # (TB, HW, dk), loop-invariant, f32
  out_enc = out_enc_ref[...]              # (TB, E)
  emb = emb_ref[...]                      # (NCP, E), in cd
  wf1 = wf1_ref[...]; b1 = b1_ref[...]
  wf2 = wf2_ref[...]; b2 = b2_ref[...]
  wq = wq_ref[...]; bq = bq_ref[...]
  ws_b = ws_ref[...][None, :, :]          # (1, 1, dk), hoisted out of the loop
  bs_scalar = bs_ref[0, 0]                # hoisted scalar extraction
  wpred = wpred_ref[...]; bpred = bpred_ref[...]

  def gates_to_hc(gates, c):
    # PyTorch LSTMCell gate order: i, f, g, o ; b = b_ih + b_hh (folded).
    i = jax.nn.sigmoid(gates[:, 0 * E:1 * E])
    f = jax.nn.sigmoid(gates[:, 1 * E:2 * E])
    g = jnp.tanh(gates[:, 2 * E:3 * E])
    o = jax.nn.sigmoid(gates[:, 3 * E:4 * E])
    c_new = f * c + i * g
    return o * jnp.tanh(c_new), c_new

  def lstm_fused(x, h, c, wf, b):
    # single fused matmul on the serial chain: [x, h] @ [wih; whh].
    xh = jnp.concatenate([x, h], axis=-1).astype(cd)
    gates = jnp.dot(xh, wf, preferred_element_type=f32) + b
    return gates_to_hc(gates, c)

  def lstm_init(x, wf, b):
    # i == -1 step: h == c == 0, so the hidden matmul and f*c term vanish.
    gates = jnp.dot(x.astype(cd), wf[:E, :], preferred_element_type=f32) + b
    i = jax.nn.sigmoid(gates[:, 0 * E:1 * E])
    g = jnp.tanh(gates[:, 2 * E:3 * E])
    o = jax.nn.sigmoid(gates[:, 3 * E:4 * E])
    c_new = i * g
    return o * jnp.tanh(c_new), c_new

  hx1, cx1 = lstm_init(out_enc, wf1, b1)
  hx2, cx2 = lstm_init(hx1, wf2, b2)
  y_prev0 = jnp.broadcast_to(emb[start_idx, :].astype(f32)[None, :], (TB, E))

  class_iota = lax.broadcasted_iota(jnp.int32, (TB, NCP), 1)

  def body(t, carry):
    y_prev, hx1, cx1, hx2, cx2 = carry
    hx1, cx1 = lstm_fused(y_prev, hx1, cx1, wf1, b1)
    hx2, cx2 = lstm_fused(hx1, hx2, cx2, wf2, b2)

    # conv1x1_1 on hx2 (spatially broadcast attention query).
    attn_query = jnp.dot(hx2.astype(cd), wq, preferred_element_type=f32) + bq
    attn_w = jnp.tanh(attn_key + attn_query[:, None, :])           # (TB, HW, dk)
    # conv1x1_2 -> single-channel score.
    score = jnp.sum(attn_w * ws_b, axis=-1) + bs_scalar            # (TB, HW)
    # TODO(synk): per-sample valid_ratio masking (data_samples) not implemented;
    # equivalent to valid_ratio == 1.0 / data_samples=None.

    # softmax over flattened spatial positions.
    score = score - jnp.max(score, axis=-1, keepdims=True)
    p = jnp.exp(score)
    attn_prob = p / jnp.sum(p, axis=-1, keepdims=True)             # (TB, HW)

    # attention-weighted feature sum as a batched matmul (MXU).
    attn_feat = jnp.einsum(
        'bqh,bhc->bqc', attn_prob[:, None, :].astype(cd), feat_flat,
        preferred_element_type=f32)[:, 0, :]                       # (TB, C)

    # prediction linear (pred_concat=False -> input is attn_feat); the class
    # dim is padded lane-dense, padded logits carry a -1e30 bias.
    y = jnp.dot(attn_feat.astype(cd), wpred, preferred_element_type=f32) + bpred

    # greedy decode: first index of max logit -> embedding (one-hot matmul).
    y_max = jnp.max(y, axis=-1, keepdims=True)
    idx = jnp.min(jnp.where(y == y_max, class_iota, NCP), axis=-1)  # (TB,)
    one_hot = (class_iota == idx[:, None]).astype(cd)               # (TB, NCP)
    y_prev_new = jnp.dot(one_hot, emb, preferred_element_type=f32)  # (TB, E)

    # final nn.Softmax(-1) per step; padded columns give exp(-1e30) == 0.
    ey = jnp.exp(y - y_max)
    out_ref[t] = ey / jnp.sum(ey, axis=-1, keepdims=True)
    return (y_prev_new, hx1, cx1, hx2, cx2)

  # seq_len is static; fully unroll so the scheduler can overlap step t's
  # off-critical-path tail with step t+1's LSTM matmuls.
  lax.fori_loop(0, seq_len, body, (y_prev0, hx1, cx1, hx2, cx2), unroll=True)


def sar_decoder_forward(feat_nchw, out_enc, params, *, seq_len, start_idx=0,
                        matmul_dtype=jnp.float32):
  B, C, H, W = feat_nchw.shape
  HW = H * W
  E = out_enc.shape[1]
  dk = params['wq'].shape[1]
  NC = params['wpred'].shape[1]
  NCP = pl.cdiv(NC, 128) * 128
  cd = matmul_dtype

  feat = jnp.transpose(feat_nchw, (0, 2, 3, 1))                   # NHWC
  feat_flat = feat.reshape(B, HW, C).astype(cd)

  # conv3x3_1(feat) is loop-invariant: precompute the attention key once here
  # (a single XLA conv) instead of 9 unaligned shifted-slice matmuls in-kernel.
  attn_key = lax.conv_general_dilated(
      feat, params['wk'], (1, 1), 'SAME',
      dimension_numbers=('NHWC', 'HWIO', 'NHWC'),
      precision=lax.Precision.HIGHEST)
  attn_key = (attn_key + params['bk'][0][None, None, None, :]).reshape(B, HW, dk)

  # fuse each LSTMCell's two matmuls: gates = [x, h] @ [wih; whh] + b.
  wf1 = jnp.concatenate([params['wih1'], params['whh1']], axis=0).astype(cd)
  wf2 = jnp.concatenate([params['wih2'], params['whh2']], axis=0).astype(cd)

  # lane-dense class dimension: pad num_classes up to a multiple of 128;
  # padded logits get a -1e30 bias so softmax/argmax ignore them.
  pad = NCP - NC
  wpred = jnp.pad(params['wpred'], ((0, 0), (0, pad))).astype(cd)
  bpred = jnp.pad(params['bpred'], ((0, 0), (0, pad)), constant_values=-1e30)
  emb = jnp.pad(params['emb'], ((0, pad), (0, 0))).astype(cd)
  wq = params['wq'].astype(cd)

  # batch tiling: one grid axis over batch ("parallel" -> both TCs on v7x).
  TB = B if B % 8 else min(B, 8)

  kernel = functools.partial(sar_decoder_kernel, seq_len=seq_len,
                             start_idx=start_idx)

  def const(a):
    nd = a.ndim
    return pl.BlockSpec(a.shape, lambda b: (0,) * nd)

  out = pl.pallas_call(
      kernel,
      out_shape=jax.ShapeDtypeStruct((seq_len, B, NCP), jnp.float32),
      grid=(B // TB,),
      in_specs=[
          pl.BlockSpec((TB, HW, C), lambda b: (b, 0, 0)),     # feat_flat
          pl.BlockSpec((TB, E), lambda b: (b, 0)),            # out_enc
          pl.BlockSpec((TB, HW, dk), lambda b: (b, 0, 0)),    # attn_key
          const(wf1), const(params['b1']),
          const(wf2), const(params['b2']),
          const(wq), const(params['bq']),
          const(params['ws']), const(params['bs']),
          const(emb), const(wpred), const(bpred),
      ],
      out_specs=pl.BlockSpec((seq_len, TB, NCP), lambda b: (0, b, 0)),
      compiler_params=pltpu.CompilerParams(
          dimension_semantics=("parallel",)),
  )(feat_flat, out_enc, attn_key,
    wf1, params['b1'], wf2, params['b2'],
    wq, params['bq'], params['ws'], params['bs'],
    emb, wpred, bpred)
  return jnp.transpose(out[:, :, :NC], (1, 0, 2))                 # (N, T, NC)


def init_params(key, *, d_model, d_enc, d_k, num_classes):
  ks = jax.random.split(key, 20)
  s = 0.1
  n = lambda k, shp: (jax.random.normal(k, shp, jnp.float32) * s)
  p = {}
  # LSTMCell 1 & 2 (input = hidden = d_enc); weights stored pre-transposed,
  # biases folded (b_ih + b_hh).
  p['wih1'] = n(ks[0], (d_enc, 4 * d_enc))
  p['whh1'] = n(ks[1], (d_enc, 4 * d_enc))
  p['b1'] = n(ks[2], (1, 4 * d_enc))
  p['wih2'] = n(ks[3], (d_enc, 4 * d_enc))
  p['whh2'] = n(ks[4], (d_enc, 4 * d_enc))
  p['b2'] = n(ks[5], (1, 4 * d_enc))
  # conv1x1_1: Conv2d(d_enc -> d_k, 1x1) as a linear.
  p['wq'] = n(ks[6], (d_enc, d_k))
  p['bq'] = n(ks[7], (1, d_k))
  # conv3x3_1: Conv2d(d_model -> d_k, 3x3, pad=1); layout (ky, kx, Cin, Cout).
  p['wk'] = n(ks[8], (3, 3, d_model, d_k))
  p['bk'] = n(ks[9], (1, d_k))
  # conv1x1_2: Conv2d(d_k -> 1, 1x1).
  p['ws'] = n(ks[10], (1, d_k))
  p['bs'] = n(ks[11], (1, 1))
  # embedding (num_classes, d_enc) and prediction Linear(d_model -> num_classes).
  p['emb'] = n(ks[12], (num_classes, d_enc))
  p['wpred'] = n(ks[13], (d_model, num_classes))
  p['bpred'] = n(ks[14], (1, num_classes))
  return p


def reference_forward(feat_nchw, out_enc, params, *, seq_len, start_idx=0):
  """Pure-JAX reference of forward_test (same math, NCHW conv path)."""
  hp = jax.lax.Precision.HIGHEST
  dot = functools.partial(jnp.dot, precision=hp)
  B, C, H, W = feat_nchw.shape
  E = out_enc.shape[1]

  def lstm(x, h, c, wih, whh, b):
    g = dot(x, wih) + dot(h, whh) + b
    i, f, gg, o = (jax.nn.sigmoid(g[:, :E]), jax.nn.sigmoid(g[:, E:2 * E]),
                   jnp.tanh(g[:, 2 * E:3 * E]), jax.nn.sigmoid(g[:, 3 * E:]))
    c_new = f * c + i * gg
    return o * jnp.tanh(c_new), c_new

  w_conv = jnp.transpose(params['wk'], (3, 2, 0, 1))   # (dk, C, 3, 3) OIHW
  attn_key = lax.conv_general_dilated(
      feat_nchw, w_conv, (1, 1), 'SAME',
      dimension_numbers=('NCHW', 'OIHW', 'NCHW'), precision=hp)
  attn_key = attn_key + params['bk'][0][None, :, None, None]

  z = jnp.zeros((B, E), jnp.float32)
  hx1, cx1 = lstm(out_enc, z, z, params['wih1'], params['whh1'], params['b1'])
  hx2, cx2 = lstm(hx1, z, z, params['wih2'], params['whh2'], params['b2'])
  y_prev = jnp.broadcast_to(params['emb'][start_idx][None, :], (B, E))

  outs = []
  for _ in range(seq_len):
    hx1, cx1 = lstm(y_prev, hx1, cx1, params['wih1'], params['whh1'], params['b1'])
    hx2, cx2 = lstm(hx1, hx2, cx2, params['wih2'], params['whh2'], params['b2'])
    q = dot(hx2, params['wq']) + params['bq']                       # (B, dk)
    aw = jnp.tanh(attn_key + q[:, :, None, None])                   # (B, dk, H, W)
    score = (jnp.sum(aw * params['ws'][0][None, :, None, None], axis=1)
             + params['bs'][0, 0])                                  # (B, H, W)
    prob = jax.nn.softmax(score.reshape(B, H * W), axis=-1)
    attn_feat = jnp.sum(feat_nchw * prob.reshape(B, 1, H, W), axis=(2, 3))
    y = dot(attn_feat, params['wpred']) + params['bpred']           # (B, NC)
    idx = jnp.argmax(y, axis=-1)
    y_prev = params['emb'][idx]
    outs.append(jax.nn.softmax(y, axis=-1))
  return jnp.stack(outs, axis=1)


if __name__ == "__main__":
  B, d_model, H, W = 2, 32, 4, 8
  d_enc, d_k, num_classes, seq_len = 32, 32, 37, 8

  key = jax.random.PRNGKey(0)
  k_feat, k_enc, k_par = jax.random.split(key, 3)
  feat = jax.random.normal(k_feat, (B, d_model, H, W), jnp.float32)   # NCHW
  out_enc = jax.random.normal(k_enc, (B, d_enc), jnp.float32)
  params = init_params(k_par, d_model=d_model, d_enc=d_enc, d_k=d_k,
                       num_classes=num_classes)

  # default matmul_dtype=f32; pass jnp.bfloat16 on v6e/v7x for faster MXU.
  out = sar_decoder_forward(feat, out_enc, params, seq_len=seq_len)
  out = jax.block_until_ready(out)
  assert out.shape == (B, seq_len, num_classes)

  ref = jax.block_until_ready(
      reference_forward(feat, out_enc, params, seq_len=seq_len))
  np.testing.assert_allclose(np.asarray(out), np.asarray(ref),
                             rtol=1e-3, atol=1e-3)
  print("KERNEL_OK")
</pallas_src>

<mosaic_0001>
module attributes {stable_mosaic.version = 11 : i64} {
  func.func @sar_decoder_kernel(%arg0: i32, %arg1: memref<2x32x32xf32, #tpu.memory_space<vmem>>, %arg2: memref<2x32xf32, #tpu.memory_space<vmem>>, %arg3: memref<2x32x32xf32, #tpu.memory_space<vmem>>, %arg4: memref<64x128xf32, #tpu.memory_space<vmem>>, %arg5: memref<1x128xf32, #tpu.memory_space<vmem>>, %arg6: memref<64x128xf32, #tpu.memory_space<vmem>>, %arg7: memref<1x128xf32, #tpu.memory_space<vmem>>, %arg8: memref<32x32xf32, #tpu.memory_space<vmem>>, %arg9: memref<1x32xf32, #tpu.memory_space<vmem>>, %arg10: memref<1x32xf32, #tpu.memory_space<vmem>>, %arg11: memref<1x1xf32, #tpu.memory_space<vmem>>, %arg12: memref<128x32xf32, #tpu.memory_space<vmem>>, %arg13: memref<32x128xf32, #tpu.memory_space<vmem>>, %arg14: memref<1x128xf32, #tpu.memory_space<vmem>>, %arg15: memref<8x2x128xf32, #tpu.memory_space<vmem>>) attributes {dimension_semantics = [#tpu.dimension_semantics<parallel>], iteration_bounds = array<i64: 1>, scalar_prefetch = 0 : i64, scratch_operands = 0 : i64, tpu.core_type = #tpu.core_type<tc>, window_params = [{transform_indices = @transform_0, window_bounds = array<i64: 2, 32, 32>}, {transform_indices = @transform_1, window_bounds = array<i64: 2, 32>}, {transform_indices = @transform_2, window_bounds = array<i64: 2, 32, 32>}, {pipeline_mode = #tpu.pipeline_mode<synchronous>, transform_indices = @transform_3, window_bounds = array<i64: 64, 128>}, {pipeline_mode = #tpu.pipeline_mode<synchronous>, transform_indices = @transform_4, window_bounds = array<i64: 1, 128>}, {pipeline_mode = #tpu.pipeline_mode<synchronous>, transform_indices = @transform_5, window_bounds = array<i64: 64, 128>}, {pipeline_mode = #tpu.pipeline_mode<synchronous>, transform_indices = @transform_6, window_bounds = array<i64: 1, 128>}, {pipeline_mode = #tpu.pipeline_mode<synchronous>, transform_indices = @transform_7, window_bounds = array<i64: 32, 32>}, {pipeline_mode = #tpu.pipeline_mode<synchronous>, transform_indices = @transform_8, window_bounds = array<i64: 1, 32>}, {pipeline_mode = #tpu.pipeline_mode<synchronous>, transform_indices = @transform_9, window_bounds = array<i64: 1, 32>}, {pipeline_mode = #tpu.pipeline_mode<synchronous>, transform_indices = @transform_10, window_bounds = array<i64: 1, 1>}, {pipeline_mode = #tpu.pipeline_mode<synchronous>, transform_indices = @transform_11, window_bounds = array<i64: 128, 32>}, {pipeline_mode = #tpu.pipeline_mode<synchronous>, transform_indices = @transform_12, window_bounds = array<i64: 32, 128>}, {pipeline_mode = #tpu.pipeline_mode<synchronous>, transform_indices = @transform_13, window_bounds = array<i64: 1, 128>}, {transform_indices = @transform_14, window_bounds = array<i64: 8, 2, 128>}]} {
    %c0 = arith.constant 0 : index
    %c0_0 = arith.constant 0 : index
    %c0_1 = arith.constant 0 : index
    %0 = vector.load %arg1[%c0, %c0_0, %c0_1] : memref<2x32x32xf32, #tpu.memory_space<vmem>>, vector<2x32x32xf32>
    %c0_2 = arith.constant 0 : index
    %c0_3 = arith.constant 0 : index
    %c0_4 = arith.constant 0 : index
    %1 = vector.load %arg3[%c0_2, %c0_3, %c0_4] : memref<2x32x32xf32, #tpu.memory_space<vmem>>, vector<2x32x32xf32>
    %c0_5 = arith.constant 0 : index
    %c0_6 = arith.constant 0 : index
    %2 = vector.load %arg2[%c0_5, %c0_6] : memref<2x32xf32, #tpu.memory_space<vmem>>, vector<2x32xf32>
    %c0_7 = arith.constant 0 : index
    %c0_8 = arith.constant 0 : index
    %3 = vector.load %arg12[%c0_7, %c0_8] : memref<128x32xf32, #tpu.memory_space<vmem>>, vector<128x32xf32>
    %c0_9 = arith.constant 0 : index
    %c0_10 = arith.constant 0 : index
    %4 = vector.load %arg4[%c0_9, %c0_10] : memref<64x128xf32, #tpu.memory_space<vmem>>, vector<64x128xf32>
    %c0_11 = arith.constant 0 : index
    %c0_12 = arith.constant 0 : index
    %5 = vector.load %arg5[%c0_11, %c0_12] : memref<1x128xf32, #tpu.memory_space<vmem>>, vector<1x128xf32>
    %c0_13 = arith.constant 0 : index
    %c0_14 = arith.constant 0 : index
    %6 = vector.load %arg6[%c0_13, %c0_14] : memref<64x128xf32, #tpu.memory_space<vmem>>, vector<64x128xf32>
    %c0_15 = arith.constant 0 : index
    %c0_16 = arith.constant 0 : index
    %7 = vector.load %arg7[%c0_15, %c0_16] : memref<1x128xf32, #tpu.memory_space<vmem>>, vector<1x128xf32>
    %c0_17 = arith.constant 0 : index
    %c0_18 = arith.constant 0 : index
    %8 = vector.load %arg8[%c0_17, %c0_18] : memref<32x32xf32, #tpu.memory_space<vmem>>, vector<32x32xf32>
    %c0_19 = arith.constant 0 : index
    %c0_20 = arith.constant 0 : index
    %9 = vector.load %arg9[%c0_19, %c0_20] : memref<1x32xf32, #tpu.memory_space<vmem>>, vector<1x32xf32>
    %c0_21 = arith.constant 0 : index
    %c0_22 = arith.constant 0 : index
    %10 = vector.load %arg10[%c0_21, %c0_22] : memref<1x32xf32, #tpu.memory_space<vmem>>, vector<1x32xf32>
    %11 = vector.shape_cast %10 : vector<1x32xf32> to vector<1x1x32xf32>
    %c0_23 = arith.constant 0 : index
    %c0_24 = arith.constant 0 : index
    %12 = vector.load %arg11[%c0_23, %c0_24] : memref<1x1xf32, #tpu.memory_space<vmem>>, vector<1x1xf32>
    %13 = vector.extract %12[0, 0] : f32 from vector<1x1xf32>
    %c0_25 = arith.constant 0 : index
    %c0_26 = arith.constant 0 : index
    %14 = vector.load %arg13[%c0_25, %c0_26] : memref<32x128xf32, #tpu.memory_space<vmem>>, vector<32x128xf32>
    %c0_27 = arith.constant 0 : index
    %c0_28 = arith.constant 0 : index
    %15 = vector.load %arg14[%c0_27, %c0_28] : memref<1x128xf32, #tpu.memory_space<vmem>>, vector<1x128xf32>
    %16 = vector.extract_strided_slice %4 {offsets = [0, 0], sizes = [32, 128], strides = [1, 1]} : vector<64x128xf32> to vector<32x128xf32>
    %cst = arith.constant dense<0.000000e+00> : vector<2x128xf32>
    %17 = tpu.matmul %2, %16, %cst {dimension_numbers = #tpu.dot_dimension_numbers<[1], [0], [0], [1], [0, 0, 1, 1], [], []>} : vector<2x32xf32>, vector<32x128xf32>, vector<2x128xf32> -> vector<2x128xf32>
    %18 = vector.broadcast %5 : vector<1x128xf32> to vector<2x128xf32>
    %19 = arith.addf %17, %18 : vector<2x128xf32>
    %20 = vector.extract_strided_slice %19 {offsets = [0, 0], sizes = [2, 32], strides = [1, 1]} : vector<2x128xf32> to vector<2x32xf32>
    %21 = arith.negf %20 : vector<2x32xf32>
    %22 = math.exp %21 : vector<2x32xf32>
    %cst_29 = arith.constant 1.000000e+00 : f32
    %23 = vector.broadcast %cst_29 : f32 to vector<2x32xf32>
    %24 = arith.addf %23, %22 : vector<2x32xf32>
    %25 = arith.divf %23, %24 : vector<2x32xf32>
    %26 = vector.extract_strided_slice %19 {offsets = [0, 64], sizes = [2, 32], strides = [1, 1]} : vector<2x128xf32> to vector<2x32xf32>
    %27 = math.tanh %26 : vector<2x32xf32>
    %28 = vector.extract_strided_slice %19 {offsets = [0, 96], sizes = [2, 32], strides = [1, 1]} : vector<2x128xf32> to vector<2x32xf32>
    %29 = arith.negf %28 : vector<2x32xf32>
    %30 = math.exp %29 : vector<2x32xf32>
    %cst_30 = arith.constant 1.000000e+00 : f32
    %31 = vector.broadcast %cst_30 : f32 to vector<2x32xf32>
    %32 = arith.addf %31, %30 : vector<2x32xf32>
    %33 = arith.divf %31, %32 : vector<2x32xf32>
    %34 = arith.mulf %25, %27 : vector<2x32xf32>
    %35 = math.tanh %34 : vector<2x32xf32>
    %36 = arith.mulf %33, %35 : vector<2x32xf32>
    %37 = vector.extract_strided_slice %6 {offsets = [0, 0], sizes = [32, 128], strides = [1, 1]} : vector<64x128xf32> to vector<32x128xf32>
    %cst_31 = arith.constant dense<0.000000e+00> : vector<2x128xf32>
    %38 = tpu.matmul %36, %37, %cst_31 {dimension_numbers = #tpu.dot_dimension_numbers<[1], [0], [0], [1], [0, 0, 1, 1], [], []>} : vector<2x32xf32>, vector<32x128xf32>, vector<2x128xf32> -> vector<2x128xf32>
    %39 = vector.broadcast %7 : vector<1x128xf32> to vector<2x128xf32>
    %40 = arith.addf %38, %39 : vector<2x128xf32>
    %41 = vector.extract_strided_slice %40 {offsets = [0, 0], sizes = [2, 32], strides = [1, 1]} : vector<2x128xf32> to vector<2x32xf32>
    %42 = arith.negf %41 : vector<2x32xf32>
    %43 = math.exp %42 : vector<2x32xf32>
    %cst_32 = arith.constant 1.000000e+00 : f32
    %44 = vector.broadcast %cst_32 : f32 to vector<2x32xf32>
    %45 = arith.addf %44, %43 : vector<2x32xf32>
    %46 = arith.divf %44, %45 : vector<2x32xf32>
    %47 = vector.extract_strided_slice %40 {offsets = [0, 64], sizes = [2, 32], strides = [1, 1]} : vector<2x128xf32> to vector<2x32xf32>
    %48 = math.tanh %47 : vector<2x32xf32>
    %49 = vector.extract_strided_slice %40 {offsets = [0, 96], sizes = [2, 32], strides = [1, 1]} : vector<2x128xf32> to vector<2x32xf32>
    %50 = arith.negf %49 : vector<2x32xf32>
    %51 = math.exp %50 : vector<2x32xf32>
    %cst_33 = arith.constant 1.000000e+00 : f32
    %52 = vector.broadcast %cst_33 : f32 to vector<2x32xf32>
    %53 = arith.addf %52, %51 : vector<2x32xf32>
    %54 = arith.divf %52, %53 : vector<2x32xf32>
    %55 = arith.mulf %46, %48 : vector<2x32xf32>
    %56 = math.tanh %55 : vector<2x32xf32>
    %57 = arith.mulf %54, %56 : vector<2x32xf32>
    %58 = vector.extract_strided_slice %3 {offsets = [0, 0], sizes = [1, 32], strides = [1, 1]} : vector<128x32xf32> to vector<1x32xf32>
    %59 = vector.shape_cast %58 : vector<1x32xf32> to vector<32xf32>
    %60 = vector.shape_cast %59 : vector<32xf32> to vector<1x32xf32>
    %61 = vector.shape_cast %60 : vector<1x32xf32> to vector<1x32xf32>
    %62 = vector.broadcast %61 : vector<1x32xf32> to vector<2x32xf32>
    %63 = tpu.iota {dimensions = array<i32: 1>} : vector<2x128xi32>
    %c0_i32 = arith.constant 0 : i32
    %64 = tpu.concatenate %62, %36 in 1 : vector<2x32xf32>, vector<2x32xf32> -> vector<2x64xf32>
    %cst_34 = arith.constant dense<0.000000e+00> : vector<2x128xf32>
    %65 = tpu.matmul %64, %4, %cst_34 {dimension_numbers = #tpu.dot_dimension_numbers<[1], [0], [0], [1], [0, 0, 1, 1], [], []>} : vector<2x64xf32>, vector<64x128xf32>, vector<2x128xf32> -> vector<2x128xf32>
    %66 = vector.broadcast %5 : vector<1x128xf32> to vector<2x128xf32>
    %67 = arith.addf %65, %66 : vector<2x128xf32>
    %68 = vector.extract_strided_slice %67 {offsets = [0, 0], sizes = [2, 32], strides = [1, 1]} : vector<2x128xf32> to vector<2x32xf32>
    %69 = arith.negf %68 : vector<2x32xf32>
    %70 = math.exp %69 : vector<2x32xf32>
    %cst_35 = arith.constant 1.000000e+00 : f32
    %71 = vector.broadcast %cst_35 : f32 to vector<2x32xf32>
    %72 = arith.addf %71, %70 : vector<2x32xf32>
    %73 = arith.divf %71, %72 : vector<2x32xf32>
    %74 = vector.extract_strided_slice %67 {offsets = [0, 32], sizes = [2, 32], strides = [1, 1]} : vector<2x128xf32> to vector<2x32xf32>
    %75 = arith.negf %74 : vector<2x32xf32>
    %76 = math.exp %75 : vector<2x32xf32>
    %cst_36 = arith.constant 1.000000e+00 : f32
    %77 = vector.broadcast %cst_36 : f32 to vector<2x32xf32>
    %78 = arith.addf %77, %76 : vector<2x32xf32>
    %79 = arith.divf %77, %78 : vector<2x32xf32>
    %80 = vector.extract_strided_slice %67 {offsets = [0, 64], sizes = [2, 32], strides = [1, 1]} : vector<2x128xf32> to vector<2x32xf32>
    %81 = math.tanh %80 : vector<2x32xf32>
    %82 = vector.extract_strided_slice %67 {offsets = [0, 96], sizes = [2, 32], strides = [1, 1]} : vector<2x128xf32> to vector<2x32xf32>
    %83 = arith.negf %82 : vector<2x32xf32>
    %84 = math.exp %83 : vector<2x32xf32>
    %cst_37 = arith.constant 1.000000e+00 : f32
    %85 = vector.broadcast %cst_37 : f32 to vector<2x32xf32>
    %86 = arith.addf %85, %84 : vector<2x32xf32>
    %87 = arith.divf %85, %86 : vector<2x32xf32>
    %88 = arith.mulf %79, %34 : vector<2x32xf32>
    %89 = arith.mulf %73, %81 : vector<2x32xf32>
    %90 = arith.addf %88, %89 : vector<2x32xf32>
    %91 = math.tanh %90 : vector<2x32xf32>
    %92 = arith.mulf %87, %91 : vector<2x32xf32>
    %93 = tpu.concatenate %92, %57 in 1 : vector<2x32xf32>, vector<2x32xf32> -> vector<2x64xf32>
    %cst_38 = arith.constant dense<0.000000e+00> : vector<2x128xf32>
    %94 = tpu.matmul %93, %6, %cst_38 {dimension_numbers = #tpu.dot_dimension_numbers<[1], [0], [0], [1], [0, 0, 1, 1], [], []>} : vector<2x64xf32>, vector<64x128xf32>, vector<2x128xf32> -> vector<2x128xf32>
    %95 = vector.broadcast %7 : vector<1x128xf32> to vector<2x128xf32>
    %96 = arith.addf %94, %95 : vector<2x128xf32>
    %97 = vector.extract_strided_slice %96 {offsets = [0, 0], sizes = [2, 32], strides = [1, 1]} : vector<2x128xf32> to vector<2x32xf32>
    %98 = arith.negf %97 : vector<2x32xf32>
    %99 = math.exp %98 : vector<2x32xf32>
    %cst_39 = arith.constant 1.000000e+00 : f32
    %100 = vector.broadcast %cst_39 : f32 to vector<2x32xf32>
    %101 = arith.addf %100, %99 : vector<2x32xf32>
    %102 = arith.divf %100, %101 : vector<2x32xf32>
    %103 = vector.extract_strided_slice %96 {offsets = [0, 32], sizes = [2, 32], strides = [1, 1]} : vector<2x128xf32> to vector<2x32xf32>
    %104 = arith.negf %103 : vector<2x32xf32>
    %105 = math.exp %104 : vector<2x32xf32>
    %cst_40 = arith.constant 1.000000e+00 : f32
    %106 = vector.broadcast %cst_40 : f32 to vector<2x32xf32>
    %107 = arith.addf %106, %105 : vector<2x32xf32>
    %108 = arith.divf %106, %107 : vector<2x32xf32>
    %109 = vector.extract_strided_slice %96 {offsets = [0, 64], sizes = [2, 32], strides = [1, 1]} : vector<2x128xf32> to vector<2x32xf32>
    %110 = math.tanh %109 : vector<2x32xf32>
    %111 = vector.extract_strided_slice %96 {offsets = [0, 96], sizes = [2, 32], strides = [1, 1]} : vector<2x128xf32> to vector<2x32xf32>
    %112 = arith.negf %111 : vector<2x32xf32>
    %113 = math.exp %112 : vector<2x32xf32>
    %cst_41 = arith.constant 1.000000e+00 : f32
    %114 = vector.broadcast %cst_41 : f32 to vector<2x32xf32>
    %115 = arith.addf %114, %113 : vector<2x32xf32>
    %116 = arith.divf %114, %115 : vector<2x32xf32>
    %117 = arith.mulf %108, %55 : vector<2x32xf32>
    %118 = arith.mulf %102, %110 : vector<2x32xf32>
    %119 = arith.addf %117, %118 : vector<2x32xf32>
    %120 = math.tanh %119 : vector<2x32xf32>
    %121 = arith.mulf %116, %120 : vector<2x32xf32>
    %cst_42 = arith.constant dense<0.000000e+00> : vector<2x32xf32>
    %122 = tpu.matmul %121, %8, %cst_42 {dimension_numbers = #tpu.dot_dimension_numbers<[1], [0], [0], [1], [0, 0, 1, 1], [], []>} : vector<2x32xf32>, vector<32x32xf32>, vector<2x32xf32> -> vector<2x32xf32>
    %123 = vector.broadcast %9 : vector<1x32xf32> to vector<2x32xf32>
    %124 = arith.addf %122, %123 : vector<2x32xf32>
    %125 = vector.shape_cast %124 : vector<2x32xf32> to vector<2x1x32xf32>
    %126 = vector.broadcast %125 : vector<2x1x32xf32> to vector<2x32x32xf32>
    %127 = arith.addf %1, %126 : vector<2x32x32xf32>
    %128 = math.tanh %127 : vector<2x32x32xf32>
    %129 = vector.broadcast %11 : vector<1x1x32xf32> to vector<2x32x32xf32>
    %130 = arith.mulf %128, %129 : vector<2x32x32xf32>
    %cst_43 = arith.constant dense<0.000000e+00> : vector<2x32xf32>
    %131 = vector.multi_reduction <add>, %130, %cst_43 [2] : vector<2x32x32xf32> to vector<2x32xf32>
    %132 = vector.broadcast %13 : f32 to vector<2x32xf32>
    %133 = arith.addf %131, %132 : vector<2x32xf32>
    %cst_44 = arith.constant dense<0xFF800000> : vector<2xf32>
    %134 = vector.multi_reduction <maximumf>, %133, %cst_44 [1] : vector<2x32xf32> to vector<2xf32>
    %135 = vector.shape_cast %134 : vector<2xf32> to vector<2x1xf32>
    %136 = vector.broadcast %135 : vector<2x1xf32> to vector<2x32xf32>
    %137 = arith.subf %133, %136 : vector<2x32xf32>
    %138 = math.exp %137 : vector<2x32xf32>
    %cst_45 = arith.constant dense<0.000000e+00> : vector<2xf32>
    %139 = vector.multi_reduction <add>, %138, %cst_45 [1] : vector<2x32xf32> to vector<2xf32>
    %140 = vector.shape_cast %139 : vector<2xf32> to vector<2x1xf32>
    %141 = vector.broadcast %140 : vector<2x1xf32> to vector<2x32xf32>
    %142 = arith.divf %138, %141 : vector<2x32xf32>
    %143 = vector.shape_cast %142 : vector<2x32xf32> to vector<2x1x32xf32>
    "tpu.trace_start"() <{level = 10 : i32, message = "bqh,bhc->bqc"}> : () -> ()
    %cst_46 = arith.constant dense<0.000000e+00> : vector<2x1x32xf32>
    %144 = tpu.matmul %143, %0, %cst_46 {dimension_numbers = #tpu.dot_dimension_numbers<[2], [1], [1], [2], [0, 0, 0, 1, 1, 2], [0], [0]>} : vector<2x1x32xf32>, vector<2x32x32xf32>, vector<2x1x32xf32> -> vector<2x1x32xf32>
    "tpu.trace_stop"() : () -> ()
    %145 = vector.shape_cast %144 : vector<2x1x32xf32> to vector<2x32xf32>
    %cst_47 = arith.constant dense<0.000000e+00> : vector<2x128xf32>
    %146 = tpu.matmul %145, %14, %cst_47 {dimension_numbers = #tpu.dot_dimension_numbers<[1], [0], [0], [1], [0, 0, 1, 1], [], []>} : vector<2x32xf32>, vector<32x128xf32>, vector<2x128xf32> -> vector<2x128xf32>
    %147 = vector.broadcast %15 : vector<1x128xf32> to vector<2x128xf32>
    %148 = arith.addf %146, %147 : vector<2x128xf32>
    %cst_48 = arith.constant dense<0xFF800000> : vector<2xf32>
    %149 = vector.multi_reduction <maximumf>, %148, %cst_48 [1] : vector<2x128xf32> to vector<2xf32>
    %150 = vector.shape_cast %149 : vector<2xf32> to vector<2x1xf32>
    %151 = vector.broadcast %150 : vector<2x1xf32> to vector<2x128xf32>
    %152 = arith.cmpf oeq, %148, %151 : vector<2x128xf32>
    %c128_i32 = arith.constant 128 : i32
    %153 = vector.broadcast %c128_i32 : i32 to vector<2x128xi32>
    %154 = arith.select %152, %63, %153 : vector<2x128xi1>, vector<2x128xi32>
    %cst_49 = arith.constant dense<2147483647> : vector<2xi32>
    %155 = vector.multi_reduction <minsi>, %154, %cst_49 [1] : vector<2x128xi32> to vector<2xi32>
    %156 = vector.shape_cast %155 : vector<2xi32> to vector<2x1xi32>
    %157 = vector.broadcast %156 : vector<2x1xi32> to vector<2x128xi32>
    %158 = arith.cmpi eq, %63, %157 : vector<2x128xi32>
    %159 = arith.extui %158 : vector<2x128xi1> to vector<2x128xi32>
    %160 = arith.sitofp %159 : vector<2x128xi32> to vector<2x128xf32>
    %cst_50 = arith.constant dense<0.000000e+00> : vector<2x32xf32>
    %161 = tpu.matmul %160, %3, %cst_50 {dimension_numbers = #tpu.dot_dimension_numbers<[1], [0], [0], [1], [0, 0, 1, 1], [], []>} : vector<2x128xf32>, vector<128x32xf32>, vector<2x32xf32> -> vector<2x32xf32>
    %162 = vector.broadcast %150 : vector<2x1xf32> to vector<2x128xf32>
    %163 = arith.subf %148, %162 : vector<2x128xf32>
    %164 = math.exp %163 : vector<2x128xf32>
    %cst_51 = arith.constant dense<0.000000e+00> : vector<2xf32>
    %165 = vector.multi_reduction <add>, %164, %cst_51 [1] : vector<2x128xf32> to vector<2xf32>
    %166 = vector.shape_cast %165 : vector<2xf32> to vector<2x1xf32>
    %167 = vector.broadcast %166 : vector<2x1xf32> to vector<2x128xf32>
    %168 = arith.divf %164, %167 : vector<2x128xf32>
    %169 = arith.index_cast %c0_i32 : i32 to index
    %c0_52 = arith.constant 0 : index
    %c0_53 = arith.constant 0 : index
    %170 = vector.load %arg15[%169, %c0_52, %c0_53] : memref<8x2x128xf32, #tpu.memory_space<vmem>>, vector<1x2x128xf32>
    %171 = vector.shape_cast %170 : vector<1x2x128xf32> to vector<2x128xf32>
    %172 = vector.shape_cast %168 : vector<2x128xf32> to vector<1x2x128xf32>
    tpu.vector_store %arg15[%169, %c0_52, %c0_53], %172 {strides = array<i32>} : memref<8x2x128xf32, #tpu.memory_space<vmem>>, vector<1x2x128xf32>,
    %c1_i32 = arith.constant 1 : i32
    %173 = tpu.concatenate %161, %92 in 1 : vector<2x32xf32>, vector<2x32xf32> -> vector<2x64xf32>
    %cst_54 = arith.constant dense<0.000000e+00> : vector<2x128xf32>
    %174 = tpu.matmul %173, %4, %cst_54 {dimension_numbers = #tpu.dot_dimension_numbers<[1], [0], [0], [1], [0, 0, 1, 1], [], []>} : vector<2x64xf32>, vector<64x128xf32>, vector<2x128xf32> -> vector<2x128xf32>
    %175 = vector.broadcast %5 : vector<1x128xf32> to vector<2x128xf32>
    %176 = arith.addf %174, %175 : vector<2x128xf32>
    %177 = vector.extract_strided_slice %176 {offsets = [0, 0], sizes = [2, 32], strides = [1, 1]} : vector<2x128xf32> to vector<2x32xf32>
    %178 = arith.negf %177 : vector<2x32xf32>
    %179 = math.exp %178 : vector<2x32xf32>
    %cst_55 = arith.constant 1.000000e+00 : f32
    %180 = vector.broadcast %cst_55 : f32 to vector<2x32xf32>
    %181 = arith.addf %180, %179 : vector<2x32xf32>
    %182 = arith.divf %180, %181 : vector<2x32xf32>
    %183 = vector.extract_strided_slice %176 {offsets = [0, 32], sizes = [2, 32], strides = [1, 1]} : vector<2x128xf32> to vector<2x32xf32>
    %184 = arith.negf %183 : vector<2x32xf32>
    %185 = math.exp %184 : vector<2x32xf32>
    %cst_56 = arith.constant 1.000000e+00 : f32
    %186 = vector.broadcast %cst_56 : f32 to vector<2x32xf32>
    %187 = arith.addf %186, %185 : vector<2x32xf32>
    %188 = arith.divf %186, %187 : vector<2x32xf32>
    %189 = vector.extract_strided_slice %176 {offsets = [0, 64], sizes = [2, 32], strides = [1, 1]} : vector<2x128xf32> to vector<2x32xf32>
    %190 = math.tanh %189 : vector<2x32xf32>
    %191 = vector.extract_strided_slice %176 {offsets = [0, 96], sizes = [2, 32], strides = [1, 1]} : vector<2x128xf32> to vector<2x32xf32>
    %192 = arith.negf %191 : vector<2x32xf32>
    %193 = math.exp %192 : vector<2x32xf32>
    %cst_57 = arith.constant 1.000000e+00 : f32
    %194 = vector.broadcast %cst_57 : f32 to vector<2x32xf32>
    %195 = arith.addf %194, %193 : vector<2x32xf32>
    %196 = arith.divf %194, %195 : vector<2x32xf32>
    %197 = arith.mulf %188, %90 : vector<2x32xf32>
    %198 = arith.mulf %182, %190 : vector<2x32xf32>
    %199 = arith.addf %197, %198 : vector<2x32xf32>
    %200 = math.tanh %199 : vector<2x32xf32>
    %201 = arith.mulf %196, %200 : vector<2x32xf32>
    %202 = tpu.concatenate %201, %121 in 1 : vector<2x32xf32>, vector<2x32xf32> -> vector<2x64xf32>
    %cst_58 = arith.constant dense<0.000000e+00> : vector<2x128xf32>
    %203 = tpu.matmul %202, %6, %cst_58 {dimension_numbers = #tpu.dot_dimension_numbers<[1], [0], [0], [1], [0, 0, 1, 1], [], []>} : vector<2x64xf32>, vector<64x128xf32>, vector<2x128xf32> -> vector<2x128xf32>
    %204 = vector.broadcast %7 : vector<1x128xf32> to vector<2x128xf32>
    %205 = arith.addf %203, %204 : vector<2x128xf32>
    %206 = vector.extract_strided_slice %205 {offsets = [0, 0], sizes = [2, 32], strides = [1, 1]} : vector<2x128xf32> to vector<2x32xf32>
    %207 = arith.negf %206 : vector<2x32xf32>
    %208 = math.exp %207 : vector<2x32xf32>
    %cst_59 = arith.constant 1.000000e+00 : f32
    %209 = vector.broadcast %cst_59 : f32 to vector<2x32xf32>
    %210 = arith.addf %209, %208 : vector<2x32xf32>
    %211 = arith.divf %209, %210 : vector<2x32xf32>
    %212 = vector.extract_strided_slice %205 {offsets = [0, 32], sizes = [2, 32], strides = [1, 1]} : vector<2x128xf32> to vector<2x32xf32>
    %213 = arith.negf %212 : vector<2x32xf32>
    %214 = math.exp %213 : vector<2x32xf32>
    %cst_60 = arith.constant 1.000000e+00 : f32
    %215 = vector.broadcast %cst_60 : f32 to vector<2x32xf32>
    %216 = arith.addf %215, %214 : vector<2x32xf32>
    %217 = arith.divf %215, %216 : vector<2x32xf32>
    %218 = vector.extract_strided_slice %205 {offsets = [0, 64], sizes = [2, 32], strides = [1, 1]} : vector<2x128xf32> to vector<2x32xf32>
    %219 = math.tanh %218 : vector<2x32xf32>
    %220 = vector.extract_strided_slice %205 {offsets = [0, 96], sizes = [2, 32], strides = [1, 1]} : vector<2x128xf32> to vector<2x32xf32>
    %221 = arith.negf %220 : vector<2x32xf32>
    %222 = math.exp %221 : vector<2x32xf32>
    %cst_61 = arith.constant 1.000000e+00 : f32
    %223 = vector.broadcast %cst_61 : f32 to vector<2x32xf32>
    %224 = arith.addf %223, %222 : vector<2x32xf32>
    %225 = arith.divf %223, %224 : vector<2x32xf32>
    %226 = arith.mulf %217, %119 : vector<2x32xf32>
    %227 = arith.mulf %211, %219 : vector<2x32xf32>
    %228 = arith.addf %226, %227 : vector<2x32xf32>
    %229 = math.tanh %228 : vector<2x32xf32>
    %230 = arith.mulf %225, %229 : vector<2x32xf32>
    %cst_62 = arith.constant dense<0.000000e+00> : vector<2x32xf32>
    %231 = tpu.matmul %230, %8, %cst_62 {dimension_numbers = #tpu.dot_dimension_numbers<[1], [0], [0], [1], [0, 0, 1, 1], [], []>} : vector<2x32xf32>, vector<32x32xf32>, vector<2x32xf32> -> vector<2x32xf32>
    %232 = vector.broadcast %9 : vector<1x32xf32> to vector<2x32xf32>
    %233 = arith.addf %231, %232 : vector<2x32xf32>
    %234 = vector.shape_cast %233 : vector<2x32xf32> to vector<2x1x32xf32>
    %235 = vector.broadcast %234 : vector<2x1x32xf32> to vector<2x32x32xf32>
    %236 = arith.addf %1, %235 : vector<2x32x32xf32>
    %237 = math.tanh %236 : vector<2x32x32xf32>
    %238 = vector.broadcast %11 : vector<1x1x32xf32> to vector<2x32x32xf32>
    %239 = arith.mulf %237, %238 : vector<2x32x32xf32>
    %cst_63 = arith.constant dense<0.000000e+00> : vector<2x32xf32>
    %240 = vector.multi_reduction <add>, %239, %cst_63 [2] : vector<2x32x32xf32> to vector<2x32xf32>
    %241 = vector.broadcast %13 : f32 to vector<2x32xf32>
    %242 = arith.addf %240, %241 : vector<2x32xf32>
    %cst_64 = arith.constant dense<0xFF800000> : vector<2xf32>
    %243 = vector.multi_reduction <maximumf>, %242, %cst_64 [1] : vector<2x32xf32> to vector<2xf32>
    %244 = vector.shape_cast %243 : vector<2xf32> to vector<2x1xf32>
    %245 = vector.broadcast %244 : vector<2x1xf32> to vector<2x32xf32>
    %246 = arith.subf %242, %245 : vector<2x32xf32>
    %247 = math.exp %246 : vector<2x32xf32>
    %cst_65 = arith.constant dense<0.000000e+00> : vector<2xf32>
    %248 = vector.multi_reduction <add>, %247, %cst_65 [1] : vector<2x32xf32> to vector<2xf32>
    %249 = vector.shape_cast %248 : vector<2xf32> to vector<2x1xf32>
    %250 = vector.broadcast %249 : vector<2x1xf32> to vector<2x32xf32>
    %251 = arith.divf %247, %250 : vector<2x32xf32>
    %252 = vector.shape_cast %251 : vector<2x32xf32> to vector<2x1x32xf32>
    "tpu.trace_start"() <{level = 10 : i32, message = "bqh,bhc->bqc"}> : () -> ()
    %cst_66 = arith.constant dense<0.000000e+00> : vector<2x1x32xf32>
    %253 = tpu.matmul %252, %0, %cst_66 {dimension_numbers = #tpu.dot_dimension_numbers<[2], [1], [1], [2], [0, 0, 0, 1, 1, 2], [0], [0]>} : vector<2x1x32xf32>, vector<2x32x32xf32>, vector<2x1x32xf32> -> vector<2x1x32xf32>
    "tpu.trace_stop"() : () -> ()
    %254 = vector.shape_cast %253 : vector<2x1x32xf32> to vector<2x32xf32>
    %cst_67 = arith.constant dense<0.000000e+00> : vector<2x128xf32>
    %255 = tpu.matmul %254, %14, %cst_67 {dimension_numbers = #tpu.dot_dimension_numbers<[1], [0], [0], [1], [0, 0, 1, 1], [], []>} : vector<2x32xf32>, vector<32x128xf32>, vector<2x128xf32> -> vector<2x128xf32>
    %256 = vector.broadcast %15 : vector<1x128xf32> to vector<2x128xf32>
    %257 = arith.addf %255, %256 : vector<2x128xf32>
    %cst_68 = arith.constant dense<0xFF800000> : vector<2xf32>
    %258 = vector.multi_reduction <maximumf>, %257, %cst_68 [1] : vector<2x128xf32> to vector<2xf32>
    %259 = vector.shape_cast %258 : vector<2xf32> to vector<2x1xf32>
    %260 = vector.broadcast %259 : vector<2x1xf32> to vector<2x128xf32>
    %261 = arith.cmpf oeq, %257, %260 : vector<2x128xf32>
    %c128_i32_69 = arith.constant 128 : i32
    %262 = vector.broadcast %c128_i32_69 : i32 to vector<2x128xi32>
    %263 = arith.select %261, %63, %262 : vector<2x128xi1>, vector<2x128xi32>
    %cst_70 = arith.constant dense<2147483647> : vector<2xi32>
    %264 = vector.multi_reduction <minsi>, %263, %cst_70 [1] : vector<2x128xi32> to vector<2xi32>
    %265 = vector.shape_cast %264 : vector<2xi32> to vector<2x1xi32>
    %266 = vector.broadcast %265 : vector<2x1xi32> to vector<2x128xi32>
    %267 = arith.cmpi eq, %63, %266 : vector<2x128xi32>
    %268 = arith.extui %267 : vector<2x128xi1> to vector<2x128xi32>
    %269 = arith.sitofp %268 : vector<2x128xi32> to vector<2x128xf32>
    %cst_71 = arith.constant dense<0.000000e+00> : vector<2x32xf32>
    %270 = tpu.matmul %269, %3, %cst_71 {dimension_numbers = #tpu.dot_dimension_numbers<[1], [0], [0], [1], [0, 0, 1, 1], [], []>} : vector<2x128xf32>, vector<128x32xf32>, vector<2x32xf32> -> vector<2x32xf32>
    %271 = vector.broadcast %259 : vector<2x1xf32> to vector<2x128xf32>
    %272 = arith.subf %257, %271 : vector<2x128xf32>
    %273 = math.exp %272 : vector<2x128xf32>
    %cst_72 = arith.constant dense<0.000000e+00> : vector<2xf32>
    %274 = vector.multi_reduction <add>, %273, %cst_72 [1] : vector<2x128xf32> to vector<2xf32>
    %275 = vector.shape_cast %274 : vector<2xf32> to vector<2x1xf32>
    %276 = vector.broadcast %275 : vector<2x1xf32> to vector<2x128xf32>
    %277 = arith.divf %273, %276 : vector<2x128xf32>
    %278 = arith.index_cast %c1_i32 : i32 to index
    %c0_73 = arith.constant 0 : index
    %c0_74 = arith.constant 0 : index
    %279 = vector.load %arg15[%278, %c0_73, %c0_74] : memref<8x2x128xf32, #tpu.memory_space<vmem>>, vector<1x2x128xf32>
    %280 = vector.shape_cast %279 : vector<1x2x128xf32> to vector<2x128xf32>
    %281 = vector.shape_cast %277 : vector<2x128xf32> to vector<1x2x128xf32>
    tpu.vector_store %arg15[%278, %c0_73, %c0_74], %281 {strides = array<i32>} : memref<8x2x128xf32, #tpu.memory_space<vmem>>, vector<1x2x128xf32>,
    %c2_i32 = arith.constant 2 : i32
    %282 = tpu.concatenate %270, %201 in 1 : vector<2x32xf32>, vector<2x32xf32> -> vector<2x64xf32>
    %cst_75 = arith.constant dense<0.000000e+00> : vector<2x128xf32>
    %283 = tpu.matmul %282, %4, %cst_75 {dimension_numbers = #tpu.dot_dimension_numbers<[1], [0], [0], [1], [0, 0, 1, 1], [], []>} : vector<2x64xf32>, vector<64x128xf32>, vector<2x128xf32> -> vector<2x128xf32>
    %284 = vector.broadcast %5 : vector<1x128xf32> to vector<2x128xf32>
    %285 = arith.addf %283, %284 : vector<2x128xf32>
    %286 = vector.extract_strided_slice %285 {offsets = [0, 0], sizes = [2, 32], strides = [1, 1]} : vector<2x128xf32> to vector<2x32xf32>
    %287 = arith.negf %286 : vector<2x32xf32>
    %288 = math.exp %287 : vector<2x32xf32>
    %cst_76 = arith.constant 1.000000e+00 : f32
    %289 = vector.broadcast %cst_76 : f32 to vector<2x32xf32>
    %290 = arith.addf %289, %288 : vector<2x32xf32>
    %291 = arith.divf %289, %290 : vector<2x32xf32>
    %292 = vector.extract_strided_slice %285 {offsets = [0, 32], sizes = [2, 32], strides = [1, 1]} : vector<2x128xf32> to vector<2x32xf32>
    %293 = arith.negf %292 : vector<2x32xf32>
    %294 = math.exp %293 : vector<2x32xf32>
    %cst_77 = arith.constant 1.000000e+00 : f32
    %295 = vector.broadcast %cst_77 : f32 to vector<2x32xf32>
    %296 = arith.addf %295, %294 : vector<2x32xf32>
    %297 = arith.divf %295, %296 : vector<2x32xf32>
    %298 = vector.extract_strided_slice %285 {offsets = [0, 64], sizes = [2, 32], strides = [1, 1]} : vector<2x128xf32> to vector<2x32xf32>
    %299 = math.tanh %298 : vector<2x32xf32>
    %300 = vector.extract_strided_slice %285 {offsets = [0, 96], sizes = [2, 32], strides = [1, 1]} : vector<2x128xf32> to vector<2x32xf32>
    %301 = arith.negf %300 : vector<2x32xf32>
    %302 = math.exp %301 : vector<2x32xf32>
    %cst_78 = arith.constant 1.000000e+00 : f32
    %303 = vector.broadcast %cst_78 : f32 to vector<2x32xf32>
    %304 = arith.addf %303, %302 : vector<2x32xf32>
    %305 = arith.divf %303, %304 : vector<2x32xf32>
    %306 = arith.mulf %297, %199 : vector<2x32xf32>
    %307 = arith.mulf %291, %299 : vector<2x32xf32>
    %308 = arith.addf %306, %307 : vector<2x32xf32>
    %309 = math.tanh %308 : vector<2x32xf32>
    %310 = arith.mulf %305, %309 : vector<2x32xf32>
    %311 = tpu.concatenate %310, %230 in 1 : vector<2x32xf32>, vector<2x32xf32> -> vector<2x64xf32>
    %cst_79 = arith.constant dense<0.000000e+00> : vector<2x128xf32>
    %312 = tpu.matmul %311, %6, %cst_79 {dimension_numbers = #tpu.dot_dimension_numbers<[1], [0], [0], [1], [0, 0, 1, 1], [], []>} : vector<2x64xf32>, vector<64x128xf32>, vector<2x128xf32> -> vector<2x128xf32>
    %313 = vector.broadcast %7 : vector<1x128xf32> to vector<2x128xf32>
    %314 = arith.addf %312, %313 : vector<2x128xf32>
    %315 = vector.extract_strided_slice %314 {offsets = [0, 0], sizes = [2, 32], strides = [1, 1]} : vector<2x128xf32> to vector<2x32xf32>
    %316 = arith.negf %315 : vector<2x32xf32>
    %317 = math.exp %316 : vector<2x32xf32>
    %cst_80 = arith.constant 1.000000e+00 : f32
    %318 = vector.broadcast %cst_80 : f32 to vector<2x32xf32>
    %319 = arith.addf %318, %317 : vector<2x32xf32>
    %320 = arith.divf %318, %319 : vector<2x32xf32>
    %321 = vector.extract_strided_slice %314 {offsets = [0, 32], sizes = [2, 32], strides = [1, 1]} : vector<2x128xf32> to vector<2x32xf32>
    %322 = arith.negf %321 : vector<2x32xf32>
    %323 = math.exp %322 : vector<2x32xf32>
    %cst_81 = arith.constant 1.000000e+00 : f32
    %324 = vector.broadcast %cst_81 : f32 to vector<2x32xf32>
    %325 = arith.addf %324, %323 : vector<2x32xf32>
    %326 = arith.divf %324, %325 : vector<2x32xf32>
    %327 = vector.extract_strided_slice %314 {offsets = [0, 64], sizes = [2, 32], strides = [1, 1]} : vector<2x128xf32> to vector<2x32xf32>
    %328 = math.tanh %327 : vector<2x32xf32>
    %329 = vector.extract_strided_slice %314 {offsets = [0, 96], sizes = [2, 32], strides = [1, 1]} : vector<2x128xf32> to vector<2x32xf32>
    %330 = arith.negf %329 : vector<2x32xf32>
    %331 = math.exp %330 : vector<2x32xf32>
    %cst_82 = arith.constant 1.000000e+00 : f32
    %332 = vector.broadcast %cst_82 : f32 to vector<2x32xf32>
    %333 = arith.addf %332, %331 : vector<2x32xf32>
    %334 = arith.divf %332, %333 : vector<2x32xf32>
    %335 = arith.mulf %326, %228 : vector<2x32xf32>
    %336 = arith.mulf %320, %328 : vector<2x32xf32>
    %337 = arith.addf %335, %336 : vector<2x32xf32>
    %338 = math.tanh %337 : vector<2x32xf32>
    %339 = arith.mulf %334, %338 : vector<2x32xf32>
    %cst_83 = arith.constant dense<0.000000e+00> : vector<2x32xf32>
    %340 = tpu.matmul %339, %8, %cst_83 {dimension_numbers = #tpu.dot_dimension_numbers<[1], [0], [0], [1], [0, 0, 1, 1], [], []>} : vector<2x32xf32>, vector<32x32xf32>, vector<2x32xf32> -> vector<2x32xf32>
    %341 = vector.broadcast %9 : vector<1x32xf32> to vector<2x32xf32>
    %342 = arith.addf %340, %341 : vector<2x32xf32>
    %343 = vector.shape_cast %342 : vector<2x32xf32> to vector<2x1x32xf32>
    %344 = vector.broadcast %343 : vector<2x1x32xf32> to vector<2x32x32xf32>
    %345 = arith.addf %1, %344 : vector<2x32x32xf32>
    %346 = math.tanh %345 : vector<2x32x32xf32>
    %347 = vector.broadcast %11 : vector<1x1x32xf32> to vector<2x32x32xf32>
    %348 = arith.mulf %346, %347 : vector<2x32x32xf32>
    %cst_84 = arith.constant dense<0.000000e+00> : vector<2x32xf32>
    %349 = vector.multi_reduction <add>, %348, %cst_84 [2] : vector<2x32x32xf32> to vector<2x32xf32>
    %350 = vector.broadcast %13 : f32 to vector<2x32xf32>
    %351 = arith.addf %349, %350 : vector<2x32xf32>
    %cst_85 = arith.constant dense<0xFF800000> : vector<2xf32>
    %352 = vector.multi_reduction <maximumf>, %351, %cst_85 [1] : vector<2x32xf32> to vector<2xf32>
    %353 = vector.shape_cast %352 : vector<2xf32> to vector<2x1xf32>
    %354 = vector.broadcast %353 : vector<2x1xf32> to vector<2x32xf32>
    %355 = arith.subf %351, %354 : vector<2x32xf32>
    %356 = math.exp %355 : vector<2x32xf32>
    %cst_86 = arith.constant dense<0.000000e+00> : vector<2xf32>
    %357 = vector.multi_reduction <add>, %356, %cst_86 [1] : vector<2x32xf32> to vector<2xf32>
    %358 = vector.shape_cast %357 : vector<2xf32> to vector<2x1xf32>
    %359 = vector.broadcast %358 : vector<2x1xf32> to vector<2x32xf32>
    %360 = arith.divf %356, %359 : vector<2x32xf32>
    %361 = vector.shape_cast %360 : vector<2x32xf32> to vector<2x1x32xf32>
    "tpu.trace_start"() <{level = 10 : i32, message = "bqh,bhc->bqc"}> : () -> ()
    %cst_87 = arith.constant dense<0.000000e+00> : vector<2x1x32xf32>
    %362 = tpu.matmul %361, %0, %cst_87 {dimension_numbers = #tpu.dot_dimension_numbers<[2], [1], [1], [2], [0, 0, 0, 1, 1, 2], [0], [0]>} : vector<2x1x32xf32>, vector<2x32x32xf32>, vector<2x1x32xf32> -> vector<2x1x32xf32>
    "tpu.trace_stop"() : () -> ()
    %363 = vector.shape_cast %362 : vector<2x1x32xf32> to vector<2x32xf32>
    %cst_88 = arith.constant dense<0.000000e+00> : vector<2x128xf32>
    %364 = tpu.matmul %363, %14, %cst_88 {dimension_numbers = #tpu.dot_dimension_numbers<[1], [0], [0], [1], [0, 0, 1, 1], [], []>} : vector<2x32xf32>, vector<32x128xf32>, vector<2x128xf32> -> vector<2x128xf32>
    %365 = vector.broadcast %15 : vector<1x128xf32> to vector<2x128xf32>
    %366 = arith.addf %364, %365 : vector<2x128xf32>
    %cst_89 = arith.constant dense<0xFF800000> : vector<2xf32>
    %367 = vector.multi_reduction <maximumf>, %366, %cst_89 [1] : vector<2x128xf32> to vector<2xf32>
    %368 = vector.shape_cast %367 : vector<2xf32> to vector<2x1xf32>
    %369 = vector.broadcast %368 : vector<2x1xf32> to vector<2x128xf32>
    %370 = arith.cmpf oeq, %366, %369 : vector<2x128xf32>
    %c128_i32_90 = arith.constant 128 : i32
    %371 = vector.broadcast %c128_i32_90 : i32 to vector<2x128xi32>
    %372 = arith.select %370, %63, %371 : vector<2x128xi1>, vector<2x128xi32>
    %cst_91 = arith.constant dense<2147483647> : vector<2xi32>
    %373 = vector.multi_reduction <minsi>, %372, %cst_91 [1] : vector<2x128xi32> to vector<2xi32>
    %374 = vector.shape_cast %373 : vector<2xi32> to vector<2x1xi32>
    %375 = vector.broadcast %374 : vector<2x1xi32> to vector<2x128xi32>
    %376 = arith.cmpi eq, %63, %375 : vector<2x128xi32>
    %377 = arith.extui %376 : vector<2x128xi1> to vector<2x128xi32>
    %378 = arith.sitofp %377 : vector<2x128xi32> to vector<2x128xf32>
    %cst_92 = arith.constant dense<0.000000e+00> : vector<2x32xf32>
    %379 = tpu.matmul %378, %3, %cst_92 {dimension_numbers = #tpu.dot_dimension_numbers<[1], [0], [0], [1], [0, 0, 1, 1], [], []>} : vector<2x128xf32>, vector<128x32xf32>, vector<2x32xf32> -> vector<2x32xf32>
    %380 = vector.broadcast %368 : vector<2x1xf32> to vector<2x128xf32>
    %381 = arith.subf %366, %380 : vector<2x128xf32>
    %382 = math.exp %381 : vector<2x128xf32>
    %cst_93 = arith.constant dense<0.000000e+00> : vector<2xf32>
    %383 = vector.multi_reduction <add>, %382, %cst_93 [1] : vector<2x128xf32> to vector<2xf32>
    %384 = vector.shape_cast %383 : vector<2xf32> to vector<2x1xf32>
    %385 = vector.broadcast %384 : vector<2x1xf32> to vector<2x128xf32>
    %386 = arith.divf %382, %385 : vector<2x128xf32>
    %387 = arith.index_cast %c2_i32 : i32 to index
    %c0_94 = arith.constant 0 : index
    %c0_95 = arith.constant 0 : index
    %388 = vector.load %arg15[%387, %c0_94, %c0_95] : memref<8x2x128xf32, #tpu.memory_space<vmem>>, vector<1x2x128xf32>
    %389 = vector.shape_cast %388 : vector<1x2x128xf32> to vector<2x128xf32>
    %390 = vector.shape_cast %386 : vector<2x128xf32> to vector<1x2x128xf32>
    tpu.vector_store %arg15[%387, %c0_94, %c0_95], %390 {strides = array<i32>} : memref<8x2x128xf32, #tpu.memory_space<vmem>>, vector<1x2x128xf32>,
    %c3_i32 = arith.constant 3 : i32
    %391 = tpu.concatenate %379, %310 in 1 : vector<2x32xf32>, vector<2x32xf32> -> vector<2x64xf32>
    %cst_96 = arith.constant dense<0.000000e+00> : vector<2x128xf32>
    %392 = tpu.matmul %391, %4, %cst_96 {dimension_numbers = #tpu.dot_dimension_numbers<[1], [0], [0], [1], [0, 0, 1, 1], [], []>} : vector<2x64xf32>, vector<64x128xf32>, vector<2x128xf32> -> vector<2x128xf32>
    %393 = vector.broadcast %5 : vector<1x128xf32> to vector<2x128xf32>
    %394 = arith.addf %392, %393 : vector<2x128xf32>
    %395 = vector.extract_strided_slice %394 {offsets = [0, 0], sizes = [2, 32], strides = [1, 1]} : vector<2x128xf32> to vector<2x32xf32>
    %396 = arith.negf %395 : vector<2x32xf32>
    %397 = math.exp %396 : vector<2x32xf32>
    %cst_97 = arith.constant 1.000000e+00 : f32
    %398 = vector.broadcast %cst_97 : f32 to vector<2x32xf32>
    %399 = arith.addf %398, %397 : vector<2x32xf32>
    %400 = arith.divf %398, %399 : vector<2x32xf32>
    %401 = vector.extract_strided_slice %394 {offsets = [0, 32], sizes = [2, 32], strides = [1, 1]} : vector<2x128xf32> to vector<2x32xf32>
    %402 = arith.negf %401 : vector<2x32xf32>
    %403 = math.exp %402 : vector<2x32xf32>
    %cst_98 = arith.constant 1.000000e+00 : f32
    %404 = vector.broadcast %cst_98 : f32 to vector<2x32xf32>
    %405 = arith.addf %404, %403 : vector<2x32xf32>
    %406 = arith.divf %404, %405 : vector<2x32xf32>
    %407 = vector.extract_strided_slice %394 {offsets = [0, 64], sizes = [2, 32], strides = [1, 1]} : vector<2x128xf32> to vector<2x32xf32>
    %408 = math.tanh %407 : vector<2x32xf32>
    %409 = vector.extract_strided_slice %394 {offsets = [0, 96], sizes = [2, 32], strides = [1, 1]} : vector<2x128xf32> to vector<2x32xf32>
    %410 = arith.negf %409 : vector<2x32xf32>
    %411 = math.exp %410 : vector<2x32xf32>
    %cst_99 = arith.constant 1.000000e+00 : f32
    %412 = vector.broadcast %cst_99 : f32 to vector<2x32xf32>
    %413 = arith.addf %412, %411 : vector<2x32xf32>
    %414 = arith.divf %412, %413 : vector<2x32xf32>
    %415 = arith.mulf %406, %308 : vector<2x32xf32>
    %416 = arith.mulf %400, %408 : vector<2x32xf32>
    %417 = arith.addf %415, %416 : vector<2x32xf32>
    %418 = math.tanh %417 : vector<2x32xf32>
    %419 = arith.mulf %414, %418 : vector<2x32xf32>
    %420 = tpu.concatenate %419, %339 in 1 : vector<2x32xf32>, vector<2x32xf32> -> vector<2x64xf32>
    %cst_100 = arith.constant dense<0.000000e+00> : vector<2x128xf32>
    %421 = tpu.matmul %420, %6, %cst_100 {dimension_numbers = #tpu.dot_dimension_numbers<[1], [0], [0], [1], [0, 0, 1, 1], [], []>} : vector<2x64xf32>, vector<64x128xf32>, vector<2x128xf32> -> vector<2x128xf32>
    %422 = vector.broadcast %7 : vector<1x128xf32> to vector<2x128xf32>
    %423 = arith.addf %421, %422 : vector<2x128xf32>
    %424 = vector.extract_strided_slice %423 {offsets = [0, 0], sizes = [2, 32], strides = [1, 1]} : vector<2x128xf32> to vector<2x32xf32>
    %425 = arith.negf %424 : vector<2x32xf32>
    %426 = math.exp %425 : vector<2x32xf32>
    %cst_101 = arith.constant 1.000000e+00 : f32
    %427 = vector.broadcast %cst_101 : f32 to vector<2x32xf32>
    %428 = arith.addf %427, %426 : vector<2x32xf32>
    %429 = arith.divf %427, %428 : vector<2x32xf32>
    %430 = vector.extract_strided_slice %423 {offsets = [0, 32], sizes = [2, 32], strides = [1, 1]} : vector<2x128xf32> to vector<2x32xf32>
    %431 = arith.negf %430 : vector<2x32xf32>
    %432 = math.exp %431 : vector<2x32xf32>
    %cst_102 = arith.constant 1.000000e+00 : f32
    %433 = vector.broadcast %cst_102 : f32 to vector<2x32xf32>
    %434 = arith.addf %433, %432 : vector<2x32xf32>
    %435 = arith.divf %433, %434 : vector<2x32xf32>
    %436 = vector.extract_strided_slice %423 {offsets = [0, 64], sizes = [2, 32], strides = [1, 1]} : vector<2x128xf32> to vector<2x32xf32>
    %437 = math.tanh %436 : vector<2x32xf32>
    %438 = vector.extract_strided_slice %423 {offsets = [0, 96], sizes = [2, 32], strides = [1, 1]} : vector<2x128xf32> to vector<2x32xf32>
    %439 = arith.negf %438 : vector<2x32xf32>
    %440 = math.exp %439 : vector<2x32xf32>
    %cst_103 = arith.constant 1.000000e+00 : f32
    %441 = vector.broadcast %cst_103 : f32 to vector<2x32xf32>
    %442 = arith.addf %441, %440 : vector<2x32xf32>
    %443 = arith.divf %441, %442 : vector<2x32xf32>
    %444 = arith.mulf %435, %337 : vector<2x32xf32>
    %445 = arith.mulf %429, %437 : vector<2x32xf32>
    %446 = arith.addf %444, %445 : vector<2x32xf32>
    %447 = math.tanh %446 : vector<2x32xf32>
    %448 = arith.mulf %443, %447 : vector<2x32xf32>
    %cst_104 = arith.constant dense<0.000000e+00> : vector<2x32xf32>
    %449 = tpu.matmul %448, %8, %cst_104 {dimension_numbers = #tpu.dot_dimension_numbers<[1], [0], [0], [1], [0, 0, 1, 1], [], []>} : vector<2x32xf32>, vector<32x32xf32>, vector<2x32xf32> -> vector<2x32xf32>
    %450 = vector.broadcast %9 : vector<1x32xf32> to vector<2x32xf32>
    %451 = arith.addf %449, %450 : vector<2x32xf32>
    %452 = vector.shape_cast %451 : vector<2x32xf32> to vector<2x1x32xf32>
    %453 = vector.broadcast %452 : vector<2x1x32xf32> to vector<2x32x32xf32>
    %454 = arith.addf %1, %453 : vector<2x32x32xf32>
    %455 = math.tanh %454 : vector<2x32x32xf32>
    %456 = vector.broadcast %11 : vector<1x1x32xf32> to vector<2x32x32xf32>
    %457 = arith.mulf %455, %456 : vector<2x32x32xf32>
    %cst_105 = arith.constant dense<0.000000e+00> : vector<2x32xf32>
    %458 = vector.multi_reduction <add>, %457, %cst_105 [2] : vector<2x32x32xf32> to vector<2x32xf32>
    %459 = vector.broadcast %13 : f32 to vector<2x32xf32>
    %460 = arith.addf %458, %459 : vector<2x32xf32>
    %cst_106 = arith.constant dense<0xFF800000> : vector<2xf32>
    %461 = vector.multi_reduction <maximumf>, %460, %cst_106 [1] : vector<2x32xf32> to vector<2xf32>
    %462 = vector.shape_cast %461 : vector<2xf32> to vector<2x1xf32>
    %463 = vector.broadcast %462 : vector<2x1xf32> to vector<2x32xf32>
    %464 = arith.subf %460, %463 : vector<2x32xf32>
    %465 = math.exp %464 : vector<2x32xf32>
    %cst_107 = arith.constant dense<0.000000e+00> : vector<2xf32>
    %466 = vector.multi_reduction <add>, %465, %cst_107 [1] : vector<2x32xf32> to vector<2xf32>
    %467 = vector.shape_cast %466 : vector<2xf32> to vector<2x1xf32>
    %468 = vector.broadcast %467 : vector<2x1xf32> to vector<2x32xf32>
    %469 = arith.divf %465, %468 : vector<2x32xf32>
    %470 = vector.shape_cast %469 : vector<2x32xf32> to vector<2x1x32xf32>
    "tpu.trace_start"() <{level = 10 : i32, message = "bqh,bhc->bqc"}> : () -> ()
    %cst_108 = arith.constant dense<0.000000e+00> : vector<2x1x32xf32>
    %471 = tpu.matmul %470, %0, %cst_108 {dimension_numbers = #tpu.dot_dimension_numbers<[2], [1], [1], [2], [0, 0, 0, 1, 1, 2], [0], [0]>} : vector<2x1x32xf32>, vector<2x32x32xf32>, vector<2x1x32xf32> -> vector<2x1x32xf32>
    "tpu.trace_stop"() : () -> ()
    %472 = vector.shape_cast %471 : vector<2x1x32xf32> to vector<2x32xf32>
    %cst_109 = arith.constant dense<0.000000e+00> : vector<2x128xf32>
    %473 = tpu.matmul %472, %14, %cst_109 {dimension_numbers = #tpu.dot_dimension_numbers<[1], [0], [0], [1], [0, 0, 1, 1], [], []>} : vector<2x32xf32>, vector<32x128xf32>, vector<2x128xf32> -> vector<2x128xf32>
    %474 = vector.broadcast %15 : vector<1x128xf32> to vector<2x128xf32>
    %475 = arith.addf %473, %474 : vector<2x128xf32>
    %cst_110 = arith.constant dense<0xFF800000> : vector<2xf32>
    %476 = vector.multi_reduction <maximumf>, %475, %cst_110 [1] : vector<2x128xf32> to vector<2xf32>
    %477 = vector.shape_cast %476 : vector<2xf32> to vector<2x1xf32>
    %478 = vector.broadcast %477 : vector<2x1xf32> to vector<2x128xf32>
    %479 = arith.cmpf oeq, %475, %478 : vector<2x128xf32>
    %c128_i32_111 = arith.constant 128 : i32
    %480 = vector.broadcast %c128_i32_111 : i32 to vector<2x128xi32>
    %481 = arith.select %479, %63, %480 : vector<2x128xi1>, vector<2x128xi32>
    %cst_112 = arith.constant dense<2147483647> : vector<2xi32>
    %482 = vector.multi_reduction <minsi>, %481, %cst_112 [1] : vector<2x128xi32> to vector<2xi32>
    %483 = vector.shape_cast %482 : vector<2xi32> to vector<2x1xi32>
    %484 = vector.broadcast %483 : vector<2x1xi32> to vector<2x128xi32>
    %485 = arith.cmpi eq, %63, %484 : vector<2x128xi32>
    %486 = arith.extui %485 : vector<2x128xi1> to vector<2x128xi32>
    %487 = arith.sitofp %486 : vector<2x128xi32> to vector<2x128xf32>
    %cst_113 = arith.constant dense<0.000000e+00> : vector<2x32xf32>
    %488 = tpu.matmul %487, %3, %cst_113 {dimension_numbers = #tpu.dot_dimension_numbers<[1], [0], [0], [1], [0, 0, 1, 1], [], []>} : vector<2x128xf32>, vector<128x32xf32>, vector<2x32xf32> -> vector<2x32xf32>
    %489 = vector.broadcast %477 : vector<2x1xf32> to vector<2x128xf32>
    %490 = arith.subf %475, %489 : vector<2x128xf32>
    %491 = math.exp %490 : vector<2x128xf32>
    %cst_114 = arith.constant dense<0.000000e+00> : vector<2xf32>
    %492 = vector.multi_reduction <add>, %491, %cst_114 [1] : vector<2x128xf32> to vector<2xf32>
    %493 = vector.shape_cast %492 : vector<2xf32> to vector<2x1xf32>
    %494 = vector.broadcast %493 : vector<2x1xf32> to vector<2x128xf32>
    %495 = arith.divf %491, %494 : vector<2x128xf32>
    %496 = arith.index_cast %c3_i32 : i32 to index
    %c0_115 = arith.constant 0 : index
    %c0_116 = arith.constant 0 : index
    %497 = vector.load %arg15[%496, %c0_115, %c0_116] : memref<8x2x128xf32, #tpu.memory_space<vmem>>, vector<1x2x128xf32>
    %498 = vector.shape_cast %497 : vector<1x2x128xf32> to vector<2x128xf32>
    %499 = vector.shape_cast %495 : vector<2x128xf32> to vector<1x2x128xf32>
    tpu.vector_store %arg15[%496, %c0_115, %c0_116], %499 {strides = array<i32>} : memref<8x2x128xf32, #tpu.memory_space<vmem>>, vector<1x2x128xf32>,
    %c4_i32 = arith.constant 4 : i32
    %500 = tpu.concatenate %488, %419 in 1 : vector<2x32xf32>, vector<2x32xf32> -> vector<2x64xf32>
    %cst_117 = arith.constant dense<0.000000e+00> : vector<2x128xf32>
    %501 = tpu.matmul %500, %4, %cst_117 {dimension_numbers = #tpu.dot_dimension_numbers<[1], [0], [0], [1], [0, 0, 1, 1], [], []>} : vector<2x64xf32>, vector<64x128xf32>, vector<2x128xf32> -> vector<2x128xf32>
    %502 = vector.broadcast %5 : vector<1x128xf32> to vector<2x128xf32>
    %503 = arith.addf %501, %502 : vector<2x128xf32>
    %504 = vector.extract_strided_slice %503 {offsets = [0, 0], sizes = [2, 32], strides = [1, 1]} : vector<2x128xf32> to vector<2x32xf32>
    %505 = arith.negf %504 : vector<2x32xf32>
    %506 = math.exp %505 : vector<2x32xf32>
    %cst_118 = arith.constant 1.000000e+00 : f32
    %507 = vector.broadcast %cst_118 : f32 to vector<2x32xf32>
    %508 = arith.addf %507, %506 : vector<2x32xf32>
    %509 = arith.divf %507, %508 : vector<2x32xf32>
    %510 = vector.extract_strided_slice %503 {offsets = [0, 32], sizes = [2, 32], strides = [1, 1]} : vector<2x128xf32> to vector<2x32xf32>
    %511 = arith.negf %510 : vector<2x32xf32>
    %512 = math.exp %511 : vector<2x32xf32>
    %cst_119 = arith.constant 1.000000e+00 : f32
    %513 = vector.broadcast %cst_119 : f32 to vector<2x32xf32>
    %514 = arith.addf %513, %512 : vector<2x32xf32>
    %515 = arith.divf %513, %514 : vector<2x32xf32>
    %516 = vector.extract_strided_slice %503 {offsets = [0, 64], sizes = [2, 32], strides = [1, 1]} : vector<2x128xf32> to vector<2x32xf32>
    %517 = math.tanh %516 : vector<2x32xf32>
    %518 = vector.extract_strided_slice %503 {offsets = [0, 96], sizes = [2, 32], strides = [1, 1]} : vector<2x128xf32> to vector<2x32xf32>
    %519 = arith.negf %518 : vector<2x32xf32>
    %520 = math.exp %519 : vector<2x32xf32>
    %cst_120 = arith.constant 1.000000e+00 : f32
    %521 = vector.broadcast %cst_120 : f32 to vector<2x32xf32>
    %522 = arith.addf %521, %520 : vector<2x32xf32>
    %523 = arith.divf %521, %522 : vector<2x32xf32>
    %524 = arith.mulf %515, %417 : vector<2x32xf32>
    %525 = arith.mulf %509, %517 : vector<2x32xf32>
    %526 = arith.addf %524, %525 : vector<2x32xf32>
    %527 = math.tanh %526 : vector<2x32xf32>
    %528 = arith.mulf %523, %527 : vector<2x32xf32>
    %529 = tpu.concatenate %528, %448 in 1 : vector<2x32xf32>, vector<2x32xf32> -> vector<2x64xf32>
    %cst_121 = arith.constant dense<0.000000e+00> : vector<2x128xf32>
    %530 = tpu.matmul %529, %6, %cst_121 {dimension_numbers = #tpu.dot_dimension_numbers<[1], [0], [0], [1], [0, 0, 1, 1], [], []>} : vector<2x64xf32>, vector<64x128xf32>, vector<2x128xf32> -> vector<2x128xf32>
    %531 = vector.broadcast %7 : vector<1x128xf32> to vector<2x128xf32>
    %532 = arith.addf %530, %531 : vector<2x128xf32>
    %533 = vector.extract_strided_slice %532 {offsets = [0, 0], sizes = [2, 32], strides = [1, 1]} : vector<2x128xf32> to vector<2x32xf32>
    %534 = arith.negf %533 : vector<2x32xf32>
    %535 = math.exp %534 : vector<2x32xf32>
    %cst_122 = arith.constant 1.000000e+00 : f32
    %536 = vector.broadcast %cst_122 : f32 to vector<2x32xf32>
    %537 = arith.addf %536, %535 : vector<2x32xf32>
    %538 = arith.divf %536, %537 : vector<2x32xf32>
    %539 = vector.extract_strided_slice %532 {offsets = [0, 32], sizes = [2, 32], strides = [1, 1]} : vector<2x128xf32> to vector<2x32xf32>
    %540 = arith.negf %539 : vector<2x32xf32>
    %541 = math.exp %540 : vector<2x32xf32>
    %cst_123 = arith.constant 1.000000e+00 : f32
    %542 = vector.broadcast %cst_123 : f32 to vector<2x32xf32>
    %543 = arith.addf %542, %541 : vector<2x32xf32>
    %544 = arith.divf %542, %543 : vector<2x32xf32>
    %545 = vector.extract_strided_slice %532 {offsets = [0, 64], sizes = [2, 32], strides = [1, 1]} : vector<2x128xf32> to vector<2x32xf32>
    %546 = math.tanh %545 : vector<2x32xf32>
    %547 = vector.extract_strided_slice %532 {offsets = [0, 96], sizes = [2, 32], strides = [1, 1]} : vector<2x128xf32> to vector<2x32xf32>
    %548 = arith.negf %547 : vector<2x32xf32>
    %549 = math.exp %548 : vector<2x32xf32>
    %cst_124 = arith.constant 1.000000e+00 : f32
    %550 = vector.broadcast %cst_124 : f32 to vector<2x32xf32>
    %551 = arith.addf %550, %549 : vector<2x32xf32>
    %552 = arith.divf %550, %551 : vector<2x32xf32>
    %553 = arith.mulf %544, %446 : vector<2x32xf32>
    %554 = arith.mulf %538, %546 : vector<2x32xf32>
    %555 = arith.addf %553, %554 : vector<2x32xf32>
    %556 = math.tanh %555 : vector<2x32xf32>
    %557 = arith.mulf %552, %556 : vector<2x32xf32>
    %cst_125 = arith.constant dense<0.000000e+00> : vector<2x32xf32>
    %558 = tpu.matmul %557, %8, %cst_125 {dimension_numbers = #tpu.dot_dimension_numbers<[1], [0], [0], [1], [0, 0, 1, 1], [], []>} : vector<2x32xf32>, vector<32x32xf32>, vector<2x32xf32> -> vector<2x32xf32>
    %559 = vector.broadcast %9 : vector<1x32xf32> to vector<2x32xf32>
    %560 = arith.addf %558, %559 : vector<2x32xf32>
    %561 = vector.shape_cast %560 : vector<2x32xf32> to vector<2x1x32xf32>
    %562 = vector.broadcast %561 : vector<2x1x32xf32> to vector<2x32x32xf32>
    %563 = arith.addf %1, %562 : vector<2x32x32xf32>
    %564 = math.tanh %563 : vector<2x32x32xf32>
    %565 = vector.broadcast %11 : vector<1x1x32xf32> to vector<2x32x32xf32>
    %566 = arith.mulf %564, %565 : vector<2x32x32xf32>
    %cst_126 = arith.constant dense<0.000000e+00> : vector<2x32xf32>
    %567 = vector.multi_reduction <add>, %566, %cst_126 [2] : vector<2x32x32xf32> to vector<2x32xf32>
    %568 = vector.broadcast %13 : f32 to vector<2x32xf32>
    %569 = arith.addf %567, %568 : vector<2x32xf32>
    %cst_127 = arith.constant dense<0xFF800000> : vector<2xf32>
    %570 = vector.multi_reduction <maximumf>, %569, %cst_127 [1] : vector<2x32xf32> to vector<2xf32>
    %571 = vector.shape_cast %570 : vector<2xf32> to vector<2x1xf32>
    %572 = vector.broadcast %571 : vector<2x1xf32> to vector<2x32xf32>
    %573 = arith.subf %569, %572 : vector<2x32xf32>
    %574 = math.exp %573 : vector<2x32xf32>
    %cst_128 = arith.constant dense<0.000000e+00> : vector<2xf32>
    %575 = vector.multi_reduction <add>, %574, %cst_128 [1] : vector<2x32xf32> to vector<2xf32>
    %576 = vector.shape_cast %575 : vector<2xf32> to vector<2x1xf32>
    %577 = vector.broadcast %576 : vector<2x1xf32> to vector<2x32xf32>
    %578 = arith.divf %574, %577 : vector<2x32xf32>
    %579 = vector.shape_cast %578 : vector<2x32xf32> to vector<2x1x32xf32>
    "tpu.trace_start"() <{level = 10 : i32, message = "bqh,bhc->bqc"}> : () -> ()
    %cst_129 = arith.constant dense<0.000000e+00> : vector<2x1x32xf32>
    %580 = tpu.matmul %579, %0, %cst_129 {dimension_numbers = #tpu.dot_dimension_numbers<[2], [1], [1], [2], [0, 0, 0, 1, 1, 2], [0], [0]>} : vector<2x1x32xf32>, vector<2x32x32xf32>, vector<2x1x32xf32> -> vector<2x1x32xf32>
    "tpu.trace_stop"() : () -> ()
    %581 = vector.shape_cast %580 : vector<2x1x32xf32> to vector<2x32xf32>
    %cst_130 = arith.constant dense<0.000000e+00> : vector<2x128xf32>
    %582 = tpu.matmul %581, %14, %cst_130 {dimension_numbers = #tpu.dot_dimension_numbers<[1], [0], [0], [1], [0, 0, 1, 1], [], []>} : vector<2x32xf32>, vector<32x128xf32>, vector<2x128xf32> -> vector<2x128xf32>
    %583 = vector.broadcast %15 : vector<1x128xf32> to vector<2x128xf32>
    %584 = arith.addf %582, %583 : vector<2x128xf32>
    %cst_131 = arith.constant dense<0xFF800000> : vector<2xf32>
    %585 = vector.multi_reduction <maximumf>, %584, %cst_131 [1] : vector<2x128xf32> to vector<2xf32>
    %586 = vector.shape_cast %585 : vector<2xf32> to vector<2x1xf32>
    %587 = vector.broadcast %586 : vector<2x1xf32> to vector<2x128xf32>
    %588 = arith.cmpf oeq, %584, %587 : vector<2x128xf32>
    %c128_i32_132 = arith.constant 128 : i32
    %589 = vector.broadcast %c128_i32_132 : i32 to vector<2x128xi32>
    %590 = arith.select %588, %63, %589 : vector<2x128xi1>, vector<2x128xi32>
    %cst_133 = arith.constant dense<2147483647> : vector<2xi32>
    %591 = vector.multi_reduction <minsi>, %590, %cst_133 [1] : vector<2x128xi32> to vector<2xi32>
    %592 = vector.shape_cast %591 : vector<2xi32> to vector<2x1xi32>
    %593 = vector.broadcast %592 : vector<2x1xi32> to vector<2x128xi32>
    %594 = arith.cmpi eq, %63, %593 : vector<2x128xi32>
    %595 = arith.extui %594 : vector<2x128xi1> to vector<2x128xi32>
    %596 = arith.sitofp %595 : vector<2x128xi32> to vector<2x128xf32>
    %cst_134 = arith.constant dense<0.000000e+00> : vector<2x32xf32>
    %597 = tpu.matmul %596, %3, %cst_134 {dimension_numbers = #tpu.dot_dimension_numbers<[1], [0], [0], [1], [0, 0, 1, 1], [], []>} : vector<2x128xf32>, vector<128x32xf32>, vector<2x32xf32> -> vector<2x32xf32>
    %598 = vector.broadcast %586 : vector<2x1xf32> to vector<2x128xf32>
    %599 = arith.subf %584, %598 : vector<2x128xf32>
    %600 = math.exp %599 : vector<2x128xf32>
    %cst_135 = arith.constant dense<0.000000e+00> : vector<2xf32>
    %601 = vector.multi_reduction <add>, %600, %cst_135 [1] : vector<2x128xf32> to vector<2xf32>
    %602 = vector.shape_cast %601 : vector<2xf32> to vector<2x1xf32>
    %603 = vector.broadcast %602 : vector<2x1xf32> to vector<2x128xf32>
    %604 = arith.divf %600, %603 : vector<2x128xf32>
    %605 = arith.index_cast %c4_i32 : i32 to index
    %c0_136 = arith.constant 0 : index
    %c0_137 = arith.constant 0 : index
    %606 = vector.load %arg15[%605, %c0_136, %c0_137] : memref<8x2x128xf32, #tpu.memory_space<vmem>>, vector<1x2x128xf32>
    %607 = vector.shape_cast %606 : vector<1x2x128xf32> to vector<2x128xf32>
    %608 = vector.shape_cast %604 : vector<2x128xf32> to vector<1x2x128xf32>
    tpu.vector_store %arg15[%605, %c0_136, %c0_137], %608 {strides = array<i32>} : memref<8x2x128xf32, #tpu.memory_space<vmem>>, vector<1x2x128xf32>,
    %c5_i32 = arith.constant 5 : i32
    %609 = tpu.concatenate %597, %528 in 1 : vector<2x32xf32>, vector<2x32xf32> -> vector<2x64xf32>
    %cst_138 = arith.constant dense<0.000000e+00> : vector<2x128xf32>
    %610 = tpu.matmul %609, %4, %cst_138 {dimension_numbers = #tpu.dot_dimension_numbers<[1], [0], [0], [1], [0, 0, 1, 1], [], []>} : vector<2x64xf32>, vector<64x128xf32>, vector<2x128xf32> -> vector<2x128xf32>
    %611 = vector.broadcast %5 : vector<1x128xf32> to vector<2x128xf32>
    %612 = arith.addf %610, %611 : vector<2x128xf32>
    %613 = vector.extract_strided_slice %612 {offsets = [0, 0], sizes = [2, 32], strides = [1, 1]} : vector<2x128xf32> to vector<2x32xf32>
    %614 = arith.negf %613 : vector<2x32xf32>
    %615 = math.exp %614 : vector<2x32xf32>
    %cst_139 = arith.constant 1.000000e+00 : f32
    %616 = vector.broadcast %cst_139 : f32 to vector<2x32xf32>
    %617 = arith.addf %616, %615 : vector<2x32xf32>
    %618 = arith.divf %616, %617 : vector<2x32xf32>
    %619 = vector.extract_strided_slice %612 {offsets = [0, 32], sizes = [2, 32], strides = [1, 1]} : vector<2x128xf32> to vector<2x32xf32>
    %620 = arith.negf %619 : vector<2x32xf32>
    %621 = math.exp %620 : vector<2x32xf32>
    %cst_140 = arith.constant 1.000000e+00 : f32
    %622 = vector.broadcast %cst_140 : f32 to vector<2x32xf32>
    %623 = arith.addf %622, %621 : vector<2x32xf32>
    %624 = arith.divf %622, %623 : vector<2x32xf32>
    %625 = vector.extract_strided_slice %612 {offsets = [0, 64], sizes = [2, 32], strides = [1, 1]} : vector<2x128xf32> to vector<2x32xf32>
    %626 = math.tanh %625 : vector<2x32xf32>
    %627 = vector.extract_strided_slice %612 {offsets = [0, 96], sizes = [2, 32], strides = [1, 1]} : vector<2x128xf32> to vector<2x32xf32>
    %628 = arith.negf %627 : vector<2x32xf32>
    %629 = math.exp %628 : vector<2x32xf32>
    %cst_141 = arith.constant 1.000000e+00 : f32
    %630 = vector.broadcast %cst_141 : f32 to vector<2x32xf32>
    %631 = arith.addf %630, %629 : vector<2x32xf32>
    %632 = arith.divf %630, %631 : vector<2x32xf32>
    %633 = arith.mulf %624, %526 : vector<2x32xf32>
    %634 = arith.mulf %618, %626 : vector<2x32xf32>
    %635 = arith.addf %633, %634 : vector<2x32xf32>
    %636 = math.tanh %635 : vector<2x32xf32>
    %637 = arith.mulf %632, %636 : vector<2x32xf32>
    %638 = tpu.concatenate %637, %557 in 1 : vector<2x32xf32>, vector<2x32xf32> -> vector<2x64xf32>
    %cst_142 = arith.constant dense<0.000000e+00> : vector<2x128xf32>
    %639 = tpu.matmul %638, %6, %cst_142 {dimension_numbers = #tpu.dot_dimension_numbers<[1], [0], [0], [1], [0, 0, 1, 1], [], []>} : vector<2x64xf32>, vector<64x128xf32>, vector<2x128xf32> -> vector<2x128xf32>
    %640 = vector.broadcast %7 : vector<1x128xf32> to vector<2x128xf32>
    %641 = arith.addf %639, %640 : vector<2x128xf32>
    %642 = vector.extract_strided_slice %641 {offsets = [0, 0], sizes = [2, 32], strides = [1, 1]} : vector<2x128xf32> to vector<2x32xf32>
    %643 = arith.negf %642 : vector<2x32xf32>
    %644 = math.exp %643 : vector<2x32xf32>
    %cst_143 = arith.constant 1.000000e+00 : f32
    %645 = vector.broadcast %cst_143 : f32 to vector<2x32xf32>
    %646 = arith.addf %645, %644 : vector<2x32xf32>
    %647 = arith.divf %645, %646 : vector<2x32xf32>
    %648 = vector.extract_strided_slice %641 {offsets = [0, 32], sizes = [2, 32], strides = [1, 1]} : vector<2x128xf32> to vector<2x32xf32>
    %649 = arith.negf %648 : vector<2x32xf32>
    %650 = math.exp %649 : vector<2x32xf32>
    %cst_144 = arith.constant 1.000000e+00 : f32
    %651 = vector.broadcast %cst_144 : f32 to vector<2x32xf32>
    %652 = arith.addf %651, %650 : vector<2x32xf32>
    %653 = arith.divf %651, %652 : vector<2x32xf32>
    %654 = vector.extract_strided_slice %641 {offsets = [0, 64], sizes = [2, 32], strides = [1, 1]} : vector<2x128xf32> to vector<2x32xf32>
    %655 = math.tanh %654 : vector<2x32xf32>
    %656 = vector.extract_strided_slice %641 {offsets = [0, 96], sizes = [2, 32], strides = [1, 1]} : vector<2x128xf32> to vector<2x32xf32>
    %657 = arith.negf %656 : vector<2x32xf32>
    %658 = math.exp %657 : vector<2x32xf32>
    %cst_145 = arith.constant 1.000000e+00 : f32
    %659 = vector.broadcast %cst_145 : f32 to vector<2x32xf32>
    %660 = arith.addf %659, %658 : vector<2x32xf32>
    %661 = arith.divf %659, %660 : vector<2x32xf32>
    %662 = arith.mulf %653, %555 : vector<2x32xf32>
    %663 = arith.mulf %647, %655 : vector<2x32xf32>
    %664 = arith.addf %662, %663 : vector<2x32xf32>
    %665 = math.tanh %664 : vector<2x32xf32>
    %666 = arith.mulf %661, %665 : vector<2x32xf32>
    %cst_146 = arith.constant dense<0.000000e+00> : vector<2x32xf32>
    %667 = tpu.matmul %666, %8, %cst_146 {dimension_numbers = #tpu.dot_dimension_numbers<[1], [0], [0], [1], [0, 0, 1, 1], [], []>} : vector<2x32xf32>, vector<32x32xf32>, vector<2x32xf32> -> vector<2x32xf32>
    %668 = vector.broadcast %9 : vector<1x32xf32> to vector<2x32xf32>
    %669 = arith.addf %667, %668 : vector<2x32xf32>
    %670 = vector.shape_cast %669 : vector<2x32xf32> to vector<2x1x32xf32>
    %671 = vector.broadcast %670 : vector<2x1x32xf32> to vector<2x32x32xf32>
    %672 = arith.addf %1, %671 : vector<2x32x32xf32>
    %673 = math.tanh %672 : vector<2x32x32xf32>
    %674 = vector.broadcast %11 : vector<1x1x32xf32> to vector<2x32x32xf32>
    %675 = arith.mulf %673, %674 : vector<2x32x32xf32>
    %cst_147 = arith.constant dense<0.000000e+00> : vector<2x32xf32>
    %676 = vector.multi_reduction <add>, %675, %cst_147 [2] : vector<2x32x32xf32> to vector<2x32xf32>
    %677 = vector.broadcast %13 : f32 to vector<2x32xf32>
    %678 = arith.addf %676, %677 : vector<2x32xf32>
    %cst_148 = arith.constant dense<0xFF800000> : vector<2xf32>
    %679 = vector.multi_reduction <maximumf>, %678, %cst_148 [1] : vector<2x32xf32> to vector<2xf32>
    %680 = vector.shape_cast %679 : vector<2xf32> to vector<2x1xf32>
    %681 = vector.broadcast %680 : vector<2x1xf32> to vector<2x32xf32>
    %682 = arith.subf %678, %681 : vector<2x32xf32>
    %683 = math.exp %682 : vector<2x32xf32>
    %cst_149 = arith.constant dense<0.000000e+00> : vector<2xf32>
    %684 = vector.multi_reduction <add>, %683, %cst_149 [1] : vector<2x32xf32> to vector<2xf32>
    %685 = vector.shape_cast %684 : vector<2xf32> to vector<2x1xf32>
    %686 = vector.broadcast %685 : vector<2x1xf32> to vector<2x32xf32>
    %687 = arith.divf %683, %686 : vector<2x32xf32>
    %688 = vector.shape_cast %687 : vector<2x32xf32> to vector<2x1x32xf32>
    "tpu.trace_start"() <{level = 10 : i32, message = "bqh,bhc->bqc"}> : () -> ()
    %cst_150 = arith.constant dense<0.000000e+00> : vector<2x1x32xf32>
    %689 = tpu.matmul %688, %0, %cst_150 {dimension_numbers = #tpu.dot_dimension_numbers<[2], [1], [1], [2], [0, 0, 0, 1, 1, 2], [0], [0]>} : vector<2x1x32xf32>, vector<2x32x32xf32>, vector<2x1x32xf32> -> vector<2x1x32xf32>
    "tpu.trace_stop"() : () -> ()
    %690 = vector.shape_cast %689 : vector<2x1x32xf32> to vector<2x32xf32>
    %cst_151 = arith.constant dense<0.000000e+00> : vector<2x128xf32>
    %691 = tpu.matmul %690, %14, %cst_151 {dimension_numbers = #tpu.dot_dimension_numbers<[1], [0], [0], [1], [0, 0, 1, 1], [], []>} : vector<2x32xf32>, vector<32x128xf32>, vector<2x128xf32> -> vector<2x128xf32>
    %692 = vector.broadcast %15 : vector<1x128xf32> to vector<2x128xf32>
    %693 = arith.addf %691, %692 : vector<2x128xf32>
    %cst_152 = arith.constant dense<0xFF800000> : vector<2xf32>
    %694 = vector.multi_reduction <maximumf>, %693, %cst_152 [1] : vector<2x128xf32> to vector<2xf32>
    %695 = vector.shape_cast %694 : vector<2xf32> to vector<2x1xf32>
    %696 = vector.broadcast %695 : vector<2x1xf32> to vector<2x128xf32>
    %697 = arith.cmpf oeq, %693, %696 : vector<2x128xf32>
    %c128_i32_153 = arith.constant 128 : i32
    %698 = vector.broadcast %c128_i32_153 : i32 to vector<2x128xi32>
    %699 = arith.select %697, %63, %698 : vector<2x128xi1>, vector<2x128xi32>
    %cst_154 = arith.constant dense<2147483647> : vector<2xi32>
    %700 = vector.multi_reduction <minsi>, %699, %cst_154 [1] : vector<2x128xi32> to vector<2xi32>
    %701 = vector.shape_cast %700 : vector<2xi32> to vector<2x1xi32>
    %702 = vector.broadcast %701 : vector<2x1xi32> to vector<2x128xi32>
    %703 = arith.cmpi eq, %63, %702 : vector<2x128xi32>
    %704 = arith.extui %703 : vector<2x128xi1> to vector<2x128xi32>
    %705 = arith.sitofp %704 : vector<2x128xi32> to vector<2x128xf32>
    %cst_155 = arith.constant dense<0.000000e+00> : vector<2x32xf32>
    %706 = tpu.matmul %705, %3, %cst_155 {dimension_numbers = #tpu.dot_dimension_numbers<[1], [0], [0], [1], [0, 0, 1, 1], [], []>} : vector<2x128xf32>, vector<128x32xf32>, vector<2x32xf32> -> vector<2x32xf32>
    %707 = vector.broadcast %695 : vector<2x1xf32> to vector<2x128xf32>
    %708 = arith.subf %693, %707 : vector<2x128xf32>
    %709 = math.exp %708 : vector<2x128xf32>
    %cst_156 = arith.constant dense<0.000000e+00> : vector<2xf32>
    %710 = vector.multi_reduction <add>, %709, %cst_156 [1] : vector<2x128xf32> to vector<2xf32>
    %711 = vector.shape_cast %710 : vector<2xf32> to vector<2x1xf32>
    %712 = vector.broadcast %711 : vector<2x1xf32> to vector<2x128xf32>
    %713 = arith.divf %709, %712 : vector<2x128xf32>
    %714 = arith.index_cast %c5_i32 : i32 to index
    %c0_157 = arith.constant 0 : index
    %c0_158 = arith.constant 0 : index
    %715 = vector.load %arg15[%714, %c0_157, %c0_158] : memref<8x2x128xf32, #tpu.memory_space<vmem>>, vector<1x2x128xf32>
    %716 = vector.shape_cast %715 : vector<1x2x128xf32> to vector<2x128xf32>
    %717 = vector.shape_cast %713 : vector<2x128xf32> to vector<1x2x128xf32>
    tpu.vector_store %arg15[%714, %c0_157, %c0_158], %717 {strides = array<i32>} : memref<8x2x128xf32, #tpu.memory_space<vmem>>, vector<1x2x128xf32>,
    %c6_i32 = arith.constant 6 : i32
    %718 = tpu.concatenate %706, %637 in 1 : vector<2x32xf32>, vector<2x32xf32> -> vector<2x64xf32>
    %cst_159 = arith.constant dense<0.000000e+00> : vector<2x128xf32>
    %719 = tpu.matmul %718, %4, %cst_159 {dimension_numbers = #tpu.dot_dimension_numbers<[1], [0], [0], [1], [0, 0, 1, 1], [], []>} : vector<2x64xf32>, vector<64x128xf32>, vector<2x128xf32> -> vector<2x128xf32>
    %720 = vector.broadcast %5 : vector<1x128xf32> to vector<2x128xf32>
    %721 = arith.addf %719, %720 : vector<2x128xf32>
    %722 = vector.extract_strided_slice %721 {offsets = [0, 0], sizes = [2, 32], strides = [1, 1]} : vector<2x128xf32> to vector<2x32xf32>
    %723 = arith.negf %722 : vector<2x32xf32>
    %724 = math.exp %723 : vector<2x32xf32>
    %cst_160 = arith.constant 1.000000e+00 : f32
    %725 = vector.broadcast %cst_160 : f32 to vector<2x32xf32>
    %726 = arith.addf %725, %724 : vector<2x32xf32>
    %727 = arith.divf %725, %726 : vector<2x32xf32>
    %728 = vector.extract_strided_slice %721 {offsets = [0, 32], sizes = [2, 32], strides = [1, 1]} : vector<2x128xf32> to vector<2x32xf32>
    %729 = arith.negf %728 : vector<2x32xf32>
    %730 = math.exp %729 : vector<2x32xf32>
    %cst_161 = arith.constant 1.000000e+00 : f32
    %731 = vector.broadcast %cst_161 : f32 to vector<2x32xf32>
    %732 = arith.addf %731, %730 : vector<2x32xf32>
    %733 = arith.divf %731, %732 : vector<2x32xf32>
    %734 = vector.extract_strided_slice %721 {offsets = [0, 64], sizes = [2, 32], strides = [1, 1]} : vector<2x128xf32> to vector<2x32xf32>
    %735 = math.tanh %734 : vector<2x32xf32>
    %736 = vector.extract_strided_slice %721 {offsets = [0, 96], sizes = [2, 32], strides = [1, 1]} : vector<2x128xf32> to vector<2x32xf32>
    %737 = arith.negf %736 : vector<2x32xf32>
    %738 = math.exp %737 : vector<2x32xf32>
    %cst_162 = arith.constant 1.000000e+00 : f32
    %739 = vector.broadcast %cst_162 : f32 to vector<2x32xf32>
    %740 = arith.addf %739, %738 : vector<2x32xf32>
    %741 = arith.divf %739, %740 : vector<2x32xf32>
    %742 = arith.mulf %733, %635 : vector<2x32xf32>
    %743 = arith.mulf %727, %735 : vector<2x32xf32>
    %744 = arith.addf %742, %743 : vector<2x32xf32>
    %745 = math.tanh %744 : vector<2x32xf32>
    %746 = arith.mulf %741, %745 : vector<2x32xf32>
    %747 = tpu.concatenate %746, %666 in 1 : vector<2x32xf32>, vector<2x32xf32> -> vector<2x64xf32>
    %cst_163 = arith.constant dense<0.000000e+00> : vector<2x128xf32>
    %748 = tpu.matmul %747, %6, %cst_163 {dimension_numbers = #tpu.dot_dimension_numbers<[1], [0], [0], [1], [0, 0, 1, 1], [], []>} : vector<2x64xf32>, vector<64x128xf32>, vector<2x128xf32> -> vector<2x128xf32>
    %749 = vector.broadcast %7 : vector<1x128xf32> to vector<2x128xf32>
    %750 = arith.addf %748, %749 : vector<2x128xf32>
    %751 = vector.extract_strided_slice %750 {offsets = [0, 0], sizes = [2, 32], strides = [1, 1]} : vector<2x128xf32> to vector<2x32xf32>
    %752 = arith.negf %751 : vector<2x32xf32>
    %753 = math.exp %752 : vector<2x32xf32>
    %cst_164 = arith.constant 1.000000e+00 : f32
    %754 = vector.broadcast %cst_164 : f32 to vector<2x32xf32>
    %755 = arith.addf %754, %753 : vector<2x32xf32>
    %756 = arith.divf %754, %755 : vector<2x32xf32>
    %757 = vector.extract_strided_slice %750 {offsets = [0, 32], sizes = [2, 32], strides = [1, 1]} : vector<2x128xf32> to vector<2x32xf32>
    %758 = arith.negf %757 : vector<2x32xf32>
    %759 = math.exp %758 : vector<2x32xf32>
    %cst_165 = arith.constant 1.000000e+00 : f32
    %760 = vector.broadcast %cst_165 : f32 to vector<2x32xf32>
    %761 = arith.addf %760, %759 : vector<2x32xf32>
    %762 = arith.divf %760, %761 : vector<2x32xf32>
    %763 = vector.extract_strided_slice %750 {offsets = [0, 64], sizes = [2, 32], strides = [1, 1]} : vector<2x128xf32> to vector<2x32xf32>
    %764 = math.tanh %763 : vector<2x32xf32>
    %765 = vector.extract_strided_slice %750 {offsets = [0, 96], sizes = [2, 32], strides = [1, 1]} : vector<2x128xf32> to vector<2x32xf32>
    %766 = arith.negf %765 : vector<2x32xf32>
    %767 = math.exp %766 : vector<2x32xf32>
    %cst_166 = arith.constant 1.000000e+00 : f32
    %768 = vector.broadcast %cst_166 : f32 to vector<2x32xf32>
    %769 = arith.addf %768, %767 : vector<2x32xf32>
    %770 = arith.divf %768, %769 : vector<2x32xf32>
    %771 = arith.mulf %762, %664 : vector<2x32xf32>
    %772 = arith.mulf %756, %764 : vector<2x32xf32>
    %773 = arith.addf %771, %772 : vector<2x32xf32>
    %774 = math.tanh %773 : vector<2x32xf32>
    %775 = arith.mulf %770, %774 : vector<2x32xf32>
    %cst_167 = arith.constant dense<0.000000e+00> : vector<2x32xf32>
    %776 = tpu.matmul %775, %8, %cst_167 {dimension_numbers = #tpu.dot_dimension_numbers<[1], [0], [0], [1], [0, 0, 1, 1], [], []>} : vector<2x32xf32>, vector<32x32xf32>, vector<2x32xf32> -> vector<2x32xf32>
    %777 = vector.broadcast %9 : vector<1x32xf32> to vector<2x32xf32>
    %778 = arith.addf %776, %777 : vector<2x32xf32>
    %779 = vector.shape_cast %778 : vector<2x32xf32> to vector<2x1x32xf32>
    %780 = vector.broadcast %779 : vector<2x1x32xf32> to vector<2x32x32xf32>
    %781 = arith.addf %1, %780 : vector<2x32x32xf32>
    %782 = math.tanh %781 : vector<2x32x32xf32>
    %783 = vector.broadcast %11 : vector<1x1x32xf32> to vector<2x32x32xf32>
    %784 = arith.mulf %782, %783 : vector<2x32x32xf32>
    %cst_168 = arith.constant dense<0.000000e+00> : vector<2x32xf32>
    %785 = vector.multi_reduction <add>, %784, %cst_168 [2] : vector<2x32x32xf32> to vector<2x32xf32>
    %786 = vector.broadcast %13 : f32 to vector<2x32xf32>
    %787 = arith.addf %785, %786 : vector<2x32xf32>
    %cst_169 = arith.constant dense<0xFF800000> : vector<2xf32>
    %788 = vector.multi_reduction <maximumf>, %787, %cst_169 [1] : vector<2x32xf32> to vector<2xf32>
    %789 = vector.shape_cast %788 : vector<2xf32> to vector<2x1xf32>
    %790 = vector.broadcast %789 : vector<2x1xf32> to vector<2x32xf32>
    %791 = arith.subf %787, %790 : vector<2x32xf32>
    %792 = math.exp %791 : vector<2x32xf32>
    %cst_170 = arith.constant dense<0.000000e+00> : vector<2xf32>
    %793 = vector.multi_reduction <add>, %792, %cst_170 [1] : vector<2x32xf32> to vector<2xf32>
    %794 = vector.shape_cast %793 : vector<2xf32> to vector<2x1xf32>
    %795 = vector.broadcast %794 : vector<2x1xf32> to vector<2x32xf32>
    %796 = arith.divf %792, %795 : vector<2x32xf32>
    %797 = vector.shape_cast %796 : vector<2x32xf32> to vector<2x1x32xf32>
    "tpu.trace_start"() <{level = 10 : i32, message = "bqh,bhc->bqc"}> : () -> ()
    %cst_171 = arith.constant dense<0.000000e+00> : vector<2x1x32xf32>
    %798 = tpu.matmul %797, %0, %cst_171 {dimension_numbers = #tpu.dot_dimension_numbers<[2], [1], [1], [2], [0, 0, 0, 1, 1, 2], [0], [0]>} : vector<2x1x32xf32>, vector<2x32x32xf32>, vector<2x1x32xf32> -> vector<2x1x32xf32>
    "tpu.trace_stop"() : () -> ()
    %799 = vector.shape_cast %798 : vector<2x1x32xf32> to vector<2x32xf32>
    %cst_172 = arith.constant dense<0.000000e+00> : vector<2x128xf32>
    %800 = tpu.matmul %799, %14, %cst_172 {dimension_numbers = #tpu.dot_dimension_numbers<[1], [0], [0], [1], [0, 0, 1, 1], [], []>} : vector<2x32xf32>, vector<32x128xf32>, vector<2x128xf32> -> vector<2x128xf32>
    %801 = vector.broadcast %15 : vector<1x128xf32> to vector<2x128xf32>
    %802 = arith.addf %800, %801 : vector<2x128xf32>
    %cst_173 = arith.constant dense<0xFF800000> : vector<2xf32>
    %803 = vector.multi_reduction <maximumf>, %802, %cst_173 [1] : vector<2x128xf32> to vector<2xf32>
    %804 = vector.shape_cast %803 : vector<2xf32> to vector<2x1xf32>
    %805 = vector.broadcast %804 : vector<2x1xf32> to vector<2x128xf32>
    %806 = arith.cmpf oeq, %802, %805 : vector<2x128xf32>
    %c128_i32_174 = arith.constant 128 : i32
    %807 = vector.broadcast %c128_i32_174 : i32 to vector<2x128xi32>
    %808 = arith.select %806, %63, %807 : vector<2x128xi1>, vector<2x128xi32>
    %cst_175 = arith.constant dense<2147483647> : vector<2xi32>
    %809 = vector.multi_reduction <minsi>, %808, %cst_175 [1] : vector<2x128xi32> to vector<2xi32>
    %810 = vector.shape_cast %809 : vector<2xi32> to vector<2x1xi32>
    %811 = vector.broadcast %810 : vector<2x1xi32> to vector<2x128xi32>
    %812 = arith.cmpi eq, %63, %811 : vector<2x128xi32>
    %813 = arith.extui %812 : vector<2x128xi1> to vector<2x128xi32>
    %814 = arith.sitofp %813 : vector<2x128xi32> to vector<2x128xf32>
    %cst_176 = arith.constant dense<0.000000e+00> : vector<2x32xf32>
    %815 = tpu.matmul %814, %3, %cst_176 {dimension_numbers = #tpu.dot_dimension_numbers<[1], [0], [0], [1], [0, 0, 1, 1], [], []>} : vector<2x128xf32>, vector<128x32xf32>, vector<2x32xf32> -> vector<2x32xf32>
    %816 = vector.broadcast %804 : vector<2x1xf32> to vector<2x128xf32>
    %817 = arith.subf %802, %816 : vector<2x128xf32>
    %818 = math.exp %817 : vector<2x128xf32>
    %cst_177 = arith.constant dense<0.000000e+00> : vector<2xf32>
    %819 = vector.multi_reduction <add>, %818, %cst_177 [1] : vector<2x128xf32> to vector<2xf32>
    %820 = vector.shape_cast %819 : vector<2xf32> to vector<2x1xf32>
    %821 = vector.broadcast %820 : vector<2x1xf32> to vector<2x128xf32>
    %822 = arith.divf %818, %821 : vector<2x128xf32>
    %823 = arith.index_cast %c6_i32 : i32 to index
    %c0_178 = arith.constant 0 : index
    %c0_179 = arith.constant 0 : index
    %824 = vector.load %arg15[%823, %c0_178, %c0_179] : memref<8x2x128xf32, #tpu.memory_space<vmem>>, vector<1x2x128xf32>
    %825 = vector.shape_cast %824 : vector<1x2x128xf32> to vector<2x128xf32>
    %826 = vector.shape_cast %822 : vector<2x128xf32> to vector<1x2x128xf32>
    tpu.vector_store %arg15[%823, %c0_178, %c0_179], %826 {strides = array<i32>} : memref<8x2x128xf32, #tpu.memory_space<vmem>>, vector<1x2x128xf32>,
    %c7_i32 = arith.constant 7 : i32
    %827 = tpu.concatenate %815, %746 in 1 : vector<2x32xf32>, vector<2x32xf32> -> vector<2x64xf32>
    %cst_180 = arith.constant dense<0.000000e+00> : vector<2x128xf32>
    %828 = tpu.matmul %827, %4, %cst_180 {dimension_numbers = #tpu.dot_dimension_numbers<[1], [0], [0], [1], [0, 0, 1, 1], [], []>} : vector<2x64xf32>, vector<64x128xf32>, vector<2x128xf32> -> vector<2x128xf32>
    %829 = vector.broadcast %5 : vector<1x128xf32> to vector<2x128xf32>
    %830 = arith.addf %828, %829 : vector<2x128xf32>
    %831 = vector.extract_strided_slice %830 {offsets = [0, 0], sizes = [2, 32], strides = [1, 1]} : vector<2x128xf32> to vector<2x32xf32>
    %832 = arith.negf %831 : vector<2x32xf32>
    %833 = math.exp %832 : vector<2x32xf32>
    %cst_181 = arith.constant 1.000000e+00 : f32
    %834 = vector.broadcast %cst_181 : f32 to vector<2x32xf32>
    %835 = arith.addf %834, %833 : vector<2x32xf32>
    %836 = arith.divf %834, %835 : vector<2x32xf32>
    %837 = vector.extract_strided_slice %830 {offsets = [0, 32], sizes = [2, 32], strides = [1, 1]} : vector<2x128xf32> to vector<2x32xf32>
    %838 = arith.negf %837 : vector<2x32xf32>
    %839 = math.exp %838 : vector<2x32xf32>
    %cst_182 = arith.constant 1.000000e+00 : f32
    %840 = vector.broadcast %cst_182 : f32 to vector<2x32xf32>
    %841 = arith.addf %840, %839 : vector<2x32xf32>
    %842 = arith.divf %840, %841 : vector<2x32xf32>
    %843 = vector.extract_strided_slice %830 {offsets = [0, 64], sizes = [2, 32], strides = [1, 1]} : vector<2x128xf32> to vector<2x32xf32>
    %844 = math.tanh %843 : vector<2x32xf32>
    %845 = vector.extract_strided_slice %830 {offsets = [0, 96], sizes = [2, 32], strides = [1, 1]} : vector<2x128xf32> to vector<2x32xf32>
    %846 = arith.negf %845 : vector<2x32xf32>
    %847 = math.exp %846 : vector<2x32xf32>
    %cst_183 = arith.constant 1.000000e+00 : f32
    %848 = vector.broadcast %cst_183 : f32 to vector<2x32xf32>
    %849 = arith.addf %848, %847 : vector<2x32xf32>
    %850 = arith.divf %848, %849 : vector<2x32xf32>
    %851 = arith.mulf %842, %744 : vector<2x32xf32>
    %852 = arith.mulf %836, %844 : vector<2x32xf32>
    %853 = arith.addf %851, %852 : vector<2x32xf32>
    %854 = math.tanh %853 : vector<2x32xf32>
    %855 = arith.mulf %850, %854 : vector<2x32xf32>
    %856 = tpu.concatenate %855, %775 in 1 : vector<2x32xf32>, vector<2x32xf32> -> vector<2x64xf32>
    %cst_184 = arith.constant dense<0.000000e+00> : vector<2x128xf32>
    %857 = tpu.matmul %856, %6, %cst_184 {dimension_numbers = #tpu.dot_dimension_numbers<[1], [0], [0], [1], [0, 0, 1, 1], [], []>} : vector<2x64xf32>, vector<64x128xf32>, vector<2x128xf32> -> vector<2x128xf32>
    %858 = vector.broadcast %7 : vector<1x128xf32> to vector<2x128xf32>
    %859 = arith.addf %857, %858 : vector<2x128xf32>
    %860 = vector.extract_strided_slice %859 {offsets = [0, 0], sizes = [2, 32], strides = [1, 1]} : vector<2x128xf32> to vector<2x32xf32>
    %861 = arith.negf %860 : vector<2x32xf32>
    %862 = math.exp %861 : vector<2x32xf32>
    %cst_185 = arith.constant 1.000000e+00 : f32
    %863 = vector.broadcast %cst_185 : f32 to vector<2x32xf32>
    %864 = arith.addf %863, %862 : vector<2x32xf32>
    %865 = arith.divf %863, %864 : vector<2x32xf32>
    %866 = vector.extract_strided_slice %859 {offsets = [0, 32], sizes = [2, 32], strides = [1, 1]} : vector<2x128xf32> to vector<2x32xf32>
    %867 = arith.negf %866 : vector<2x32xf32>
    %868 = math.exp %867 : vector<2x32xf32>
    %cst_186 = arith.constant 1.000000e+00 : f32
    %869 = vector.broadcast %cst_186 : f32 to vector<2x32xf32>
    %870 = arith.addf %869, %868 : vector<2x32xf32>
    %871 = arith.divf %869, %870 : vector<2x32xf32>
    %872 = vector.extract_strided_slice %859 {offsets = [0, 64], sizes = [2, 32], strides = [1, 1]} : vector<2x128xf32> to vector<2x32xf32>
    %873 = math.tanh %872 : vector<2x32xf32>
    %874 = vector.extract_strided_slice %859 {offsets = [0, 96], sizes = [2, 32], strides = [1, 1]} : vector<2x128xf32> to vector<2x32xf32>
    %875 = arith.negf %874 : vector<2x32xf32>
    %876 = math.exp %875 : vector<2x32xf32>
    %cst_187 = arith.constant 1.000000e+00 : f32
    %877 = vector.broadcast %cst_187 : f32 to vector<2x32xf32>
    %878 = arith.addf %877, %876 : vector<2x32xf32>
    %879 = arith.divf %877, %878 : vector<2x32xf32>
    %880 = arith.mulf %871, %773 : vector<2x32xf32>
    %881 = arith.mulf %865, %873 : vector<2x32xf32>
    %882 = arith.addf %880, %881 : vector<2x32xf32>
    %883 = math.tanh %882 : vector<2x32xf32>
    %884 = arith.mulf %879, %883 : vector<2x32xf32>
    %cst_188 = arith.constant dense<0.000000e+00> : vector<2x32xf32>
    %885 = tpu.matmul %884, %8, %cst_188 {dimension_numbers = #tpu.dot_dimension_numbers<[1], [0], [0], [1], [0, 0, 1, 1], [], []>} : vector<2x32xf32>, vector<32x32xf32>, vector<2x32xf32> -> vector<2x32xf32>
    %886 = vector.broadcast %9 : vector<1x32xf32> to vector<2x32xf32>
    %887 = arith.addf %885, %886 : vector<2x32xf32>
    %888 = vector.shape_cast %887 : vector<2x32xf32> to vector<2x1x32xf32>
    %889 = vector.broadcast %888 : vector<2x1x32xf32> to vector<2x32x32xf32>
    %890 = arith.addf %1, %889 : vector<2x32x32xf32>
    %891 = math.tanh %890 : vector<2x32x32xf32>
    %892 = vector.broadcast %11 : vector<1x1x32xf32> to vector<2x32x32xf32>
    %893 = arith.mulf %891, %892 : vector<2x32x32xf32>
    %cst_189 = arith.constant dense<0.000000e+00> : vector<2x32xf32>
    %894 = vector.multi_reduction <add>, %893, %cst_189 [2] : vector<2x32x32xf32> to vector<2x32xf32>
    %895 = vector.broadcast %13 : f32 to vector<2x32xf32>
    %896 = arith.addf %894, %895 : vector<2x32xf32>
    %cst_190 = arith.constant dense<0xFF800000> : vector<2xf32>
    %897 = vector.multi_reduction <maximumf>, %896, %cst_190 [1] : vector<2x32xf32> to vector<2xf32>
    %898 = vector.shape_cast %897 : vector<2xf32> to vector<2x1xf32>
    %899 = vector.broadcast %898 : vector<2x1xf32> to vector<2x32xf32>
    %900 = arith.subf %896, %899 : vector<2x32xf32>
    %901 = math.exp %900 : vector<2x32xf32>
    %cst_191 = arith.constant dense<0.000000e+00> : vector<2xf32>
    %902 = vector.multi_reduction <add>, %901, %cst_191 [1] : vector<2x32xf32> to vector<2xf32>
    %903 = vector.shape_cast %902 : vector<2xf32> to vector<2x1xf32>
    %904 = vector.broadcast %903 : vector<2x1xf32> to vector<2x32xf32>
    %905 = arith.divf %901, %904 : vector<2x32xf32>
    %906 = vector.shape_cast %905 : vector<2x32xf32> to vector<2x1x32xf32>
    "tpu.trace_start"() <{level = 10 : i32, message = "bqh,bhc->bqc"}> : () -> ()
    %cst_192 = arith.constant dense<0.000000e+00> : vector<2x1x32xf32>
    %907 = tpu.matmul %906, %0, %cst_192 {dimension_numbers = #tpu.dot_dimension_numbers<[2], [1], [1], [2], [0, 0, 0, 1, 1, 2], [0], [0]>} : vector<2x1x32xf32>, vector<2x32x32xf32>, vector<2x1x32xf32> -> vector<2x1x32xf32>
    "tpu.trace_stop"() : () -> ()
    %908 = vector.shape_cast %907 : vector<2x1x32xf32> to vector<2x32xf32>
    %cst_193 = arith.constant dense<0.000000e+00> : vector<2x128xf32>
    %909 = tpu.matmul %908, %14, %cst_193 {dimension_numbers = #tpu.dot_dimension_numbers<[1], [0], [0], [1], [0, 0, 1, 1], [], []>} : vector<2x32xf32>, vector<32x128xf32>, vector<2x128xf32> -> vector<2x128xf32>
    %910 = vector.broadcast %15 : vector<1x128xf32> to vector<2x128xf32>
    %911 = arith.addf %909, %910 : vector<2x128xf32>
    %cst_194 = arith.constant dense<0xFF800000> : vector<2xf32>
    %912 = vector.multi_reduction <maximumf>, %911, %cst_194 [1] : vector<2x128xf32> to vector<2xf32>
    %913 = vector.shape_cast %912 : vector<2xf32> to vector<2x1xf32>
    %914 = vector.broadcast %913 : vector<2x1xf32> to vector<2x128xf32>
    %915 = arith.cmpf oeq, %911, %914 : vector<2x128xf32>
    %c128_i32_195 = arith.constant 128 : i32
    %916 = vector.broadcast %c128_i32_195 : i32 to vector<2x128xi32>
    %917 = arith.select %915, %63, %916 : vector<2x128xi1>, vector<2x128xi32>
    %cst_196 = arith.constant dense<2147483647> : vector<2xi32>
    %918 = vector.multi_reduction <minsi>, %917, %cst_196 [1] : vector<2x128xi32> to vector<2xi32>
    %919 = vector.shape_cast %918 : vector<2xi32> to vector<2x1xi32>
    %920 = vector.broadcast %919 : vector<2x1xi32> to vector<2x128xi32>
    %921 = arith.cmpi eq, %63, %920 : vector<2x128xi32>
    %922 = arith.extui %921 : vector<2x128xi1> to vector<2x128xi32>
    %923 = arith.sitofp %922 : vector<2x128xi32> to vector<2x128xf32>
    %cst_197 = arith.constant dense<0.000000e+00> : vector<2x32xf32>
    %924 = tpu.matmul %923, %3, %cst_197 {dimension_numbers = #tpu.dot_dimension_numbers<[1], [0], [0], [1], [0, 0, 1, 1], [], []>} : vector<2x128xf32>, vector<128x32xf32>, vector<2x32xf32> -> vector<2x32xf32>
    %925 = vector.broadcast %913 : vector<2x1xf32> to vector<2x128xf32>
    %926 = arith.subf %911, %925 : vector<2x128xf32>
    %927 = math.exp %926 : vector<2x128xf32>
    %cst_198 = arith.constant dense<0.000000e+00> : vector<2xf32>
    %928 = vector.multi_reduction <add>, %927, %cst_198 [1] : vector<2x128xf32> to vector<2xf32>
    %929 = vector.shape_cast %928 : vector<2xf32> to vector<2x1xf32>
    %930 = vector.broadcast %929 : vector<2x1xf32> to vector<2x128xf32>
    %931 = arith.divf %927, %930 : vector<2x128xf32>
    %932 = arith.index_cast %c7_i32 : i32 to index
    %c0_199 = arith.constant 0 : index
    %c0_200 = arith.constant 0 : index
    %933 = vector.load %arg15[%932, %c0_199, %c0_200] : memref<8x2x128xf32, #tpu.memory_space<vmem>>, vector<1x2x128xf32>
    %934 = vector.shape_cast %933 : vector<1x2x128xf32> to vector<2x128xf32>
    %935 = vector.shape_cast %931 : vector<2x128xf32> to vector<1x2x128xf32>
    tpu.vector_store %arg15[%932, %c0_199, %c0_200], %935 {strides = array<i32>} : memref<8x2x128xf32, #tpu.memory_space<vmem>>, vector<1x2x128xf32>,
    %c8_i32 = arith.constant 8 : i32
    return
  }
  func.func @transform_0(%arg0: i32) -> (i32, i32, i32) {
    %c0_i32 = arith.constant 0 : i32
    %c0_i32_0 = arith.constant 0 : i32
    %c0_i32_1 = arith.constant 0 : i32
    return %arg0, %c0_i32, %c0_i32_0 : i32, i32, i32
  }
  func.func @transform_1(%arg0: i32) -> (i32, i32) {
    %c0_i32 = arith.constant 0 : i32
    %c0_i32_0 = arith.constant 0 : i32
    return %arg0, %c0_i32 : i32, i32
  }
  func.func @transform_2(%arg0: i32) -> (i32, i32, i32) {
    %c0_i32 = arith.constant 0 : i32
    %c0_i32_0 = arith.constant 0 : i32
    %c0_i32_1 = arith.constant 0 : i32
    return %arg0, %c0_i32, %c0_i32_0 : i32, i32, i32
  }
  func.func @transform_3(%arg0: i32) -> (i32, i32) {
    %c0_i32 = arith.constant 0 : i32
    %c0_i32_0 = arith.constant 0 : i32
    %c0_i32_1 = arith.constant 0 : i32
    return %c0_i32, %c0_i32_0 : i32, i32
  }
  func.func @transform_4(%arg0: i32) -> (i32, i32) {
    %c0_i32 = arith.constant 0 : i32
    %c0_i32_0 = arith.constant 0 : i32
    %c0_i32_1 = arith.constant 0 : i32
    return %c0_i32, %c0_i32_0 : i32, i32
  }
  func.func @transform_5(%arg0: i32) -> (i32, i32) {
    %c0_i32 = arith.constant 0 : i32
    %c0_i32_0 = arith.constant 0 : i32
    %c0_i32_1 = arith.constant 0 : i32
    return %c0_i32, %c0_i32_0 : i32, i32
  }
  func.func @transform_6(%arg0: i32) -> (i32, i32) {
    %c0_i32 = arith.constant 0 : i32
    %c0_i32_0 = arith.constant 0 : i32
    %c0_i32_1 = arith.constant 0 : i32
    return %c0_i32, %c0_i32_0 : i32, i32
  }
  func.func @transform_7(%arg0: i32) -> (i32, i32) {
    %c0_i32 = arith.constant 0 : i32
    %c0_i32_0 = arith.constant 0 : i32
    %c0_i32_1 = arith.constant 0 : i32
    return %c0_i32, %c0_i32_0 : i32, i32
  }
  func.func @transform_8(%arg0: i32) -> (i32, i32) {
    %c0_i32 = arith.constant 0 : i32
    %c0_i32_0 = arith.constant 0 : i32
    %c0_i32_1 = arith.constant 0 : i32
    return %c0_i32, %c0_i32_0 : i32, i32
  }
  func.func @transform_9(%arg0: i32) -> (i32, i32) {
    %c0_i32 = arith.constant 0 : i32
    %c0_i32_0 = arith.constant 0 : i32
    %c0_i32_1 = arith.constant 0 : i32
    return %c0_i32, %c0_i32_0 : i32, i32
  }
  func.func @transform_10(%arg0: i32) -> (i32, i32) {
    %c0_i32 = arith.constant 0 : i32
    %c0_i32_0 = arith.constant 0 : i32
    %c0_i32_1 = arith.constant 0 : i32
    return %c0_i32, %c0_i32_0 : i32, i32
  }
  func.func @transform_11(%arg0: i32) -> (i32, i32) {
    %c0_i32 = arith.constant 0 : i32
    %c0_i32_0 = arith.constant 0 : i32
    %c0_i32_1 = arith.constant 0 : i32
    return %c0_i32, %c0_i32_0 : i32, i32
  }
  func.func @transform_12(%arg0: i32) -> (i32, i32) {
    %c0_i32 = arith.constant 0 : i32
    %c0_i32_0 = arith.constant 0 : i32
    %c0_i32_1 = arith.constant 0 : i32
    return %c0_i32, %c0_i32_0 : i32, i32
  }
  func.func @transform_13(%arg0: i32) -> (i32, i32) {
    %c0_i32 = arith.constant 0 : i32
    %c0_i32_0 = arith.constant 0 : i32
    %c0_i32_1 = arith.constant 0 : i32
    return %c0_i32, %c0_i32_0 : i32, i32
  }
  func.func @transform_14(%arg0: i32) -> (i32, i32, i32) {
    %c0_i32 = arith.constant 0 : i32
    %c0_i32_0 = arith.constant 0 : i32
    %c0_i32_1 = arith.constant 0 : i32
    return %c0_i32, %arg0, %c0_i32_0 : i32, i32, i32
  }
}

</mosaic_0001>

<bundles_post_ra>
// kernel: tpu_custom_call.1
= control target key start
LH: loop header
LB: loop body
LE: loop exit
PB: predicated region body
PF: predicated region fallthrough
CT: control target
= control target key end

     0   :  { %s12743_s0 = inlined_call_operand.vmem [shape: f32[2,32,32], index: 0, kind: input, shape index: {}]   ;;  %s12744_s1 = inlined_call_operand.vmem [shape: f32[2,32], index: 1, kind: input, shape index: {}]   ;;  %s12745_s2 = inlined_call_operand.vmem [shape: f32[2,32,32], index: 2, kind: input, shape index: {}]   ;;  %s12746_s3 = inlined_call_operand.hbm [shape: f32[64,128], index: 3, kind: input, shape index: {}]   ;;  %s12747_s4 = inlined_call_operand.vmem [shape: f32[1,128], index: 4, kind: input, shape index: {}]   ;;  %s12748_s5 = inlined_call_operand.hbm [shape: f32[64,128], index: 5, kind: input, shape index: {}]   ;;  %s12749_s6 = inlined_call_operand.vmem [shape: f32[1,128], index: 6, kind: input, shape index: {}]   ;;  %s12750_s7 = inlined_call_operand.vmem [shape: f32[32,32], index: 7, kind: input, shape index: {}]   ;;  %s12751_s8 = inlined_call_operand.vmem [shape: f32[1,32], index: 8, kind: input, shape index: {}]   ;;  %s12752_s9 = inlined_call_operand.vmem [shape: f32[1,32], index: 9, kind: input, shape index: {}]   ;;  %s12753_s10 = inlined_call_operand.<no memory space> [shape: f32[1,1], index: 10, kind: input, shape index: {}]   ;;  %s12754_s11 = inlined_call_operand.vmem [shape: f32[128,32], index: 11, kind: input, shape index: {}]   ;;  %s12755_s12 = inlined_call_operand.hbm [shape: f32[32,128], index: 12, kind: input, shape index: {}]   ;;  %s12756_s13 = inlined_call_operand.vmem [shape: f32[1,128], index: 13, kind: input, shape index: {}]   ;;  %s12757_s14 = inlined_call_operand.hbm [shape: f32[8,2,128], index: 14, kind: output, shape index: {}]  }
   0x1   :  { %v19_v0 = vstv %s12753_s10 }
   0x2   :  { %20 = vst [vmem:[#allocation2] sm:$0x1] %v19_v0 }
   0x3   :  { %21 = vsyncpa [#allocation4], 0 }
   0x4   :  { %22 = vsyncpa [#allocation7], 0 }
   0x5   :  { %23 = vsyncpa [#allocation5], 0  ;;  %s10508_s15 = smov [#allocation6]   ;;  %s10509_s17 = smov [#allocation3]  }
   0x6   :  { %s49_s16 = sshll.u32 %s10508_s15, 4  ;;  %s35_s18 = sshll.u32 %s10509_s17, 4  ;;  %s50_s16 = int_to_ptr.vmem [resolvable:$true] %s49_s16  ;;  %s10602_s18 = int_to_ptr.vmem [resolvable:$true] %s35_s18 }
   0x7   :  { %s10414_s21 = scalar_lea.hbm %s12748_s5, 1024 }
   0x8   :  { %p10415_p0 = scmp.ne.s32.totalorder %s12748_s5, %s10414_s21  ;;  %p10418_p1 = scmp.lt.u32.totalorder %s10414_s21, %s12748_s5 }
   0xa   :  { %p10420_p2 = pnand %p10418_p1, %p10415_p0 }
   0xc   :  { %10423 = shalt.err (!%p10420_p2)
}
   0xd   :  { %s10424_s25 = scalar_lea.vmem %s50_s16, 1024  ;;  %p10429_p4 = scmp.lt.s32.totalorder %s50_s16, %s50_s16 }
   0xe   :  { %p10425_p3 = scmp.ne.s32.totalorder %s50_s16, %s10424_s25  ;;  %p10430_p5 = scmp.lt.s32.totalorder %s10424_s25, %s10424_s25 }
  0x10   :  { %p10431_p6 = por %p10430_p5, %p10429_p4 }
  0x12   :  { %p10432_p7 = pnand %p10431_p6, %p10425_p3 }
  0x14   :  { %10435 = shalt.err (!%p10432_p7)
}
  0x15   :  { %s10510_s26 = smov 128   ;;  %s10511_s27 = smov 8  }
  0x16   :  { %55 = dma.hbm_to_vmem [thread:$0]  %s12748_s5, 1024, %s50_s16, [#allocation7], %s10510_s26, %s10510_s26, %s10511_s27  }
  0x17   :  { %s10436_s17 = scalar_lea.hbm %s12746_s3, 1024 }
  0x18   :  { %p10437_p8 = scmp.ne.s32.totalorder %s12746_s3, %s10436_s17  ;;  %p10440_p9 = scmp.lt.u32.totalorder %s10436_s17, %s12746_s3 }
  0x1a   :  { %p10442_p10 = pnand %p10440_p9, %p10437_p8 }
  0x1c   :  { %10445 = shalt.err (!%p10442_p10)
}
  0x1d   :  { %s10446_s23 = scalar_lea.vmem %s10602_s18, 1024  ;;  %p10451_p12 = scmp.lt.s32.totalorder %s10602_s18, %s10602_s18 }
  0x1e   :  { %p10447_p11 = scmp.ne.s32.totalorder %s10602_s18, %s10446_s23  ;;  %p10452_p13 = scmp.lt.s32.totalorder %s10446_s23, %s10446_s23 }
  0x20   :  { %p10453_p0 = por %p10452_p13, %p10451_p12 }
  0x22   :  { %p10454_p1 = pnand %p10453_p0, %p10447_p11 }
  0x24   :  { %10457 = shalt.err (!%p10454_p1)
}
  0x25   :  { %41 = dma.hbm_to_vmem [thread:$0]  %s12746_s3, 1024, %s10602_s18, [#allocation4], %s10510_s26, %s10510_s26, %s10511_s27  }
  0x26   :  { %s10512_s10 = smov [#allocation8]   ;;  %s10458_s29 = scalar_lea.hbm %s12755_s12, 512 }
  0x27   :  { %s73_s24 = sshll.u32 %s10512_s10, 4  ;;  %p10459_p2 = scmp.ne.s32.totalorder %s12755_s12, %s10458_s29  ;;  %s74_s24 = int_to_ptr.vmem [resolvable:$true] %s73_s24 }
  0x28   :  { %p10462_p3 = scmp.lt.u32.totalorder %s10458_s29, %s12755_s12 }
  0x2a   :  { %p10464_p4 = pnand %p10462_p3, %p10459_p2 }
  0x2c   :  { %10467 = shalt.err (!%p10464_p4)
}
  0x2d   :  { %s10468_s20 = scalar_lea.vmem %s74_s24, 512  ;;  %p10473_p6 = scmp.lt.s32.totalorder %s74_s24, %s74_s24 }
  0x2e   :  { %p10469_p5 = scmp.ne.s32.totalorder %s74_s24, %s10468_s20  ;;  %p10474_p7 = scmp.lt.s32.totalorder %s10468_s20, %s10468_s20 }
  0x30   :  { %p10475_p8 = por %p10474_p7, %p10473_p6 }
  0x32   :  { %p10476_p9 = pnand %p10475_p8, %p10469_p5 }
  0x34   :  { %10479 = shalt.err (!%p10476_p9)
}
  0x35   :  { %79 = dma.hbm_to_vmem [thread:$0]  %s12755_s12, 512, %s74_s24, [#allocation7], %s10510_s26, %s10510_s26, %s10511_s27  }
  0x36   :  { %10502 = dma.done.wait [#allocation4], 1024  }
  0x37   :  { %10503 = vsyncadd [#allocation4], 4294966272 }
  0x38   :  { %10504 = dma.done.wait [#allocation7], 1536  }
  0x39   :  { %10505 = vsyncadd [#allocation7], 4294965760  ;;  %v12760_v1 = vmov 0.0|0.0   ;;  %vm10514_vm0 = vmmov 0   ;;  %v12762_v2 = vmov 0.0   ;;  %v124_v3 = vld [vmem:[#allocation3] sm:$0xff]  ;;  %v352_v36 = vlaneseq }
  0x3a   :  { %9326 = vmatprep.subr.bf16.mxu0 %v12760_v1  ;;  %8411 = vmatprep.mubr.msk.f32.mxu0 %vm10514_vm0, %v12762_v2  ;;  %v125_v4 = vld [vmem:[#allocation3 + $0x8] sm:$0xff]  ;;  %v126_v5 = vld [vmem:[#allocation3 + $0x10] sm:$0xff]  ;;  %v127_v7 = vld [vmem:[#allocation3 + $0x18] sm:$0xff]  ;;  %vm161_vm1 = vcmask 261120   ;;  %s10517_s22 = smov 96   ;;  %s10518_s23 = smov 32  }
  0x3b   :  { %9332 = vmatprep.subr.bf16.mxu1 %v12760_v1  ;;  %8422 = vmatprep.mubr.msk.f32.mxu1 %vm10514_vm0, %v12762_v2  ;;  %v10660_v6 = vpack.c.bf16 %v125_v4, %v124_v3  ;;  %v10663_v8 = vpack.c.bf16 %v127_v7, %v126_v5  ;;  %v107_v9 = vld [vmem:[%s12744_s1] sm:$0x3]  ;;  %s10516_s1 = smov 64   ;;  %v129_v22 = vld [vmem:[#allocation3 + $0x28] sm:$0xff]  ;;  %v130_v26 = vld [vmem:[#allocation3 + $0x30] sm:$0xff]  ;;  %v10706_v37 = vshrl.u32 %v352_v36, 7 }
  0x3c   :  { %v10681_v10 = vld [vmem:[%s12747_s4] ss:$0 sm:$0xff]  ;;  %v128_v21 = vld [vmem:[#allocation3 + $0x20] sm:$0xff]  ;;  %v134_v25 = vld [vmem:[#allocation6 + $0x8] sm:$0xff]  ;;  %vm362_vm2 = vcmask 523264   ;;  %vm768_vm3 = vcmask 130112  }
  0x3d   :  { %9328 = vmatpush3.bf16.msra.mxu0 %v10660_v6  ;;  %v133_v23 = vld [vmem:[#allocation6] sm:$0xff]  ;;  %v10685_v24 = vpack.c.bf16 %v129_v22, %v128_v21  ;;  %v131_v27 = vld [vmem:[#allocation3 + $0x38] sm:$0xff]  ;;  %v135_v31 = vld [vmem:[#allocation6 + $0x10] sm:$0xff]  ;;  %v10709_v38 = vsub.s32 0, %v10706_v37  ;;  %vm775_vm4 = vcmask 195712   ;;  %vm782_vm5 = vcmask 261312  }
  0x3e   :  { %9329 = vmatprep.subr.bf16.mxu0 %v12760_v1  ;;  %v10687_v29 = vpack.c.bf16 %v134_v25, %v133_v23  ;;  %v10691_v30 = vpack.c.bf16 %v131_v27, %v130_v26  ;;  %v136_v32 = vld [vmem:[#allocation6 + $0x18] sm:$0xff]  ;;  %vm803_vm6 = vcmask 1041409   ;;  %vm806_vm7 = vcmask 254976  }
  0x3f   :  { %v10698_v33 = vpack.c.bf16 %v136_v32, %v135_v31  ;;  %v10714_v39 = vld [vmem:[%s12754_s11] sm:$0xff]  ;;  %vm1237_vm8 = vcmask 1041408  }
  0x40   :  { %9334 = vmatpush3.bf16.msra.mxu1 %v10687_v29  ;;  %v355_v40 = vrot.slane %v10714_v39, %v10709_v38  ;;  %v10733_v47 = vld [vmem:[%s12749_s6] ss:$0 sm:$0xff] }
  0x41   :  { %9331 = vmatpush3.bf16.msra.mxu0 %v10663_v8  ;;  %9335 = vmatprep.subr.bf16.mxu1 %v12760_v1 }
  0x42   :  { %9338 = vmatprep.subr.bf16.mxu0 %v12760_v1 }
  0x44   :  { %8412 = vmatmul.mubr.msk.f32.vlgmr.msra.gmra.mrb[0].mxu0 %vm161_vm1, %v107_v9  ;;  %9337 = vmatpush3.bf16.msra.mxu1 %v10698_v33 }
  0x45   :  { %9340 = vmatpush3.bf16.msra.mxu0 %v10660_v6  ;;  %8441 = vmatprep.mubr.msk.f32.mxu0 %vm10514_vm0, %v12762_v2 }
  0x46   :  { %9341 = vmatprep.subr.bf16.mxu0 %v12760_v1  ;;  %9350 = vmatprep.subr.bf16.mxu1 %v12760_v1 }
  0x49   :  { %9343 = vmatpush3.bf16.msra.mxu0 %v10663_v8 }
  0x4a   :  { %9344 = vmatprep.subr.bf16.mxu0 %v12760_v1 }
  0x4d   :  { %9346 = vmatpush3.bf16.msra.mxu0 %v10685_v24 }
  0x4e   :  { %9347 = vmatprep.subr.bf16.mxu0 %v12760_v1 }
  0x51   :  { %9349 = vmatpush3.bf16.msra.mxu0 %v10691_v30 }
  0x52   :  { %9362 = vmatprep.subr.bf16.mxu0 %v12760_v1 }
 0x117   :  { %v231_v11 = vpop.f32.mrb[0].mxu0 }
 0x118   :  { %v232_v12 = vadd.f32 %v10681_v10, %v231_v11  ;;  %v8413_v13 = vpop.f32.mrb[1].mxu0  ;;  %v138_v11 = vld [vmem:[#allocation6 + $0x28] sm:$0xff] }
 0x11a   :  { %9910 = vtanh.f32 %v232_v12  ;;  %v7885_v15 = vmul.f32 -1.442695, %v232_v12  ;;  %v139_v12 = vld [vmem:[#allocation6 + $0x30] sm:$0xff] }
 0x11c   :  { %9912 = vpow2.f32 %v7885_v15 }
 0x124   :  { %v9911_v14 = vpop.eup %9910 }
 0x125   :  { %243 = vrot.lane.b32.xlu0 %v9911_v14, %s10516_s1  ;;  %v140_v14 = vld [vmem:[#allocation6 + $0x38] sm:$0xff] }
 0x126   :  { %v9913_v16 = vpop.eup %9912  ;;  %v10746_v15 = vpack.c.bf16 %v140_v14, %v139_v12  ;;  %v10820_v12 = vld [vmem:[%s12745_s2 + $0x10] sm:$0xff] }
 0x127   :  { %v238_v17 = vadd.f32 1.0, %v9913_v16 }
 0x129   :  { %9914 = vrcp.f32 %v238_v17 }
 0x133   :  { %v9915_v18 = vpop.eup %9914 }
 0x197   :  { %v244_v19 = vpop.permute.xlu0 %243 }
 0x198   :  { %v246_v20 = vmul.f32 %v9915_v18, %v244_v19 }
 0x19a   :  { %9916 = vtanh.f32 %v246_v20 }
 0x1a4   :  { %v9917_v28 = vpop.eup %9916 }
 0x1a5   :  { %249 = vrot.lane.b32.xlu0 %v9917_v28, %s10517_s22 }
 0x217   :  { %v250_v34 = vpop.permute.xlu0 %249 }
 0x218   :  { %v252_v35 = vmul.f32 %v9915_v18, %v250_v34 }
 0x21a   :  { %358 = vrot.lane.b32.xlu1 %v252_v35, %s10516_s1 }
 0x21e   :  { %260 = vrot.lane.b32.xlu1 %v252_v35, %s10518_s23 }
 0x222   :  { %444 = vrot.lane.b32.xlu1 %v246_v20, %s10518_s23 }
 0x28c   :  { %v359_v41 = vpop.permute.xlu1 %358 }
 0x28d   :  { %v361_v42 = vsel %vm161_vm1, %v355_v40, %v359_v41 }
 0x28e   :  { %8442 = vmatmul.mubr.msk.f32.vlgmr.msra.gmra.mrb[2].mxu0 %vm362_vm2, %v361_v42 }
 0x28f   :  { %8471 = vmatprep.mubr.msk.f32.mxu0 %vm10514_vm0, %v12762_v2 }
 0x290   :  { %v261_v43 = vpop.permute.xlu1 %260 }
 0x291   :  { %8423 = vmatmul.mubr.msk.f32.vlgmr.msra.gmra.mrb[0].mxu1 %vm161_vm1, %v261_v43 }
 0x292   :  { %9352 = vmatpush3.bf16.msra.mxu1 %v10687_v29  ;;  %8460 = vmatprep.mubr.msk.f32.mxu1 %vm10514_vm0, %v12762_v2 }
 0x293   :  { %9353 = vmatprep.subr.bf16.mxu1 %v12760_v1 }
 0x294   :  { %v445_v4 = vpop.permute.xlu1 %444 }
 0x296   :  { %9355 = vmatpush3.bf16.msra.mxu1 %v10698_v33 }
 0x297   :  { %9356 = vmatprep.subr.bf16.mxu1 %v12760_v1 }
 0x361   :  { %v432_v44 = vpop.f32.mrb[2].mxu0 }
 0x362   :  { %v433_v45 = vadd.f32 %v10681_v10, %v432_v44  ;;  %v8443_v46 = vpop.f32.mrb[3].mxu0  ;;  %v137_v10 = vld [vmem:[#allocation6 + $0x20] sm:$0xff] }
 0x363   :  { %v10743_v13 = vpack.c.bf16 %v138_v11, %v137_v10  ;;  %v142_v46 = vld [vmem:[%s12750_s7] sm:$0xff]  ;;  %v10810_v10 = vld [vmem:[%s12745_s2 + $0x8] sm:$0xff] }
 0x364   :  { %9918 = vtanh.f32 %v433_v45  ;;  %v330_v48 = vpop.f32.mrb[0].mxu1  ;;  %v7890_v53 = vmul.f32 -1.442695, %v433_v45  ;;  %v10815_v11 = vld [vmem:[%s12745_s2] sm:$0xff] }
 0x365   :  { %v331_v49 = vadd.f32 %v10733_v47, %v330_v48  ;;  %v8424_v50 = vpop.f32.mrb[1].mxu1  ;;  %9358 = vmatpush3.bf16.msra.mxu1 %v10743_v13  ;;  %v143_v48 = vld [vmem:[%s12750_s7 + $0x8] sm:$0xff] }
 0x366   :  { %9359 = vmatprep.subr.bf16.mxu1 %v12760_v1  ;;  %v10777_v50 = vpack.c.bf16 %v143_v48, %v142_v46 }
 0x367   :  { %9920 = vtanh.f32 %v331_v49  ;;  %v7888_v54 = vmul.f32 -1.442695, %v331_v49  ;;  %v144_v49 = vld [vmem:[%s12750_s7 + $0x10] sm:$0xff] }
 0x368   :  { %9922 = vpow2.f32 %v7890_v53  ;;  %9364 = vmatpush3.bf16.msra.mxu0 %v10777_v50 }
 0x369   :  { %9924 = vpow2.f32 %v7888_v54  ;;  %9361 = vmatpush3.bf16.msra.mxu1 %v10746_v15  ;;  %9365 = vmatprep.subr.bf16.mxu0 %v12760_v1 }
 0x36a   :  { %9368 = vmatprep.subr.bf16.mxu1 %v12760_v1 }
 0x36e   :  { %v9919_v51 = vpop.eup %9918 }
 0x36f   :  { %449 = vrot.lane.b32.xlu0 %v9919_v51, %s10516_s1  ;;  %v145_v51 = vld [vmem:[%s12750_s7 + $0x18] sm:$0xff] }
 0x371   :  { %v9921_v52 = vpop.eup %9920 }
 0x372   :  { %v9923_v55 = vpop.eup %9922 }
 0x373   :  { %342 = vrot.lane.b32.xlu0 %v9921_v52, %s10516_s1  ;;  %v439_v56 = vadd.f32 1.0, %v9923_v55  ;;  %v9925_v57 = vpop.eup %9924  ;;  %v10783_v52 = vpack.c.bf16 %v145_v51, %v144_v49 }
 0x374   :  { %v337_v58 = vadd.f32 1.0, %v9925_v57  ;;  %v148_v57 = vld [vmem:[#allocation2] sm:$0x1] }
 0x375   :  { %9926 = vrcp.f32 %v439_v56  ;;  %9367 = vmatpush3.bf16.msra.mxu0 %v10783_v52  ;;  %9890 = vpush %v148_v57 }
 0x376   :  { %9928 = vrcp.f32 %v337_v58  ;;  %9374 = vmatprep.subr.bf16.mxu0 %v12760_v1  ;;  %v10519_v58 = vmov 1966171168  }
 0x37f   :  { %v9927_v59 = vpop.eup %9926 }
 0x380   :  { %v9929_v62 = vpop.eup %9928  ;;  %v447_v5 = vmul.f32 %v9927_v59, %v445_v4 }
 0x3a6   :  { %s9891_s7 = spop %9890 }
 0x3e1   :  { %v450_v60 = vpop.permute.xlu0 %449 }
 0x3e2   :  { %v452_v61 = vmul.f32 %v9927_v59, %v450_v60 }
 0x3e4   :  { %454 = vrot.lane.b32.xlu1 %v452_v61, %s10518_s23  ;;  %v10799_v61 = vld [vmem:[%s12751_s8] ss:$0 sm:$0xff] }
 0x3e5   :  { %v343_v63 = vpop.permute.xlu0 %342 }
 0x3e6   :  { %v345_v0 = vmul.f32 %v9929_v62, %v343_v63 }
 0x3e8   :  { %9930 = vtanh.f32 %v345_v0 }
 0x3f2   :  { %v9931_v3 = vpop.eup %9930 }
 0x3f3   :  { %348 = vrot.lane.b32.xlu0 %v9931_v3, %s10517_s22 }
 0x456   :  { %v455_v7 = vpop.permute.xlu1 %454 }
 0x457   :  { %v10740_v9 = vadd.f32 %v455_v7, %v447_v5 }
 0x459   :  { %9932 = vtanh.f32 %v10740_v9 }
 0x463   :  { %v9933_v16 = vpop.eup %9932 }
 0x464   :  { %460 = vrot.lane.b32.xlu1 %v9933_v16, %s10516_s1 }
 0x465   :  { %v349_v17 = vpop.permute.xlu0 %348 }
 0x466   :  { %v351_v18 = vmul.f32 %v9929_v62, %v349_v17  ;;  %v10827_v17 = vld [vmem:[%s12745_s2 + $0x28] sm:$0xff] }
 0x468   :  { %469 = vrot.lane.b32.xlu1 %v351_v18, %s10516_s1  ;;  %v10832_v18 = vld [vmem:[%s12745_s2 + $0x20] sm:$0xff] }
 0x46c   :  { %554 = vrot.lane.b32.xlu1 %v345_v0, %s10518_s23 }
 0x4d6   :  { %v461_v19 = vpop.permute.xlu1 %460 }
 0x4d7   :  { %v10754_v20 = vmul.f32 %v9927_v59, %v461_v19  ;;  %v657_v59 = vunpack.c.l.s4 %v10519_v58 }
 0x4d9   :  { %465 = vrot.lane.b32.xlu0 %v10754_v20, %s10518_s23  ;;  %v658_v60 = vunpack.c.0.s8 %v657_v59 }
 0x4da   :  { %v470_v21 = vpop.permute.xlu1 %469 }
 0x4db   :  { %v10802_v62 = vsub.s32 %v658_v60, %v10706_v37 }
 0x4dd   :  { %12828 = vst [vmem:[#allocation13_spill] sm:$0xff] %v10802_v62 }
 0x4de   :  { %v555_v42 = vpop.permute.xlu1 %554 }
 0x54b   :  { %v466_v22 = vpop.permute.xlu0 %465 }
 0x54c   :  { %v472_v23 = vsel %vm161_vm1, %v466_v22, %v470_v21 }
 0x54d   :  { %8461 = vmatmul.mubr.msk.f32.vlgmr.msra.gmra.mrb[2].mxu1 %vm362_vm2, %v472_v23 }
 0x54e   :  { %8482 = vmatprep.mubr.msk.f32.mxu1 %vm10514_vm0, %v12762_v2 }
 0x620   :  { %v542_v25 = vpop.f32.mrb[2].mxu1 }
 0x621   :  { %v543_v26 = vadd.f32 %v10733_v47, %v542_v25  ;;  %v8462_v27 = vpop.f32.mrb[3].mxu1  ;;  %v10841_v25 = vld [vmem:[%s12745_s2 + $0x30] sm:$0xff] }
 0x623   :  { %9934 = vtanh.f32 %v543_v26  ;;  %v7892_v31 = vmul.f32 -1.442695, %v543_v26 }
 0x625   :  { %9936 = vpow2.f32 %v7892_v31  ;;  %v10849_v31 = vld [vmem:[%s12745_s2 + $0x18] sm:$0xff] }
 0x62d   :  { %v9935_v28 = vpop.eup %9934 }
 0x62e   :  { %559 = vrot.lane.b32.xlu0 %v9935_v28, %s10516_s1 }
 0x62f   :  { %v9937_v32 = vpop.eup %9936 }
 0x630   :  { %v549_v34 = vadd.f32 1.0, %v9937_v32  ;;  %v10854_v32 = vld [vmem:[%s12745_s2 + $0x38] sm:$0xff] }
 0x632   :  { %9938 = vrcp.f32 %v549_v34 }
 0x63c   :  { %v9939_v35 = vpop.eup %9938 }
 0x63d   :  { %v557_v43 = vmul.f32 %v9939_v35, %v555_v42 }
 0x6a0   :  { %v560_v40 = vpop.permute.xlu0 %559 }
 0x6a1   :  { %v562_v41 = vmul.f32 %v9939_v35, %v560_v40  ;;  %v10861_v40 = vld [vmem:[%s12752_s9] ss:$0 sm:$0xff] }
 0x6a3   :  { %564 = vrot.lane.b32.xlu0 %v562_v41, %s10518_s23 }
 0x715   :  { %v565_v44 = vpop.permute.xlu0 %564 }
 0x716   :  { %v10765_v45 = vadd.f32 %v565_v44, %v557_v43 }
 0x718   :  { %9940 = vtanh.f32 %v10765_v45 }
 0x722   :  { %v9941_v53 = vpop.eup %9940 }
 0x723   :  { %570 = vrot.lane.b32.xlu1 %v9941_v53, %s10516_s1 }
 0x795   :  { %v571_v54 = vpop.permute.xlu1 %570 }
 0x796   :  { %v10789_v55 = vmul.f32 %v9939_v35, %v571_v54 }
 0x798   :  { %581 = vrot.lane.b32.xlu0 %v10789_v55, %s10518_s23 }
 0x80a   :  { %v582_v56 = vpop.permute.xlu0 %581 }
 0x80b   :  { %8472 = vmatmul.mubr.msk.f32.vlgmr.msra.gmra.mrb[4].mxu0 %vm161_vm1, %v582_v56 }
 0x80c   :  { %8493 = vmatprep.mubr.msk.f32.mxu0 %vm10514_vm0, %v12762_v2 }
 0x8de   :  { %v651_v63 = vpop.f32.mrb[4].mxu0 }
 0x8df   :  { %v652_v0 = vadd.f32 %v10799_v61, %v651_v63  ;;  %v8473_v3 = vpop.f32.mrb[5].mxu0 }
 0x8e1   :  { %v662_v4 = vrot.slane %v652_v0, %v10802_v62 }
 0x8e3   :  { %v663_v5 = vcombine.high %v662_v4, %v662_v4  ;;  %v670_v7 = vrot.slane %v662_v4, %v10802_v62 }
 0x8e5   :  { %v677_v14 = vrot.slane %v663_v5, %v10802_v62  ;;  %v681_v16 = vrot.slane %v670_v7, %v10709_v38 }
 0x8e7   :  { %v685_v19 = vrot.slane %v677_v14, %v10709_v38  ;;  %v689_v21 = vadd.f32 %v681_v16, %v10810_v10  ;;  %v688_v22 = vadd.f32 %v681_v16, %v10815_v11  ;;  %v690_v23 = vadd.f32 %v681_v16, %v10820_v12 }
 0x8e8   :  { %v691_v34 = vadd.f32 %v681_v16, %v10849_v31 }
 0x8e9   :  { %9942 = vtanh.f32 %v689_v21  ;;  %v693_v26 = vadd.f32 %v685_v19, %v10827_v17  ;;  %v692_v27 = vadd.f32 %v685_v19, %v10832_v18  ;;  %v694_v28 = vadd.f32 %v685_v19, %v10841_v25 }
 0x8ea   :  { %9944 = vtanh.f32 %v688_v22  ;;  %v695_v35 = vadd.f32 %v685_v19, %v10854_v32  ;;  %v10880_v21 = vand.u32 127, %v352_v36 }
 0x8eb   :  { %9946 = vtanh.f32 %v690_v23 }
 0x8ec   :  { %9948 = vtanh.f32 %v693_v26  ;;  %v763_v26 = vadd.s32 4294967288, %v10880_v21  ;;  %v777_v36 = vadd.s32 4294967272, %v10880_v21 }
 0x8ed   :  { %9950 = vtanh.f32 %v692_v27  ;;  %v770_v27 = vadd.s32 4294967280, %v10880_v21 }
 0x8ee   :  { %9952 = vtanh.f32 %v694_v28  ;;  %v10884_v28 = vstv %s9891_s7 }
 0x8ef   :  { %9954 = vtanh.f32 %v691_v34  ;;  %12829 = vst [vmem:[#allocation14_spill] sm:$0xff] %v10884_v28 }
 0x8f0   :  { %9956 = vtanh.f32 %v695_v35 }
 0x8f3   :  { %v9943_v41 = vpop.eup %9942 }
 0x8f4   :  { %v9945_v42 = vpop.eup %9944  ;;  %v711_v43 = vmul.f32 %v9943_v41, %v10861_v40  ;;  %v10888_v41 = vsub.s32 %v10880_v21, %v10706_v37 }
 0x8f5   :  { %v9947_v44 = vpop.eup %9946  ;;  %v710_v46 = vmul.f32 %v9945_v42, %v10861_v40  ;;  %v10891_v42 = vsub.s32 %v763_v26, %v10706_v37 }
 0x8f6   :  { %v9949_v48 = vpop.eup %9948  ;;  %v721_v49 = vsel %vm161_vm1, %v711_v43, 0.0  ;;  %v712_v51 = vmul.f32 %v9947_v44, %v10861_v40 }
 0x8f7   :  { %v9951_v53 = vpop.eup %9950  ;;  %722 = vadd.xlane.f32.xlu0 %v721_v49  ;;  %v718_v54 = vsel %vm161_vm1, %v710_v46, 0.0  ;;  %v715_v56 = vmul.f32 %v9949_v48, %v10861_v40  ;;  %v10897_v46 = vsub.s32 %v770_v27, %v10706_v37 }
 0x8f8   :  { %v9953_v57 = vpop.eup %9952  ;;  %719 = vadd.xlane.f32.xlu1 %v718_v54  ;;  %v724_v58 = vsel %vm161_vm1, %v712_v51, 0.0  ;;  %v714_v59 = vmul.f32 %v9951_v53, %v10861_v40 }
 0x8f9   :  { %v9955_v60 = vpop.eup %9954  ;;  %v733_v63 = vsel %vm161_vm1, %v715_v56, 0.0  ;;  %v716_v0 = vmul.f32 %v9953_v57, %v10861_v40  ;;  %v10904_v57 = vsub.s32 %v777_v36, %v10706_v37 }
 0x8fa   :  { %v9957_v3 = vpop.eup %9956  ;;  %v730_v4 = vsel %vm161_vm1, %v714_v59, 0.0  ;;  %v713_v5 = vmul.f32 %v9955_v60, %v10861_v40 }
 0x8fb   :  { %725 = vadd.xlane.f32.xlu0 %v724_v58  ;;  %v736_v7 = vsel %vm161_vm1, %v716_v0, 0.0  ;;  %v717_v14 = vmul.f32 %v9957_v3, %v10861_v40 }
 0x8fc   :  { %734 = vadd.xlane.f32.xlu1 %v733_v63  ;;  %v727_v16 = vsel %vm161_vm1, %v713_v5, 0.0 }
 0x8fd   :  { %v739_v19 = vsel %vm161_vm1, %v717_v14, 0.0 }
 0x8ff   :  { %731 = vadd.xlane.f32.xlu0 %v730_v4 }
 0x900   :  { %737 = vadd.xlane.f32.xlu1 %v736_v7 }
 0x903   :  { %728 = vadd.xlane.f32.xlu0 %v727_v16 }
 0x904   :  { %740 = vadd.xlane.f32.xlu1 %v739_v19 }
 0x984   :  { %v723_v22 = vpop.xlane.xlu0 %722 }
 0x985   :  { %v720_v23 = vpop.xlane.xlu1 %719  ;;  %v744_v43 = vadd.f32 %v10884_v28, %v723_v22 }
 0x986   :  { %v743_v44 = vadd.f32 %v10884_v28, %v720_v23 }
 0x987   :  { %v767_v58 = vrot.slane %v744_v43, %v10891_v42 }
 0x988   :  { %v726_v34 = vpop.xlane.xlu0 %725  ;;  %v762_v59 = vrot.slane %v743_v44, %v10888_v41 }
 0x989   :  { %v735_v35 = vpop.xlane.xlu1 %734  ;;  %v745_v48 = vadd.f32 %v10884_v28, %v726_v34 }
 0x98a   :  { %v748_v49 = vadd.f32 %v10884_v28, %v735_v35  ;;  %v769_v22 = vsel %vm768_vm3, %v767_v58, %v762_v59  ;;  %v10925_v58 = vsub.s32 1, %v10706_v37 }
 0x98b   :  { %v774_v63 = vrot.slane %v745_v48, %v10897_v46 }
 0x98c   :  { %v732_v51 = vpop.xlane.xlu0 %731  ;;  %v791_v0 = vrot.slane %v748_v49, %v10891_v42 }
 0x98d   :  { %v747_v53 = vadd.f32 %v10884_v28, %v732_v51  ;;  %v738_v54 = vpop.xlane.xlu1 %737  ;;  %v776_v26 = vsel %vm775_vm4, %v774_v63, %v769_v22 }
 0x98e   :  { %v749_v56 = vadd.f32 %v10884_v28, %v738_v54  ;;  %v10520_v54 = vmov 0  }
 0x98f   :  { %v787_v60 = vrot.slane %v747_v53, %v10888_v41  ;;  %9909 = vset.pattern.permute.xlu0 %v10520_v54  ;;  %9908 = vset.pattern.permute.xlu1 %v10520_v54 }
 0x990   :  { %v729_v3 = vpop.xlane.xlu0 %728  ;;  %v796_v4 = vrot.slane %v749_v56, %v10897_v46 }
 0x991   :  { %v746_v5 = vadd.f32 %v10884_v28, %v729_v3  ;;  %v741_v7 = vpop.xlane.xlu1 %740  ;;  %v792_v16 = vsel %vm768_vm3, %v791_v0, %v787_v60 }
 0x992   :  { %v750_v14 = vadd.f32 %v10884_v28, %v741_v7  ;;  %v797_v34 = vsel %vm775_vm4, %v796_v4, %v792_v16 }
 0x993   :  { %v781_v19 = vrot.slane %v746_v5, %v10904_v57 }
 0x994   :  { %v801_v23 = vrot.slane %v750_v14, %v10904_v57 }
 0x995   :  { %v783_v27 = vsel %vm782_vm5, %v781_v19, %v776_v26 }
 0x996   :  { %v802_v35 = vsel %vm782_vm5, %v801_v23, %v797_v34 }
 0x997   :  { %v804_v36 = vsel %vm803_vm6, %v802_v35, %v783_v27 }
 0x998   :  { %v807_v51 = vsel %vm806_vm7, %v804_v36, -inf }
 0x999   :  { %808 = vmax.xlane.f32.xlu0 %v807_v51 }
 0xa26   :  { %v809_v59 = vpop.xlane.xlu0 %808 }
 0xa27   :  { %v814_v60 = vrot.slane %v809_v59, %v10709_v38  ;;  %v818_v63 = vrot.slane %v809_v59, %v10925_v58 }
 0xa29   :  { %v821_v0 = vsub.f32 %v743_v44, %v814_v60  ;;  %v822_v3 = vsub.f32 %v744_v43, %v814_v60  ;;  %v825_v4 = vsub.f32 %v747_v53, %v818_v63  ;;  %v826_v19 = vsub.f32 %v748_v49, %v818_v63 }
 0xa2a   :  { %v823_v23 = vsub.f32 %v745_v48, %v814_v60  ;;  %v827_v27 = vsub.f32 %v749_v56, %v818_v63  ;;  %v824_v43 = vsub.f32 %v746_v5, %v814_v60  ;;  %v828_v53 = vsub.f32 %v750_v14, %v818_v63 }
 0xa2b   :  { %v829_v7 = vmul.f32 1.442695, %v821_v0  ;;  %v831_v16 = vmul.f32 1.442695, %v822_v3  ;;  %v837_v22 = vmul.f32 1.442695, %v825_v4 }
 0xa2c   :  { %v839_v26 = vmul.f32 1.442695, %v826_v19  ;;  %v833_v37 = vmul.f32 1.442695, %v823_v23  ;;  %v841_v44 = vmul.f32 1.442695, %v827_v27 }
 0xa2d   :  { %9958 = vpow2.f32 %v829_v7  ;;  %v835_v48 = vmul.f32 1.442695, %v824_v43  ;;  %v843_v56 = vmul.f32 1.442695, %v828_v53 }
 0xa2e   :  { %9960 = vpow2.f32 %v831_v16 }
 0xa2f   :  { %9962 = vpow2.f32 %v837_v22 }
 0xa30   :  { %9964 = vpow2.f32 %v839_v26 }
 0xa31   :  { %9966 = vpow2.f32 %v833_v37 }
 0xa32   :  { %9968 = vpow2.f32 %v841_v44 }
 0xa33   :  { %9970 = vpow2.f32 %v835_v48 }
 0xa34   :  { %9972 = vpow2.f32 %v843_v56 }
 0xa37   :  { %v10929_v34 = vpop.eup %9958 }
 0xa38   :  { %v10931_v35 = vpop.eup %9960  ;;  %854 = vperm.xlu1 %9908, %v10929_v34  }
 0xa39   :  { %857 = vperm.xlu0 %9909, %v10931_v35   ;;  %v9963_v49 = vpop.eup %9962 }
 0xa3a   :  { %v9965_v36 = vpop.eup %9964 }
 0xa3b   :  { %v9967_v51 = vpop.eup %9966 }
 0xa3c   :  { %866 = vperm.xlu1 %9908, %v9963_v49   ;;  %v9969_v54 = vpop.eup %9968 }
 0xa3d   :  { %v9971_v59 = vpop.eup %9970 }
 0xa3e   :  { %v9973_v5 = vpop.eup %9972 }
 0xa40   :  { %869 = vperm.xlu1 %9908, %v9965_v36  }
 0xa44   :  { %860 = vperm.xlu1 %9908, %v9967_v51  }
 0xa48   :  { %872 = vperm.xlu1 %9908, %v9969_v54  }
 0xa4c   :  { %863 = vperm.xlu1 %9908, %v9971_v59  }
 0xa50   :  { %875 = vperm.xlu1 %9908, %v9973_v5  }
 0xab7   :  { %v855_v60 = vpop.permute.xlu1 %854 }
 0xab8   :  { %v858_v63 = vpop.permute.xlu0 %857  ;;  %v880_v19 = vrot.slane %v855_v60, %v10888_v41 }
 0xab9   :  { %v884_v16 = vrot.slane %v858_v63, %v10891_v42 }
 0xabb   :  { %v867_v0 = vpop.permute.xlu1 %866  ;;  %v885_v44 = vsel %vm768_vm3, %v884_v16, %v880_v19 }
 0xabc   :  { %v899_v27 = vrot.slane %v867_v0, %v10888_v41 }
 0xabf   :  { %v870_v3 = vpop.permute.xlu1 %869 }
 0xac0   :  { %v903_v22 = vrot.slane %v870_v3, %v10891_v42 }
 0xac2   :  { %v904_v53 = vsel %vm768_vm3, %v903_v22, %v899_v27 }
 0xac3   :  { %v861_v4 = vpop.permute.xlu1 %860 }
 0xac4   :  { %v889_v23 = vrot.slane %v861_v4, %v10897_v46 }
 0xac6   :  { %v890_v56 = vsel %vm775_vm4, %v889_v23, %v885_v44 }
 0xac7   :  { %v873_v14 = vpop.permute.xlu1 %872 }
 0xac8   :  { %v908_v26 = vrot.slane %v873_v14, %v10897_v46 }
 0xaca   :  { %v909_v60 = vsel %vm775_vm4, %v908_v26, %v904_v53  ;;  %v95_v53 = vld [vmem:[%s12743_s0 + $0x20] sm:$0xff] }
 0xacb   :  { %v864_v7 = vpop.permute.xlu1 %863 }
 0xacc   :  { %v894_v37 = vrot.slane %v864_v7, %v10904_v57 }
 0xace   :  { %v895_v3 = vsel %vm782_vm5, %v894_v37, %v890_v56  ;;  %v91_v56 = vld [vmem:[%s12743_s0] sm:$0xff] }
 0xacf   :  { %v876_v43 = vpop.permute.xlu1 %875 }
 0xad0   :  { %v913_v48 = vrot.slane %v876_v43, %v10904_v57 }
 0xad2   :  { %v914_v4 = vsel %vm782_vm5, %v913_v48, %v909_v60  ;;  %v92_v60 = vld [vmem:[%s12743_s0 + $0x8] sm:$0xff] }
 0xad3   :  { %v915_v14 = vsel %vm803_vm6, %v914_v4, %v895_v3  ;;  %v10981_v3 = vpack.c.bf16 %v92_v60, %v91_v56 }
 0xad4   :  { %v917_v0 = vsel %vm806_vm7, %v915_v14, 0.0 }
 0xad5   :  { %918 = vadd.xlane.f32.xlu1 %v917_v0  ;;  %9370 = vmatpush3.bf16.msra.mxu1 %v10981_v3 }
 0xad6   :  { %9371 = vmatprep.subr.bf16.mxu1 %v12760_v1 }
 0xb62   :  { %v919_v63 = vpop.xlane.xlu1 %918 }
 0xb63   :  { %v928_v7 = vrot.slane %v919_v63, %v10925_v58  ;;  %v924_v16 = vrot.slane %v919_v63, %v10709_v38 }
 0xb65   :  { %9974 = vrcp.f32 %v928_v7 }
 0xb66   :  { %9976 = vrcp.f32 %v924_v16 }
 0xb6f   :  { %v9975_v19 = vpop.eup %9974 }
 0xb70   :  { %v937_v22 = vmul.f32 %v9975_v19, %v9963_v49  ;;  %v938_v23 = vmul.f32 %v9975_v19, %v9965_v36  ;;  %v939_v26 = vmul.f32 %v9975_v19, %v9969_v54  ;;  %v9977_v27 = vpop.eup %9976  ;;  %v940_v44 = vmul.f32 %v9975_v19, %v9973_v5  ;;  %v96_v49 = vld [vmem:[%s12743_s0 + $0x28] sm:$0xff] }
 0xb71   :  { %v932_v37 = vmul.f32 %v9977_v27, %v10929_v34  ;;  %v933_v43 = vmul.f32 %v9977_v27, %v10931_v35  ;;  %v10961_v36 = vpack.c.bf16 %v96_v49, %v95_v53  ;;  %v97_v34 = vld [vmem:[%s12743_s0 + $0x30] sm:$0xff]  ;;  %v98_v35 = vld [vmem:[%s12743_s0 + $0x38] sm:$0xff]  ;;  %v934_v5 = vmul.f32 %v9977_v27, %v9967_v51 }
 0xb72   :  { %1053 = vperm.xlu0 %9909, %v937_v22   ;;  %v10970_v54 = vpack.c.bf16 %v98_v35, %v97_v34  ;;  %v935_v48 = vmul.f32 %v9977_v27, %v9971_v59  ;;  %v93_v51 = vld [vmem:[%s12743_s0 + $0x10] sm:$0xff]  ;;  %v94_v59 = vld [vmem:[%s12743_s0 + $0x18] sm:$0xff]  ;;  %v109_v22 = vld [vmem:[%s12754_s11 + $0x8] sm:$0xff] }
 0xb73   :  { %12830 = vst [vmem:[#allocation15_spill] sm:$0xff] %v10961_v36  ;;  %9376 = vmatpush3.bf16.msra.mxu0 %v10961_v36  ;;  %v10990_v4 = vpack.c.bf16 %v94_v59, %v93_v51 }
 0xb74   :  { %12831 = vst [vmem:[#allocation16_spill] sm:$0xff] %v10970_v54  ;;  %9377 = vmatprep.subr.bf16.mxu0 %v12760_v1 }
 0xb75   :  { %9373 = vmatpush3.bf16.msra.mxu1 %v10990_v4 }
 0xb76   :  { %1056 = vperm.xlu0 %9909, %v938_v23   ;;  %9380 = vmatprep.subr.bf16.mxu1 %v12760_v1 }
 0xb77   :  { %9379 = vmatpush3.bf16.msra.mxu0 %v10970_v54 }
 0xb78   :  { %9386 = vmatprep.subr.bf16.mxu0 %v12760_v1 }
 0xb7a   :  { %1059 = vperm.xlu0 %9909, %v939_v26  }
 0xb7e   :  { %946 = vperm.xlu0 %9909, %v932_v37   ;;  %v11002_v37 = vpack.c.bf16 %v109_v22, %v10714_v39 }
 0xb82   :  { %949 = vperm.xlu0 %9909, %v933_v43  }
 0xb86   :  { %1062 = vperm.xlu0 %9909, %v940_v44  }
 0xb8a   :  { %952 = vperm.xlu0 %9909, %v934_v5  }
 0xb8e   :  { %955 = vperm.xlu0 %9909, %v935_v48  }
 0xbf1   :  { %v1054_v14 = vpop.permute.xlu0 %1053 }
 0xbf2   :  { %v1067_v26 = vrot.slane %v1054_v14, %v10888_v41  ;;  %v150_v14 = vld [vmem:[#allocation8] sm:$0xff] }
 0xbf5   :  { %v1057_v0 = vpop.permute.xlu0 %1056 }
 0xbf6   :  { %v1071_v19 = vrot.slane %v1057_v0, %v10891_v42  ;;  %v151_v0 = vld [vmem:[#allocation8 + $0x8] sm:$0xff] }
 0xbf8   :  { %v1072_v43 = vsel %vm768_vm3, %v1071_v19, %v1067_v26 }
 0xbf9   :  { %v1060_v63 = vpop.permute.xlu0 %1059 }
 0xbfa   :  { %v1076_v23 = vrot.slane %v1060_v63, %v10897_v46  ;;  %v152_v63 = vld [vmem:[#allocation8 + $0x10] sm:$0xff] }
 0xbfc   :  { %v1077_v53 = vsel %vm775_vm4, %v1076_v23, %v1072_v43 }
 0xbfd   :  { %v947_v7 = vpop.permute.xlu0 %946 }
 0xbfe   :  { %v960_v5 = vrot.slane %v947_v7, %v10888_v41  ;;  %v153_v7 = vld [vmem:[#allocation8 + $0x18] sm:$0xff] }
 0xbff   :  { %v11026_v19 = vpack.c.bf16 %v153_v7, %v152_v63  ;;  %v113_v7 = vld [vmem:[%s12754_s11 + $0x28] sm:$0xff] }
 0xc01   :  { %v950_v16 = vpop.permute.xlu0 %949 }
 0xc02   :  { %v964_v35 = vrot.slane %v950_v16, %v10891_v42  ;;  %v11023_v16 = vpack.c.bf16 %v151_v0, %v150_v14  ;;  %v111_v14 = vld [vmem:[%s12754_s11 + $0x18] sm:$0xff]  ;;  %v112_v0 = vld [vmem:[%s12754_s11 + $0x20] sm:$0xff] }
 0xc04   :  { %v965_v56 = vsel %vm768_vm3, %v964_v35, %v960_v5 }
 0xc05   :  { %v1063_v27 = vpop.permute.xlu0 %1062 }
 0xc06   :  { %v1081_v44 = vrot.slane %v1063_v27, %v10904_v57 }
 0xc08   :  { %v1082_v49 = vsel %vm782_vm5, %v1081_v44, %v1077_v53  ;;  %v11046_v53 = vld [vmem:[%s12756_s13] ss:$0 sm:$0xff] }
 0xc09   :  { %v953_v34 = vpop.permute.xlu0 %952  ;;  %8494 = vmatmul.mubr.msk.f32.vlgmr.msra.gmra.mrb[6].mxu0 %vm161_vm1, %v1082_v49 }
 0xc0a   :  { %9388 = vmatpush3.bf16.msra.mxu0 %v11002_v37  ;;  %8539 = vmatprep.mubr.msk.f32.mxu0 %vm10514_vm0, %v12762_v2  ;;  %v969_v39 = vrot.slane %v953_v34, %v10897_v46 }
 0xc0b   :  { %9389 = vmatprep.subr.bf16.mxu0 %v12760_v1 }
 0xc0c   :  { %v970_v51 = vsel %vm775_vm4, %v969_v39, %v965_v56 }
 0xc0d   :  { %v956_v48 = vpop.permute.xlu0 %955 }
 0xc0e   :  { %v974_v60 = vrot.slane %v956_v48, %v10904_v57 }
 0xc10   :  { %v975_v59 = vsel %vm782_vm5, %v974_v60, %v970_v51 }
 0xc11   :  { %8483 = vmatmul.mubr.msk.f32.vlgmr.msra.gmra.mrb[4].mxu1 %vm161_vm1, %v975_v59  ;;  %v110_v59 = vld [vmem:[%s12754_s11 + $0x10] sm:$0xff] }
 0xc12   :  { %8504 = vmatprep.mubr.msk.f32.mxu1 %vm10514_vm0, %v12762_v2  ;;  %9382 = vmatpush3.bf16.msra.mxu1 %v11023_v16  ;;  %v11068_v63 = vpack.c.bf16 %v111_v14, %v110_v59  ;;  %v121_v59 = vld [vmem:[%s12754_s11 + $0x68] sm:$0xff] }
 0xc13   :  { %9383 = vmatprep.subr.bf16.mxu1 %v12760_v1 }
 0xc14   :  { %9391 = vmatpush3.bf16.msra.mxu0 %v11068_v63 }
 0xc15   :  { %9392 = vmatprep.subr.bf16.mxu0 %v12760_v1 }
 0xc16   :  { %9385 = vmatpush3.bf16.msra.mxu1 %v11026_v19 }
 0xc17   :  { %9410 = vmatprep.subr.bf16.mxu1 %v12760_v1 }
 0xcdc   :  { %v1151_v22 = vpop.f32.mrb[6].mxu0 }
 0xcdd   :  { %v8495_v23 = vpop.f32.mrb[7].mxu0  ;;  %v1163_v26 = vrot.slane %v1151_v22, 7  ;;  %v11074_v22 = vpack.c.bf16 %v113_v7, %v112_v0 }
 0xcde   :  { %v114_v23 = vld [vmem:[%s12754_s11 + $0x30] sm:$0xff] }
 0xcdf   :  { %9394 = vmatpush3.bf16.msra.mxu0 %v11074_v22 }
 0xce0   :  { %9395 = vmatprep.subr.bf16.mxu0 %v12760_v1 }
 0xce4   :  { %v1044_v27 = vpop.f32.mrb[4].mxu1 }
 0xce5   :  { %v1164_v43 = vsel %vm803_vm6, %v1163_v26, %v1044_v27  ;;  %v8484_v44 = vpop.f32.mrb[5].mxu1  ;;  %v115_v26 = vld [vmem:[%s12754_s11 + $0x38] sm:$0xff] }
 0xce6   :  { %8505 = vmatmul.mubr.msk.f32.vlgmr.msra.gmra.mrb[6].mxu1 %vm161_vm1, %v1164_v43  ;;  %v11084_v27 = vpack.c.bf16 %v115_v26, %v114_v23  ;;  %v116_v43 = vld [vmem:[%s12754_s11 + $0x40] sm:$0xff]  ;;  %v117_v44 = vld [vmem:[%s12754_s11 + $0x48] sm:$0xff] }
 0xce7   :  { %9412 = vmatpush3.bf16.msra.mxu1 %v10660_v6  ;;  %8558 = vmatprep.mubr.msk.f32.mxu1 %vm10514_vm0, %v12762_v2 }
 0xce8   :  { %9413 = vmatprep.subr.bf16.mxu1 %v12760_v1  ;;  %9397 = vmatpush3.bf16.msra.mxu0 %v11084_v27 }
 0xce9   :  { %9398 = vmatprep.subr.bf16.mxu0 %v12760_v1 }
 0xceb   :  { %9415 = vmatpush3.bf16.msra.mxu1 %v10663_v8 }
 0xcec   :  { %9416 = vmatprep.subr.bf16.mxu1 %v12760_v1 }
 0xcef   :  { %9418 = vmatpush3.bf16.msra.mxu1 %v10685_v24 }
 0xcf0   :  { %9419 = vmatprep.subr.bf16.mxu1 %v12760_v1 }
 0xcf3   :  { %9421 = vmatpush3.bf16.msra.mxu1 %v10691_v30 }
 0xcf4   :  { %9422 = vmatprep.subr.bf16.mxu1 %v12760_v1 }
 0xdb9   :  { %v1233_v49 = vpop.f32.mrb[6].mxu1 }
 0xdba   :  { %v11049_v34 = vadd.f32 %v11046_v53, %v1233_v49  ;;  %v8506_v35 = vpop.f32.mrb[7].mxu1  ;;  %v11094_v49 = vpack.c.bf16 %v117_v44, %v116_v43  ;;  %v122_v43 = vld [vmem:[%s12754_s11 + $0x70] sm:$0xff]  ;;  %v123_v44 = vld [vmem:[%s12754_s11 + $0x78] sm:$0xff] }
 0xdbb   :  { %v118_v35 = vld [vmem:[%s12754_s11 + $0x50] sm:$0xff] }
 0xdbc   :  { %12832 = vst [vmem:[#allocation17_spill] sm:$0xff] %v11049_v34  ;;  %v1238_v39 = vsel %vm1237_vm8, %v11049_v34, -inf  ;;  %9400 = vmatpush3.bf16.msra.mxu0 %v11094_v49 }
 0xdbd   :  { %1239 = vmax.xlane.f32.xlu1 %v1238_v39  ;;  %v119_v39 = vld [vmem:[%s12754_s11 + $0x58] sm:$0xff]  ;;  %9401 = vmatprep.subr.bf16.mxu0 %v12760_v1 }
 0xe4a   :  { %v11053_v5 = vpop.xlane.xlu1 %1239 }
 0xe4b   :  { %12833 = vst [vmem:[#allocation18_spill] sm:$0xff] %v11053_v5  ;;  %vm1241_vm9 = vcmp.eq.f32.partialorder %v11049_v34, %v11053_v5 }
 0xe4c   :  { %v1242_v48 = vsel %vm1241_vm9, %v10880_v21, 128 }
 0xe4d   :  { %v1243_v56 = vsel %vm1237_vm8, %v1242_v48, 2147483647  ;;  %v11104_v48 = vpack.c.bf16 %v119_v39, %v118_v35  ;;  %v11127_v35 = vpack.c.bf16 %v123_v44, %v122_v43  ;;  %v11154_v44 = vld [vmem:[%s12747_s4] ss:$0 sm:$0xff] }
 0xe4e   :  { %v1245_v60 = vshra.s32 %v1243_v56, 16  ;;  %v1244_v0 = vand.u32 65535, %v1243_v56 }
 0xe4f   :  { %9403 = vmatpush3.bf16.msra.mxu0 %v11104_v48 }
 0xe50   :  { %v1247_v51 = vcvt.s32.f32 %v1245_v60  ;;  %v120_v60 = vld [vmem:[%s12754_s11 + $0x60] sm:$0xff]  ;;  %9404 = vmatprep.subr.bf16.mxu0 %v12760_v1  ;;  %v1246_v23 = vcvt.s32.f32 %v1244_v0  ;;  %v12758_v0 = vmov 1.0  }
 0xe51   :  { %v11114_v14 = vpack.c.bf16 %v121_v59, %v120_v60 }
 0xe52   :  { %1248 = vmin.xlane.f32.xlu0 %v1247_v51 }
 0xe53   :  { %9406 = vmatpush3.bf16.msra.mxu0 %v11114_v14 }
 0xe54   :  { %9407 = vmatprep.subr.bf16.mxu0 %v12760_v1 }
 0xe57   :  { %9409 = vmatpush3.bf16.msra.mxu0 %v11127_v35 }
 0xe58   :  { %9434 = vmatprep.subr.bf16.mxu0 %v12760_v1 }
 0xedf   :  { %v1249_v7 = vpop.xlane.xlu0 %1248 }
 0xee0   :  { %vm1250_vm10 = vcmp.eq.f32.partialorder %v1247_v51, %v1249_v7  ;;  %v1255_v56 = vcvt.f32.s32 %v1249_v7 }
 0xee1   :  { %v1251_v26 = vsel %vm1250_vm10, %v1246_v23, inf }
 0xee2   :  { %1252 = vmin.xlane.f32.xlu1 %v1251_v26  ;;  %v1256_v39 = vshll.u32 %v1255_v56, 16 }
 0xef3   :  { %1340 = vrot.lane.b32.xlu1 %v10754_v20, %s10516_s1 }
 0xf6f   :  { %v1253_v51 = vpop.xlane.xlu1 %1252 }
 0xf70   :  { %v1254_v60 = vcvt.f32.s32 %v1253_v51 }
 0xf72   :  { %v1257_v59 = vadd.s32 %v1256_v39, %v1254_v60 }
 0xf73   :  { %v1341_v20 = vpop.permute.xlu1 %1340 }
 0xf74   :  { %vm1258_vm11 = vcmp.eq.s32.totalorder %v10880_v21, %v1257_v59 }
 0xf75   :  { %8540 = vmatmul.mubr.msk.f32.vlgmr.msra.gmra.mrb[8].mxu0 %vm1258_vm11, %v12758_v0 }
 0xf76   :  { %9436 = vmatpush3.bf16.msra.mxu0 %v10777_v50  ;;  %8588 = vmatprep.mubr.msk.f32.mxu0 %vm10514_vm0, %v12762_v2 }
 0xf77   :  { %9437 = vmatprep.subr.bf16.mxu0 %v12760_v1 }
 0xf7a   :  { %9439 = vmatpush3.bf16.msra.mxu0 %v10783_v52 }
 0xf7b   :  { %9446 = vmatprep.subr.bf16.mxu0 %v12760_v1 }
0x1048   :  { %v1327_v7 = vpop.f32.mrb[8].mxu0 }
0x1049   :  { %v1343_v23 = vsel %vm161_vm1, %v1327_v7, %v1341_v20  ;;  %v8541_v26 = vpop.f32.mrb[9].mxu0 }
0x104a   :  { %8559 = vmatmul.mubr.msk.f32.vlgmr.msra.gmra.mrb[8].mxu1 %vm362_vm2, %v1343_v23 }
0x104b   :  { %9424 = vmatpush3.bf16.msra.mxu1 %v10687_v29  ;;  %8577 = vmatprep.mubr.msk.f32.mxu1 %vm10514_vm0, %v12762_v2 }
0x104c   :  { %9425 = vmatprep.subr.bf16.mxu1 %v12760_v1 }
0x104f   :  { %9427 = vmatpush3.bf16.msra.mxu1 %v10698_v33 }
0x1050   :  { %9428 = vmatprep.subr.bf16.mxu1 %v12760_v1 }
0x1053   :  { %9430 = vmatpush3.bf16.msra.mxu1 %v10743_v13 }
0x1054   :  { %9431 = vmatprep.subr.bf16.mxu1 %v12760_v1 }
0x1057   :  { %9433 = vmatpush3.bf16.msra.mxu1 %v10746_v15 }
0x1058   :  { %9440 = vmatprep.subr.bf16.mxu1 %v12760_v1 }
0x111d   :  { %v1413_v43 = vpop.f32.mrb[8].mxu1 }
0x111e   :  { %v1414_v56 = vadd.f32 %v11154_v44, %v1413_v43  ;;  %v8560_v51 = vpop.f32.mrb[9].mxu1 }
0x1120   :  { %9978 = vtanh.f32 %v1414_v56  ;;  %v7903_v60 = vmul.f32 -1.442695, %v1414_v56 }
0x1122   :  { %9980 = vpow2.f32 %v7903_v60 }
0x112a   :  { %v9979_v39 = vpop.eup %9978 }
0x112b   :  { %1426 = vrot.lane.b32.xlu1 %v9979_v39, %s10516_s1 }
0x112c   :  { %v9981_v59 = vpop.eup %9980 }
0x112d   :  { %v1420_v20 = vadd.f32 1.0, %v9981_v59 }
0x112f   :  { %9982 = vrcp.f32 %v1420_v20 }
0x1139   :  { %v9983_v7 = vpop.eup %9982 }
0x113a   :  { %v1424_v0 = vmul.f32 %v9983_v7, %v10740_v9 }
0x119d   :  { %v1427_v23 = vpop.permute.xlu1 %1426 }
0x119e   :  { %v1429_v26 = vmul.f32 %v9983_v7, %v1427_v23 }
0x11a0   :  { %1431 = vrot.lane.b32.xlu1 %v1429_v26, %s10518_s23 }
0x1212   :  { %v1432_v1 = vpop.permute.xlu1 %1431 }
0x1213   :  { %v11160_v2 = vadd.f32 %v1432_v1, %v1424_v0  ;;  %v12834_v1 = vmov 0.0   ;;  %v12835_v0 = vmov 0.0|0.0  }
0x1215   :  { %9984 = vtanh.f32 %v11160_v2 }
0x121f   :  { %v9985_v43 = vpop.eup %9984 }
0x1220   :  { %1437 = vrot.lane.b32.xlu0 %v9985_v43, %s10516_s1 }
0x1292   :  { %v1438_v56 = vpop.permute.xlu0 %1437 }
0x1293   :  { %v11164_v51 = vmul.f32 %v9983_v7, %v1438_v56 }
0x1295   :  { %1442 = vrot.lane.b32.xlu1 %v11164_v51, %s10518_s23 }
0x1299   :  { %1445 = vrot.lane.b32.xlu1 %v10789_v55, %s10516_s1 }
0x1307   :  { %v1443_v39 = vpop.permute.xlu1 %1442 }
0x130b   :  { %v1446_v60 = vpop.permute.xlu1 %1445 }
0x130c   :  { %v1448_v9 = vsel %vm161_vm1, %v1443_v39, %v1446_v60 }
0x130d   :  { %8578 = vmatmul.mubr.msk.f32.vlgmr.msra.gmra.mrb[10].mxu1 %vm362_vm2, %v1448_v9 }
0x130e   :  { %9442 = vmatpush3.bf16.msra.mxu1 %v10981_v3  ;;  %8599 = vmatprep.mubr.msk.f32.mxu1 %vm10514_vm0, %v12834_v1 }
0x130f   :  { %9443 = vmatprep.subr.bf16.mxu1 %v12835_v0 }
0x1312   :  { %9445 = vmatpush3.bf16.msra.mxu1 %v10990_v4 }
0x1313   :  { %9452 = vmatprep.subr.bf16.mxu1 %v12835_v0 }
0x13e0   :  { %v1518_v59 = vpop.f32.mrb[10].mxu1 }
0x13e1   :  { %v1519_v55 = vadd.f32 %v10733_v47, %v1518_v59  ;;  %v8579_v20 = vpop.f32.mrb[11].mxu1 }
0x13e3   :  { %9986 = vtanh.f32 %v1519_v55  ;;  %v7905_v23 = vmul.f32 -1.442695, %v1519_v55 }
0x13e5   :  { %9988 = vpow2.f32 %v7905_v23 }
0x13ed   :  { %v9987_v7 = vpop.eup %9986 }
0x13ee   :  { %1531 = vrot.lane.b32.xlu1 %v9987_v7, %s10516_s1 }
0x13ef   :  { %v9989_v26 = vpop.eup %9988 }
0x13f0   :  { %v1525_v43 = vadd.f32 1.0, %v9989_v26 }
0x13f2   :  { %9990 = vrcp.f32 %v1525_v43 }
0x13fc   :  { %v9991_v56 = vpop.eup %9990 }
0x13fd   :  { %v1529_v9 = vmul.f32 %v9991_v56, %v10765_v45 }
0x1460   :  { %v1532_v39 = vpop.permute.xlu1 %1531 }
0x1461   :  { %v1534_v60 = vmul.f32 %v9991_v56, %v1532_v39 }
0x1463   :  { %1536 = vrot.lane.b32.xlu1 %v1534_v60, %s10518_s23 }
0x14d5   :  { %v1537_v34 = vpop.permute.xlu1 %1536 }
0x14d6   :  { %v11182_v5 = vadd.f32 %v1537_v34, %v1529_v9 }
0x14d8   :  { %9992 = vtanh.f32 %v11182_v5 }
0x14e2   :  { %v9993_v47 = vpop.eup %9992 }
0x14e3   :  { %1542 = vrot.lane.b32.xlu1 %v9993_v47, %s10516_s1 }
0x1555   :  { %v1543_v59 = vpop.permute.xlu1 %1542 }
0x1556   :  { %v11186_v55 = vmul.f32 %v9991_v56, %v1543_v59 }
0x1558   :  { %1547 = vrot.lane.b32.xlu1 %v11186_v55, %s10518_s23 }
0x15ca   :  { %v1548_v20 = vpop.permute.xlu1 %1547 }
0x15cb   :  { %8589 = vmatmul.mubr.msk.f32.vlgmr.msra.gmra.mrb[10].mxu0 %vm161_vm1, %v1548_v20 }
0x15cc   :  { %9448 = vmatpush3.bf16.msra.mxu0 %v10961_v36  ;;  %8610 = vmatprep.mubr.msk.f32.mxu0 %vm10514_vm0, %v12834_v1 }
0x15cd   :  { %9449 = vmatprep.subr.bf16.mxu0 %v12835_v0 }
0x15d0   :  { %9451 = vmatpush3.bf16.msra.mxu0 %v10970_v54 }
0x15d1   :  { %9458 = vmatprep.subr.bf16.mxu0 %v12835_v0 }
0x169e   :  { %v1617_v45 = vpop.f32.mrb[10].mxu0 }
0x169f   :  { %v1618_v34 = vadd.f32 %v10799_v61, %v1617_v45  ;;  %v8590_v7 = vpop.f32.mrb[11].mxu0 }
0x16a1   :  { %v1628_v23 = vrot.slane %v1618_v34, %v10802_v62 }
0x16a3   :  { %v1629_v26 = vcombine.high %v1628_v23, %v1628_v23  ;;  %v1636_v43 = vrot.slane %v1628_v23, %v10802_v62 }
0x16a5   :  { %v1643_v56 = vrot.slane %v1629_v26, %v10802_v62  ;;  %v1647_v39 = vrot.slane %v1636_v43, %v10709_v38 }
0x16a7   :  { %v1651_v60 = vrot.slane %v1643_v56, %v10709_v38  ;;  %v1655_v9 = vadd.f32 %v1647_v39, %v10810_v10  ;;  %v1654_v47 = vadd.f32 %v1647_v39, %v10815_v11  ;;  %v1656_v59 = vadd.f32 %v1647_v39, %v10820_v12 }
0x16a8   :  { %v1657_v20 = vadd.f32 %v1647_v39, %v10849_v31 }
0x16a9   :  { %9994 = vtanh.f32 %v1655_v9  ;;  %v1658_v61 = vadd.f32 %v1651_v60, %v10832_v18  ;;  %v1659_v45 = vadd.f32 %v1651_v60, %v10827_v17  ;;  %v1660_v34 = vadd.f32 %v1651_v60, %v10841_v25 }
0x16aa   :  { %9996 = vtanh.f32 %v1654_v47  ;;  %v1661_v10 = vadd.f32 %v1651_v60, %v10854_v32 }
0x16ab   :  { %9998 = vtanh.f32 %v1656_v59 }
0x16ac   :  { %10000 = vtanh.f32 %v1658_v61 }
0x16ad   :  { %10002 = vtanh.f32 %v1657_v20 }
0x16ae   :  { %10004 = vtanh.f32 %v1659_v45 }
0x16af   :  { %10006 = vtanh.f32 %v1660_v34 }
0x16b0   :  { %10008 = vtanh.f32 %v1661_v10 }
0x16b3   :  { %v9995_v11 = vpop.eup %9994 }
0x16b4   :  { %v9997_v7 = vpop.eup %9996  ;;  %v1671_v12 = vmul.f32 %v9995_v11, %v10861_v40 }
0x16b5   :  { %v9999_v23 = vpop.eup %9998  ;;  %v1670_v18 = vmul.f32 %v9997_v7, %v10861_v40 }
0x16b6   :  { %v10001_v31 = vpop.eup %10000  ;;  %v1681_v26 = vsel %vm161_vm1, %v1671_v12, 0.0  ;;  %v1672_v17 = vmul.f32 %v9999_v23, %v10861_v40 }
0x16b7   :  { %v10003_v43 = vpop.eup %10002  ;;  %1682 = vadd.xlane.f32.xlu1 %v1681_v26  ;;  %v1678_v25 = vsel %vm161_vm1, %v1670_v18, 0.0  ;;  %v1674_v56 = vmul.f32 %v10001_v31, %v10861_v40 }
0x16b8   :  { %v10005_v32 = vpop.eup %10004  ;;  %1679 = vadd.xlane.f32.xlu0 %v1678_v25  ;;  %v1684_v39 = vsel %vm161_vm1, %v1672_v17, 0.0  ;;  %v1673_v60 = vmul.f32 %v10003_v43, %v10861_v40 }
0x16b9   :  { %v1690_v9 = vsel %vm161_vm1, %v1674_v56, 0.0  ;;  %v1675_v47 = vmul.f32 %v10005_v32, %v10861_v40  ;;  %v10007_v59 = vpop.eup %10006 }
0x16ba   :  { %v1687_v61 = vsel %vm161_vm1, %v1673_v60, 0.0  ;;  %v1676_v45 = vmul.f32 %v10007_v59, %v10861_v40  ;;  %v10009_v34 = vpop.eup %10008 }
0x16bb   :  { %1685 = vadd.xlane.f32.xlu1 %v1684_v39  ;;  %v1693_v20 = vsel %vm161_vm1, %v1675_v47, 0.0  ;;  %v1677_v11 = vmul.f32 %v10009_v34, %v10861_v40 }
0x16bc   :  { %1691 = vadd.xlane.f32.xlu0 %v1690_v9  ;;  %v1696_v10 = vsel %vm161_vm1, %v1676_v45, 0.0 }
0x16bd   :  { %v1699_v7 = vsel %vm161_vm1, %v1677_v11, 0.0 }
0x16bf   :  { %1688 = vadd.xlane.f32.xlu1 %v1687_v61 }
0x16c0   :  { %1694 = vadd.xlane.f32.xlu0 %v1693_v20 }
0x16c4   :  { %1697 = vadd.xlane.f32.xlu0 %v1696_v10 }
0x16c8   :  { %1700 = vadd.xlane.f32.xlu0 %v1699_v7 }
0x1744   :  { %v1683_v12 = vpop.xlane.xlu1 %1682 }
0x1745   :  { %v1680_v23 = vpop.xlane.xlu0 %1679  ;;  %v1703_v43 = vadd.f32 %v1683_v12, %v10884_v28 }
0x1746   :  { %v1702_v25 = vadd.f32 %v1680_v23, %v10884_v28 }
0x1747   :  { %v1725_v47 = vrot.slane %v1703_v43, %v10891_v42 }
0x1748   :  { %v1686_v18 = vpop.xlane.xlu1 %1685  ;;  %v1721_v59 = vrot.slane %v1702_v25, %v10888_v41 }
0x1749   :  { %v1692_v31 = vpop.xlane.xlu0 %1691  ;;  %v1704_v32 = vadd.f32 %v1686_v18, %v10884_v28 }
0x174a   :  { %v1706_v40 = vadd.f32 %v1692_v31, %v10884_v28  ;;  %v1726_v23 = vsel %vm768_vm3, %v1725_v47, %v1721_v59 }
0x174b   :  { %v1730_v20 = vrot.slane %v1704_v32, %v10897_v46 }
0x174c   :  { %v1689_v17 = vpop.xlane.xlu1 %1688  ;;  %v1740_v10 = vrot.slane %v1706_v40, %v10888_v41 }
0x174d   :  { %v1695_v26 = vpop.xlane.xlu0 %1694  ;;  %v1705_v60 = vadd.f32 %v1689_v17, %v10884_v28  ;;  %v1731_v31 = vsel %vm775_vm4, %v1730_v20, %v1726_v23 }
0x174e   :  { %v1707_v56 = vadd.f32 %v1695_v26, %v10884_v28 }
0x174f   :  { %v1735_v11 = vrot.slane %v1705_v60, %v10904_v57 }
0x1750   :  { %v1744_v61 = vrot.slane %v1707_v56, %v10891_v42 }
0x1751   :  { %v1698_v39 = vpop.xlane.xlu0 %1697  ;;  %v1736_v17 = vsel %vm782_vm5, %v1735_v11, %v1731_v31 }
0x1752   :  { %v1708_v9 = vadd.f32 %v1698_v39, %v10884_v28  ;;  %v1745_v18 = vsel %vm768_vm3, %v1744_v61, %v1740_v10 }
0x1754   :  { %v1749_v45 = vrot.slane %v1708_v9, %v10897_v46 }
0x1755   :  { %v1701_v34 = vpop.xlane.xlu0 %1700 }
0x1756   :  { %v1709_v7 = vadd.f32 %v1701_v34, %v10884_v28  ;;  %v1750_v26 = vsel %vm775_vm4, %v1749_v45, %v1745_v18 }
0x1758   :  { %v1754_v12 = vrot.slane %v1709_v7, %v10904_v57 }
0x175a   :  { %v1755_v39 = vsel %vm782_vm5, %v1754_v12, %v1750_v26 }
0x175b   :  { %v1756_v62 = vsel %vm803_vm6, %v1755_v39, %v1736_v17 }
0x175c   :  { %v1758_v54 = vsel %vm806_vm7, %v1756_v62, -inf }
0x175d   :  { %1759 = vmax.xlane.f32.xlu1 %v1758_v54 }
0x17ea   :  { %v1760_v34 = vpop.xlane.xlu1 %1759 }
0x17eb   :  { %v1765_v28 = vrot.slane %v1760_v34, %v10709_v38  ;;  %v1769_v47 = vrot.slane %v1760_v34, %v10925_v58 }
0x17ed   :  { %v1772_v59 = vsub.f32 %v1702_v25, %v1765_v28  ;;  %v1773_v61 = vsub.f32 %v1703_v43, %v1765_v28  ;;  %v1776_v10 = vsub.f32 %v1706_v40, %v1769_v47  ;;  %v1777_v20 = vsub.f32 %v1707_v56, %v1769_v47 }
0x17ee   :  { %v1774_v18 = vsub.f32 %v1704_v32, %v1765_v28  ;;  %v1778_v12 = vsub.f32 %v1708_v9, %v1769_v47  ;;  %v1775_v26 = vsub.f32 %v1705_v60, %v1765_v28  ;;  %v1779_v54 = vsub.f32 %v1709_v7, %v1769_v47 }
0x17ef   :  { %v1780_v23 = vmul.f32 1.442695, %v1772_v59  ;;  %v1782_v45 = vmul.f32 1.442695, %v1773_v61  ;;  %v1788_v11 = vmul.f32 1.442695, %v1776_v10 }
0x17f0   :  { %v1790_v31 = vmul.f32 1.442695, %v1777_v20  ;;  %v1784_v62 = vmul.f32 1.442695, %v1774_v18  ;;  %v1792_v17 = vmul.f32 1.442695, %v1778_v12 }
0x17f1   :  { %10010 = vpow2.f32 %v1780_v23  ;;  %v1786_v39 = vmul.f32 1.442695, %v1775_v26  ;;  %v1794_v43 = vmul.f32 1.442695, %v1779_v54 }
0x17f2   :  { %10012 = vpow2.f32 %v1782_v45 }
0x17f3   :  { %10014 = vpow2.f32 %v1788_v11 }
0x17f4   :  { %10016 = vpow2.f32 %v1790_v31 }
0x17f5   :  { %10018 = vpow2.f32 %v1784_v62 }
0x17f6   :  { %10020 = vpow2.f32 %v1792_v17 }
0x17f7   :  { %10022 = vpow2.f32 %v1786_v39 }
0x17f8   :  { %10024 = vpow2.f32 %v1794_v43 }
0x17fb   :  { %v10011_v25 = vpop.eup %10010 }
0x17fc   :  { %v10013_v56 = vpop.eup %10012  ;;  %1805 = vperm.xlu0 %9909, %v10011_v25  }
0x17fd   :  { %1808 = vperm.xlu1 %9908, %v10013_v56   ;;  %v10015_v32 = vpop.eup %10014 }
0x17fe   :  { %v10017_v40 = vpop.eup %10016 }
0x17ff   :  { %v10019_v28 = vpop.eup %10018 }
0x1800   :  { %1820 = vperm.xlu0 %9909, %v10017_v40   ;;  %v10021_v60 = vpop.eup %10020 }
0x1801   :  { %1817 = vperm.xlu1 %9908, %v10015_v32   ;;  %v10023_v9 = vpop.eup %10022 }
0x1802   :  { %v10025_v7 = vpop.eup %10024 }
0x1804   :  { %1823 = vperm.xlu0 %9909, %v10021_v60  }
0x1805   :  { %1811 = vperm.xlu1 %9908, %v10019_v28  }
0x1808   :  { %1826 = vperm.xlu0 %9909, %v10025_v7  }
0x1809   :  { %1814 = vperm.xlu1 %9908, %v10023_v9  }
0x187b   :  { %v1806_v34 = vpop.permute.xlu0 %1805 }
0x187c   :  { %v1809_v47 = vpop.permute.xlu1 %1808  ;;  %v1831_v45 = vrot.slane %v1806_v34, %v10888_v41 }
0x187d   :  { %v1835_v23 = vrot.slane %v1809_v47, %v10891_v42 }
0x187f   :  { %v1821_v61 = vpop.permute.xlu0 %1820  ;;  %v1836_v54 = vsel %vm768_vm3, %v1835_v23, %v1831_v45 }
0x1880   :  { %v1818_v59 = vpop.permute.xlu1 %1817  ;;  %v1854_v11 = vrot.slane %v1821_v61, %v10891_v42 }
0x1881   :  { %v1850_v18 = vrot.slane %v1818_v59, %v10888_v41 }
0x1883   :  { %v1824_v20 = vpop.permute.xlu0 %1823  ;;  %v1855_v17 = vsel %vm768_vm3, %v1854_v11, %v1850_v18 }
0x1884   :  { %v1812_v10 = vpop.permute.xlu1 %1811  ;;  %v1859_v31 = vrot.slane %v1824_v20, %v10897_v46 }
0x1885   :  { %v1840_v12 = vrot.slane %v1812_v10, %v10897_v46 }
0x1886   :  { %v1860_v47 = vsel %vm775_vm4, %v1859_v31, %v1855_v17 }
0x1887   :  { %v1827_v62 = vpop.permute.xlu0 %1826  ;;  %v1841_v34 = vsel %vm775_vm4, %v1840_v12, %v1836_v54 }
0x1888   :  { %v1815_v26 = vpop.permute.xlu1 %1814  ;;  %v1864_v43 = vrot.slane %v1827_v62, %v10904_v57 }
0x1889   :  { %v1845_v39 = vrot.slane %v1815_v26, %v10904_v57 }
0x188a   :  { %v1865_v61 = vsel %vm782_vm5, %v1864_v43, %v1860_v47 }
0x188b   :  { %v1846_v59 = vsel %vm782_vm5, %v1845_v39, %v1841_v34 }
0x188c   :  { %v1866_v10 = vsel %vm803_vm6, %v1865_v61, %v1846_v59 }
0x188d   :  { %v1868_v20 = vsel %vm806_vm7, %v1866_v10, 0.0 }
0x188e   :  { %1869 = vadd.xlane.f32.xlu1 %v1868_v20 }
0x191b   :  { %v1870_v23 = vpop.xlane.xlu1 %1869 }
0x191c   :  { %v1879_v45 = vrot.slane %v1870_v23, %v10925_v58  ;;  %v1875_v18 = vrot.slane %v1870_v23, %v10709_v38 }
0x191e   :  { %10026 = vrcp.f32 %v1879_v45 }
0x191f   :  { %10028 = vrcp.f32 %v1875_v18 }
0x1928   :  { %v10027_v11 = vpop.eup %10026 }
0x1929   :  { %v1888_v12 = vmul.f32 %v10027_v11, %v10015_v32  ;;  %v1889_v31 = vmul.f32 %v10027_v11, %v10017_v40  ;;  %v1890_v26 = vmul.f32 %v10027_v11, %v10021_v60  ;;  %v10029_v62 = vpop.eup %10028  ;;  %v1891_v39 = vmul.f32 %v10027_v11, %v10025_v7 }
0x192a   :  { %v1883_v54 = vmul.f32 %v10029_v62, %v10011_v25  ;;  %v1884_v17 = vmul.f32 %v10029_v62, %v10013_v56  ;;  %v1885_v43 = vmul.f32 %v10029_v62, %v10019_v28  ;;  %v1886_v34 = vmul.f32 %v10029_v62, %v10023_v9 }
0x192b   :  { %2004 = vperm.xlu0 %9909, %v1888_v12  }
0x192f   :  { %2007 = vperm.xlu0 %9909, %v1889_v31  }
0x1933   :  { %2010 = vperm.xlu0 %9909, %v1890_v26  }
0x1937   :  { %1897 = vperm.xlu0 %9909, %v1883_v54  }
0x193b   :  { %1900 = vperm.xlu0 %9909, %v1884_v17  }
0x193f   :  { %2013 = vperm.xlu0 %9909, %v1891_v39  }
0x1943   :  { %1903 = vperm.xlu0 %9909, %v1885_v43  }
0x1947   :  { %1906 = vperm.xlu0 %9909, %v1886_v34  }
0x19aa   :  { %v2005_v47 = vpop.permute.xlu0 %2004 }
0x19ab   :  { %v2018_v25 = vrot.slane %v2005_v47, %v10888_v41 }
0x19ae   :  { %v2008_v59 = vpop.permute.xlu0 %2007 }
0x19af   :  { %v2022_v40 = vrot.slane %v2008_v59, %v10891_v42 }
0x19b1   :  { %v2023_v56 = vsel %vm768_vm3, %v2022_v40, %v2018_v25 }
0x19b2   :  { %v2011_v61 = vpop.permute.xlu0 %2010 }
0x19b3   :  { %v2027_v60 = vrot.slane %v2011_v61, %v10897_v46 }
0x19b5   :  { %v2028_v28 = vsel %vm775_vm4, %v2027_v60, %v2023_v56 }
0x19b6   :  { %v1898_v32 = vpop.permute.xlu0 %1897 }
0x19b7   :  { %v1911_v11 = vrot.slane %v1898_v32, %v10888_v41 }
0x19ba   :  { %v1901_v10 = vpop.permute.xlu0 %1900 }
0x19bb   :  { %v1915_v45 = vrot.slane %v1901_v10, %v10891_v42 }
0x19bd   :  { %v1916_v31 = vsel %vm768_vm3, %v1915_v45, %v1911_v11 }
0x19be   :  { %v2014_v20 = vpop.permute.xlu0 %2013 }
0x19bf   :  { %v2032_v7 = vrot.slane %v2014_v20, %v10904_v57 }
0x19c1   :  { %v2033_v9 = vsel %vm782_vm5, %v2032_v7, %v2028_v28 }
0x19c2   :  { %8611 = vmatmul.mubr.msk.f32.vlgmr.msra.gmra.mrb[12].mxu0 %vm161_vm1, %v2033_v9  ;;  %v1904_v23 = vpop.permute.xlu0 %1903 }
0x19c3   :  { %9460 = vmatpush3.bf16.msra.mxu0 %v11002_v37  ;;  %8656 = vmatprep.mubr.msk.f32.mxu0 %vm10514_vm0, %v12834_v1  ;;  %v1920_v18 = vrot.slane %v1904_v23, %v10897_v46 }
0x19c4   :  { %9461 = vmatprep.subr.bf16.mxu0 %v12835_v0 }
0x19c5   :  { %v1921_v62 = vsel %vm775_vm4, %v1920_v18, %v1916_v31 }
0x19c6   :  { %v1907_v12 = vpop.permute.xlu0 %1906 }
0x19c7   :  { %v1925_v26 = vrot.slane %v1907_v12, %v10904_v57  ;;  %9463 = vmatpush3.bf16.msra.mxu0 %v11068_v63 }
0x19c8   :  { %9464 = vmatprep.subr.bf16.mxu0 %v12835_v0 }
0x19c9   :  { %v1926_v54 = vsel %vm782_vm5, %v1925_v26, %v1921_v62  ;;  %v12838_v26 = vmov 1.0  }
0x19ca   :  { %8600 = vmatmul.mubr.msk.f32.vlgmr.msra.gmra.mrb[12].mxu1 %vm161_vm1, %v1926_v54 }
0x19cb   :  { %9454 = vmatpush3.bf16.msra.mxu1 %v11023_v16  ;;  %8621 = vmatprep.mubr.msk.f32.mxu1 %vm10514_vm0, %v12834_v1 }
0x19cc   :  { %9455 = vmatprep.subr.bf16.mxu1 %v12835_v0  ;;  %9466 = vmatpush3.bf16.msra.mxu0 %v11074_v22 }
0x19cd   :  { %9467 = vmatprep.subr.bf16.mxu0 %v12835_v0 }
0x19cf   :  { %9457 = vmatpush3.bf16.msra.mxu1 %v11026_v19 }
0x19d0   :  { %9469 = vmatpush3.bf16.msra.mxu0 %v11084_v27  ;;  %9482 = vmatprep.subr.bf16.mxu1 %v12835_v0 }
0x19d1   :  { %9470 = vmatprep.subr.bf16.mxu0 %v12835_v0 }
0x19d4   :  { %9472 = vmatpush3.bf16.msra.mxu0 %v11094_v49 }
0x19d5   :  { %9473 = vmatprep.subr.bf16.mxu0 %v12835_v0 }
0x19d8   :  { %9475 = vmatpush3.bf16.msra.mxu0 %v11104_v48 }
0x19d9   :  { %9476 = vmatprep.subr.bf16.mxu0 %v12835_v0 }
0x19dc   :  { %9478 = vmatpush3.bf16.msra.mxu0 %v11114_v14 }
0x19dd   :  { %9479 = vmatprep.subr.bf16.mxu0 %v12835_v0 }
0x19e0   :  { %9481 = vmatpush3.bf16.msra.mxu0 %v11127_v35 }
0x19e1   :  { %9506 = vmatprep.subr.bf16.mxu0 %v12835_v0 }
0x1a95   :  { %v2102_v17 = vpop.f32.mrb[12].mxu0 }
0x1a96   :  { %v8612_v39 = vpop.f32.mrb[13].mxu0  ;;  %v2108_v43 = vrot.slane %v2102_v17, 7 }
0x1a9d   :  { %v1995_v34 = vpop.f32.mrb[12].mxu1 }
0x1a9e   :  { %v2109_v47 = vsel %vm803_vm6, %v2108_v43, %v1995_v34  ;;  %v8601_v59 = vpop.f32.mrb[13].mxu1 }
0x1a9f   :  { %8622 = vmatmul.mubr.msk.f32.vlgmr.msra.gmra.mrb[14].mxu1 %vm161_vm1, %v2109_v47 }
0x1aa0   :  { %9484 = vmatpush3.bf16.msra.mxu1 %v10660_v6  ;;  %8675 = vmatprep.mubr.msk.f32.mxu1 %vm10514_vm0, %v12834_v1 }
0x1aa1   :  { %9485 = vmatprep.subr.bf16.mxu1 %v12835_v0 }
0x1aa4   :  { %9487 = vmatpush3.bf16.msra.mxu1 %v10663_v8 }
0x1aa5   :  { %9488 = vmatprep.subr.bf16.mxu1 %v12835_v0 }
0x1aa8   :  { %9490 = vmatpush3.bf16.msra.mxu1 %v10685_v24 }
0x1aa9   :  { %9491 = vmatprep.subr.bf16.mxu1 %v12835_v0 }
0x1aac   :  { %9493 = vmatpush3.bf16.msra.mxu1 %v10691_v30 }
0x1aad   :  { %9494 = vmatprep.subr.bf16.mxu1 %v12835_v0 }
0x1b72   :  { %v2178_v61 = vpop.f32.mrb[14].mxu1 }
0x1b73   :  { %v11324_v32 = vadd.f32 %v11046_v53, %v2178_v61  ;;  %v8623_v10 = vpop.f32.mrb[15].mxu1 }
0x1b75   :  { %12836 = vst [vmem:[#allocation19_spill] sm:$0xff] %v11324_v32  ;;  %v2182_v40 = vsel %vm1237_vm8, %v11324_v32, -inf }
0x1b76   :  { %2183 = vmax.xlane.f32.xlu0 %v2182_v40 }
0x1c03   :  { %v11328_v60 = vpop.xlane.xlu0 %2183 }
0x1c04   :  { %12837 = vst [vmem:[#allocation20_spill] sm:$0xff] %v11328_v60  ;;  %vm2185_vm12 = vcmp.eq.f32.partialorder %v11324_v32, %v11328_v60 }
0x1c05   :  { %v2186_v25 = vsel %vm2185_vm12, %v10880_v21, 128 }
0x1c06   :  { %v2187_v20 = vsel %vm1237_vm8, %v2186_v25, 2147483647 }
0x1c07   :  { %v2189_v56 = vshra.s32 %v2187_v20, 16  ;;  %v2188_v28 = vand.u32 65535, %v2187_v20 }
0x1c09   :  { %v2191_v7 = vcvt.s32.f32 %v2189_v56  ;;  %v2190_v9 = vcvt.s32.f32 %v2188_v28 }
0x1c0b   :  { %2192 = vmin.xlane.f32.xlu1 %v2191_v7 }
0x1c98   :  { %v2193_v53 = vpop.xlane.xlu1 %2192 }
0x1c99   :  { %vm2194_vm13 = vcmp.eq.f32.partialorder %v2191_v7, %v2193_v53  ;;  %v2199_v45 = vcvt.f32.s32 %v2193_v53 }
0x1c9a   :  { %v2195_v23 = vsel %vm2194_vm13, %v2190_v9, inf }
0x1c9b   :  { %2196 = vmin.xlane.f32.xlu1 %v2195_v23  ;;  %v2200_v11 = vshll.u32 %v2199_v45, 16 }
0x1cac   :  { %2285 = vrot.lane.b32.xlu1 %v11164_v51, %s10516_s1 }
0x1d28   :  { %v2197_v18 = vpop.xlane.xlu1 %2196 }
0x1d29   :  { %v2198_v12 = vcvt.f32.s32 %v2197_v18 }
0x1d2b   :  { %v2201_v31 = vadd.s32 %v2200_v11, %v2198_v12 }
0x1d2c   :  { %v2286_v51 = vpop.permute.xlu1 %2285 }
0x1d2d   :  { %vm2202_vm14 = vcmp.eq.s32.totalorder %v10880_v21, %v2201_v31 }
0x1d2e   :  { %8657 = vmatmul.mubr.msk.f32.vlgmr.msra.gmra.mrb[14].mxu0 %vm2202_vm14, %v12838_v26 }
0x1d2f   :  { %9508 = vmatpush3.bf16.msra.mxu0 %v10777_v50  ;;  %8705 = vmatprep.mubr.msk.f32.mxu0 %vm10514_vm0, %v12834_v1 }
0x1d30   :  { %9509 = vmatprep.subr.bf16.mxu0 %v12835_v0 }
0x1d33   :  { %9511 = vmatpush3.bf16.msra.mxu0 %v10783_v52 }
0x1d34   :  { %9518 = vmatprep.subr.bf16.mxu0 %v12835_v0 }
0x1e01   :  { %v2271_v62 = vpop.f32.mrb[14].mxu0 }
0x1e02   :  { %v2288_v54 = vsel %vm161_vm1, %v2271_v62, %v2286_v51  ;;  %v8658_v17 = vpop.f32.mrb[15].mxu0 }
0x1e03   :  { %8676 = vmatmul.mubr.msk.f32.vlgmr.msra.gmra.mrb[16].mxu1 %vm362_vm2, %v2288_v54 }
0x1e04   :  { %9496 = vmatpush3.bf16.msra.mxu1 %v10687_v29  ;;  %8694 = vmatprep.mubr.msk.f32.mxu1 %vm10514_vm0, %v12834_v1 }
0x1e05   :  { %9497 = vmatprep.subr.bf16.mxu1 %v12835_v0 }
0x1e08   :  { %9499 = vmatpush3.bf16.msra.mxu1 %v10698_v33 }
0x1e09   :  { %9500 = vmatprep.subr.bf16.mxu1 %v12835_v0 }
0x1e0c   :  { %9502 = vmatpush3.bf16.msra.mxu1 %v10743_v13 }
0x1e0d   :  { %9503 = vmatprep.subr.bf16.mxu1 %v12835_v0 }
0x1e10   :  { %9505 = vmatpush3.bf16.msra.mxu1 %v10746_v15 }
0x1e11   :  { %9512 = vmatprep.subr.bf16.mxu1 %v12835_v0 }
0x1ed6   :  { %v2358_v39 = vpop.f32.mrb[16].mxu1 }
0x1ed7   :  { %v2359_v43 = vadd.f32 %v11154_v44, %v2358_v39  ;;  %v8677_v34 = vpop.f32.mrb[17].mxu1 }
0x1ed9   :  { %10030 = vtanh.f32 %v2359_v43  ;;  %v7913_v59 = vmul.f32 -1.442695, %v2359_v43 }
0x1edb   :  { %10032 = vpow2.f32 %v7913_v59 }
0x1ee3   :  { %v10031_v47 = vpop.eup %10030 }
0x1ee4   :  { %2371 = vrot.lane.b32.xlu1 %v10031_v47, %s10516_s1 }
0x1ee5   :  { %v10033_v61 = vpop.eup %10032 }
0x1ee6   :  { %v2365_v10 = vadd.f32 1.0, %v10033_v61 }
0x1ee8   :  { %10034 = vrcp.f32 %v2365_v10 }
0x1ef2   :  { %v10035_v40 = vpop.eup %10034 }
0x1ef3   :  { %v2369_v56 = vmul.f32 %v10035_v40, %v11160_v2 }
0x1f56   :  { %v2372_v25 = vpop.permute.xlu1 %2371 }
0x1f57   :  { %v2374_v20 = vmul.f32 %v10035_v40, %v2372_v25 }
0x1f59   :  { %2376 = vrot.lane.b32.xlu0 %v2374_v20, %s10518_s23 }
0x1fcb   :  { %v2377_v7 = vpop.permute.xlu0 %2376 }
0x1fcc   :  { %v11360_v28 = vadd.f32 %v2377_v7, %v2369_v56  ;;  %v11405_v56 = vld [vmem:[%s12751_s8] ss:$0 sm:$0xff] }
0x1fcd   :  { %12840 = vst [vmem:[#allocation21_spill] sm:$0xff] %v11405_v56 }
0x1fce   :  { %10036 = vtanh.f32 %v11360_v28 }
0x1fd8   :  { %v10037_v44 = vpop.eup %10036 }
0x1fd9   :  { %2382 = vrot.lane.b32.xlu1 %v10037_v44, %s10516_s1 }
0x204b   :  { %v2383_v53 = vpop.permute.xlu1 %2382 }
0x204c   :  { %v11364_v9 = vmul.f32 %v10035_v40, %v2383_v53  ;;  %v12841_v53 = vld [vmem:[#allocation13_spill] sm:$0xff] }
0x204e   :  { %2387 = vrot.lane.b32.xlu1 %v11364_v9, %s10518_s23 }
0x2052   :  { %2390 = vrot.lane.b32.xlu1 %v11186_v55, %s10516_s1  ;;  %v11381_v55 = vld [vmem:[%s12749_s6] ss:$0 sm:$0xff] }
0x20c0   :  { %v2388_v23 = vpop.permute.xlu1 %2387 }
0x20c4   :  { %v2391_v45 = vpop.permute.xlu1 %2390 }
0x20c5   :  { %v2393_v2 = vsel %vm161_vm1, %v2388_v23, %v2391_v45 }
0x20c6   :  { %8695 = vmatmul.mubr.msk.f32.vlgmr.msra.gmra.mrb[18].mxu1 %vm362_vm2, %v2393_v2 }
0x20c7   :  { %9514 = vmatpush3.bf16.msra.mxu1 %v10981_v3  ;;  %8716 = vmatprep.mubr.msk.f32.mxu1 %vm10514_vm0, %v12834_v1 }
0x20c8   :  { %9515 = vmatprep.subr.bf16.mxu1 %v12835_v0 }
0x20cb   :  { %9517 = vmatpush3.bf16.msra.mxu1 %v10990_v4 }
0x20cc   :  { %9524 = vmatprep.subr.bf16.mxu1 %v12835_v0 }
0x2199   :  { %v2463_v18 = vpop.f32.mrb[18].mxu1 }
0x219a   :  { %v2464_v11 = vadd.f32 %v11381_v55, %v2463_v18  ;;  %v8696_v12 = vpop.f32.mrb[19].mxu1 }
0x219c   :  { %10038 = vtanh.f32 %v2464_v11  ;;  %v7915_v51 = vmul.f32 -1.442695, %v2464_v11 }
0x219e   :  { %10040 = vpow2.f32 %v7915_v51 }
0x21a6   :  { %v10039_v31 = vpop.eup %10038 }
0x21a7   :  { %2476 = vrot.lane.b32.xlu1 %v10039_v31, %s10516_s1  ;;  %v11416_v31 = vld [vmem:[%s12745_s2] sm:$0xff] }
0x21a8   :  { %v10041_v62 = vpop.eup %10040  ;;  %12842 = vst [vmem:[#allocation22_spill] sm:$0xff] %v11416_v31 }
0x21a9   :  { %v2470_v54 = vadd.f32 1.0, %v10041_v62  ;;  %v11422_v62 = vld [vmem:[%s12745_s2 + $0x8] sm:$0xff] }
0x21aa   :  { %12843 = vst [vmem:[#allocation23_spill] sm:$0xff] %v11422_v62 }
0x21ab   :  { %10042 = vrcp.f32 %v2470_v54 }
0x21b5   :  { %v10043_v17 = vpop.eup %10042 }
0x21b6   :  { %v2474_v34 = vmul.f32 %v10043_v17, %v11182_v5  ;;  %v12839_v5 = vld [vmem:[#allocation16_spill] sm:$0xff] }
0x2219   :  { %v2477_v39 = vpop.permute.xlu1 %2476 }
0x221a   :  { %v2479_v43 = vmul.f32 %v10043_v17, %v2477_v39 }
0x221c   :  { %2481 = vrot.lane.b32.xlu1 %v2479_v43, %s10518_s23  ;;  %v11434_v43 = vld [vmem:[%s12745_s2 + $0x28] sm:$0xff] }
0x221d   :  { %12845 = vst [vmem:[#allocation25_spill] sm:$0xff] %v11434_v43 }
0x228e   :  { %v2482_v47 = vpop.permute.xlu1 %2481 }
0x228f   :  { %v11387_v59 = vadd.f32 %v2482_v47, %v2474_v34  ;;  %v11440_v47 = vld [vmem:[%s12745_s2 + $0x30] sm:$0xff] }
0x2290   :  { %12846 = vst [vmem:[#allocation26_spill] sm:$0xff] %v11440_v47 }
0x2291   :  { %10044 = vtanh.f32 %v11387_v59 }
0x229b   :  { %v10045_v61 = vpop.eup %10044 }
0x229c   :  { %2487 = vrot.lane.b32.xlu1 %v10045_v61, %s10516_s1 }
0x230e   :  { %v2488_v10 = vpop.permute.xlu1 %2487 }
0x230f   :  { %v11391_v40 = vmul.f32 %v10043_v17, %v2488_v10  ;;  %v11428_v17 = vld [vmem:[%s12745_s2 + $0x10] sm:$0xff]  ;;  %v11446_v10 = vld [vmem:[%s12745_s2 + $0x20] sm:$0xff] }
0x2310   :  { %12844 = vst [vmem:[#allocation24_spill] sm:$0xff] %v11428_v17  ;;  %12847 = vst [vmem:[#allocation27_spill] sm:$0xff] %v11446_v10 }
0x2311   :  { %2492 = vrot.lane.b32.xlu0 %v11391_v40, %s10518_s23 }
0x2383   :  { %v2493_v25 = vpop.permute.xlu0 %2492 }
0x2384   :  { %8706 = vmatmul.mubr.msk.f32.vlgmr.msra.gmra.mrb[16].mxu0 %vm161_vm1, %v2493_v25 }
0x2385   :  { %9520 = vmatpush3.bf16.msra.mxu0 %v10961_v36  ;;  %8727 = vmatprep.mubr.msk.f32.mxu0 %vm10514_vm0, %v12834_v1 }
0x2386   :  { %9521 = vmatprep.subr.bf16.mxu0 %v12835_v0 }
0x2389   :  { %9523 = vmatpush3.bf16.msra.mxu0 %v12839_v5 }
0x238a   :  { %9530 = vmatprep.subr.bf16.mxu0 %v12835_v0 }
0x2457   :  { %v2562_v20 = vpop.f32.mrb[16].mxu0 }
0x2458   :  { %v2563_v7 = vadd.f32 %v11405_v56, %v2562_v20  ;;  %v8707_v44 = vpop.f32.mrb[17].mxu0  ;;  %v11452_v20 = vld [vmem:[%s12745_s2 + $0x18] sm:$0xff] }
0x2459   :  { %12848 = vst [vmem:[#allocation28_spill] sm:$0xff] %v11452_v20  ;;  %v11458_v44 = vld [vmem:[%s12745_s2 + $0x38] sm:$0xff] }
0x245a   :  { %v2573_v23 = vrot.slane %v2563_v7, %v12841_v53  ;;  %12849 = vst [vmem:[#allocation29_spill] sm:$0xff] %v11458_v44 }
0x245c   :  { %v2574_v45 = vcombine.high %v2573_v23, %v2573_v23  ;;  %v2581_v2 = vrot.slane %v2573_v23, %v12841_v53 }
0x245e   :  { %v2588_v18 = vrot.slane %v2574_v45, %v12841_v53  ;;  %v2592_v11 = vrot.slane %v2581_v2, %v10709_v38 }
0x2460   :  { %v2596_v12 = vrot.slane %v2588_v18, %v10709_v38  ;;  %v2599_v51 = vadd.f32 %v11416_v31, %v2592_v11  ;;  %v2600_v54 = vadd.f32 %v11422_v62, %v2592_v11  ;;  %v2601_v39 = vadd.f32 %v11428_v17, %v2592_v11  ;;  %v11464_v18 = vld [vmem:[%s12752_s9] ss:$0 sm:$0xff] }
0x2461   :  { %v2602_v7 = vadd.f32 %v11452_v20, %v2592_v11  ;;  %12850 = vst [vmem:[#allocation30_spill] sm:$0xff] %v11464_v18 }
0x2462   :  { %10046 = vtanh.f32 %v2600_v54  ;;  %v2604_v34 = vadd.f32 %v11434_v43, %v2596_v12  ;;  %v2605_v61 = vadd.f32 %v11440_v47, %v2596_v12  ;;  %v2603_v25 = vadd.f32 %v11446_v10, %v2596_v12 }
0x2463   :  { %10048 = vtanh.f32 %v2599_v51  ;;  %v2606_v23 = vadd.f32 %v11458_v44, %v2596_v12 }
0x2464   :  { %10050 = vtanh.f32 %v2601_v39 }
0x2465   :  { %10052 = vtanh.f32 %v2604_v34 }
0x2466   :  { %10054 = vtanh.f32 %v2605_v61 }
0x2467   :  { %10056 = vtanh.f32 %v2603_v25 }
0x2468   :  { %10058 = vtanh.f32 %v2602_v7 }
0x2469   :  { %10060 = vtanh.f32 %v2606_v23 }
0x246c   :  { %v10047_v45 = vpop.eup %10046 }
0x246d   :  { %v10049_v2 = vpop.eup %10048  ;;  %v2616_v51 = vmul.f32 %v11464_v18, %v10047_v45 }
0x246e   :  { %v10051_v11 = vpop.eup %10050  ;;  %v2615_v54 = vmul.f32 %v11464_v18, %v10049_v2 }
0x246f   :  { %v10053_v39 = vpop.eup %10052  ;;  %v2626_v34 = vsel %vm161_vm1, %v2616_v51, 0.0  ;;  %v2617_v61 = vmul.f32 %v11464_v18, %v10051_v11 }
0x2470   :  { %v10055_v12 = vpop.eup %10054  ;;  %2627 = vadd.xlane.f32.xlu0 %v2626_v34  ;;  %v2623_v25 = vsel %vm161_vm1, %v2615_v54, 0.0  ;;  %v2620_v7 = vmul.f32 %v11464_v18, %v10053_v39 }
0x2471   :  { %v10057_v23 = vpop.eup %10056  ;;  %2624 = vadd.xlane.f32.xlu1 %v2623_v25  ;;  %v2629_v32 = vsel %vm161_vm1, %v2617_v61, 0.0  ;;  %v2621_v51 = vmul.f32 %v11464_v18, %v10055_v12 }
0x2472   :  { %v2619_v45 = vmul.f32 %v11464_v18, %v10057_v23  ;;  %v10059_v60 = vpop.eup %10058  ;;  %v2638_v2 = vsel %vm161_vm1, %v2620_v7, 0.0 }
0x2473   :  { %v10061_v44 = vpop.eup %10060  ;;  %v2618_v54 = vmul.f32 %v11464_v18, %v10059_v60  ;;  %v2641_v39 = vsel %vm161_vm1, %v2621_v51, 0.0 }
0x2474   :  { %2630 = vadd.xlane.f32.xlu0 %v2629_v32  ;;  %v2635_v11 = vsel %vm161_vm1, %v2619_v45, 0.0  ;;  %v2622_v34 = vmul.f32 %v11464_v18, %v10061_v44 }
0x2475   :  { %2639 = vadd.xlane.f32.xlu1 %v2638_v2  ;;  %v2632_v61 = vsel %vm161_vm1, %v2618_v54, 0.0  ;;  %v12851_v2 = vld [vmem:[#allocation14_spill] sm:$0xff] }
0x2476   :  { %v2644_v32 = vsel %vm161_vm1, %v2622_v34, 0.0 }
0x2478   :  { %2636 = vadd.xlane.f32.xlu0 %v2635_v11 }
0x2479   :  { %2642 = vadd.xlane.f32.xlu1 %v2641_v39 }
0x247c   :  { %2633 = vadd.xlane.f32.xlu0 %v2632_v61 }
0x247d   :  { %2645 = vadd.xlane.f32.xlu1 %v2644_v32 }
0x24fd   :  { %v2628_v25 = vpop.xlane.xlu0 %2627 }
0x24fe   :  { %v2625_v12 = vpop.xlane.xlu1 %2624  ;;  %v2648_v45 = vadd.f32 %v2628_v25, %v12851_v2 }
0x24ff   :  { %v2647_v60 = vadd.f32 %v2625_v12, %v12851_v2 }
0x2500   :  { %v2670_v61 = vrot.slane %v2648_v45, %v10891_v42 }
0x2501   :  { %v2631_v7 = vpop.xlane.xlu0 %2630  ;;  %v2666_v32 = vrot.slane %v2647_v60, %v10888_v41 }
0x2502   :  { %v2640_v23 = vpop.xlane.xlu1 %2639  ;;  %v2649_v51 = vadd.f32 %v2631_v7, %v12851_v2 }
0x2503   :  { %v2652_v11 = vadd.f32 %v2640_v23, %v12851_v2  ;;  %v2671_v10 = vsel %vm768_vm3, %v2670_v61, %v2666_v32 }
0x2504   :  { %v2675_v25 = vrot.slane %v2649_v51, %v10897_v46 }
0x2505   :  { %v2637_v44 = vpop.xlane.xlu0 %2636  ;;  %v2689_v12 = vrot.slane %v2652_v11, %v10891_v42 }
0x2506   :  { %v2643_v39 = vpop.xlane.xlu1 %2642  ;;  %v2651_v54 = vadd.f32 %v2637_v44, %v12851_v2  ;;  %v2676_v62 = vsel %vm775_vm4, %v2675_v25, %v2671_v10 }
0x2507   :  { %v2653_v34 = vadd.f32 %v2643_v39, %v12851_v2 }
0x2508   :  { %v2685_v18 = vrot.slane %v2651_v54, %v10888_v41 }
0x2509   :  { %v2634_v47 = vpop.xlane.xlu0 %2633  ;;  %v2694_v7 = vrot.slane %v2653_v34, %v10897_v46 }
0x250a   :  { %v2646_v23 = vpop.xlane.xlu1 %2645  ;;  %v2650_v43 = vadd.f32 %v2634_v47, %v12851_v2  ;;  %v2690_v44 = vsel %vm768_vm3, %v2689_v12, %v2685_v18 }
0x250b   :  { %v2654_v39 = vadd.f32 %v2646_v23, %v12851_v2  ;;  %v2695_v53 = vsel %vm775_vm4, %v2694_v7, %v2690_v44 }
0x250c   :  { %v2680_v20 = vrot.slane %v2650_v43, %v10904_v57 }
0x250d   :  { %v2699_v17 = vrot.slane %v2654_v39, %v10904_v57 }
0x250e   :  { %v2681_v31 = vsel %vm782_vm5, %v2680_v20, %v2676_v62 }
0x250f   :  { %v2700_v56 = vsel %vm782_vm5, %v2699_v17, %v2695_v53 }
0x2510   :  { %v2701_v47 = vsel %vm803_vm6, %v2700_v56, %v2681_v31 }
0x2511   :  { %v2703_v18 = vsel %vm806_vm7, %v2701_v47, -inf }
0x2512   :  { %2704 = vmax.xlane.f32.xlu0 %v2703_v18 }
0x259f   :  { %v2705_v12 = vpop.xlane.xlu0 %2704 }
0x25a0   :  { %v2710_v61 = vrot.slane %v2705_v12, %v10709_v38  ;;  %v2714_v32 = vrot.slane %v2705_v12, %v10925_v58 }
0x25a2   :  { %v2717_v23 = vsub.f32 %v2647_v60, %v2710_v61  ;;  %v2718_v2 = vsub.f32 %v2648_v45, %v2710_v61  ;;  %v2719_v5 = vsub.f32 %v2649_v51, %v2710_v61  ;;  %v2721_v10 = vsub.f32 %v2651_v54, %v2714_v32 }
0x25a3   :  { %v2722_v20 = vsub.f32 %v2652_v11, %v2714_v32  ;;  %v2720_v53 = vsub.f32 %v2650_v43, %v2710_v61  ;;  %v2723_v31 = vsub.f32 %v2653_v34, %v2714_v32  ;;  %v2724_v47 = vsub.f32 %v2654_v39, %v2714_v32 }
0x25a4   :  { %v2725_v25 = vmul.f32 1.442695, %v2717_v23  ;;  %v2727_v62 = vmul.f32 1.442695, %v2718_v2  ;;  %v2733_v7 = vmul.f32 1.442695, %v2721_v10 }
0x25a5   :  { %v2729_v56 = vmul.f32 1.442695, %v2719_v5  ;;  %v2735_v17 = vmul.f32 1.442695, %v2722_v20  ;;  %v2731_v44 = vmul.f32 1.442695, %v2720_v53 }
0x25a6   :  { %10062 = vpow2.f32 %v2725_v25  ;;  %v2737_v18 = vmul.f32 1.442695, %v2723_v31  ;;  %v2739_v2 = vmul.f32 1.442695, %v2724_v47 }
0x25a7   :  { %10064 = vpow2.f32 %v2727_v62 }
0x25a8   :  { %10066 = vpow2.f32 %v2733_v7 }
0x25a9   :  { %10068 = vpow2.f32 %v2729_v56 }
0x25aa   :  { %10070 = vpow2.f32 %v2735_v17 }
0x25ab   :  { %10072 = vpow2.f32 %v2731_v44 }
0x25ac   :  { %10074 = vpow2.f32 %v2737_v18 }
0x25ad   :  { %10076 = vpow2.f32 %v2739_v2 }
0x25b0   :  { %v10063_v45 = vpop.eup %10062 }
0x25b1   :  { %v10065_v60 = vpop.eup %10064  ;;  %2750 = vperm.xlu1 %9908, %v10063_v45  }
0x25b2   :  { %2753 = vperm.xlu0 %9909, %v10065_v60   ;;  %v10067_v51 = vpop.eup %10066 }
0x25b3   :  { %v10069_v11 = vpop.eup %10068 }
0x25b4   :  { %v10071_v5 = vpop.eup %10070 }
0x25b5   :  { %2762 = vperm.xlu1 %9908, %v10067_v51   ;;  %v10073_v43 = vpop.eup %10072 }
0x25b6   :  { %2756 = vperm.xlu0 %9909, %v10069_v11   ;;  %v10075_v54 = vpop.eup %10074 }
0x25b7   :  { %v10077_v34 = vpop.eup %10076 }
0x25b9   :  { %2765 = vperm.xlu1 %9908, %v10071_v5  }
0x25ba   :  { %2759 = vperm.xlu0 %9909, %v10073_v43  }
0x25bd   :  { %2768 = vperm.xlu1 %9908, %v10075_v54  }
0x25c1   :  { %2771 = vperm.xlu1 %9908, %v10077_v34  }
0x2630   :  { %v2751_v39 = vpop.permute.xlu1 %2750 }
0x2631   :  { %v2754_v12 = vpop.permute.xlu0 %2753  ;;  %v2776_v20 = vrot.slane %v2751_v39, %v10888_v41 }
0x2632   :  { %v2780_v62 = vrot.slane %v2754_v12, %v10891_v42 }
0x2634   :  { %v2763_v61 = vpop.permute.xlu1 %2762  ;;  %v2781_v47 = vsel %vm768_vm3, %v2780_v62, %v2776_v20 }
0x2635   :  { %v2757_v32 = vpop.permute.xlu0 %2756  ;;  %v2795_v31 = vrot.slane %v2763_v61, %v10888_v41 }
0x2636   :  { %v2785_v53 = vrot.slane %v2757_v32, %v10897_v46 }
0x2638   :  { %v2766_v23 = vpop.permute.xlu1 %2765  ;;  %v2786_v12 = vsel %vm775_vm4, %v2785_v53, %v2781_v47 }
0x2639   :  { %v2760_v10 = vpop.permute.xlu0 %2759  ;;  %v2799_v7 = vrot.slane %v2766_v23, %v10891_v42 }
0x263a   :  { %v2790_v17 = vrot.slane %v2760_v10, %v10904_v57 }
0x263b   :  { %v2800_v18 = vsel %vm768_vm3, %v2799_v7, %v2795_v31 }
0x263c   :  { %v2769_v25 = vpop.permute.xlu1 %2768  ;;  %v2791_v23 = vsel %vm782_vm5, %v2790_v17, %v2786_v12 }
0x263d   :  { %v2804_v56 = vrot.slane %v2769_v25, %v10897_v46 }
0x263f   :  { %v2805_v39 = vsel %vm775_vm4, %v2804_v56, %v2800_v18 }
0x2640   :  { %v2772_v44 = vpop.permute.xlu1 %2771 }
0x2641   :  { %v2809_v2 = vrot.slane %v2772_v44, %v10904_v57 }
0x2643   :  { %v2810_v32 = vsel %vm782_vm5, %v2809_v2, %v2805_v39 }
0x2644   :  { %v2811_v25 = vsel %vm803_vm6, %v2810_v32, %v2791_v23 }
0x2645   :  { %v2813_v61 = vsel %vm806_vm7, %v2811_v25, 0.0 }
0x2646   :  { %2814 = vadd.xlane.f32.xlu0 %v2813_v61 }
0x26d3   :  { %v2815_v10 = vpop.xlane.xlu0 %2814 }
0x26d4   :  { %v2824_v62 = vrot.slane %v2815_v10, %v10925_v58  ;;  %v2820_v20 = vrot.slane %v2815_v10, %v10709_v38 }
0x26d6   :  { %10078 = vrcp.f32 %v2824_v62 }
0x26d7   :  { %10080 = vrcp.f32 %v2820_v20 }
0x26e0   :  { %v10079_v7 = vpop.eup %10078 }
0x26e1   :  { %v2833_v53 = vmul.f32 %v10079_v7, %v10067_v51  ;;  %v2834_v56 = vmul.f32 %v10079_v7, %v10071_v5  ;;  %v2835_v31 = vmul.f32 %v10079_v7, %v10075_v54  ;;  %v10081_v17 = vpop.eup %10080  ;;  %v2836_v18 = vmul.f32 %v10079_v7, %v10077_v34 }
0x26e2   :  { %v2828_v44 = vmul.f32 %v10081_v17, %v10063_v45  ;;  %v2829_v47 = vmul.f32 %v10081_v17, %v10065_v60  ;;  %v2830_v2 = vmul.f32 %v10081_v17, %v10069_v11  ;;  %v2831_v12 = vmul.f32 %v10081_v17, %v10073_v43 }
0x26e3   :  { %2949 = vperm.xlu1 %9908, %v2833_v53  }
0x26e7   :  { %2952 = vperm.xlu1 %9908, %v2834_v56  }
0x26eb   :  { %2955 = vperm.xlu1 %9908, %v2835_v31  }
0x26ef   :  { %2842 = vperm.xlu1 %9908, %v2828_v44  }
0x26f3   :  { %2845 = vperm.xlu1 %9908, %v2829_v47  }
0x26f7   :  { %2958 = vperm.xlu1 %9908, %v2836_v18  }
0x26fb   :  { %2848 = vperm.xlu1 %9908, %v2830_v2  }
0x26ff   :  { %2851 = vperm.xlu1 %9908, %v2831_v12  }
0x2762   :  { %v2950_v39 = vpop.permute.xlu1 %2949 }
0x2763   :  { %v2963_v45 = vrot.slane %v2950_v39, %v10888_v41 }
0x2766   :  { %v2953_v23 = vpop.permute.xlu1 %2952 }
0x2767   :  { %v2967_v5 = vrot.slane %v2953_v23, %v10891_v42 }
0x2769   :  { %v2968_v60 = vsel %vm768_vm3, %v2967_v5, %v2963_v45 }
0x276a   :  { %v2956_v32 = vpop.permute.xlu1 %2955 }
0x276b   :  { %v2972_v54 = vrot.slane %v2956_v32, %v10897_v46 }
0x276d   :  { %v2973_v11 = vsel %vm775_vm4, %v2972_v54, %v2968_v60 }
0x276e   :  { %v2843_v51 = vpop.permute.xlu1 %2842 }
0x276f   :  { %v2856_v7 = vrot.slane %v2843_v51, %v10888_v41  ;;  %v11581_v51 = vld [vmem:[%s12756_s13] ss:$0 sm:$0xff] }
0x2772   :  { %v2846_v25 = vpop.permute.xlu1 %2845 }
0x2773   :  { %v2860_v62 = vrot.slane %v2846_v25, %v10891_v42 }
0x2775   :  { %v2861_v56 = vsel %vm768_vm3, %v2860_v62, %v2856_v7 }
0x2776   :  { %v2959_v61 = vpop.permute.xlu1 %2958 }
0x2777   :  { %v2977_v34 = vrot.slane %v2959_v61, %v10904_v57 }
0x2779   :  { %v2978_v43 = vsel %vm782_vm5, %v2977_v34, %v2973_v11 }
0x277a   :  { %8728 = vmatmul.mubr.msk.f32.vlgmr.msra.gmra.mrb[18].mxu0 %vm161_vm1, %v2978_v43  ;;  %v2849_v10 = vpop.permute.xlu1 %2848 }
0x277b   :  { %9532 = vmatpush3.bf16.msra.mxu0 %v11002_v37  ;;  %8773 = vmatprep.mubr.msk.f32.mxu0 %vm10514_vm0, %v12834_v1  ;;  %v2865_v20 = vrot.slane %v2849_v10, %v10897_v46 }
0x277c   :  { %9533 = vmatprep.subr.bf16.mxu0 %v12835_v0 }
0x277d   :  { %v2866_v17 = vsel %vm775_vm4, %v2865_v20, %v2861_v56 }
0x277e   :  { %v2852_v53 = vpop.permute.xlu1 %2851 }
0x277f   :  { %v2870_v31 = vrot.slane %v2852_v53, %v10904_v57  ;;  %9535 = vmatpush3.bf16.msra.mxu0 %v11068_v63 }
0x2780   :  { %9536 = vmatprep.subr.bf16.mxu0 %v12835_v0 }
0x2781   :  { %v2871_v44 = vsel %vm782_vm5, %v2870_v31, %v2866_v17 }
0x2782   :  { %8717 = vmatmul.mubr.msk.f32.vlgmr.msra.gmra.mrb[20].mxu1 %vm161_vm1, %v2871_v44 }
0x2783   :  { %9526 = vmatpush3.bf16.msra.mxu1 %v11023_v16  ;;  %8738 = vmatprep.mubr.msk.f32.mxu1 %vm10514_vm0, %v12834_v1 }
0x2784   :  { %9527 = vmatprep.subr.bf16.mxu1 %v12835_v0  ;;  %9538 = vmatpush3.bf16.msra.mxu0 %v11074_v22 }
0x2785   :  { %9539 = vmatprep.subr.bf16.mxu0 %v12835_v0 }
0x2787   :  { %9529 = vmatpush3.bf16.msra.mxu1 %v11026_v19 }
0x2788   :  { %9541 = vmatpush3.bf16.msra.mxu0 %v11084_v27  ;;  %9554 = vmatprep.subr.bf16.mxu1 %v12835_v0 }
0x2789   :  { %9542 = vmatprep.subr.bf16.mxu0 %v12835_v0 }
0x278c   :  { %9544 = vmatpush3.bf16.msra.mxu0 %v11094_v49 }
0x278d   :  { %9545 = vmatprep.subr.bf16.mxu0 %v12835_v0 }
0x2790   :  { %9547 = vmatpush3.bf16.msra.mxu0 %v11104_v48 }
0x2791   :  { %9548 = vmatprep.subr.bf16.mxu0 %v12835_v0 }
0x2794   :  { %9550 = vmatpush3.bf16.msra.mxu0 %v11114_v14 }
0x2795   :  { %9551 = vmatprep.subr.bf16.mxu0 %v12835_v0 }
0x2798   :  { %9553 = vmatpush3.bf16.msra.mxu0 %v11127_v35 }
0x2799   :  { %9578 = vmatprep.subr.bf16.mxu0 %v12835_v0 }
0x284d   :  { %v3047_v47 = vpop.f32.mrb[18].mxu0 }
0x284e   :  { %v8729_v18 = vpop.f32.mrb[19].mxu0  ;;  %v3053_v2 = vrot.slane %v3047_v47, 7 }
0x2855   :  { %v2940_v12 = vpop.f32.mrb[20].mxu1 }
0x2856   :  { %v3054_v39 = vsel %vm803_vm6, %v3053_v2, %v2940_v12  ;;  %v8718_v23 = vpop.f32.mrb[21].mxu1  ;;  %v11619_v12 = vld [vmem:[%s12747_s4] ss:$0 sm:$0xff] }
0x2857   :  { %8739 = vmatmul.mubr.msk.f32.vlgmr.msra.gmra.mrb[22].mxu1 %vm161_vm1, %v3054_v39 }
0x2858   :  { %9556 = vmatpush3.bf16.msra.mxu1 %v10660_v6  ;;  %8792 = vmatprep.mubr.msk.f32.mxu1 %vm10514_vm0, %v12834_v1 }
0x2859   :  { %9557 = vmatprep.subr.bf16.mxu1 %v12835_v0 }
0x285c   :  { %9559 = vmatpush3.bf16.msra.mxu1 %v10663_v8 }
0x285d   :  { %9560 = vmatprep.subr.bf16.mxu1 %v12835_v0 }
0x2860   :  { %9562 = vmatpush3.bf16.msra.mxu1 %v10685_v24 }
0x2861   :  { %9563 = vmatprep.subr.bf16.mxu1 %v12835_v0 }
0x2864   :  { %9565 = vmatpush3.bf16.msra.mxu1 %v10691_v30 }
0x2865   :  { %9566 = vmatprep.subr.bf16.mxu1 %v12835_v0 }
0x292a   :  { %v3123_v32 = vpop.f32.mrb[22].mxu1 }
0x292b   :  { %v11584_v25 = vadd.f32 %v11581_v51, %v3123_v32  ;;  %v8740_v5 = vpop.f32.mrb[23].mxu1 }
0x292d   :  { %12852 = vst [vmem:[#allocation31_spill] sm:$0xff] %v11584_v25  ;;  %v3127_v54 = vsel %vm1237_vm8, %v11584_v25, -inf }
0x292e   :  { %3128 = vmax.xlane.f32.xlu0 %v3127_v54 }
0x29bb   :  { %v11588_v45 = vpop.xlane.xlu0 %3128 }
0x29bc   :  { %12853 = vst [vmem:[#allocation32_spill] sm:$0xff] %v11588_v45  ;;  %vm3130_vm15 = vcmp.eq.f32.partialorder %v11584_v25, %v11588_v45 }
0x29bd   :  { %v3131_v61 = vsel %vm3130_vm15, %v10880_v21, 128 }
0x29be   :  { %v3132_v60 = vsel %vm1237_vm8, %v3131_v61, 2147483647 }
0x29bf   :  { %v3134_v34 = vshra.s32 %v3132_v60, 16  ;;  %v3133_v43 = vand.u32 65535, %v3132_v60 }
0x29c1   :  { %v3136_v11 = vcvt.s32.f32 %v3134_v34  ;;  %v3135_v62 = vcvt.s32.f32 %v3133_v43 }
0x29c3   :  { %3137 = vmin.xlane.f32.xlu1 %v3136_v11 }
0x2a50   :  { %v3138_v10 = vpop.xlane.xlu1 %3137 }
0x2a51   :  { %vm3139_vm9 = vcmp.eq.f32.partialorder %v3136_v11, %v3138_v10  ;;  %v3144_v7 = vcvt.f32.s32 %v3138_v10 }
0x2a52   :  { %v3140_v20 = vsel %vm3139_vm9, %v3135_v62, inf }
0x2a53   :  { %3141 = vmin.xlane.f32.xlu0 %v3140_v20  ;;  %v3145_v56 = vshll.u32 %v3144_v7, 16 }
0x2a69   :  { %3230 = vrot.lane.b32.xlu0 %v11364_v9, %s10516_s1 }
0x2ae0   :  { %v3142_v53 = vpop.xlane.xlu0 %3141 }
0x2ae1   :  { %v3143_v31 = vcvt.f32.s32 %v3142_v53 }
0x2ae3   :  { %v3146_v17 = vadd.s32 %v3145_v56, %v3143_v31 }
0x2ae4   :  { %v3231_v9 = vpop.permute.xlu0 %3230 }
0x2ae5   :  { %vm3147_vm10 = vcmp.eq.s32.totalorder %v10880_v21, %v3146_v17 }
0x2ae6   :  { %8774 = vmatmul.mubr.msk.f32.vlgmr.msra.gmra.mrb[20].mxu0 %vm3147_vm10, %v12838_v26 }
0x2ae7   :  { %9580 = vmatpush3.bf16.msra.mxu0 %v10777_v50  ;;  %8822 = vmatprep.mubr.msk.f32.mxu0 %vm10514_vm0, %v12834_v1 }
0x2ae8   :  { %9581 = vmatprep.subr.bf16.mxu0 %v12835_v0 }
0x2aeb   :  { %9583 = vmatpush3.bf16.msra.mxu0 %v10783_v52 }
0x2aec   :  { %9590 = vmatprep.subr.bf16.mxu0 %v12835_v0 }
0x2bb9   :  { %v3216_v44 = vpop.f32.mrb[20].mxu0 }
0x2bba   :  { %v3233_v47 = vsel %vm161_vm1, %v3216_v44, %v3231_v9  ;;  %v8775_v18 = vpop.f32.mrb[21].mxu0 }
0x2bbb   :  { %8793 = vmatmul.mubr.msk.f32.vlgmr.msra.gmra.mrb[24].mxu1 %vm362_vm2, %v3233_v47 }
0x2bbc   :  { %9568 = vmatpush3.bf16.msra.mxu1 %v10687_v29  ;;  %8811 = vmatprep.mubr.msk.f32.mxu1 %vm10514_vm0, %v12834_v1 }
0x2bbd   :  { %9569 = vmatprep.subr.bf16.mxu1 %v12835_v0 }
0x2bc0   :  { %9571 = vmatpush3.bf16.msra.mxu1 %v10698_v33 }
0x2bc1   :  { %9572 = vmatprep.subr.bf16.mxu1 %v12835_v0 }
0x2bc4   :  { %9574 = vmatpush3.bf16.msra.mxu1 %v10743_v13 }
0x2bc5   :  { %9575 = vmatprep.subr.bf16.mxu1 %v12835_v0 }
0x2bc8   :  { %9577 = vmatpush3.bf16.msra.mxu1 %v10746_v15 }
0x2bc9   :  { %9584 = vmatprep.subr.bf16.mxu1 %v12835_v0 }
0x2c8e   :  { %v3303_v2 = vpop.f32.mrb[24].mxu1 }
0x2c8f   :  { %v3304_v39 = vadd.f32 %v11619_v12, %v3303_v2  ;;  %v8794_v23 = vpop.f32.mrb[25].mxu1 }
0x2c91   :  { %10082 = vtanh.f32 %v3304_v39  ;;  %v7923_v5 = vmul.f32 -1.442695, %v3304_v39 }
0x2c93   :  { %10084 = vpow2.f32 %v7923_v5 }
0x2c9b   :  { %v10083_v32 = vpop.eup %10082 }
0x2c9c   :  { %3316 = vrot.lane.b32.xlu0 %v10083_v32, %s10516_s1 }
0x2c9d   :  { %v10085_v54 = vpop.eup %10084 }
0x2c9e   :  { %v3310_v61 = vadd.f32 1.0, %v10085_v54 }
0x2ca0   :  { %10086 = vrcp.f32 %v3310_v61 }
0x2caa   :  { %v10087_v60 = vpop.eup %10086 }
0x2cab   :  { %v3314_v43 = vmul.f32 %v10087_v60, %v11360_v28 }
0x2d0e   :  { %v3317_v34 = vpop.permute.xlu0 %3316 }
0x2d0f   :  { %v3319_v11 = vmul.f32 %v10087_v60, %v3317_v34 }
0x2d11   :  { %3321 = vrot.lane.b32.xlu0 %v3319_v11, %s10518_s23 }
0x2d83   :  { %v3322_v10 = vpop.permute.xlu0 %3321 }
0x2d84   :  { %v11625_v62 = vadd.f32 %v3322_v10, %v3314_v43  ;;  %v12855_v10 = vld [vmem:[#allocation21_spill] sm:$0xff] }
0x2d86   :  { %10088 = vtanh.f32 %v11625_v62 }
0x2d90   :  { %v10089_v20 = vpop.eup %10088 }
0x2d91   :  { %3327 = vrot.lane.b32.xlu0 %v10089_v20, %s10516_s1 }
0x2d95   :  { %3335 = vrot.lane.b32.xlu0 %v11391_v40, %s10516_s1 }
0x2e03   :  { %v3328_v7 = vpop.permute.xlu0 %3327 }
0x2e04   :  { %v11631_v53 = vmul.f32 %v10087_v60, %v3328_v7 }
0x2e06   :  { %3332 = vrot.lane.b32.xlu1 %v11631_v53, %s10518_s23 }
0x2e07   :  { %v3336_v56 = vpop.permute.xlu0 %3335 }
0x2e78   :  { %v3333_v31 = vpop.permute.xlu1 %3332 }
0x2e79   :  { %v3338_v28 = vsel %vm161_vm1, %v3333_v31, %v3336_v56  ;;  %v12856_v56 = vld [vmem:[#allocation13_spill] sm:$0xff] }
0x2e7a   :  { %8812 = vmatmul.mubr.msk.f32.vlgmr.msra.gmra.mrb[26].mxu1 %vm362_vm2, %v3338_v28 }
0x2e7b   :  { %9586 = vmatpush3.bf16.msra.mxu1 %v10981_v3  ;;  %8833 = vmatprep.mubr.msk.f32.mxu1 %vm10514_vm0, %v12834_v1 }
0x2e7c   :  { %9587 = vmatprep.subr.bf16.mxu1 %v12835_v0 }
0x2e7f   :  { %9589 = vmatpush3.bf16.msra.mxu1 %v10990_v4 }
0x2e80   :  { %9596 = vmatprep.subr.bf16.mxu1 %v12835_v0 }
0x2f4d   :  { %v3408_v40 = vpop.f32.mrb[26].mxu1 }
0x2f4e   :  { %v3409_v17 = vadd.f32 %v11381_v55, %v3408_v40  ;;  %v8813_v9 = vpop.f32.mrb[27].mxu1 }
0x2f50   :  { %10090 = vtanh.f32 %v3409_v17  ;;  %v7925_v47 = vmul.f32 -1.442695, %v3409_v17 }
0x2f52   :  { %10092 = vpow2.f32 %v7925_v47  ;;  %v12857_v47 = vld [vmem:[#allocation22_spill] sm:$0xff] }
0x2f5a   :  { %v10091_v44 = vpop.eup %10090 }
0x2f5b   :  { %3421 = vrot.lane.b32.xlu0 %v10091_v44, %s10516_s1 }
0x2f5c   :  { %v10093_v18 = vpop.eup %10092 }
0x2f5d   :  { %v3415_v2 = vadd.f32 1.0, %v10093_v18 }
0x2f5f   :  { %10094 = vrcp.f32 %v3415_v2  ;;  %v12858_v2 = vld [vmem:[#allocation23_spill] sm:$0xff] }
0x2f69   :  { %v10095_v39 = vpop.eup %10094 }
0x2f6a   :  { %v3419_v5 = vmul.f32 %v10095_v39, %v11387_v59  ;;  %v12854_v59 = vld [vmem:[#allocation16_spill] sm:$0xff] }
0x2fcd   :  { %v3422_v23 = vpop.permute.xlu0 %3421 }
0x2fce   :  { %v3424_v32 = vmul.f32 %v10095_v39, %v3422_v23  ;;  %v12859_v23 = vld [vmem:[#allocation24_spill] sm:$0xff] }
0x2fd0   :  { %3426 = vrot.lane.b32.xlu0 %v3424_v32, %s10518_s23 }
0x3042   :  { %v3427_v54 = vpop.permute.xlu0 %3426 }
0x3043   :  { %v11647_v61 = vadd.f32 %v3427_v54, %v3419_v5  ;;  %v12860_v5 = vld [vmem:[#allocation28_spill] sm:$0xff] }
0x3045   :  { %10096 = vtanh.f32 %v11647_v61 }
0x304f   :  { %v10097_v55 = vpop.eup %10096 }
0x3050   :  { %3432 = vrot.lane.b32.xlu0 %v10097_v55, %s10516_s1  ;;  %v12861_v55 = vld [vmem:[#allocation27_spill] sm:$0xff] }
0x30c2   :  { %v3433_v60 = vpop.permute.xlu0 %3432 }
0x30c3   :  { %v11651_v34 = vmul.f32 %v10095_v39, %v3433_v60 }
0x30c5   :  { %3437 = vrot.lane.b32.xlu1 %v11651_v34, %s10518_s23 }
0x3137   :  { %v3438_v11 = vpop.permute.xlu1 %3437 }
0x3138   :  { %8823 = vmatmul.mubr.msk.f32.vlgmr.msra.gmra.mrb[22].mxu0 %vm161_vm1, %v3438_v11  ;;  %v12862_v11 = vld [vmem:[#allocation25_spill] sm:$0xff] }
0x3139   :  { %9592 = vmatpush3.bf16.msra.mxu0 %v10961_v36  ;;  %8844 = vmatprep.mubr.msk.f32.mxu0 %vm10514_vm0, %v12834_v1 }
0x313a   :  { %9593 = vmatprep.subr.bf16.mxu0 %v12835_v0 }
0x313d   :  { %9595 = vmatpush3.bf16.msra.mxu0 %v12854_v59 }
0x313e   :  { %9602 = vmatprep.subr.bf16.mxu0 %v12835_v0 }
0x320b   :  { %v3507_v43 = vpop.f32.mrb[22].mxu0 }
0x320c   :  { %v3508_v20 = vadd.f32 %v12855_v10, %v3507_v43  ;;  %v8824_v7 = vpop.f32.mrb[23].mxu0  ;;  %v12863_v10 = vld [vmem:[#allocation26_spill] sm:$0xff] }
0x320d   :  { %v12864_v7 = vld [vmem:[#allocation29_spill] sm:$0xff] }
0x320e   :  { %v3518_v31 = vrot.slane %v3508_v20, %v12856_v56 }
0x3210   :  { %v3519_v28 = vcombine.high %v3518_v31, %v3518_v31  ;;  %v3526_v40 = vrot.slane %v3518_v31, %v12856_v56 }
0x3212   :  { %v3533_v17 = vrot.slane %v3519_v28, %v12856_v56  ;;  %v3537_v9 = vrot.slane %v3526_v40, %v10709_v38 }
0x3214   :  { %v3541_v44 = vrot.slane %v3533_v17, %v10709_v38  ;;  %v3544_v18 = vadd.f32 %v12857_v47, %v3537_v9  ;;  %v3545_v39 = vadd.f32 %v12858_v2, %v3537_v9  ;;  %v3546_v32 = vadd.f32 %v12859_v23, %v3537_v9  ;;  %v12865_v17 = vld [vmem:[#allocation30_spill] sm:$0xff] }
0x3215   :  { %v3547_v54 = vadd.f32 %v12860_v5, %v3537_v9 }
0x3216   :  { %10098 = vtanh.f32 %v3545_v39  ;;  %v3548_v60 = vadd.f32 %v12861_v55, %v3541_v44  ;;  %v3549_v43 = vadd.f32 %v12862_v11, %v3541_v44  ;;  %v3550_v20 = vadd.f32 %v12863_v10, %v3541_v44 }
0x3217   :  { %10100 = vtanh.f32 %v3544_v18  ;;  %v3551_v31 = vadd.f32 %v12864_v7, %v3541_v44 }
0x3218   :  { %10102 = vtanh.f32 %v3546_v32 }
0x3219   :  { %10104 = vtanh.f32 %v3548_v60 }
0x321a   :  { %10106 = vtanh.f32 %v3547_v54 }
0x321b   :  { %10108 = vtanh.f32 %v3549_v43 }
0x321c   :  { %10110 = vtanh.f32 %v3550_v20 }
0x321d   :  { %10112 = vtanh.f32 %v3551_v31 }
0x3220   :  { %v10099_v28 = vpop.eup %10098 }
0x3221   :  { %v10101_v40 = vpop.eup %10100  ;;  %v3561_v47 = vmul.f32 %v12865_v17, %v10099_v28 }
0x3222   :  { %v10103_v9 = vpop.eup %10102  ;;  %v3560_v2 = vmul.f32 %v12865_v17, %v10101_v40 }
0x3223   :  { %v10105_v39 = vpop.eup %10104  ;;  %v3571_v18 = vsel %vm161_vm1, %v3561_v47, 0.0  ;;  %v3562_v23 = vmul.f32 %v12865_v17, %v10103_v9 }
0x3224   :  { %v10107_v32 = vpop.eup %10106  ;;  %3572 = vadd.xlane.f32.xlu1 %v3571_v18  ;;  %v3568_v5 = vsel %vm161_vm1, %v3560_v2, 0.0  ;;  %v3564_v54 = vmul.f32 %v12865_v17, %v10105_v39 }
0x3225   :  { %v10109_v44 = vpop.eup %10108  ;;  %3569 = vadd.xlane.f32.xlu0 %v3568_v5  ;;  %v3574_v55 = vsel %vm161_vm1, %v3562_v23, 0.0  ;;  %v3563_v60 = vmul.f32 %v12865_v17, %v10107_v32 }
0x3226   :  { %v3580_v11 = vsel %vm161_vm1, %v3564_v54, 0.0  ;;  %v3565_v43 = vmul.f32 %v12865_v17, %v10109_v44  ;;  %v10111_v10 = vpop.eup %10110  ;;  %v12866_v54 = vld [vmem:[#allocation14_spill] sm:$0xff] }
0x3227   :  { %v3577_v20 = vsel %vm161_vm1, %v3563_v60, 0.0  ;;  %v3566_v31 = vmul.f32 %v12865_v17, %v10111_v10  ;;  %v10113_v28 = vpop.eup %10112 }
0x3228   :  { %3575 = vadd.xlane.f32.xlu1 %v3574_v55  ;;  %v3583_v7 = vsel %vm161_vm1, %v3565_v43, 0.0  ;;  %v3567_v47 = vmul.f32 %v12865_v17, %v10113_v28 }
0x3229   :  { %3581 = vadd.xlane.f32.xlu0 %v3580_v11  ;;  %v3586_v40 = vsel %vm161_vm1, %v3566_v31, 0.0 }
0x322a   :  { %v3589_v9 = vsel %vm161_vm1, %v3567_v47, 0.0 }
0x322c   :  { %3578 = vadd.xlane.f32.xlu1 %v3577_v20 }
0x322d   :  { %3584 = vadd.xlane.f32.xlu0 %v3583_v7 }
0x3231   :  { %3587 = vadd.xlane.f32.xlu0 %v3586_v40 }
0x3235   :  { %3590 = vadd.xlane.f32.xlu0 %v3589_v9 }
0x32b1   :  { %v3573_v2 = vpop.xlane.xlu1 %3572 }
0x32b2   :  { %v3570_v39 = vpop.xlane.xlu0 %3569  ;;  %v3593_v44 = vadd.f32 %v3573_v2, %v12866_v54 }
0x32b3   :  { %v3592_v55 = vadd.f32 %v3570_v39, %v12866_v54 }
0x32b4   :  { %v3615_v7 = vrot.slane %v3593_v44, %v10891_v42 }
0x32b5   :  { %v3576_v18 = vpop.xlane.xlu1 %3575  ;;  %v3611_v31 = vrot.slane %v3592_v55, %v10888_v41 }
0x32b6   :  { %v3582_v23 = vpop.xlane.xlu0 %3581  ;;  %v3594_v11 = vadd.f32 %v3576_v18, %v12866_v54 }
0x32b7   :  { %v3596_v17 = vadd.f32 %v3582_v23, %v12866_v54  ;;  %v3616_v23 = vsel %vm768_vm3, %v3615_v7, %v3611_v31 }
0x32b8   :  { %v3620_v40 = vrot.slane %v3594_v11, %v10897_v46 }
0x32b9   :  { %v3579_v5 = vpop.xlane.xlu1 %3578  ;;  %v3630_v2 = vrot.slane %v3596_v17, %v10888_v41 }
0x32ba   :  { %v3585_v32 = vpop.xlane.xlu0 %3584  ;;  %v3595_v10 = vadd.f32 %v3579_v5, %v12866_v54 }
0x32bb   :  { %v3597_v60 = vadd.f32 %v3585_v32, %v12866_v54 }
0x32bc   :  { %v3625_v39 = vrot.slane %v3595_v10, %v10904_v57 }
0x32bd   :  { %v3634_v28 = vrot.slane %v3597_v60, %v10891_v42 }
0x32be   :  { %v3588_v43 = vpop.xlane.xlu0 %3587 }
0x32bf   :  { %v3598_v20 = vadd.f32 %v3588_v43, %v12866_v54  ;;  %v3635_v32 = vsel %vm768_vm3, %v3634_v28, %v3630_v2  ;;  %v3621_v43 = vsel %vm775_vm4, %v3620_v40, %v3616_v23 }
0x32c0   :  { %v3626_v45 = vsel %vm782_vm5, %v3625_v39, %v3621_v43 }
0x32c1   :  { %v3639_v47 = vrot.slane %v3598_v20, %v10897_v46 }
0x32c2   :  { %v3591_v9 = vpop.xlane.xlu0 %3590 }
0x32c3   :  { %v3599_v18 = vadd.f32 %v3591_v9, %v12866_v54  ;;  %v3640_v25 = vsel %vm775_vm4, %v3639_v47, %v3635_v32 }
0x32c5   :  { %v3644_v5 = vrot.slane %v3599_v18, %v10904_v57 }
0x32c7   :  { %v3645_v56 = vsel %vm782_vm5, %v3644_v5, %v3640_v25 }
0x32c8   :  { %v3646_v59 = vsel %vm803_vm6, %v3645_v56, %v3626_v45 }
0x32c9   :  { %v3648_v36 = vsel %vm806_vm7, %v3646_v59, -inf }
0x32ca   :  { %3649 = vmax.xlane.f32.xlu1 %v3648_v36 }
0x3357   :  { %v3650_v9 = vpop.xlane.xlu1 %3649 }
0x3358   :  { %v3655_v7 = vrot.slane %v3650_v9, %v10709_v38  ;;  %v3659_v31 = vrot.slane %v3650_v9, %v10925_v58 }
0x335a   :  { %v3662_v28 = vsub.f32 %v3592_v55, %v3655_v7  ;;  %v3663_v2 = vsub.f32 %v3593_v44, %v3655_v7  ;;  %v3666_v54 = vsub.f32 %v3596_v17, %v3659_v31  ;;  %v3667_v40 = vsub.f32 %v3597_v60, %v3659_v31 }
0x335b   :  { %v3664_v32 = vsub.f32 %v3594_v11, %v3655_v7  ;;  %v3668_v25 = vsub.f32 %v3598_v20, %v3659_v31  ;;  %v3665_v56 = vsub.f32 %v3595_v10, %v3655_v7  ;;  %v3669_v36 = vsub.f32 %v3599_v18, %v3659_v31 }
0x335c   :  { %v3670_v23 = vmul.f32 1.442695, %v3662_v28  ;;  %v3672_v47 = vmul.f32 1.442695, %v3663_v2  ;;  %v3678_v39 = vmul.f32 1.442695, %v3666_v54 }
0x335d   :  { %v3680_v45 = vmul.f32 1.442695, %v3667_v40  ;;  %v3674_v59 = vmul.f32 1.442695, %v3664_v32  ;;  %v3682_v5 = vmul.f32 1.442695, %v3668_v25 }
0x335e   :  { %10114 = vpow2.f32 %v3670_v23  ;;  %v3676_v43 = vmul.f32 1.442695, %v3665_v56  ;;  %v3684_v44 = vmul.f32 1.442695, %v3669_v36 }
0x335f   :  { %10116 = vpow2.f32 %v3672_v47 }
0x3360   :  { %10118 = vpow2.f32 %v3678_v39 }
0x3361   :  { %10120 = vpow2.f32 %v3680_v45 }
0x3362   :  { %10122 = vpow2.f32 %v3674_v59 }
0x3363   :  { %10124 = vpow2.f32 %v3682_v5 }
0x3364   :  { %10126 = vpow2.f32 %v3676_v43 }
0x3365   :  { %10128 = vpow2.f32 %v3684_v44 }
0x3368   :  { %v10115_v55 = vpop.eup %10114 }
0x3369   :  { %v10117_v60 = vpop.eup %10116  ;;  %3695 = vperm.xlu0 %9909, %v10115_v55  }
0x336a   :  { %3698 = vperm.xlu1 %9908, %v10117_v60   ;;  %v10119_v54 = vpop.eup %10118 }
0x336b   :  { %v10121_v11 = vpop.eup %10120 }
0x336c   :  { %v10123_v17 = vpop.eup %10122 }
0x336d   :  { %3710 = vperm.xlu0 %9909, %v10121_v11   ;;  %v10125_v10 = vpop.eup %10124 }
0x336e   :  { %3707 = vperm.xlu1 %9908, %v10119_v54   ;;  %v10127_v20 = vpop.eup %10126 }
0x336f   :  { %v10129_v18 = vpop.eup %10128 }
0x3371   :  { %3713 = vperm.xlu0 %9909, %v10125_v10  }
0x3372   :  { %3701 = vperm.xlu1 %9908, %v10123_v17  }
0x3375   :  { %3716 = vperm.xlu0 %9909, %v10129_v18  }
0x3376   :  { %3704 = vperm.xlu1 %9908, %v10127_v20  }
0x33e8   :  { %v3696_v9 = vpop.permute.xlu0 %3695 }
0x33e9   :  { %v3699_v7 = vpop.permute.xlu1 %3698  ;;  %v3721_v47 = vrot.slane %v3696_v9, %v10888_v41 }
0x33ea   :  { %v3725_v23 = vrot.slane %v3699_v7, %v10891_v42 }
0x33ec   :  { %v3711_v28 = vpop.permute.xlu0 %3710  ;;  %v3726_v36 = vsel %vm768_vm3, %v3725_v23, %v3721_v47 }
0x33ed   :  { %v3708_v31 = vpop.permute.xlu1 %3707  ;;  %v3744_v39 = vrot.slane %v3711_v28, %v10891_v42 }
0x33ee   :  { %v3740_v32 = vrot.slane %v3708_v31, %v10888_v41 }
0x33f0   :  { %v3714_v40 = vpop.permute.xlu0 %3713  ;;  %v3745_v5 = vsel %vm768_vm3, %v3744_v39, %v3740_v32 }
0x33f1   :  { %v3702_v2 = vpop.permute.xlu1 %3701  ;;  %v3749_v45 = vrot.slane %v3714_v40, %v10897_v46 }
0x33f2   :  { %v3730_v25 = vrot.slane %v3702_v2, %v10897_v46 }
0x33f3   :  { %v3750_v7 = vsel %vm775_vm4, %v3749_v45, %v3745_v5 }
0x33f4   :  { %v3717_v59 = vpop.permute.xlu0 %3716  ;;  %v3731_v9 = vsel %vm775_vm4, %v3730_v25, %v3726_v36 }
0x33f5   :  { %v3705_v56 = vpop.permute.xlu1 %3704  ;;  %v3754_v44 = vrot.slane %v3717_v59, %v10904_v57 }
0x33f6   :  { %v3735_v43 = vrot.slane %v3705_v56, %v10904_v57 }
0x33f7   :  { %v3755_v28 = vsel %vm782_vm5, %v3754_v44, %v3750_v7 }
0x33f8   :  { %v3736_v31 = vsel %vm782_vm5, %v3735_v43, %v3731_v9 }
0x33f9   :  { %v3756_v2 = vsel %vm803_vm6, %v3755_v28, %v3736_v31 }
0x33fa   :  { %v3758_v40 = vsel %vm806_vm7, %v3756_v2, 0.0 }
0x33fb   :  { %3759 = vadd.xlane.f32.xlu1 %v3758_v40 }
0x3488   :  { %v3760_v23 = vpop.xlane.xlu1 %3759 }
0x3489   :  { %v3769_v47 = vrot.slane %v3760_v23, %v10925_v58  ;;  %v3765_v32 = vrot.slane %v3760_v23, %v10709_v38 }
0x348b   :  { %10130 = vrcp.f32 %v3769_v47 }
0x348c   :  { %10132 = vrcp.f32 %v3765_v32 }
0x3495   :  { %v10131_v39 = vpop.eup %10130 }
0x3496   :  { %v3778_v25 = vmul.f32 %v10131_v39, %v10119_v54  ;;  %v3779_v45 = vmul.f32 %v10131_v39, %v10121_v11  ;;  %v3780_v56 = vmul.f32 %v10131_v39, %v10125_v10  ;;  %v10133_v59 = vpop.eup %10132  ;;  %v3781_v43 = vmul.f32 %v10131_v39, %v10129_v18 }
0x3497   :  { %v3773_v36 = vmul.f32 %v10133_v59, %v10115_v55  ;;  %v3774_v5 = vmul.f32 %v10133_v59, %v10117_v60  ;;  %v3775_v44 = vmul.f32 %v10133_v59, %v10123_v17  ;;  %v3776_v9 = vmul.f32 %v10133_v59, %v10127_v20 }
0x3498   :  { %3894 = vperm.xlu0 %9909, %v3778_v25  }
0x349c   :  { %3897 = vperm.xlu0 %9909, %v3779_v45  }
0x34a0   :  { %3900 = vperm.xlu0 %9909, %v3780_v56  }
0x34a4   :  { %3787 = vperm.xlu0 %9909, %v3773_v36  }
0x34a8   :  { %3790 = vperm.xlu0 %9909, %v3774_v5  }
0x34ac   :  { %3903 = vperm.xlu0 %9909, %v3781_v43  }
0x34b0   :  { %3793 = vperm.xlu0 %9909, %v3775_v44  }
0x34b4   :  { %3796 = vperm.xlu0 %9909, %v3776_v9  }
0x3517   :  { %v3895_v7 = vpop.permute.xlu0 %3894 }
0x3518   :  { %v3908_v55 = vrot.slane %v3895_v7, %v10888_v41 }
0x351b   :  { %v3898_v31 = vpop.permute.xlu0 %3897 }
0x351c   :  { %v3912_v11 = vrot.slane %v3898_v31, %v10891_v42 }
0x351e   :  { %v3913_v60 = vsel %vm768_vm3, %v3912_v11, %v3908_v55 }
0x351f   :  { %v3901_v28 = vpop.permute.xlu0 %3900 }
0x3520   :  { %v3917_v10 = vrot.slane %v3901_v28, %v10897_v46 }
0x3522   :  { %v3918_v17 = vsel %vm775_vm4, %v3917_v10, %v3913_v60 }
0x3523   :  { %v3788_v54 = vpop.permute.xlu0 %3787 }
0x3524   :  { %v3801_v39 = vrot.slane %v3788_v54, %v10888_v41 }
0x3527   :  { %v3791_v2 = vpop.permute.xlu0 %3790 }
0x3528   :  { %v3805_v47 = vrot.slane %v3791_v2, %v10891_v42 }
0x352a   :  { %v3806_v45 = vsel %vm768_vm3, %v3805_v47, %v3801_v39 }
0x352b   :  { %v3904_v40 = vpop.permute.xlu0 %3903 }
0x352c   :  { %v3922_v18 = vrot.slane %v3904_v40, %v10904_v57 }
0x352e   :  { %v3923_v20 = vsel %vm782_vm5, %v3922_v18, %v3918_v17 }
0x352f   :  { %8845 = vmatmul.mubr.msk.f32.vlgmr.msra.gmra.mrb[24].mxu0 %vm161_vm1, %v3923_v20  ;;  %v3794_v23 = vpop.permute.xlu0 %3793 }
0x3530   :  { %9604 = vmatpush3.bf16.msra.mxu0 %v11002_v37  ;;  %8890 = vmatprep.mubr.msk.f32.mxu0 %vm10514_vm0, %v12834_v1  ;;  %v3810_v32 = vrot.slane %v3794_v23, %v10897_v46 }
0x3531   :  { %9605 = vmatprep.subr.bf16.mxu0 %v12835_v0 }
0x3532   :  { %v3811_v59 = vsel %vm775_vm4, %v3810_v32, %v3806_v45 }
0x3533   :  { %v3797_v25 = vpop.permute.xlu0 %3796 }
0x3534   :  { %v3815_v56 = vrot.slane %v3797_v25, %v10904_v57  ;;  %9607 = vmatpush3.bf16.msra.mxu0 %v11068_v63 }
0x3535   :  { %9608 = vmatprep.subr.bf16.mxu0 %v12835_v0 }
0x3536   :  { %v3816_v36 = vsel %vm782_vm5, %v3815_v56, %v3811_v59 }
0x3537   :  { %8834 = vmatmul.mubr.msk.f32.vlgmr.msra.gmra.mrb[28].mxu1 %vm161_vm1, %v3816_v36 }
0x3538   :  { %9598 = vmatpush3.bf16.msra.mxu1 %v11023_v16  ;;  %8855 = vmatprep.mubr.msk.f32.mxu1 %vm10514_vm0, %v12834_v1 }
0x3539   :  { %9599 = vmatprep.subr.bf16.mxu1 %v12835_v0  ;;  %9610 = vmatpush3.bf16.msra.mxu0 %v11074_v22 }
0x353a   :  { %9611 = vmatprep.subr.bf16.mxu0 %v12835_v0 }
0x353c   :  { %9601 = vmatpush3.bf16.msra.mxu1 %v11026_v19 }
0x353d   :  { %9613 = vmatpush3.bf16.msra.mxu0 %v11084_v27  ;;  %9626 = vmatprep.subr.bf16.mxu1 %v12835_v0 }
0x353e   :  { %9614 = vmatprep.subr.bf16.mxu0 %v12835_v0 }
0x3541   :  { %9616 = vmatpush3.bf16.msra.mxu0 %v11094_v49 }
0x3542   :  { %9617 = vmatprep.subr.bf16.mxu0 %v12835_v0 }
0x3545   :  { %9619 = vmatpush3.bf16.msra.mxu0 %v11104_v48 }
0x3546   :  { %9620 = vmatprep.subr.bf16.mxu0 %v12835_v0 }
0x3549   :  { %9622 = vmatpush3.bf16.msra.mxu0 %v11114_v14 }
0x354a   :  { %9623 = vmatprep.subr.bf16.mxu0 %v12835_v0 }
0x354d   :  { %9625 = vmatpush3.bf16.msra.mxu0 %v11127_v35 }
0x354e   :  { %9650 = vmatprep.subr.bf16.mxu0 %v12835_v0 }
0x3602   :  { %v3992_v5 = vpop.f32.mrb[24].mxu0 }
0x3603   :  { %v8846_v43 = vpop.f32.mrb[25].mxu0  ;;  %v3998_v44 = vrot.slane %v3992_v5, 7 }
0x360a   :  { %v3885_v9 = vpop.f32.mrb[28].mxu1 }
0x360b   :  { %v3999_v7 = vsel %vm803_vm6, %v3998_v44, %v3885_v9  ;;  %v8835_v31 = vpop.f32.mrb[29].mxu1 }
0x360c   :  { %8856 = vmatmul.mubr.msk.f32.vlgmr.msra.gmra.mrb[30].mxu1 %vm161_vm1, %v3999_v7 }
0x360d   :  { %9628 = vmatpush3.bf16.msra.mxu1 %v10660_v6  ;;  %8909 = vmatprep.mubr.msk.f32.mxu1 %vm10514_vm0, %v12834_v1 }
0x360e   :  { %9629 = vmatprep.subr.bf16.mxu1 %v12835_v0 }
0x3611   :  { %9631 = vmatpush3.bf16.msra.mxu1 %v10663_v8 }
0x3612   :  { %9632 = vmatprep.subr.bf16.mxu1 %v12835_v0 }
0x3615   :  { %9634 = vmatpush3.bf16.msra.mxu1 %v10685_v24 }
0x3616   :  { %9635 = vmatprep.subr.bf16.mxu1 %v12835_v0 }
0x3619   :  { %9637 = vmatpush3.bf16.msra.mxu1 %v10691_v30 }
0x361a   :  { %9638 = vmatprep.subr.bf16.mxu1 %v12835_v0 }
0x36df   :  { %v4068_v28 = vpop.f32.mrb[30].mxu1 }
0x36e0   :  { %v11789_v54 = vadd.f32 %v11581_v51, %v4068_v28  ;;  %v8857_v2 = vpop.f32.mrb[31].mxu1 }
0x36e2   :  { %12867 = vst [vmem:[#allocation21_spill] sm:$0xff] %v11789_v54  ;;  %v4072_v11 = vsel %vm1237_vm8, %v11789_v54, -inf }
0x36e3   :  { %4073 = vmax.xlane.f32.xlu0 %v4072_v11 }
0x3770   :  { %v11793_v10 = vpop.xlane.xlu0 %4073 }
0x3771   :  { %12868 = vst [vmem:[#allocation22_spill] sm:$0xff] %v11793_v10  ;;  %vm4075_vm11 = vcmp.eq.f32.partialorder %v11789_v54, %v11793_v10 }
0x3772   :  { %v4076_v55 = vsel %vm4075_vm11, %v10880_v21, 128 }
0x3773   :  { %v4077_v40 = vsel %vm1237_vm8, %v4076_v55, 2147483647 }
0x3774   :  { %v4079_v60 = vshra.s32 %v4077_v40, 16  ;;  %v4078_v17 = vand.u32 65535, %v4077_v40 }
0x3776   :  { %v4081_v18 = vcvt.s32.f32 %v4079_v60  ;;  %v4080_v20 = vcvt.s32.f32 %v4078_v17 }
0x3778   :  { %4082 = vmin.xlane.f32.xlu1 %v4081_v18 }
0x3805   :  { %v4083_v51 = vpop.xlane.xlu1 %4082 }
0x3806   :  { %vm4084_vm12 = vcmp.eq.f32.partialorder %v4081_v18, %v4083_v51  ;;  %v4089_v47 = vcvt.f32.s32 %v4083_v51 }
0x3807   :  { %v4085_v23 = vsel %vm4084_vm12, %v4080_v20, inf }
0x3808   :  { %4086 = vmin.xlane.f32.xlu1 %v4085_v23  ;;  %v4090_v39 = vshll.u32 %v4089_v47, 16 }
0x3819   :  { %4175 = vrot.lane.b32.xlu1 %v11631_v53, %s10516_s1 }
0x3895   :  { %v4087_v32 = vpop.xlane.xlu1 %4086 }
0x3896   :  { %v4088_v25 = vcvt.f32.s32 %v4087_v32 }
0x3898   :  { %v4091_v45 = vadd.s32 %v4090_v39, %v4088_v25 }
0x3899   :  { %v4176_v53 = vpop.permute.xlu1 %4175 }
0x389a   :  { %vm4092_vm13 = vcmp.eq.s32.totalorder %v10880_v21, %v4091_v45 }
0x389b   :  { %8891 = vmatmul.mubr.msk.f32.vlgmr.msra.gmra.mrb[26].mxu0 %vm4092_vm13, %v12838_v26 }
0x389c   :  { %9652 = vmatpush3.bf16.msra.mxu0 %v10777_v50  ;;  %8939 = vmatprep.mubr.msk.f32.mxu0 %vm10514_vm0, %v12834_v1 }
0x389d   :  { %9653 = vmatprep.subr.bf16.mxu0 %v12835_v0 }
0x38a0   :  { %9655 = vmatpush3.bf16.msra.mxu0 %v10783_v52 }
0x38a1   :  { %9662 = vmatprep.subr.bf16.mxu0 %v12835_v0 }
0x396e   :  { %v4161_v56 = vpop.f32.mrb[26].mxu0 }
0x396f   :  { %v4178_v59 = vsel %vm161_vm1, %v4161_v56, %v4176_v53  ;;  %v8892_v36 = vpop.f32.mrb[27].mxu0 }
0x3970   :  { %8910 = vmatmul.mubr.msk.f32.vlgmr.msra.gmra.mrb[32].mxu1 %vm362_vm2, %v4178_v59 }
0x3971   :  { %9640 = vmatpush3.bf16.msra.mxu1 %v10687_v29  ;;  %8928 = vmatprep.mubr.msk.f32.mxu1 %vm10514_vm0, %v12834_v1 }
0x3972   :  { %9641 = vmatprep.subr.bf16.mxu1 %v12835_v0 }
0x3975   :  { %9643 = vmatpush3.bf16.msra.mxu1 %v10698_v33 }
0x3976   :  { %9644 = vmatprep.subr.bf16.mxu1 %v12835_v0 }
0x3979   :  { %9646 = vmatpush3.bf16.msra.mxu1 %v10743_v13 }
0x397a   :  { %9647 = vmatprep.subr.bf16.mxu1 %v12835_v0 }
0x397d   :  { %9649 = vmatpush3.bf16.msra.mxu1 %v10746_v15 }
0x397e   :  { %9656 = vmatprep.subr.bf16.mxu1 %v12835_v0 }
0x3a43   :  { %v4248_v5 = vpop.f32.mrb[32].mxu1 }
0x3a44   :  { %v4249_v43 = vadd.f32 %v11619_v12, %v4248_v5  ;;  %v8911_v44 = vpop.f32.mrb[33].mxu1 }
0x3a46   :  { %10134 = vtanh.f32 %v4249_v43  ;;  %v7933_v7 = vmul.f32 -1.442695, %v4249_v43 }
0x3a48   :  { %10136 = vpow2.f32 %v7933_v7 }
0x3a50   :  { %v10135_v9 = vpop.eup %10134 }
0x3a51   :  { %4261 = vrot.lane.b32.xlu1 %v10135_v9, %s10516_s1 }
0x3a52   :  { %v10137_v31 = vpop.eup %10136 }
0x3a53   :  { %v4255_v28 = vadd.f32 1.0, %v10137_v31 }
0x3a55   :  { %10138 = vrcp.f32 %v4255_v28 }
0x3a5f   :  { %v10139_v2 = vpop.eup %10138 }
0x3a60   :  { %v4259_v40 = vmul.f32 %v10139_v2, %v11625_v62 }
0x3ac3   :  { %v4262_v11 = vpop.permute.xlu1 %4261 }
0x3ac4   :  { %v4264_v55 = vmul.f32 %v10139_v2, %v4262_v11  ;;  %v12869_v11 = vld [vmem:[#allocation15_spill] sm:$0xff] }
0x3ac6   :  { %4266 = vrot.lane.b32.xlu0 %v4264_v55, %s10518_s23 }
0x3b38   :  { %v4267_v60 = vpop.permute.xlu0 %4266 }
0x3b39   :  { %v11825_v18 = vadd.f32 %v4267_v60, %v4259_v40  ;;  %v11870_v40 = vld [vmem:[%s12751_s8] ss:$0 sm:$0xff] }
0x3b3a   :  { %12871 = vst [vmem:[#allocation23_spill] sm:$0xff] %v11870_v40 }
0x3b3b   :  { %10140 = vtanh.f32 %v11825_v18 }
0x3b45   :  { %v10141_v12 = vpop.eup %10140 }
0x3b46   :  { %4272 = vrot.lane.b32.xlu1 %v10141_v12, %s10516_s1 }
0x3bb8   :  { %v4273_v17 = vpop.permute.xlu1 %4272 }
0x3bb9   :  { %v11829_v51 = vmul.f32 %v10139_v2, %v4273_v17  ;;  %v12872_v17 = vld [vmem:[#allocation13_spill] sm:$0xff] }
0x3bbb   :  { %4277 = vrot.lane.b32.xlu1 %v11829_v51, %s10518_s23 }
0x3bbf   :  { %4280 = vrot.lane.b32.xlu1 %v11651_v34, %s10516_s1  ;;  %v11846_v34 = vld [vmem:[%s12749_s6] ss:$0 sm:$0xff] }
0x3c2d   :  { %v4278_v20 = vpop.permute.xlu1 %4277 }
0x3c31   :  { %v4281_v23 = vpop.permute.xlu1 %4280 }
0x3c32   :  { %v4283_v62 = vsel %vm161_vm1, %v4278_v20, %v4281_v23 }
0x3c33   :  { %8929 = vmatmul.mubr.msk.f32.vlgmr.msra.gmra.mrb[34].mxu1 %vm362_vm2, %v4283_v62 }
0x3c34   :  { %9658 = vmatpush3.bf16.msra.mxu1 %v10981_v3  ;;  %8950 = vmatprep.mubr.msk.f32.mxu1 %vm10514_vm0, %v12834_v1 }
0x3c35   :  { %9659 = vmatprep.subr.bf16.mxu1 %v12835_v0 }
0x3c38   :  { %9661 = vmatpush3.bf16.msra.mxu1 %v10990_v4 }
0x3c39   :  { %9668 = vmatprep.subr.bf16.mxu1 %v12835_v0 }
0x3d06   :  { %v4353_v47 = vpop.f32.mrb[34].mxu1 }
0x3d07   :  { %v4354_v32 = vadd.f32 %v11846_v34, %v4353_v47  ;;  %v8930_v39 = vpop.f32.mrb[35].mxu1 }
0x3d09   :  { %10142 = vtanh.f32 %v4354_v32  ;;  %v7935_v45 = vmul.f32 -1.442695, %v4354_v32 }
0x3d0b   :  { %10144 = vpow2.f32 %v7935_v45 }
0x3d13   :  { %v10143_v25 = vpop.eup %10142 }
0x3d14   :  { %4366 = vrot.lane.b32.xlu1 %v10143_v25, %s10516_s1  ;;  %v11881_v25 = vld [vmem:[%s12745_s2] sm:$0xff] }
0x3d15   :  { %v10145_v53 = vpop.eup %10144  ;;  %12873 = vst [vmem:[#allocation24_spill] sm:$0xff] %v11881_v25 }
0x3d16   :  { %v4360_v56 = vadd.f32 1.0, %v10145_v53  ;;  %v11887_v53 = vld [vmem:[%s12745_s2 + $0x8] sm:$0xff] }
0x3d17   :  { %12874 = vst [vmem:[#allocation28_spill] sm:$0xff] %v11887_v53 }
0x3d18   :  { %10146 = vrcp.f32 %v4360_v56 }
0x3d22   :  { %v10147_v59 = vpop.eup %10146 }
0x3d23   :  { %v4364_v43 = vmul.f32 %v10147_v59, %v11647_v61  ;;  %v12870_v61 = vld [vmem:[#allocation16_spill] sm:$0xff] }
0x3d86   :  { %v4367_v36 = vpop.permute.xlu1 %4366 }
0x3d87   :  { %v4369_v5 = vmul.f32 %v10147_v59, %v4367_v36 }
0x3d89   :  { %4371 = vrot.lane.b32.xlu1 %v4369_v5, %s10518_s23  ;;  %v11899_v5 = vld [vmem:[%s12745_s2 + $0x28] sm:$0xff] }
0x3d8a   :  { %12876 = vst [vmem:[#allocation25_spill] sm:$0xff] %v11899_v5 }
0x3dfb   :  { %v4372_v44 = vpop.permute.xlu1 %4371 }
0x3dfc   :  { %v11852_v9 = vadd.f32 %v4372_v44, %v4364_v43  ;;  %v11905_v44 = vld [vmem:[%s12745_s2 + $0x30] sm:$0xff] }
0x3dfd   :  { %12877 = vst [vmem:[#allocation26_spill] sm:$0xff] %v11905_v44 }
0x3dfe   :  { %10148 = vtanh.f32 %v11852_v9 }
0x3e08   :  { %v10149_v7 = vpop.eup %10148 }
0x3e09   :  { %4377 = vrot.lane.b32.xlu1 %v10149_v7, %s10516_s1 }
0x3e7b   :  { %v4378_v31 = vpop.permute.xlu1 %4377 }
0x3e7c   :  { %v11856_v28 = vmul.f32 %v10147_v59, %v4378_v31  ;;  %v11893_v59 = vld [vmem:[%s12745_s2 + $0x10] sm:$0xff]  ;;  %v11911_v31 = vld [vmem:[%s12745_s2 + $0x20] sm:$0xff] }
0x3e7d   :  { %12875 = vst [vmem:[#allocation27_spill] sm:$0xff] %v11893_v59  ;;  %12878 = vst [vmem:[#allocation29_spill] sm:$0xff] %v11911_v31 }
0x3e7e   :  { %4382 = vrot.lane.b32.xlu0 %v11856_v28, %s10518_s23 }
0x3ef0   :  { %v4383_v2 = vpop.permute.xlu0 %4382 }
0x3ef1   :  { %8940 = vmatmul.mubr.msk.f32.vlgmr.msra.gmra.mrb[28].mxu0 %vm161_vm1, %v4383_v2 }
0x3ef2   :  { %9664 = vmatpush3.bf16.msra.mxu0 %v12869_v11  ;;  %8961 = vmatprep.mubr.msk.f32.mxu0 %vm10514_vm0, %v12834_v1 }
0x3ef3   :  { %9665 = vmatprep.subr.bf16.mxu0 %v12835_v0 }
0x3ef6   :  { %9667 = vmatpush3.bf16.msra.mxu0 %v12870_v61 }
0x3ef7   :  { %9674 = vmatprep.subr.bf16.mxu0 %v12835_v0 }
0x3fc4   :  { %v4452_v55 = vpop.f32.mrb[28].mxu0 }
0x3fc5   :  { %v4453_v60 = vadd.f32 %v11870_v40, %v4452_v55  ;;  %v8941_v12 = vpop.f32.mrb[29].mxu0  ;;  %v11917_v55 = vld [vmem:[%s12745_s2 + $0x18] sm:$0xff] }
0x3fc6   :  { %12879 = vst [vmem:[#allocation30_spill] sm:$0xff] %v11917_v55  ;;  %v11923_v12 = vld [vmem:[%s12745_s2 + $0x38] sm:$0xff] }
0x3fc7   :  { %v4463_v20 = vrot.slane %v4453_v60, %v12872_v17  ;;  %12880 = vst [vmem:[#allocation33_spill] sm:$0xff] %v11923_v12 }
0x3fc9   :  { %v4464_v23 = vcombine.high %v4463_v20, %v4463_v20  ;;  %v4471_v62 = vrot.slane %v4463_v20, %v12872_v17 }
0x3fcb   :  { %v4478_v47 = vrot.slane %v4464_v23, %v12872_v17  ;;  %v4482_v32 = vrot.slane %v4471_v62, %v10709_v38 }
0x3fcd   :  { %v4486_v39 = vrot.slane %v4478_v47, %v10709_v38  ;;  %v4489_v45 = vadd.f32 %v11881_v25, %v4482_v32  ;;  %v4490_v56 = vadd.f32 %v11887_v53, %v4482_v32  ;;  %v4491_v36 = vadd.f32 %v11893_v59, %v4482_v32  ;;  %v11929_v47 = vld [vmem:[%s12752_s9] ss:$0 sm:$0xff] }
0x3fce   :  { %v4492_v60 = vadd.f32 %v11917_v55, %v4482_v32  ;;  %12881 = vst [vmem:[#allocation34_spill] sm:$0xff] %v11929_v47 }
0x3fcf   :  { %10150 = vtanh.f32 %v4490_v56  ;;  %v4494_v43 = vadd.f32 %v11899_v5, %v4486_v39  ;;  %v4495_v7 = vadd.f32 %v11905_v44, %v4486_v39  ;;  %v4493_v2 = vadd.f32 %v11911_v31, %v4486_v39 }
0x3fd0   :  { %10152 = vtanh.f32 %v4489_v45  ;;  %v4496_v20 = vadd.f32 %v11923_v12, %v4486_v39 }
0x3fd1   :  { %10154 = vtanh.f32 %v4491_v36 }
0x3fd2   :  { %10156 = vtanh.f32 %v4494_v43 }
0x3fd3   :  { %10158 = vtanh.f32 %v4495_v7 }
0x3fd4   :  { %10160 = vtanh.f32 %v4493_v2 }
0x3fd5   :  { %10162 = vtanh.f32 %v4492_v60 }
0x3fd6   :  { %10164 = vtanh.f32 %v4496_v20 }
0x3fd9   :  { %v10151_v23 = vpop.eup %10150 }
0x3fda   :  { %v10153_v62 = vpop.eup %10152  ;;  %v4506_v32 = vmul.f32 %v11929_v47, %v10151_v23 }
0x3fdb   :  { %v10155_v45 = vpop.eup %10154  ;;  %v4505_v56 = vmul.f32 %v11929_v47, %v10153_v62 }
0x3fdc   :  { %v10157_v36 = vpop.eup %10156  ;;  %v4516_v43 = vsel %vm161_vm1, %v4506_v32, 0.0  ;;  %v4507_v7 = vmul.f32 %v11929_v47, %v10155_v45 }
0x3fdd   :  { %v10159_v39 = vpop.eup %10158  ;;  %4517 = vadd.xlane.f32.xlu0 %v4516_v43  ;;  %v4513_v2 = vsel %vm161_vm1, %v4505_v56, 0.0  ;;  %v4510_v60 = vmul.f32 %v11929_v47, %v10157_v36 }
0x3fde   :  { %v10161_v20 = vpop.eup %10160  ;;  %4514 = vadd.xlane.f32.xlu1 %v4513_v2  ;;  %v4519_v54 = vsel %vm161_vm1, %v4507_v7, 0.0  ;;  %v4511_v32 = vmul.f32 %v11929_v47, %v10159_v39 }
0x3fdf   :  { %v4509_v23 = vmul.f32 %v11929_v47, %v10161_v20  ;;  %v10163_v10 = vpop.eup %10162  ;;  %v4528_v62 = vsel %vm161_vm1, %v4510_v60, 0.0 }
0x3fe0   :  { %v10165_v12 = vpop.eup %10164  ;;  %v4508_v56 = vmul.f32 %v11929_v47, %v10163_v10  ;;  %v4531_v36 = vsel %vm161_vm1, %v4511_v32, 0.0 }
0x3fe1   :  { %4520 = vadd.xlane.f32.xlu0 %v4519_v54  ;;  %v4525_v45 = vsel %vm161_vm1, %v4509_v23, 0.0  ;;  %v4512_v43 = vmul.f32 %v11929_v47, %v10165_v12 }
0x3fe2   :  { %4529 = vadd.xlane.f32.xlu1 %v4528_v62  ;;  %v4522_v7 = vsel %vm161_vm1, %v4508_v56, 0.0  ;;  %v12882_v62 = vld [vmem:[#allocation14_spill] sm:$0xff] }
0x3fe3   :  { %v4534_v54 = vsel %vm161_vm1, %v4512_v43, 0.0 }
0x3fe5   :  { %4526 = vadd.xlane.f32.xlu0 %v4525_v45 }
0x3fe6   :  { %4532 = vadd.xlane.f32.xlu1 %v4531_v36 }
0x3fe9   :  { %4523 = vadd.xlane.f32.xlu0 %v4522_v7 }
0x3fea   :  { %4535 = vadd.xlane.f32.xlu1 %v4534_v54 }
0x406a   :  { %v4518_v2 = vpop.xlane.xlu0 %4517 }
0x406b   :  { %v4515_v39 = vpop.xlane.xlu1 %4514  ;;  %v4538_v23 = vadd.f32 %v4518_v2, %v12882_v62 }
0x406c   :  { %v4537_v10 = vadd.f32 %v4515_v39, %v12882_v62 }
0x406d   :  { %v4560_v7 = vrot.slane %v4538_v23, %v10891_v42 }
0x406e   :  { %v4521_v60 = vpop.xlane.xlu0 %4520  ;;  %v4556_v54 = vrot.slane %v4537_v10, %v10888_v41 }
0x406f   :  { %v4530_v20 = vpop.xlane.xlu1 %4529  ;;  %v4539_v32 = vadd.f32 %v4521_v60, %v12882_v62 }
0x4070   :  { %v4542_v45 = vadd.f32 %v4530_v20, %v12882_v62  ;;  %v4561_v31 = vsel %vm768_vm3, %v4560_v7, %v4556_v54 }
0x4071   :  { %v4565_v2 = vrot.slane %v4539_v32, %v10897_v46 }
0x4072   :  { %v4527_v12 = vpop.xlane.xlu0 %4526  ;;  %v4579_v39 = vrot.slane %v4542_v45, %v10891_v42 }
0x4073   :  { %v4533_v36 = vpop.xlane.xlu1 %4532  ;;  %v4541_v56 = vadd.f32 %v4527_v12, %v12882_v62  ;;  %v4566_v53 = vsel %vm775_vm4, %v4565_v2, %v4561_v31 }
0x4074   :  { %v4543_v43 = vadd.f32 %v4533_v36, %v12882_v62 }
0x4075   :  { %v4575_v47 = vrot.slane %v4541_v56, %v10888_v41 }
0x4076   :  { %v4524_v44 = vpop.xlane.xlu0 %4523  ;;  %v4584_v60 = vrot.slane %v4543_v43, %v10897_v46 }
0x4077   :  { %v4536_v20 = vpop.xlane.xlu1 %4535  ;;  %v4540_v5 = vadd.f32 %v4524_v44, %v12882_v62  ;;  %v4580_v12 = vsel %vm768_vm3, %v4579_v39, %v4575_v47 }
0x4078   :  { %v4544_v36 = vadd.f32 %v4536_v20, %v12882_v62  ;;  %v4585_v17 = vsel %vm775_vm4, %v4584_v60, %v4580_v12 }
0x4079   :  { %v4570_v55 = vrot.slane %v4540_v5, %v10904_v57 }
0x407a   :  { %v4589_v59 = vrot.slane %v4544_v36, %v10904_v57 }
0x407b   :  { %v4571_v25 = vsel %vm782_vm5, %v4570_v55, %v4566_v53 }
0x407c   :  { %v4590_v40 = vsel %vm782_vm5, %v4589_v59, %v4585_v17 }
0x407d   :  { %v4591_v44 = vsel %vm803_vm6, %v4590_v40, %v4571_v25 }
0x407e   :  { %v4593_v47 = vsel %vm806_vm7, %v4591_v44, -inf }
0x407f   :  { %4594 = vmax.xlane.f32.xlu0 %v4593_v47 }
0x410c   :  { %v4595_v39 = vpop.xlane.xlu0 %4594 }
0x410d   :  { %v4600_v7 = vrot.slane %v4595_v39, %v10709_v38  ;;  %v4604_v54 = vrot.slane %v4595_v39, %v10925_v58 }
0x410f   :  { %v4607_v20 = vsub.f32 %v4537_v10, %v4600_v7  ;;  %v4608_v62 = vsub.f32 %v4538_v23, %v4600_v7  ;;  %v4609_v61 = vsub.f32 %v4539_v32, %v4600_v7  ;;  %v4611_v31 = vsub.f32 %v4541_v56, %v4604_v54 }
0x4110   :  { %v4612_v55 = vsub.f32 %v4542_v45, %v4604_v54  ;;  %v4610_v17 = vsub.f32 %v4540_v5, %v4600_v7  ;;  %v4613_v25 = vsub.f32 %v4543_v43, %v4604_v54  ;;  %v4614_v44 = vsub.f32 %v4544_v36, %v4604_v54 }
0x4111   :  { %v4615_v2 = vmul.f32 1.442695, %v4607_v20  ;;  %v4617_v53 = vmul.f32 1.442695, %v4608_v62  ;;  %v4623_v60 = vmul.f32 1.442695, %v4611_v31 }
0x4112   :  { %v4619_v40 = vmul.f32 1.442695, %v4609_v61  ;;  %v4625_v59 = vmul.f32 1.442695, %v4612_v55  ;;  %v4621_v12 = vmul.f32 1.442695, %v4610_v17 }
0x4113   :  { %10166 = vpow2.f32 %v4615_v2  ;;  %v4627_v47 = vmul.f32 1.442695, %v4613_v25  ;;  %v4629_v62 = vmul.f32 1.442695, %v4614_v44 }
0x4114   :  { %10168 = vpow2.f32 %v4617_v53 }
0x4115   :  { %10170 = vpow2.f32 %v4623_v60 }
0x4116   :  { %10172 = vpow2.f32 %v4619_v40 }
0x4117   :  { %10174 = vpow2.f32 %v4625_v59 }
0x4118   :  { %10176 = vpow2.f32 %v4621_v12 }
0x4119   :  { %10178 = vpow2.f32 %v4627_v47 }
0x411a   :  { %10180 = vpow2.f32 %v4629_v62 }
0x411d   :  { %v10167_v23 = vpop.eup %10166 }
0x411e   :  { %v10169_v10 = vpop.eup %10168  ;;  %4640 = vperm.xlu1 %9908, %v10167_v23  }
0x411f   :  { %4643 = vperm.xlu0 %9909, %v10169_v10   ;;  %v10171_v32 = vpop.eup %10170 }
0x4120   :  { %v10173_v45 = vpop.eup %10172 }
0x4121   :  { %v10175_v61 = vpop.eup %10174 }
0x4122   :  { %4652 = vperm.xlu1 %9908, %v10171_v32   ;;  %v10177_v5 = vpop.eup %10176 }
0x4123   :  { %4646 = vperm.xlu0 %9909, %v10173_v45   ;;  %v10179_v56 = vpop.eup %10178 }
0x4124   :  { %v10181_v43 = vpop.eup %10180 }
0x4126   :  { %4655 = vperm.xlu1 %9908, %v10175_v61  }
0x4127   :  { %4649 = vperm.xlu0 %9909, %v10177_v5  }
0x412a   :  { %4658 = vperm.xlu1 %9908, %v10179_v56  }
0x412e   :  { %4661 = vperm.xlu1 %9908, %v10181_v43  }
0x419d   :  { %v4641_v36 = vpop.permute.xlu1 %4640 }
0x419e   :  { %v4644_v39 = vpop.permute.xlu0 %4643  ;;  %v4666_v55 = vrot.slane %v4641_v36, %v10888_v41 }
0x419f   :  { %v4670_v53 = vrot.slane %v4644_v39, %v10891_v42 }
0x41a1   :  { %v4653_v7 = vpop.permute.xlu1 %4652  ;;  %v4671_v44 = vsel %vm768_vm3, %v4670_v53, %v4666_v55 }
0x41a2   :  { %v4647_v54 = vpop.permute.xlu0 %4646  ;;  %v4685_v25 = vrot.slane %v4653_v7, %v10888_v41 }
0x41a3   :  { %v4675_v17 = vrot.slane %v4647_v54, %v10897_v46 }
0x41a5   :  { %v4656_v20 = vpop.permute.xlu1 %4655  ;;  %v4676_v39 = vsel %vm775_vm4, %v4675_v17, %v4671_v44 }
0x41a6   :  { %v4650_v31 = vpop.permute.xlu0 %4649  ;;  %v4689_v60 = vrot.slane %v4656_v20, %v10891_v42 }
0x41a7   :  { %v4680_v59 = vrot.slane %v4650_v31, %v10904_v57 }
0x41a8   :  { %v4690_v47 = vsel %vm768_vm3, %v4689_v60, %v4685_v25 }
0x41a9   :  { %v4659_v2 = vpop.permute.xlu1 %4658  ;;  %v4681_v20 = vsel %vm782_vm5, %v4680_v59, %v4676_v39 }
0x41aa   :  { %v4694_v40 = vrot.slane %v4659_v2, %v10897_v46 }
0x41ac   :  { %v4695_v36 = vsel %vm775_vm4, %v4694_v40, %v4690_v47 }
0x41ad   :  { %v4662_v12 = vpop.permute.xlu1 %4661 }
0x41ae   :  { %v4699_v62 = vrot.slane %v4662_v12, %v10904_v57 }
0x41b0   :  { %v4700_v54 = vsel %vm782_vm5, %v4699_v62, %v4695_v36 }
0x41b1   :  { %v4701_v2 = vsel %vm803_vm6, %v4700_v54, %v4681_v20 }
0x41b2   :  { %v4703_v7 = vsel %vm806_vm7, %v4701_v2, 0.0 }
0x41b3   :  { %4704 = vadd.xlane.f32.xlu0 %v4703_v7 }
0x4240   :  { %v4705_v31 = vpop.xlane.xlu0 %4704 }
0x4241   :  { %v4714_v53 = vrot.slane %v4705_v31, %v10925_v58  ;;  %v4710_v55 = vrot.slane %v4705_v31, %v10709_v38 }
0x4243   :  { %10182 = vrcp.f32 %v4714_v53 }
0x4244   :  { %10184 = vrcp.f32 %v4710_v55 }
0x424d   :  { %v10183_v60 = vpop.eup %10182 }
0x424e   :  { %v4723_v17 = vmul.f32 %v10183_v60, %v10171_v32  ;;  %v4724_v40 = vmul.f32 %v10183_v60, %v10175_v61  ;;  %v4725_v25 = vmul.f32 %v10183_v60, %v10179_v56  ;;  %v10185_v59 = vpop.eup %10184  ;;  %v4726_v47 = vmul.f32 %v10183_v60, %v10181_v43 }
0x424f   :  { %v4718_v12 = vmul.f32 %v10185_v59, %v10167_v23  ;;  %v4719_v44 = vmul.f32 %v10185_v59, %v10169_v10  ;;  %v4720_v62 = vmul.f32 %v10185_v59, %v10173_v45  ;;  %v4721_v39 = vmul.f32 %v10185_v59, %v10177_v5 }
0x4250   :  { %4839 = vperm.xlu1 %9908, %v4723_v17  }
0x4254   :  { %4842 = vperm.xlu1 %9908, %v4724_v40  }
0x4258   :  { %4845 = vperm.xlu1 %9908, %v4725_v25  }
0x425c   :  { %4732 = vperm.xlu1 %9908, %v4718_v12  }
0x4260   :  { %4735 = vperm.xlu1 %9908, %v4719_v44  }
0x4264   :  { %4848 = vperm.xlu1 %9908, %v4726_v47  }
0x4268   :  { %4738 = vperm.xlu1 %9908, %v4720_v62  }
0x426c   :  { %4741 = vperm.xlu1 %9908, %v4721_v39  }
0x42cf   :  { %v4840_v36 = vpop.permute.xlu1 %4839 }
0x42d0   :  { %v4853_v23 = vrot.slane %v4840_v36, %v10888_v41 }
0x42d3   :  { %v4843_v20 = vpop.permute.xlu1 %4842 }
0x42d4   :  { %v4857_v61 = vrot.slane %v4843_v20, %v10891_v42 }
0x42d6   :  { %v4858_v10 = vsel %vm768_vm3, %v4857_v61, %v4853_v23 }
0x42d7   :  { %v4846_v54 = vpop.permute.xlu1 %4845 }
0x42d8   :  { %v4862_v56 = vrot.slane %v4846_v54, %v10897_v46 }
0x42da   :  { %v4863_v45 = vsel %vm775_vm4, %v4862_v56, %v4858_v10 }
0x42db   :  { %v4733_v32 = vpop.permute.xlu1 %4732 }
0x42dc   :  { %v4746_v60 = vrot.slane %v4733_v32, %v10888_v41  ;;  %v12046_v32 = vld [vmem:[%s12756_s13] ss:$0 sm:$0xff] }
0x42df   :  { %v4736_v2 = vpop.permute.xlu1 %4735 }
0x42e0   :  { %v4750_v53 = vrot.slane %v4736_v2, %v10891_v42 }
0x42e2   :  { %v4751_v40 = vsel %vm768_vm3, %v4750_v53, %v4746_v60 }
0x42e3   :  { %v4849_v7 = vpop.permute.xlu1 %4848 }
0x42e4   :  { %v4867_v43 = vrot.slane %v4849_v7, %v10904_v57 }
0x42e6   :  { %v4868_v5 = vsel %vm782_vm5, %v4867_v43, %v4863_v45 }
0x42e7   :  { %8962 = vmatmul.mubr.msk.f32.vlgmr.msra.gmra.mrb[30].mxu0 %vm161_vm1, %v4868_v5  ;;  %v4739_v31 = vpop.permute.xlu1 %4738 }
0x42e8   :  { %9676 = vmatpush3.bf16.msra.mxu0 %v11002_v37  ;;  %9007 = vmatprep.mubr.msk.f32.mxu0 %vm10514_vm0, %v12834_v1  ;;  %v4755_v55 = vrot.slane %v4739_v31, %v10897_v46 }
0x42e9   :  { %9677 = vmatprep.subr.bf16.mxu0 %v12835_v0 }
0x42ea   :  { %v4756_v59 = vsel %vm775_vm4, %v4755_v55, %v4751_v40 }
0x42eb   :  { %v4742_v17 = vpop.permute.xlu1 %4741 }
0x42ec   :  { %v4760_v25 = vrot.slane %v4742_v17, %v10904_v57  ;;  %9679 = vmatpush3.bf16.msra.mxu0 %v11068_v63 }
0x42ed   :  { %9680 = vmatprep.subr.bf16.mxu0 %v12835_v0 }
0x42ee   :  { %v4761_v12 = vsel %vm782_vm5, %v4760_v25, %v4756_v59 }
0x42ef   :  { %8951 = vmatmul.mubr.msk.f32.vlgmr.msra.gmra.mrb[36].mxu1 %vm161_vm1, %v4761_v12 }
0x42f0   :  { %9670 = vmatpush3.bf16.msra.mxu1 %v11023_v16  ;;  %8972 = vmatprep.mubr.msk.f32.mxu1 %vm10514_vm0, %v12834_v1 }
0x42f1   :  { %9671 = vmatprep.subr.bf16.mxu1 %v12835_v0  ;;  %9682 = vmatpush3.bf16.msra.mxu0 %v11074_v22 }
0x42f2   :  { %9683 = vmatprep.subr.bf16.mxu0 %v12835_v0 }
0x42f4   :  { %9673 = vmatpush3.bf16.msra.mxu1 %v11026_v19 }
0x42f5   :  { %9685 = vmatpush3.bf16.msra.mxu0 %v11084_v27  ;;  %9698 = vmatprep.subr.bf16.mxu1 %v12835_v0 }
0x42f6   :  { %9686 = vmatprep.subr.bf16.mxu0 %v12835_v0 }
0x42f9   :  { %9688 = vmatpush3.bf16.msra.mxu0 %v11094_v49 }
0x42fa   :  { %9689 = vmatprep.subr.bf16.mxu0 %v12835_v0 }
0x42fd   :  { %9691 = vmatpush3.bf16.msra.mxu0 %v11104_v48 }
0x42fe   :  { %9692 = vmatprep.subr.bf16.mxu0 %v12835_v0 }
0x4301   :  { %9694 = vmatpush3.bf16.msra.mxu0 %v11114_v14 }
0x4302   :  { %9695 = vmatprep.subr.bf16.mxu0 %v12835_v0 }
0x4305   :  { %9697 = vmatpush3.bf16.msra.mxu0 %v11127_v35 }
0x4306   :  { %9722 = vmatprep.subr.bf16.mxu0 %v12835_v0 }
0x43ba   :  { %v4937_v44 = vpop.f32.mrb[30].mxu0 }
0x43bb   :  { %v8963_v47 = vpop.f32.mrb[31].mxu0  ;;  %v4943_v62 = vrot.slane %v4937_v44, 7 }
0x43c2   :  { %v4830_v39 = vpop.f32.mrb[36].mxu1 }
0x43c3   :  { %v4944_v36 = vsel %vm803_vm6, %v4943_v62, %v4830_v39  ;;  %v8952_v20 = vpop.f32.mrb[37].mxu1  ;;  %v12084_v39 = vld [vmem:[%s12747_s4] ss:$0 sm:$0xff] }
0x43c4   :  { %8973 = vmatmul.mubr.msk.f32.vlgmr.msra.gmra.mrb[38].mxu1 %vm161_vm1, %v4944_v36 }
0x43c5   :  { %9700 = vmatpush3.bf16.msra.mxu1 %v10660_v6  ;;  %9026 = vmatprep.mubr.msk.f32.mxu1 %vm10514_vm0, %v12834_v1 }
0x43c6   :  { %9701 = vmatprep.subr.bf16.mxu1 %v12835_v0 }
0x43c9   :  { %9703 = vmatpush3.bf16.msra.mxu1 %v10663_v8 }
0x43ca   :  { %9704 = vmatprep.subr.bf16.mxu1 %v12835_v0 }
0x43cd   :  { %9706 = vmatpush3.bf16.msra.mxu1 %v10685_v24 }
0x43ce   :  { %9707 = vmatprep.subr.bf16.mxu1 %v12835_v0 }
0x43d1   :  { %9709 = vmatpush3.bf16.msra.mxu1 %v10691_v30 }
0x43d2   :  { %9710 = vmatprep.subr.bf16.mxu1 %v12835_v0 }
0x4497   :  { %v5013_v54 = vpop.f32.mrb[38].mxu1 }
0x4498   :  { %v12049_v2 = vadd.f32 %v12046_v32, %v5013_v54  ;;  %v8974_v61 = vpop.f32.mrb[39].mxu1 }
0x449a   :  { %12883 = vst [vmem:[#allocation35_spill] sm:$0xff] %v12049_v2  ;;  %v5017_v56 = vsel %vm1237_vm8, %v12049_v2, -inf }
0x449b   :  { %5018 = vmax.xlane.f32.xlu0 %v5017_v56 }
0x4528   :  { %v12053_v23 = vpop.xlane.xlu0 %5018 }
0x4529   :  { %12884 = vst [vmem:[#allocation36_spill] sm:$0xff] %v12053_v23  ;;  %vm5020_vm14 = vcmp.eq.f32.partialorder %v12049_v2, %v12053_v23 }
0x452a   :  { %v5021_v7 = vsel %vm5020_vm14, %v10880_v21, 128 }
0x452b   :  { %v5022_v10 = vsel %vm1237_vm8, %v5021_v7, 2147483647 }
0x452c   :  { %v5024_v43 = vshra.s32 %v5022_v10, 16  ;;  %v5023_v5 = vand.u32 65535, %v5022_v10 }
0x452e   :  { %v5026_v45 = vcvt.s32.f32 %v5024_v43  ;;  %v5025_v53 = vcvt.s32.f32 %v5023_v5 }
0x4530   :  { %5027 = vmin.xlane.f32.xlu1 %v5026_v45 }
0x45bd   :  { %v5028_v31 = vpop.xlane.xlu1 %5027 }
0x45be   :  { %vm5029_vm15 = vcmp.eq.f32.partialorder %v5026_v45, %v5028_v31  ;;  %v5034_v60 = vcvt.f32.s32 %v5028_v31 }
0x45bf   :  { %v5030_v55 = vsel %vm5029_vm15, %v5025_v53, inf }
0x45c0   :  { %5031 = vmin.xlane.f32.xlu0 %v5030_v55  ;;  %v5035_v40 = vshll.u32 %v5034_v60, 16 }
0x45d6   :  { %5120 = vrot.lane.b32.xlu0 %v11829_v51, %s10516_s1 }
0x464d   :  { %v5032_v17 = vpop.xlane.xlu0 %5031 }
0x464e   :  { %v5033_v25 = vcvt.f32.s32 %v5032_v17 }
0x4650   :  { %v5036_v59 = vadd.s32 %v5035_v40, %v5033_v25 }
0x4651   :  { %v5121_v51 = vpop.permute.xlu0 %5120 }
0x4652   :  { %vm5037_vm9 = vcmp.eq.s32.totalorder %v10880_v21, %v5036_v59 }
0x4653   :  { %9008 = vmatmul.mubr.msk.f32.vlgmr.msra.gmra.mrb[32].mxu0 %vm5037_vm9, %v12838_v26 }
0x4654   :  { %9724 = vmatpush3.bf16.msra.mxu0 %v10777_v50  ;;  %9056 = vmatprep.mubr.msk.f32.mxu0 %vm10514_vm0, %v12834_v1 }
0x4655   :  { %9725 = vmatprep.subr.bf16.mxu0 %v12835_v0 }
0x4658   :  { %9727 = vmatpush3.bf16.msra.mxu0 %v10783_v52 }
0x4659   :  { %9734 = vmatprep.subr.bf16.mxu0 %v12835_v0 }
0x4726   :  { %v5106_v12 = vpop.f32.mrb[32].mxu0 }
0x4727   :  { %v5123_v44 = vsel %vm161_vm1, %v5106_v12, %v5121_v51  ;;  %v9009_v47 = vpop.f32.mrb[33].mxu0 }
0x4728   :  { %9027 = vmatmul.mubr.msk.f32.vlgmr.msra.gmra.mrb[40].mxu1 %vm362_vm2, %v5123_v44 }
0x4729   :  { %9712 = vmatpush3.bf16.msra.mxu1 %v10687_v29  ;;  %9045 = vmatprep.mubr.msk.f32.mxu1 %vm10514_vm0, %v12834_v1 }
0x472a   :  { %9713 = vmatprep.subr.bf16.mxu1 %v12835_v0 }
0x472d   :  { %9715 = vmatpush3.bf16.msra.mxu1 %v10698_v33 }
0x472e   :  { %9716 = vmatprep.subr.bf16.mxu1 %v12835_v0 }
0x4731   :  { %9718 = vmatpush3.bf16.msra.mxu1 %v10743_v13 }
0x4732   :  { %9719 = vmatprep.subr.bf16.mxu1 %v12835_v0 }
0x4735   :  { %9721 = vmatpush3.bf16.msra.mxu1 %v10746_v15 }
0x4736   :  { %9728 = vmatprep.subr.bf16.mxu1 %v12835_v0 }
0x47fb   :  { %v5193_v62 = vpop.f32.mrb[40].mxu1 }
0x47fc   :  { %v5194_v36 = vadd.f32 %v12084_v39, %v5193_v62  ;;  %v9028_v20 = vpop.f32.mrb[41].mxu1 }
0x47fe   :  { %10186 = vtanh.f32 %v5194_v36  ;;  %v7943_v61 = vmul.f32 -1.442695, %v5194_v36 }
0x4800   :  { %10188 = vpow2.f32 %v7943_v61 }
0x4808   :  { %v10187_v54 = vpop.eup %10186 }
0x4809   :  { %5206 = vrot.lane.b32.xlu0 %v10187_v54, %s10516_s1 }
0x480a   :  { %v10189_v56 = vpop.eup %10188 }
0x480b   :  { %v5200_v7 = vadd.f32 1.0, %v10189_v56 }
0x480d   :  { %10190 = vrcp.f32 %v5200_v7 }
0x4817   :  { %v10191_v10 = vpop.eup %10190 }
0x4818   :  { %v5204_v5 = vmul.f32 %v10191_v10, %v11825_v18 }
0x487b   :  { %v5207_v43 = vpop.permute.xlu0 %5206 }
0x487c   :  { %v5209_v45 = vmul.f32 %v10191_v10, %v5207_v43 }
0x487e   :  { %5211 = vrot.lane.b32.xlu0 %v5209_v45, %s10518_s23 }
0x48f0   :  { %v5212_v31 = vpop.permute.xlu0 %5211 }
0x48f1   :  { %v12090_v53 = vadd.f32 %v5212_v31, %v5204_v5  ;;  %v12886_v31 = vld [vmem:[#allocation23_spill] sm:$0xff] }
0x48f3   :  { %10192 = vtanh.f32 %v12090_v53 }
0x48fd   :  { %v10193_v55 = vpop.eup %10192 }
0x48fe   :  { %5217 = vrot.lane.b32.xlu0 %v10193_v55, %s10516_s1 }
0x4902   :  { %5225 = vrot.lane.b32.xlu0 %v11856_v28, %s10516_s1 }
0x4970   :  { %v5218_v60 = vpop.permute.xlu0 %5217 }
0x4971   :  { %v12096_v17 = vmul.f32 %v10191_v10, %v5218_v60 }
0x4973   :  { %5222 = vrot.lane.b32.xlu1 %v12096_v17, %s10518_s23 }
0x4974   :  { %v5226_v40 = vpop.permute.xlu0 %5225 }
0x49e5   :  { %v5223_v25 = vpop.permute.xlu1 %5222 }
0x49e6   :  { %v5228_v18 = vsel %vm161_vm1, %v5223_v25, %v5226_v40  ;;  %v12887_v40 = vld [vmem:[#allocation13_spill] sm:$0xff] }
0x49e7   :  { %9046 = vmatmul.mubr.msk.f32.vlgmr.msra.gmra.mrb[42].mxu1 %vm362_vm2, %v5228_v18 }
0x49e8   :  { %9730 = vmatpush3.bf16.msra.mxu1 %v10981_v3  ;;  %9067 = vmatprep.mubr.msk.f32.mxu1 %vm10514_vm0, %v12834_v1 }
0x49e9   :  { %9731 = vmatprep.subr.bf16.mxu1 %v12835_v0 }
0x49ec   :  { %9733 = vmatpush3.bf16.msra.mxu1 %v10990_v4 }
0x49ed   :  { %9740 = vmatprep.subr.bf16.mxu1 %v12835_v0 }
0x4aba   :  { %v5298_v28 = vpop.f32.mrb[42].mxu1 }
0x4abb   :  { %v5299_v59 = vadd.f32 %v11846_v34, %v5298_v28  ;;  %v9047_v51 = vpop.f32.mrb[43].mxu1 }
0x4abd   :  { %10194 = vtanh.f32 %v5299_v59  ;;  %v7945_v44 = vmul.f32 -1.442695, %v5299_v59 }
0x4abf   :  { %10196 = vpow2.f32 %v7945_v44  ;;  %v12888_v44 = vld [vmem:[#allocation24_spill] sm:$0xff] }
0x4ac7   :  { %v10195_v12 = vpop.eup %10194 }
0x4ac8   :  { %5311 = vrot.lane.b32.xlu0 %v10195_v12, %s10516_s1 }
0x4ac9   :  { %v10197_v47 = vpop.eup %10196 }
0x4aca   :  { %v5305_v62 = vadd.f32 1.0, %v10197_v47 }
0x4acc   :  { %10198 = vrcp.f32 %v5305_v62  ;;  %v12889_v62 = vld [vmem:[#allocation28_spill] sm:$0xff] }
0x4ad6   :  { %v10199_v36 = vpop.eup %10198 }
0x4ad7   :  { %v5309_v61 = vmul.f32 %v10199_v36, %v11852_v9  ;;  %v12885_v9 = vld [vmem:[#allocation16_spill] sm:$0xff] }
0x4b3a   :  { %v5312_v20 = vpop.permute.xlu0 %5311 }
0x4b3b   :  { %v5314_v54 = vmul.f32 %v10199_v36, %v5312_v20  ;;  %v12890_v20 = vld [vmem:[#allocation27_spill] sm:$0xff] }
0x4b3d   :  { %5316 = vrot.lane.b32.xlu0 %v5314_v54, %s10518_s23 }
0x4baf   :  { %v5317_v56 = vpop.permute.xlu0 %5316 }
0x4bb0   :  { %v12112_v7 = vadd.f32 %v5317_v56, %v5309_v61  ;;  %v12891_v61 = vld [vmem:[#allocation30_spill] sm:$0xff] }
0x4bb2   :  { %10200 = vtanh.f32 %v12112_v7 }
0x4bbc   :  { %v10201_v34 = vpop.eup %10200 }
0x4bbd   :  { %5322 = vrot.lane.b32.xlu0 %v10201_v34, %s10516_s1  ;;  %v12892_v34 = vld [vmem:[#allocation29_spill] sm:$0xff] }
0x4c2f   :  { %v5323_v10 = vpop.permute.xlu0 %5322 }
0x4c30   :  { %v12116_v43 = vmul.f32 %v10199_v36, %v5323_v10 }
0x4c32   :  { %5327 = vrot.lane.b32.xlu1 %v12116_v43, %s10518_s23 }
0x4ca4   :  { %v5328_v45 = vpop.permute.xlu1 %5327 }
0x4ca5   :  { %9057 = vmatmul.mubr.msk.f32.vlgmr.msra.gmra.mrb[34].mxu0 %vm161_vm1, %v5328_v45  ;;  %v12893_v45 = vld [vmem:[#allocation25_spill] sm:$0xff] }
0x4ca6   :  { %9736 = vmatpush3.bf16.msra.mxu0 %v12869_v11  ;;  %9078 = vmatprep.mubr.msk.f32.mxu0 %vm10514_vm0, %v12834_v1 }
0x4ca7   :  { %9737 = vmatprep.subr.bf16.mxu0 %v12835_v0 }
0x4caa   :  { %9739 = vmatpush3.bf16.msra.mxu0 %v12885_v9 }
0x4cab   :  { %9746 = vmatprep.subr.bf16.mxu0 %v12835_v0 }
0x4d78   :  { %v5397_v5 = vpop.f32.mrb[34].mxu0 }
0x4d79   :  { %v5398_v55 = vadd.f32 %v12886_v31, %v5397_v5  ;;  %v9058_v60 = vpop.f32.mrb[35].mxu0  ;;  %v12894_v31 = vld [vmem:[#allocation26_spill] sm:$0xff] }
0x4d7a   :  { %v12895_v60 = vld [vmem:[#allocation33_spill] sm:$0xff] }
0x4d7b   :  { %v5408_v25 = vrot.slane %v5398_v55, %v12887_v40 }
0x4d7d   :  { %v5409_v18 = vcombine.high %v5408_v25, %v5408_v25  ;;  %v5416_v28 = vrot.slane %v5408_v25, %v12887_v40 }
0x4d7f   :  { %v5423_v59 = vrot.slane %v5409_v18, %v12887_v40  ;;  %v5427_v51 = vrot.slane %v5416_v28, %v10709_v38 }
0x4d81   :  { %v5431_v12 = vrot.slane %v5423_v59, %v10709_v38  ;;  %v5434_v47 = vadd.f32 %v12888_v44, %v5427_v51  ;;  %v5435_v36 = vadd.f32 %v12889_v62, %v5427_v51  ;;  %v5436_v54 = vadd.f32 %v12890_v20, %v5427_v51  ;;  %v12896_v59 = vld [vmem:[#allocation34_spill] sm:$0xff] }
0x4d82   :  { %v5437_v56 = vadd.f32 %v12891_v61, %v5427_v51 }
0x4d83   :  { %10202 = vtanh.f32 %v5435_v36  ;;  %v5438_v10 = vadd.f32 %v12892_v34, %v5431_v12  ;;  %v5439_v5 = vadd.f32 %v12893_v45, %v5431_v12  ;;  %v5440_v55 = vadd.f32 %v12894_v31, %v5431_v12 }
0x4d84   :  { %10204 = vtanh.f32 %v5434_v47  ;;  %v5441_v25 = vadd.f32 %v12895_v60, %v5431_v12 }
0x4d85   :  { %10206 = vtanh.f32 %v5436_v54 }
0x4d86   :  { %10208 = vtanh.f32 %v5438_v10 }
0x4d87   :  { %10210 = vtanh.f32 %v5437_v56 }
0x4d88   :  { %10212 = vtanh.f32 %v5439_v5 }
0x4d89   :  { %10214 = vtanh.f32 %v5440_v55 }
0x4d8a   :  { %10216 = vtanh.f32 %v5441_v25 }
0x4d8d   :  { %v10203_v18 = vpop.eup %10202 }
0x4d8e   :  { %v10205_v28 = vpop.eup %10204  ;;  %v5451_v44 = vmul.f32 %v12896_v59, %v10203_v18 }
0x4d8f   :  { %v10207_v51 = vpop.eup %10206  ;;  %v5450_v62 = vmul.f32 %v12896_v59, %v10205_v28 }
0x4d90   :  { %v10209_v36 = vpop.eup %10208  ;;  %v5461_v47 = vsel %vm161_vm1, %v5451_v44, 0.0  ;;  %v5452_v20 = vmul.f32 %v12896_v59, %v10207_v51 }
0x4d91   :  { %v10211_v54 = vpop.eup %10210  ;;  %5462 = vadd.xlane.f32.xlu1 %v5461_v47  ;;  %v5458_v61 = vsel %vm161_vm1, %v5450_v62, 0.0  ;;  %v5454_v56 = vmul.f32 %v12896_v59, %v10209_v36 }
0x4d92   :  { %v10213_v12 = vpop.eup %10212  ;;  %5459 = vadd.xlane.f32.xlu0 %v5458_v61  ;;  %v5464_v34 = vsel %vm161_vm1, %v5452_v20, 0.0  ;;  %v5453_v10 = vmul.f32 %v12896_v59, %v10211_v54 }
0x4d93   :  { %v5470_v45 = vsel %vm161_vm1, %v5454_v56, 0.0  ;;  %v5455_v5 = vmul.f32 %v12896_v59, %v10213_v12  ;;  %v10215_v31 = vpop.eup %10214  ;;  %v12897_v56 = vld [vmem:[#allocation14_spill] sm:$0xff] }
0x4d94   :  { %v5467_v55 = vsel %vm161_vm1, %v5453_v10, 0.0  ;;  %v5456_v25 = vmul.f32 %v12896_v59, %v10215_v31  ;;  %v10217_v18 = vpop.eup %10216 }
0x4d95   :  { %5465 = vadd.xlane.f32.xlu1 %v5464_v34  ;;  %v5473_v60 = vsel %vm161_vm1, %v5455_v5, 0.0  ;;  %v5457_v44 = vmul.f32 %v12896_v59, %v10217_v18 }
0x4d96   :  { %5471 = vadd.xlane.f32.xlu0 %v5470_v45  ;;  %v5476_v28 = vsel %vm161_vm1, %v5456_v25, 0.0 }
0x4d97   :  { %v5479_v51 = vsel %vm161_vm1, %v5457_v44, 0.0 }
0x4d99   :  { %5468 = vadd.xlane.f32.xlu1 %v5467_v55 }
0x4d9a   :  { %5474 = vadd.xlane.f32.xlu0 %v5473_v60 }
0x4d9e   :  { %5477 = vadd.xlane.f32.xlu0 %v5476_v28 }
0x4da2   :  { %5480 = vadd.xlane.f32.xlu0 %v5479_v51 }
0x4e1e   :  { %v5463_v62 = vpop.xlane.xlu1 %5462 }
0x4e1f   :  { %v5460_v36 = vpop.xlane.xlu0 %5459  ;;  %v5483_v12 = vadd.f32 %v5463_v62, %v12897_v56 }
0x4e20   :  { %v5482_v34 = vadd.f32 %v5460_v36, %v12897_v56 }
0x4e21   :  { %v5505_v60 = vrot.slane %v5483_v12, %v10891_v42 }
0x4e22   :  { %v5466_v47 = vpop.xlane.xlu1 %5465  ;;  %v5501_v25 = vrot.slane %v5482_v34, %v10888_v41 }
0x4e23   :  { %v5472_v20 = vpop.xlane.xlu0 %5471  ;;  %v5484_v45 = vadd.f32 %v5466_v47, %v12897_v56 }
0x4e24   :  { %v5486_v59 = vadd.f32 %v5472_v20, %v12897_v56  ;;  %v5506_v20 = vsel %vm768_vm3, %v5505_v60, %v5501_v25 }
0x4e25   :  { %v5510_v28 = vrot.slane %v5484_v45, %v10897_v46 }
0x4e26   :  { %v5469_v61 = vpop.xlane.xlu1 %5468  ;;  %v5520_v62 = vrot.slane %v5486_v59, %v10888_v41 }
0x4e27   :  { %v5475_v54 = vpop.xlane.xlu0 %5474  ;;  %v5485_v31 = vadd.f32 %v5469_v61, %v12897_v56 }
0x4e28   :  { %v5487_v10 = vadd.f32 %v5475_v54, %v12897_v56 }
0x4e29   :  { %v5515_v36 = vrot.slane %v5485_v31, %v10904_v57 }
0x4e2a   :  { %v5524_v18 = vrot.slane %v5487_v10, %v10891_v42 }
0x4e2b   :  { %v5478_v5 = vpop.xlane.xlu0 %5477 }
0x4e2c   :  { %v5488_v55 = vadd.f32 %v5478_v5, %v12897_v56  ;;  %v5525_v54 = vsel %vm768_vm3, %v5524_v18, %v5520_v62  ;;  %v5511_v5 = vsel %vm775_vm4, %v5510_v28, %v5506_v20 }
0x4e2d   :  { %v5516_v23 = vsel %vm782_vm5, %v5515_v36, %v5511_v5 }
0x4e2e   :  { %v5529_v44 = vrot.slane %v5488_v55, %v10897_v46 }
0x4e2f   :  { %v5481_v51 = vpop.xlane.xlu0 %5480 }
0x4e30   :  { %v5489_v47 = vadd.f32 %v5481_v51, %v12897_v56  ;;  %v5530_v2 = vsel %vm775_vm4, %v5529_v44, %v5525_v54 }
0x4e32   :  { %v5534_v61 = vrot.slane %v5489_v47, %v10904_v57 }
0x4e34   :  { %v5535_v40 = vsel %vm782_vm5, %v5534_v61, %v5530_v2 }
0x4e35   :  { %v5536_v9 = vsel %vm803_vm6, %v5535_v40, %v5516_v23 }
0x4e36   :  { %v5538_v11 = vsel %vm806_vm7, %v5536_v9, -inf }
0x4e37   :  { %5539 = vmax.xlane.f32.xlu1 %v5538_v11 }
0x4ec4   :  { %v5540_v51 = vpop.xlane.xlu1 %5539 }
0x4ec5   :  { %v5545_v60 = vrot.slane %v5540_v51, %v10709_v38  ;;  %v5549_v25 = vrot.slane %v5540_v51, %v10925_v58 }
0x4ec7   :  { %v5552_v18 = vsub.f32 %v5482_v34, %v5545_v60  ;;  %v5553_v62 = vsub.f32 %v5483_v12, %v5545_v60  ;;  %v5556_v56 = vsub.f32 %v5486_v59, %v5549_v25  ;;  %v5557_v28 = vsub.f32 %v5487_v10, %v5549_v25 }
0x4ec8   :  { %v5554_v54 = vsub.f32 %v5484_v45, %v5545_v60  ;;  %v5558_v2 = vsub.f32 %v5488_v55, %v5549_v25  ;;  %v5555_v40 = vsub.f32 %v5485_v31, %v5545_v60  ;;  %v5559_v11 = vsub.f32 %v5489_v47, %v5549_v25 }
0x4ec9   :  { %v5560_v20 = vmul.f32 1.442695, %v5552_v18  ;;  %v5562_v44 = vmul.f32 1.442695, %v5553_v62  ;;  %v5568_v36 = vmul.f32 1.442695, %v5556_v56 }
0x4eca   :  { %v5570_v23 = vmul.f32 1.442695, %v5557_v28  ;;  %v5564_v9 = vmul.f32 1.442695, %v5554_v54  ;;  %v5572_v61 = vmul.f32 1.442695, %v5558_v2 }
0x4ecb   :  { %10218 = vpow2.f32 %v5560_v20  ;;  %v5566_v5 = vmul.f32 1.442695, %v5555_v40  ;;  %v5574_v12 = vmul.f32 1.442695, %v5559_v11 }
0x4ecc   :  { %10220 = vpow2.f32 %v5562_v44 }
0x4ecd   :  { %10222 = vpow2.f32 %v5568_v36 }
0x4ece   :  { %10224 = vpow2.f32 %v5570_v23 }
0x4ecf   :  { %10226 = vpow2.f32 %v5564_v9 }
0x4ed0   :  { %10228 = vpow2.f32 %v5572_v61 }
0x4ed1   :  { %10230 = vpow2.f32 %v5566_v5 }
0x4ed2   :  { %10232 = vpow2.f32 %v5574_v12 }
0x4ed5   :  { %v10219_v34 = vpop.eup %10218 }
0x4ed6   :  { %v10221_v10 = vpop.eup %10220  ;;  %5585 = vperm.xlu0 %9909, %v10219_v34  }
0x4ed7   :  { %5588 = vperm.xlu1 %9908, %v10221_v10   ;;  %v10223_v56 = vpop.eup %10222 }
0x4ed8   :  { %v10225_v45 = vpop.eup %10224 }
0x4ed9   :  { %v10227_v59 = vpop.eup %10226 }
0x4eda   :  { %5600 = vperm.xlu0 %9909, %v10225_v45   ;;  %v10229_v31 = vpop.eup %10228 }
0x4edb   :  { %5597 = vperm.xlu1 %9908, %v10223_v56   ;;  %v10231_v55 = vpop.eup %10230 }
0x4edc   :  { %v10233_v47 = vpop.eup %10232 }
0x4ede   :  { %5603 = vperm.xlu0 %9909, %v10229_v31  }
0x4edf   :  { %5591 = vperm.xlu1 %9908, %v10227_v59  }
0x4ee2   :  { %5606 = vperm.xlu0 %9909, %v10233_v47  }
0x4ee3   :  { %5594 = vperm.xlu1 %9908, %v10231_v55  }
0x4f55   :  { %v5586_v51 = vpop.permute.xlu0 %5585 }
0x4f56   :  { %v5589_v60 = vpop.permute.xlu1 %5588  ;;  %v5611_v44 = vrot.slane %v5586_v51, %v10888_v41 }
0x4f57   :  { %v5615_v20 = vrot.slane %v5589_v60, %v10891_v42 }
0x4f59   :  { %v5601_v18 = vpop.permute.xlu0 %5600  ;;  %v5616_v11 = vsel %vm768_vm3, %v5615_v20, %v5611_v44 }
0x4f5a   :  { %v5598_v25 = vpop.permute.xlu1 %5597  ;;  %v5634_v36 = vrot.slane %v5601_v18, %v10891_v42 }
0x4f5b   :  { %v5630_v54 = vrot.slane %v5598_v25, %v10888_v41 }
0x4f5d   :  { %v5604_v28 = vpop.permute.xlu0 %5603  ;;  %v5635_v61 = vsel %vm768_vm3, %v5634_v36, %v5630_v54 }
0x4f5e   :  { %v5592_v62 = vpop.permute.xlu1 %5591  ;;  %v5639_v23 = vrot.slane %v5604_v28, %v10897_v46 }
0x4f5f   :  { %v5620_v2 = vrot.slane %v5592_v62, %v10897_v46 }
0x4f60   :  { %v5640_v60 = vsel %vm775_vm4, %v5639_v23, %v5635_v61 }
0x4f61   :  { %v5607_v9 = vpop.permute.xlu0 %5606  ;;  %v5621_v51 = vsel %vm775_vm4, %v5620_v2, %v5616_v11 }
0x4f62   :  { %v5595_v40 = vpop.permute.xlu1 %5594  ;;  %v5644_v12 = vrot.slane %v5607_v9, %v10904_v57 }
0x4f63   :  { %v5625_v5 = vrot.slane %v5595_v40, %v10904_v57 }
0x4f64   :  { %v5645_v18 = vsel %vm782_vm5, %v5644_v12, %v5640_v60 }
0x4f65   :  { %v5626_v25 = vsel %vm782_vm5, %v5625_v5, %v5621_v51 }
0x4f66   :  { %v5646_v62 = vsel %vm803_vm6, %v5645_v18, %v5626_v25 }
0x4f67   :  { %v5648_v28 = vsel %vm806_vm7, %v5646_v62, 0.0 }
0x4f68   :  { %5649 = vadd.xlane.f32.xlu1 %v5648_v28 }
0x4ff5   :  { %v5650_v20 = vpop.xlane.xlu1 %5649 }
0x4ff6   :  { %v5659_v44 = vrot.slane %v5650_v20, %v10925_v58  ;;  %v5655_v54 = vrot.slane %v5650_v20, %v10709_v38 }
0x4ff8   :  { %10234 = vrcp.f32 %v5659_v44 }
0x4ff9   :  { %10236 = vrcp.f32 %v5655_v54 }
0x5002   :  { %v10235_v36 = vpop.eup %10234 }
0x5003   :  { %v5668_v2 = vmul.f32 %v10235_v36, %v10223_v56  ;;  %v5669_v23 = vmul.f32 %v10235_v36, %v10225_v45  ;;  %v5670_v40 = vmul.f32 %v10235_v36, %v10229_v31  ;;  %v10237_v9 = vpop.eup %10236  ;;  %v5671_v5 = vmul.f32 %v10235_v36, %v10233_v47 }
0x5004   :  { %v5663_v11 = vmul.f32 %v10237_v9, %v10219_v34  ;;  %v5664_v61 = vmul.f32 %v10237_v9, %v10221_v10  ;;  %v5665_v12 = vmul.f32 %v10237_v9, %v10227_v59  ;;  %v5666_v51 = vmul.f32 %v10237_v9, %v10231_v55 }
0x5005   :  { %5784 = vperm.xlu0 %9909, %v5668_v2  }
0x5009   :  { %5787 = vperm.xlu0 %9909, %v5669_v23  }
0x500d   :  { %5790 = vperm.xlu0 %9909, %v5670_v40  }
0x5011   :  { %5677 = vperm.xlu0 %9909, %v5663_v11  }
0x5015   :  { %5680 = vperm.xlu0 %9909, %v5664_v61  }
0x5019   :  { %5793 = vperm.xlu0 %9909, %v5671_v5  }
0x501d   :  { %5683 = vperm.xlu0 %9909, %v5665_v12  }
0x5021   :  { %5686 = vperm.xlu0 %9909, %v5666_v51  }
0x5084   :  { %v5785_v60 = vpop.permute.xlu0 %5784 }
0x5085   :  { %v5798_v34 = vrot.slane %v5785_v60, %v10888_v41 }
0x5088   :  { %v5788_v25 = vpop.permute.xlu0 %5787 }
0x5089   :  { %v5802_v45 = vrot.slane %v5788_v25, %v10891_v42 }
0x508b   :  { %v5803_v10 = vsel %vm768_vm3, %v5802_v45, %v5798_v34 }
0x508c   :  { %v5791_v18 = vpop.permute.xlu0 %5790 }
0x508d   :  { %v5807_v31 = vrot.slane %v5791_v18, %v10897_v46 }
0x508f   :  { %v5808_v59 = vsel %vm775_vm4, %v5807_v31, %v5803_v10 }
0x5090   :  { %v5678_v56 = vpop.permute.xlu0 %5677 }
0x5091   :  { %v5691_v36 = vrot.slane %v5678_v56, %v10888_v41 }
0x5094   :  { %v5681_v62 = vpop.permute.xlu0 %5680 }
0x5095   :  { %v5695_v44 = vrot.slane %v5681_v62, %v10891_v42 }
0x5097   :  { %v5696_v23 = vsel %vm768_vm3, %v5695_v44, %v5691_v36 }
0x5098   :  { %v5794_v28 = vpop.permute.xlu0 %5793 }
0x5099   :  { %v5812_v47 = vrot.slane %v5794_v28, %v10904_v57 }
0x509b   :  { %v5813_v55 = vsel %vm782_vm5, %v5812_v47, %v5808_v59 }
0x509c   :  { %9079 = vmatmul.mubr.msk.f32.vlgmr.msra.gmra.mrb[36].mxu0 %vm161_vm1, %v5813_v55  ;;  %v5684_v20 = vpop.permute.xlu0 %5683 }
0x509d   :  { %9748 = vmatpush3.bf16.msra.mxu0 %v11002_v37  ;;  %9124 = vmatprep.mubr.msk.f32.mxu0 %vm10514_vm0, %v12834_v1  ;;  %v5700_v54 = vrot.slane %v5684_v20, %v10897_v46 }
0x509e   :  { %9749 = vmatprep.subr.bf16.mxu0 %v12835_v0 }
0x509f   :  { %v5701_v9 = vsel %vm775_vm4, %v5700_v54, %v5696_v23 }
0x50a0   :  { %v5687_v2 = vpop.permute.xlu0 %5686 }
0x50a1   :  { %v5705_v40 = vrot.slane %v5687_v2, %v10904_v57  ;;  %9751 = vmatpush3.bf16.msra.mxu0 %v11068_v63 }
0x50a2   :  { %9752 = vmatprep.subr.bf16.mxu0 %v12835_v0 }
0x50a3   :  { %v5706_v11 = vsel %vm782_vm5, %v5705_v40, %v5701_v9 }
0x50a4   :  { %9068 = vmatmul.mubr.msk.f32.vlgmr.msra.gmra.mrb[44].mxu1 %vm161_vm1, %v5706_v11 }
0x50a5   :  { %9742 = vmatpush3.bf16.msra.mxu1 %v11023_v16  ;;  %9089 = vmatprep.mubr.msk.f32.mxu1 %vm10514_vm0, %v12834_v1 }
0x50a6   :  { %9743 = vmatprep.subr.bf16.mxu1 %v12835_v0  ;;  %9754 = vmatpush3.bf16.msra.mxu0 %v11074_v22 }
0x50a7   :  { %9755 = vmatprep.subr.bf16.mxu0 %v12835_v0 }
0x50a9   :  { %9745 = vmatpush3.bf16.msra.mxu1 %v11026_v19 }
0x50aa   :  { %9757 = vmatpush3.bf16.msra.mxu0 %v11084_v27  ;;  %9770 = vmatprep.subr.bf16.mxu1 %v12835_v0 }
0x50ab   :  { %9758 = vmatprep.subr.bf16.mxu0 %v12835_v0 }
0x50ae   :  { %9760 = vmatpush3.bf16.msra.mxu0 %v11094_v49 }
0x50af   :  { %9761 = vmatprep.subr.bf16.mxu0 %v12835_v0 }
0x50b2   :  { %9763 = vmatpush3.bf16.msra.mxu0 %v11104_v48 }
0x50b3   :  { %9764 = vmatprep.subr.bf16.mxu0 %v12835_v0 }
0x50b6   :  { %9766 = vmatpush3.bf16.msra.mxu0 %v11114_v14 }
0x50b7   :  { %9767 = vmatprep.subr.bf16.mxu0 %v12835_v0 }
0x50ba   :  { %9769 = vmatpush3.bf16.msra.mxu0 %v11127_v35 }
0x50bb   :  { %9794 = vmatprep.subr.bf16.mxu0 %v12835_v0 }
0x516f   :  { %v5882_v61 = vpop.f32.mrb[36].mxu0 }
0x5170   :  { %v9080_v5 = vpop.f32.mrb[37].mxu0  ;;  %v5888_v12 = vrot.slane %v5882_v61, 7 }
0x5177   :  { %v5775_v51 = vpop.f32.mrb[44].mxu1 }
0x5178   :  { %v5889_v60 = vsel %vm803_vm6, %v5888_v12, %v5775_v51  ;;  %v9069_v25 = vpop.f32.mrb[45].mxu1 }
0x5179   :  { %9090 = vmatmul.mubr.msk.f32.vlgmr.msra.gmra.mrb[46].mxu1 %vm161_vm1, %v5889_v60 }
0x517a   :  { %9772 = vmatpush3.bf16.msra.mxu1 %v10660_v6  ;;  %9143 = vmatprep.mubr.msk.f32.mxu1 %vm10514_vm0, %v12834_v1 }
0x517b   :  { %9773 = vmatprep.subr.bf16.mxu1 %v12835_v0 }
0x517e   :  { %9775 = vmatpush3.bf16.msra.mxu1 %v10663_v8 }
0x517f   :  { %9776 = vmatprep.subr.bf16.mxu1 %v12835_v0 }
0x5182   :  { %9778 = vmatpush3.bf16.msra.mxu1 %v10685_v24 }
0x5183   :  { %9779 = vmatprep.subr.bf16.mxu1 %v12835_v0 }
0x5186   :  { %9781 = vmatpush3.bf16.msra.mxu1 %v10691_v30 }
0x5187   :  { %9782 = vmatprep.subr.bf16.mxu1 %v12835_v0 }
0x524c   :  { %v5958_v18 = vpop.f32.mrb[46].mxu1 }
0x524d   :  { %v12254_v56 = vadd.f32 %v12046_v32, %v5958_v18  ;;  %v9091_v62 = vpop.f32.mrb[47].mxu1 }
0x524f   :  { %12898 = vst [vmem:[#allocation23_spill] sm:$0xff] %v12254_v56  ;;  %v5962_v45 = vsel %vm1237_vm8, %v12254_v56, -inf }
0x5250   :  { %5963 = vmax.xlane.f32.xlu0 %v5962_v45 }
0x52dd   :  { %v12258_v31 = vpop.xlane.xlu0 %5963 }
0x52de   :  { %12899 = vst [vmem:[#allocation24_spill] sm:$0xff] %v12258_v31  ;;  %vm5965_vm10 = vcmp.eq.f32.partialorder %v12254_v56, %v12258_v31 }
0x52df   :  { %v5966_v34 = vsel %vm5965_vm10, %v10880_v21, 128 }
0x52e0   :  { %v5967_v28 = vsel %vm1237_vm8, %v5966_v34, 2147483647 }
0x52e1   :  { %v5969_v10 = vshra.s32 %v5967_v28, 16  ;;  %v5968_v59 = vand.u32 65535, %v5967_v28 }
0x52e3   :  { %v5971_v47 = vcvt.s32.f32 %v5969_v10  ;;  %v5970_v55 = vcvt.s32.f32 %v5968_v59 }
0x52e5   :  { %5972 = vmin.xlane.f32.xlu1 %v5971_v47 }
0x5372   :  { %v5973_v32 = vpop.xlane.xlu1 %5972 }
0x5373   :  { %vm5974_vm11 = vcmp.eq.f32.partialorder %v5971_v47, %v5973_v32  ;;  %v5979_v44 = vcvt.f32.s32 %v5973_v32 }
0x5374   :  { %v5975_v20 = vsel %vm5974_vm11, %v5970_v55, inf }
0x5375   :  { %5976 = vmin.xlane.f32.xlu1 %v5975_v20  ;;  %v5980_v36 = vshll.u32 %v5979_v44, 16 }
0x5386   :  { %6065 = vrot.lane.b32.xlu1 %v12096_v17, %s10516_s1 }
0x5402   :  { %v5977_v54 = vpop.xlane.xlu1 %5976 }
0x5403   :  { %v5978_v2 = vcvt.f32.s32 %v5977_v54 }
0x5405   :  { %v5981_v23 = vadd.s32 %v5980_v36, %v5978_v2 }
0x5406   :  { %v6066_v17 = vpop.permute.xlu1 %6065 }
0x5407   :  { %vm5982_vm12 = vcmp.eq.s32.totalorder %v10880_v21, %v5981_v23 }
0x5408   :  { %9125 = vmatmul.mubr.msk.f32.vlgmr.msra.gmra.mrb[38].mxu0 %vm5982_vm12, %v12838_v26 }
0x5409   :  { %9796 = vmatpush3.bf16.msra.mxu0 %v10777_v50  ;;  %9173 = vmatprep.mubr.msk.f32.mxu0 %vm10514_vm0, %v12834_v1 }
0x540a   :  { %9797 = vmatprep.subr.bf16.mxu0 %v12835_v0 }
0x540d   :  { %9799 = vmatpush3.bf16.msra.mxu0 %v10783_v52 }
0x540e   :  { %9806 = vmatprep.subr.bf16.mxu0 %v12835_v0 }
0x54db   :  { %v6051_v40 = vpop.f32.mrb[38].mxu0 }
0x54dc   :  { %v6068_v9 = vsel %vm161_vm1, %v6051_v40, %v6066_v17  ;;  %v9126_v11 = vpop.f32.mrb[39].mxu0 }
0x54dd   :  { %9144 = vmatmul.mubr.msk.f32.vlgmr.msra.gmra.mrb[48].mxu1 %vm362_vm2, %v6068_v9 }
0x54de   :  { %9784 = vmatpush3.bf16.msra.mxu1 %v10687_v29  ;;  %9162 = vmatprep.mubr.msk.f32.mxu1 %vm10514_vm0, %v12834_v1 }
0x54df   :  { %9785 = vmatprep.subr.bf16.mxu1 %v12835_v0 }
0x54e2   :  { %9787 = vmatpush3.bf16.msra.mxu1 %v10698_v33 }
0x54e3   :  { %9788 = vmatprep.subr.bf16.mxu1 %v12835_v0 }
0x54e6   :  { %9790 = vmatpush3.bf16.msra.mxu1 %v10743_v13 }
0x54e7   :  { %9791 = vmatprep.subr.bf16.mxu1 %v12835_v0 }
0x54ea   :  { %9793 = vmatpush3.bf16.msra.mxu1 %v10746_v15 }
0x54eb   :  { %9800 = vmatprep.subr.bf16.mxu1 %v12835_v0 }
0x55b0   :  { %v6138_v61 = vpop.f32.mrb[48].mxu1 }
0x55b1   :  { %v6139_v5 = vadd.f32 %v12084_v39, %v6138_v61  ;;  %v9145_v12 = vpop.f32.mrb[49].mxu1 }
0x55b3   :  { %10238 = vtanh.f32 %v6139_v5  ;;  %v7953_v60 = vmul.f32 -1.442695, %v6139_v5 }
0x55b5   :  { %10240 = vpow2.f32 %v7953_v60 }
0x55bd   :  { %v10239_v51 = vpop.eup %10238 }
0x55be   :  { %6151 = vrot.lane.b32.xlu1 %v10239_v51, %s10516_s1 }
0x55bf   :  { %v10241_v25 = vpop.eup %10240 }
0x55c0   :  { %v6145_v18 = vadd.f32 1.0, %v10241_v25 }
0x55c2   :  { %10242 = vrcp.f32 %v6145_v18 }
0x55cc   :  { %v10243_v62 = vpop.eup %10242 }
0x55cd   :  { %v6149_v28 = vmul.f32 %v10243_v62, %v12090_v53 }
0x5630   :  { %v6152_v45 = vpop.permute.xlu1 %6151 }
0x5631   :  { %v6154_v34 = vmul.f32 %v10243_v62, %v6152_v45  ;;  %v12900_v45 = vld [vmem:[#allocation15_spill] sm:$0xff] }
0x5633   :  { %6156 = vrot.lane.b32.xlu0 %v6154_v34, %s10518_s23 }
0x56a5   :  { %v6157_v10 = vpop.permute.xlu0 %6156 }
0x56a6   :  { %v12290_v47 = vadd.f32 %v6157_v10, %v6149_v28  ;;  %v12335_v28 = vld [vmem:[%s12751_s8] ss:$0 sm:$0xff] }
0x56a7   :  { %12902 = vst [vmem:[#allocation28_spill] sm:$0xff] %v12335_v28 }
0x56a8   :  { %10244 = vtanh.f32 %v12290_v47 }
0x56b2   :  { %v10245_v39 = vpop.eup %10244 }
0x56b3   :  { %6162 = vrot.lane.b32.xlu1 %v10245_v39, %s10516_s1 }
0x5725   :  { %v6163_v59 = vpop.permute.xlu1 %6162 }
0x5726   :  { %v12294_v32 = vmul.f32 %v10243_v62, %v6163_v59  ;;  %v12903_v59 = vld [vmem:[#allocation13_spill] sm:$0xff] }
0x5728   :  { %6167 = vrot.lane.b32.xlu1 %v12294_v32, %s10518_s23 }
0x572c   :  { %6170 = vrot.lane.b32.xlu1 %v12116_v43, %s10516_s1  ;;  %v12311_v43 = vld [vmem:[%s12749_s6] ss:$0 sm:$0xff] }
0x579a   :  { %v6168_v55 = vpop.permute.xlu1 %6167 }
0x579e   :  { %v6171_v20 = vpop.permute.xlu1 %6170 }
0x579f   :  { %v6173_v53 = vsel %vm161_vm1, %v6168_v55, %v6171_v20 }
0x57a0   :  { %9163 = vmatmul.mubr.msk.f32.vlgmr.msra.gmra.mrb[50].mxu1 %vm362_vm2, %v6173_v53 }
0x57a1   :  { %9802 = vmatpush3.bf16.msra.mxu1 %v10981_v3  ;;  %9184 = vmatprep.mubr.msk.f32.mxu1 %vm10514_vm0, %v12834_v1 }
0x57a2   :  { %9803 = vmatprep.subr.bf16.mxu1 %v12835_v0 }
0x57a5   :  { %9805 = vmatpush3.bf16.msra.mxu1 %v10990_v4 }
0x57a6   :  { %9812 = vmatprep.subr.bf16.mxu1 %v12835_v0 }
0x5873   :  { %v6243_v44 = vpop.f32.mrb[50].mxu1 }
0x5874   :  { %v6244_v54 = vadd.f32 %v12311_v43, %v6243_v44  ;;  %v9164_v36 = vpop.f32.mrb[51].mxu1 }
0x5876   :  { %10246 = vtanh.f32 %v6244_v54  ;;  %v7955_v23 = vmul.f32 -1.442695, %v6244_v54 }
0x5878   :  { %10248 = vpow2.f32 %v7955_v23 }
0x5880   :  { %v10247_v2 = vpop.eup %10246 }
0x5881   :  { %6256 = vrot.lane.b32.xlu1 %v10247_v2, %s10516_s1  ;;  %v12346_v2 = vld [vmem:[%s12745_s2] sm:$0xff] }
0x5882   :  { %v10249_v17 = vpop.eup %10248  ;;  %12904 = vst [vmem:[#allocation27_spill] sm:$0xff] %v12346_v2 }
0x5883   :  { %v6250_v40 = vadd.f32 1.0, %v10249_v17  ;;  %v12352_v17 = vld [vmem:[%s12745_s2 + $0x8] sm:$0xff] }
0x5884   :  { %12905 = vst [vmem:[#allocation30_spill] sm:$0xff] %v12352_v17 }
0x5885   :  { %10250 = vrcp.f32 %v6250_v40 }
0x588f   :  { %v10251_v9 = vpop.eup %10250 }
0x5890   :  { %v6254_v5 = vmul.f32 %v10251_v9, %v12112_v7  ;;  %v12901_v7 = vld [vmem:[#allocation16_spill] sm:$0xff] }
0x58f3   :  { %v6257_v11 = vpop.permute.xlu1 %6256 }
0x58f4   :  { %v6259_v61 = vmul.f32 %v10251_v9, %v6257_v11 }
0x58f6   :  { %6261 = vrot.lane.b32.xlu1 %v6259_v61, %s10518_s23  ;;  %v12364_v61 = vld [vmem:[%s12745_s2 + $0x28] sm:$0xff] }
0x58f7   :  { %12907 = vst [vmem:[#allocation25_spill] sm:$0xff] %v12364_v61 }
0x5968   :  { %v6262_v12 = vpop.permute.xlu1 %6261 }
0x5969   :  { %v12317_v51 = vadd.f32 %v6262_v12, %v6254_v5  ;;  %v12370_v12 = vld [vmem:[%s12745_s2 + $0x30] sm:$0xff] }
0x596a   :  { %12908 = vst [vmem:[#allocation26_spill] sm:$0xff] %v12370_v12 }
0x596b   :  { %10252 = vtanh.f32 %v12317_v51 }
0x5975   :  { %v10253_v60 = vpop.eup %10252 }
0x5976   :  { %6267 = vrot.lane.b32.xlu1 %v10253_v60, %s10516_s1 }
0x59e8   :  { %v6268_v25 = vpop.permute.xlu1 %6267 }
0x59e9   :  { %v12321_v18 = vmul.f32 %v10251_v9, %v6268_v25  ;;  %v12358_v9 = vld [vmem:[%s12745_s2 + $0x10] sm:$0xff]  ;;  %v12376_v25 = vld [vmem:[%s12745_s2 + $0x20] sm:$0xff] }
0x59ea   :  { %12906 = vst [vmem:[#allocation29_spill] sm:$0xff] %v12358_v9  ;;  %12909 = vst [vmem:[#allocation33_spill] sm:$0xff] %v12376_v25 }
0x59eb   :  { %6272 = vrot.lane.b32.xlu0 %v12321_v18, %s10518_s23 }
0x5a5d   :  { %v6273_v62 = vpop.permute.xlu0 %6272 }
0x5a5e   :  { %9174 = vmatmul.mubr.msk.f32.vlgmr.msra.gmra.mrb[40].mxu0 %vm161_vm1, %v6273_v62 }
0x5a5f   :  { %9808 = vmatpush3.bf16.msra.mxu0 %v12900_v45  ;;  %9195 = vmatprep.mubr.msk.f32.mxu0 %vm10514_vm0, %v12834_v1 }
0x5a60   :  { %9809 = vmatprep.subr.bf16.mxu0 %v12835_v0 }
0x5a63   :  { %9811 = vmatpush3.bf16.msra.mxu0 %v12901_v7 }
0x5a64   :  { %9818 = vmatprep.subr.bf16.mxu0 %v12835_v0 }
0x5b31   :  { %v6342_v34 = vpop.f32.mrb[40].mxu0 }
0x5b32   :  { %v6343_v10 = vadd.f32 %v12335_v28, %v6342_v34  ;;  %v9175_v39 = vpop.f32.mrb[41].mxu0  ;;  %v12382_v34 = vld [vmem:[%s12745_s2 + $0x18] sm:$0xff] }
0x5b33   :  { %12910 = vst [vmem:[#allocation34_spill] sm:$0xff] %v12382_v34  ;;  %v12388_v39 = vld [vmem:[%s12745_s2 + $0x38] sm:$0xff] }
0x5b34   :  { %v6353_v55 = vrot.slane %v6343_v10, %v12903_v59  ;;  %12911 = vst [vmem:[#allocation15_spill] sm:$0xff] %v12388_v39 }
0x5b36   :  { %v6354_v20 = vcombine.high %v6353_v55, %v6353_v55  ;;  %v6361_v53 = vrot.slane %v6353_v55, %v12903_v59 }
0x5b38   :  { %v6368_v44 = vrot.slane %v6354_v20, %v12903_v59  ;;  %v6372_v54 = vrot.slane %v6361_v53, %v10709_v38 }
0x5b3a   :  { %v6376_v36 = vrot.slane %v6368_v44, %v10709_v38  ;;  %v6379_v23 = vadd.f32 %v12346_v2, %v6372_v54  ;;  %v6380_v40 = vadd.f32 %v12352_v17, %v6372_v54  ;;  %v6381_v11 = vadd.f32 %v12358_v9, %v6372_v54  ;;  %v12394_v44 = vld [vmem:[%s12752_s9] ss:$0 sm:$0xff] }
0x5b3b   :  { %v6382_v10 = vadd.f32 %v12382_v34, %v6372_v54  ;;  %12912 = vst [vmem:[#allocation37_spill] sm:$0xff] %v12394_v44 }
0x5b3c   :  { %10254 = vtanh.f32 %v6380_v40  ;;  %v6384_v5 = vadd.f32 %v12364_v61, %v6376_v36  ;;  %v6385_v60 = vadd.f32 %v12370_v12, %v6376_v36  ;;  %v6383_v62 = vadd.f32 %v12376_v25, %v6376_v36 }
0x5b3d   :  { %10256 = vtanh.f32 %v6379_v23  ;;  %v6386_v55 = vadd.f32 %v12388_v39, %v6376_v36 }
0x5b3e   :  { %10258 = vtanh.f32 %v6381_v11 }
0x5b3f   :  { %10260 = vtanh.f32 %v6384_v5 }
0x5b40   :  { %10262 = vtanh.f32 %v6385_v60 }
0x5b41   :  { %10264 = vtanh.f32 %v6383_v62 }
0x5b42   :  { %10266 = vtanh.f32 %v6382_v10 }
0x5b43   :  { %10268 = vtanh.f32 %v6386_v55 }
0x5b46   :  { %v10255_v20 = vpop.eup %10254 }
0x5b47   :  { %v10257_v53 = vpop.eup %10256  ;;  %v6396_v54 = vmul.f32 %v12394_v44, %v10255_v20 }
0x5b48   :  { %v10259_v23 = vpop.eup %10258  ;;  %v6395_v40 = vmul.f32 %v12394_v44, %v10257_v53 }
0x5b49   :  { %v10261_v11 = vpop.eup %10260  ;;  %v6406_v5 = vsel %vm161_vm1, %v6396_v54, 0.0  ;;  %v6397_v60 = vmul.f32 %v12394_v44, %v10259_v23 }
0x5b4a   :  { %v10263_v36 = vpop.eup %10262  ;;  %6407 = vadd.xlane.f32.xlu0 %v6406_v5  ;;  %v6403_v62 = vsel %vm161_vm1, %v6395_v40, 0.0  ;;  %v6400_v10 = vmul.f32 %v12394_v44, %v10261_v11 }
0x5b4b   :  { %v10265_v55 = vpop.eup %10264  ;;  %6404 = vadd.xlane.f32.xlu1 %v6403_v62  ;;  %v6409_v56 = vsel %vm161_vm1, %v6397_v60, 0.0  ;;  %v6401_v54 = vmul.f32 %v12394_v44, %v10263_v36 }
0x5b4c   :  { %v6399_v20 = vmul.f32 %v12394_v44, %v10265_v55  ;;  %v10267_v31 = vpop.eup %10266  ;;  %v6418_v53 = vsel %vm161_vm1, %v6400_v10, 0.0 }
0x5b4d   :  { %v10269_v39 = vpop.eup %10268  ;;  %v6398_v40 = vmul.f32 %v12394_v44, %v10267_v31  ;;  %v6421_v11 = vsel %vm161_vm1, %v6401_v54, 0.0 }
0x5b4e   :  { %6410 = vadd.xlane.f32.xlu0 %v6409_v56  ;;  %v6415_v23 = vsel %vm161_vm1, %v6399_v20, 0.0  ;;  %v6402_v5 = vmul.f32 %v12394_v44, %v10269_v39 }
0x5b4f   :  { %6419 = vadd.xlane.f32.xlu1 %v6418_v53  ;;  %v6412_v60 = vsel %vm161_vm1, %v6398_v40, 0.0  ;;  %v12913_v53 = vld [vmem:[#allocation14_spill] sm:$0xff] }
0x5b50   :  { %v6424_v56 = vsel %vm161_vm1, %v6402_v5, 0.0 }
0x5b52   :  { %6416 = vadd.xlane.f32.xlu0 %v6415_v23 }
0x5b53   :  { %6422 = vadd.xlane.f32.xlu1 %v6421_v11 }
0x5b56   :  { %6413 = vadd.xlane.f32.xlu0 %v6412_v60 }
0x5b57   :  { %6425 = vadd.xlane.f32.xlu1 %v6424_v56 }
0x5bd7   :  { %v6408_v62 = vpop.xlane.xlu0 %6407 }
0x5bd8   :  { %v6405_v36 = vpop.xlane.xlu1 %6404  ;;  %v6428_v20 = vadd.f32 %v6408_v62, %v12913_v53 }
0x5bd9   :  { %v6427_v31 = vadd.f32 %v6405_v36, %v12913_v53 }
0x5bda   :  { %v6450_v60 = vrot.slane %v6428_v20, %v10891_v42 }
0x5bdb   :  { %v6411_v10 = vpop.xlane.xlu0 %6410  ;;  %v6446_v56 = vrot.slane %v6427_v31, %v10888_v41 }
0x5bdc   :  { %v6420_v55 = vpop.xlane.xlu1 %6419  ;;  %v6429_v54 = vadd.f32 %v6411_v10, %v12913_v53 }
0x5bdd   :  { %v6432_v23 = vadd.f32 %v6420_v55, %v12913_v53  ;;  %v6451_v25 = vsel %vm768_vm3, %v6450_v60, %v6446_v56 }
0x5bde   :  { %v6455_v62 = vrot.slane %v6429_v54, %v10897_v46 }
0x5bdf   :  { %v6417_v39 = vpop.xlane.xlu0 %6416  ;;  %v6469_v36 = vrot.slane %v6432_v23, %v10891_v42 }
0x5be0   :  { %v6423_v11 = vpop.xlane.xlu1 %6422  ;;  %v6431_v40 = vadd.f32 %v6417_v39, %v12913_v53  ;;  %v6456_v9 = vsel %vm775_vm4, %v6455_v62, %v6451_v25 }
0x5be1   :  { %v6433_v5 = vadd.f32 %v6423_v11, %v12913_v53 }
0x5be2   :  { %v6465_v44 = vrot.slane %v6431_v40, %v10888_v41 }
0x5be3   :  { %v6414_v12 = vpop.xlane.xlu0 %6413  ;;  %v6474_v10 = vrot.slane %v6433_v5, %v10897_v46 }
0x5be4   :  { %v6426_v55 = vpop.xlane.xlu1 %6425  ;;  %v6430_v61 = vadd.f32 %v6414_v12, %v12913_v53  ;;  %v6470_v39 = vsel %vm768_vm3, %v6469_v36, %v6465_v44 }
0x5be5   :  { %v6434_v11 = vadd.f32 %v6426_v55, %v12913_v53  ;;  %v6475_v59 = vsel %vm775_vm4, %v6474_v10, %v6470_v39 }
0x5be6   :  { %v6460_v34 = vrot.slane %v6430_v61, %v10904_v57 }
0x5be7   :  { %v6479_v17 = vrot.slane %v6434_v11, %v10904_v57 }
0x5be8   :  { %v6461_v2 = vsel %vm782_vm5, %v6460_v34, %v6456_v9 }
0x5be9   :  { %v6480_v28 = vsel %vm782_vm5, %v6479_v17, %v6475_v59 }
0x5bea   :  { %v6481_v12 = vsel %vm803_vm6, %v6480_v28, %v6461_v2 }
0x5beb   :  { %v6483_v44 = vsel %vm806_vm7, %v6481_v12, -inf }
0x5bec   :  { %6484 = vmax.xlane.f32.xlu0 %v6483_v44 }
0x5c79   :  { %v6485_v36 = vpop.xlane.xlu0 %6484 }
0x5c7a   :  { %v6490_v60 = vrot.slane %v6485_v36, %v10709_v38  ;;  %v6494_v56 = vrot.slane %v6485_v36, %v10925_v58 }
0x5c7c   :  { %v6497_v55 = vsub.f32 %v6427_v31, %v6490_v60  ;;  %v6498_v25 = vsub.f32 %v6428_v20, %v6490_v60  ;;  %v6499_v62 = vsub.f32 %v6429_v54, %v6490_v60  ;;  %v6501_v53 = vsub.f32 %v6431_v40, %v6494_v56 }
0x5c7d   :  { %v6502_v34 = vsub.f32 %v6432_v23, %v6494_v56  ;;  %v6500_v59 = vsub.f32 %v6430_v61, %v6490_v60  ;;  %v6503_v2 = vsub.f32 %v6433_v5, %v6494_v56  ;;  %v6504_v12 = vsub.f32 %v6434_v11, %v6494_v56 }
0x5c7e   :  { %v6505_v7 = vmul.f32 1.442695, %v6497_v55  ;;  %v6507_v9 = vmul.f32 1.442695, %v6498_v25  ;;  %v6513_v10 = vmul.f32 1.442695, %v6501_v53 }
0x5c7f   :  { %v6509_v28 = vmul.f32 1.442695, %v6499_v62  ;;  %v6515_v17 = vmul.f32 1.442695, %v6502_v34  ;;  %v6511_v39 = vmul.f32 1.442695, %v6500_v59 }
0x5c80   :  { %10270 = vpow2.f32 %v6505_v7  ;;  %v6517_v44 = vmul.f32 1.442695, %v6503_v2  ;;  %v6519_v54 = vmul.f32 1.442695, %v6504_v12 }
0x5c81   :  { %10272 = vpow2.f32 %v6507_v9 }
0x5c82   :  { %10274 = vpow2.f32 %v6513_v10 }
0x5c83   :  { %10276 = vpow2.f32 %v6509_v28 }
0x5c84   :  { %10278 = vpow2.f32 %v6515_v17 }
0x5c85   :  { %10280 = vpow2.f32 %v6511_v39 }
0x5c86   :  { %10282 = vpow2.f32 %v6517_v44 }
0x5c87   :  { %10284 = vpow2.f32 %v6519_v54 }
0x5c8a   :  { %v10271_v20 = vpop.eup %10270 }
0x5c8b   :  { %v10273_v31 = vpop.eup %10272  ;;  %6530 = vperm.xlu1 %9908, %v10271_v20  }
0x5c8c   :  { %6533 = vperm.xlu0 %9909, %v10273_v31   ;;  %v10275_v7 = vpop.eup %10274 }
0x5c8d   :  { %v10277_v53 = vpop.eup %10276 }
0x5c8e   :  { %v10279_v61 = vpop.eup %10278 }
0x5c8f   :  { %6542 = vperm.xlu1 %9908, %v10275_v7   ;;  %v10281_v23 = vpop.eup %10280 }
0x5c90   :  { %6536 = vperm.xlu0 %9909, %v10277_v53   ;;  %v10283_v40 = vpop.eup %10282 }
0x5c91   :  { %v10285_v5 = vpop.eup %10284 }
0x5c93   :  { %6545 = vperm.xlu1 %9908, %v10279_v61  }
0x5c94   :  { %6539 = vperm.xlu0 %9909, %v10281_v23  }
0x5c97   :  { %6548 = vperm.xlu1 %9908, %v10283_v40  }
0x5c9b   :  { %6551 = vperm.xlu1 %9908, %v10285_v5  }
0x5d0a   :  { %v6531_v11 = vpop.permute.xlu1 %6530 }
0x5d0b   :  { %v6534_v36 = vpop.permute.xlu0 %6533  ;;  %v6556_v34 = vrot.slane %v6531_v11, %v10888_v41 }
0x5d0c   :  { %v6560_v9 = vrot.slane %v6534_v36, %v10891_v42 }
0x5d0e   :  { %v6543_v60 = vpop.permute.xlu1 %6542  ;;  %v6561_v12 = vsel %vm768_vm3, %v6560_v9, %v6556_v34 }
0x5d0f   :  { %v6537_v56 = vpop.permute.xlu0 %6536  ;;  %v6575_v2 = vrot.slane %v6543_v60, %v10888_v41 }
0x5d10   :  { %v6565_v59 = vrot.slane %v6537_v56, %v10897_v46 }
0x5d12   :  { %v6546_v55 = vpop.permute.xlu1 %6545  ;;  %v6566_v36 = vsel %vm775_vm4, %v6565_v59, %v6561_v12 }
0x5d13   :  { %v6540_v25 = vpop.permute.xlu0 %6539  ;;  %v6579_v10 = vrot.slane %v6546_v55, %v10891_v42 }
0x5d14   :  { %v6570_v17 = vrot.slane %v6540_v25, %v10904_v57 }
0x5d15   :  { %v6580_v44 = vsel %vm768_vm3, %v6579_v10, %v6575_v2 }
0x5d16   :  { %v6549_v62 = vpop.permute.xlu1 %6548  ;;  %v6571_v55 = vsel %vm782_vm5, %v6570_v17, %v6566_v36 }
0x5d17   :  { %v6584_v28 = vrot.slane %v6549_v62, %v10897_v46 }
0x5d19   :  { %v6585_v11 = vsel %vm775_vm4, %v6584_v28, %v6580_v44 }
0x5d1a   :  { %v6552_v39 = vpop.permute.xlu1 %6551 }
0x5d1b   :  { %v6589_v54 = vrot.slane %v6552_v39, %v10904_v57 }
0x5d1d   :  { %v6590_v56 = vsel %vm782_vm5, %v6589_v54, %v6585_v11 }
0x5d1e   :  { %v6591_v62 = vsel %vm803_vm6, %v6590_v56, %v6571_v55 }
0x5d1f   :  { %v6593_v60 = vsel %vm806_vm7, %v6591_v62, 0.0 }
0x5d20   :  { %6594 = vadd.xlane.f32.xlu0 %v6593_v60 }
0x5dad   :  { %v6595_v25 = vpop.xlane.xlu0 %6594 }
0x5dae   :  { %v6604_v9 = vrot.slane %v6595_v25, %v10925_v58  ;;  %v6600_v34 = vrot.slane %v6595_v25, %v10709_v38 }
0x5db0   :  { %10286 = vrcp.f32 %v6604_v9 }
0x5db1   :  { %10288 = vrcp.f32 %v6600_v34 }
0x5dba   :  { %v10287_v10 = vpop.eup %10286 }
0x5dbb   :  { %v6613_v59 = vmul.f32 %v10287_v10, %v10275_v7  ;;  %v6614_v28 = vmul.f32 %v10287_v10, %v10279_v61  ;;  %v6615_v2 = vmul.f32 %v10287_v10, %v10283_v40  ;;  %v10289_v17 = vpop.eup %10288  ;;  %v6616_v44 = vmul.f32 %v10287_v10, %v10285_v5 }
0x5dbc   :  { %v6608_v39 = vmul.f32 %v10289_v17, %v10271_v20  ;;  %v6609_v12 = vmul.f32 %v10289_v17, %v10273_v31  ;;  %v6610_v54 = vmul.f32 %v10289_v17, %v10277_v53  ;;  %v6611_v36 = vmul.f32 %v10289_v17, %v10281_v23 }
0x5dbd   :  { %6729 = vperm.xlu1 %9908, %v6613_v59  }
0x5dc1   :  { %6732 = vperm.xlu1 %9908, %v6614_v28  }
0x5dc5   :  { %6735 = vperm.xlu1 %9908, %v6615_v2  }
0x5dc9   :  { %6622 = vperm.xlu1 %9908, %v6608_v39  }
0x5dcd   :  { %6625 = vperm.xlu1 %9908, %v6609_v12  }
0x5dd1   :  { %6738 = vperm.xlu1 %9908, %v6616_v44  }
0x5dd5   :  { %6628 = vperm.xlu1 %9908, %v6610_v54  }
0x5dd9   :  { %6631 = vperm.xlu1 %9908, %v6611_v36  }
0x5e3c   :  { %v6730_v11 = vpop.permute.xlu1 %6729 }
0x5e3d   :  { %v6743_v20 = vrot.slane %v6730_v11, %v10888_v41 }
0x5e40   :  { %v6733_v55 = vpop.permute.xlu1 %6732 }
0x5e41   :  { %v6747_v61 = vrot.slane %v6733_v55, %v10891_v42 }
0x5e43   :  { %v6748_v31 = vsel %vm768_vm3, %v6747_v61, %v6743_v20 }
0x5e44   :  { %v6736_v56 = vpop.permute.xlu1 %6735 }
0x5e45   :  { %v6752_v40 = vrot.slane %v6736_v56, %v10897_v46 }
0x5e47   :  { %v6753_v53 = vsel %vm775_vm4, %v6752_v40, %v6748_v31 }
0x5e48   :  { %v6623_v7 = vpop.permute.xlu1 %6622 }
0x5e49   :  { %v6636_v10 = vrot.slane %v6623_v7, %v10888_v41 }
0x5e4c   :  { %v6626_v62 = vpop.permute.xlu1 %6625 }
0x5e4d   :  { %v6640_v9 = vrot.slane %v6626_v62, %v10891_v42 }
0x5e4f   :  { %v6641_v28 = vsel %vm768_vm3, %v6640_v9, %v6636_v10 }
0x5e50   :  { %v6739_v60 = vpop.permute.xlu1 %6738 }
0x5e51   :  { %v6757_v5 = vrot.slane %v6739_v60, %v10904_v57 }
0x5e53   :  { %v6758_v23 = vsel %vm782_vm5, %v6757_v5, %v6753_v53 }
0x5e54   :  { %9196 = vmatmul.mubr.msk.f32.vlgmr.msra.gmra.mrb[42].mxu0 %vm161_vm1, %v6758_v23  ;;  %v6629_v25 = vpop.permute.xlu1 %6628 }
0x5e55   :  { %9820 = vmatpush3.bf16.msra.mxu0 %v11002_v37  ;;  %9241 = vmatprep.mubr.msk.f32.mxu0 %vm10514_vm0, %v12834_v1  ;;  %v6645_v34 = vrot.slane %v6629_v25, %v10897_v46 }
0x5e56   :  { %9821 = vmatprep.subr.bf16.mxu0 %v12835_v0 }
0x5e57   :  { %v6646_v17 = vsel %vm775_vm4, %v6645_v34, %v6641_v28 }
0x5e58   :  { %v6632_v59 = vpop.permute.xlu1 %6631 }
0x5e59   :  { %v6650_v2 = vrot.slane %v6632_v59, %v10904_v57  ;;  %9823 = vmatpush3.bf16.msra.mxu0 %v11068_v63 }
0x5e5a   :  { %9824 = vmatprep.subr.bf16.mxu0 %v12835_v0 }
0x5e5b   :  { %v6651_v37 = vsel %vm782_vm5, %v6650_v2, %v6646_v17 }
0x5e5c   :  { %9185 = vmatmul.mubr.msk.f32.vlgmr.msra.gmra.mrb[52].mxu1 %vm161_vm1, %v6651_v37 }
0x5e5d   :  { %9814 = vmatpush3.bf16.msra.mxu1 %v11023_v16  ;;  %9206 = vmatprep.mubr.msk.f32.mxu1 %vm10514_vm0, %v12834_v1 }
0x5e5e   :  { %9815 = vmatprep.subr.bf16.mxu1 %v12835_v0  ;;  %9826 = vmatpush3.bf16.msra.mxu0 %v11074_v22 }
0x5e5f   :  { %9827 = vmatprep.subr.bf16.mxu0 %v12835_v0 }
0x5e61   :  { %9817 = vmatpush3.bf16.msra.mxu1 %v11026_v19 }
0x5e62   :  { %9829 = vmatpush3.bf16.msra.mxu0 %v11084_v27  ;;  %9842 = vmatprep.subr.bf16.mxu1 %v12835_v0 }
0x5e63   :  { %9830 = vmatprep.subr.bf16.mxu0 %v12835_v0 }
0x5e66   :  { %9832 = vmatpush3.bf16.msra.mxu0 %v11094_v49 }
0x5e67   :  { %9833 = vmatprep.subr.bf16.mxu0 %v12835_v0 }
0x5e6a   :  { %9835 = vmatpush3.bf16.msra.mxu0 %v11104_v48 }
0x5e6b   :  { %9836 = vmatprep.subr.bf16.mxu0 %v12835_v0 }
0x5e6e   :  { %9838 = vmatpush3.bf16.msra.mxu0 %v11114_v14 }
0x5e6f   :  { %9839 = vmatprep.subr.bf16.mxu0 %v12835_v0 }
0x5e72   :  { %9841 = vmatpush3.bf16.msra.mxu0 %v11127_v35 }
0x5e73   :  { %9866 = vmatprep.subr.bf16.mxu0 %v12835_v0 }
0x5f27   :  { %v6827_v63 = vpop.f32.mrb[42].mxu0 }
0x5f28   :  { %v9197_v22 = vpop.f32.mrb[43].mxu0  ;;  %v6833_v27 = vrot.slane %v6827_v63, 7 }
0x5f2f   :  { %v6720_v39 = vpop.f32.mrb[52].mxu1 }
0x5f30   :  { %v6834_v49 = vsel %vm803_vm6, %v6833_v27, %v6720_v39  ;;  %v9186_v12 = vpop.f32.mrb[53].mxu1 }
0x5f31   :  { %9207 = vmatmul.mubr.msk.f32.vlgmr.msra.gmra.mrb[54].mxu1 %vm161_vm1, %v6834_v49 }
0x5f32   :  { %9844 = vmatpush3.bf16.msra.mxu1 %v10660_v6  ;;  %9260 = vmatprep.mubr.msk.f32.mxu1 %vm10514_vm0, %v12834_v1  ;;  %v12511_v6 = vld [vmem:[%s12756_s13] ss:$0 sm:$0xff] }
0x5f33   :  { %9845 = vmatprep.subr.bf16.mxu1 %v12835_v0 }
0x5f36   :  { %9847 = vmatpush3.bf16.msra.mxu1 %v10663_v8 }
0x5f37   :  { %9848 = vmatprep.subr.bf16.mxu1 %v12835_v0 }
0x5f3a   :  { %9850 = vmatpush3.bf16.msra.mxu1 %v10685_v24 }
0x5f3b   :  { %9851 = vmatprep.subr.bf16.mxu1 %v12835_v0 }
0x5f3e   :  { %9853 = vmatpush3.bf16.msra.mxu1 %v10691_v30 }
0x5f3f   :  { %9854 = vmatprep.subr.bf16.mxu1 %v12835_v0 }
0x6004   :  { %v6903_v48 = vpop.f32.mrb[54].mxu1 }
0x6005   :  { %v12514_v14 = vadd.f32 %v12511_v6, %v6903_v48  ;;  %v9208_v8 = vpop.f32.mrb[55].mxu1 }
0x6007   :  { %v6907_v35 = vsel %vm1237_vm8, %v12514_v14, -inf }
0x6008   :  { %6908 = vmax.xlane.f32.xlu0 %v6907_v35 }
0x6095   :  { %v12518_v24 = vpop.xlane.xlu0 %6908 }
0x6096   :  { %vm6910_vm13 = vcmp.eq.f32.partialorder %v12514_v14, %v12518_v24 }
0x6097   :  { %v6911_v30 = vsel %vm6910_vm13, %v10880_v21, 128 }
0x6098   :  { %v6912_v44 = vsel %vm1237_vm8, %v6911_v30, 2147483647 }
0x6099   :  { %v6914_v54 = vshra.s32 %v6912_v44, 16  ;;  %v6913_v11 = vand.u32 65535, %v6912_v44 }
0x609b   :  { %v6916_v36 = vcvt.s32.f32 %v6914_v54  ;;  %v6915_v56 = vcvt.s32.f32 %v6913_v11 }
0x609d   :  { %6917 = vmin.xlane.f32.xlu1 %v6916_v36 }
0x612a   :  { %v6918_v55 = vpop.xlane.xlu1 %6917 }
0x612b   :  { %vm6919_vm14 = vcmp.eq.f32.partialorder %v6916_v36, %v6918_v55  ;;  %v6924_v62 = vcvt.f32.s32 %v6918_v55 }
0x612c   :  { %v6920_v7 = vsel %vm6919_vm14, %v6915_v56, inf  ;;  %v12915_v56 = vld [vmem:[#allocation28_spill] sm:$0xff] }
0x612d   :  { %6921 = vmin.xlane.f32.xlu0 %v6920_v7  ;;  %v6925_v40 = vshll.u32 %v6924_v62, 16 }
0x6143   :  { %7010 = vrot.lane.b32.xlu0 %v12294_v32, %s10516_s1 }
0x61ba   :  { %v6922_v61 = vpop.xlane.xlu0 %6921 }
0x61bb   :  { %v6923_v20 = vcvt.f32.s32 %v6922_v61  ;;  %v12916_v61 = vld [vmem:[#allocation13_spill] sm:$0xff] }
0x61bd   :  { %v6926_v60 = vadd.s32 %v6925_v40, %v6923_v20 }
0x61be   :  { %v7011_v32 = vpop.permute.xlu0 %7010 }
0x61bf   :  { %vm6927_vm15 = vcmp.eq.s32.totalorder %v10880_v21, %v6926_v60 }
0x61c0   :  { %9242 = vmatmul.mubr.msk.f32.vlgmr.msra.gmra.mrb[44].mxu0 %vm6927_vm15, %v12838_v26 }
0x61c1   :  { %9868 = vmatpush3.bf16.msra.mxu0 %v10777_v50  ;;  %9290 = vmatprep.mubr.msk.f32.mxu0 %vm10514_vm0, %v12834_v1 }
0x61c2   :  { %9869 = vmatprep.subr.bf16.mxu0 %v12835_v0 }
0x61c5   :  { %9871 = vmatpush3.bf16.msra.mxu0 %v10783_v52 }
0x61c6   :  { %9878 = vmatprep.subr.bf16.mxu0 %v12835_v0 }
0x6293   :  { %v6996_v31 = vpop.f32.mrb[44].mxu0 }
0x6294   :  { %v7013_v5 = vsel %vm161_vm1, %v6996_v31, %v7011_v32  ;;  %v9243_v53 = vpop.f32.mrb[45].mxu0 }
0x6295   :  { %9261 = vmatmul.mubr.msk.f32.vlgmr.msra.gmra.mrb[56].mxu1 %vm362_vm2, %v7013_v5  ;;  %v12917_v5 = vld [vmem:[#allocation27_spill] sm:$0xff] }
0x6296   :  { %9856 = vmatpush3.bf16.msra.mxu1 %v10687_v29  ;;  %9279 = vmatprep.mubr.msk.f32.mxu1 %vm10514_vm0, %v12834_v1  ;;  %v10413_v29 = vld [vmem:[%s12747_s4] ss:$0 sm:$0xff]  ;;  %s10522_s4 = smov [#allocation9]  }
0x6297   :  { %9857 = vmatprep.subr.bf16.mxu1 %v12835_v0 }
0x629a   :  { %9859 = vmatpush3.bf16.msra.mxu1 %v10698_v33 }
0x629b   :  { %9860 = vmatprep.subr.bf16.mxu1 %v12835_v0 }
0x629e   :  { %9862 = vmatpush3.bf16.msra.mxu1 %v10743_v13 }
0x629f   :  { %9863 = vmatprep.subr.bf16.mxu1 %v12835_v0 }
0x62a2   :  { %9865 = vmatpush3.bf16.msra.mxu1 %v10746_v15 }
0x62a3   :  { %9872 = vmatprep.subr.bf16.mxu1 %v12835_v0 }
0x6368   :  { %v7083_v50 = vpop.f32.mrb[56].mxu1 }
0x6369   :  { %v7084_v52 = vadd.f32 %v10413_v29, %v7083_v50  ;;  %v9262_v21 = vpop.f32.mrb[57].mxu1  ;;  %v12918_v50 = vld [vmem:[#allocation30_spill] sm:$0xff] }
0x636b   :  { %10290 = vtanh.f32 %v7084_v52  ;;  %v7963_v33 = vmul.f32 -1.442695, %v7084_v52  ;;  %v12919_v52 = vld [vmem:[#allocation29_spill] sm:$0xff] }
0x636d   :  { %10292 = vpow2.f32 %v7963_v33 }
0x6375   :  { %v10291_v26 = vpop.eup %10290 }
0x6376   :  { %7096 = vrot.lane.b32.xlu0 %v10291_v26, %s10516_s1  ;;  %v12920_v26 = vld [vmem:[#allocation34_spill] sm:$0xff] }
0x6377   :  { %v10293_v13 = vpop.eup %10292 }
0x6378   :  { %v7090_v23 = vadd.f32 1.0, %v10293_v13  ;;  %v12921_v13 = vld [vmem:[#allocation33_spill] sm:$0xff] }
0x637a   :  { %10294 = vrcp.f32 %v7090_v23 }
0x6384   :  { %v10295_v25 = vpop.eup %10294 }
0x6385   :  { %v7094_v34 = vmul.f32 %v10295_v25, %v12290_v47 }
0x63e8   :  { %v7097_v15 = vpop.permute.xlu0 %7096 }
0x63e9   :  { %v7099_v9 = vmul.f32 %v10295_v25, %v7097_v15 }
0x63eb   :  { %7101 = vrot.lane.b32.xlu0 %v7099_v9, %s10518_s23  ;;  %v12923_v9 = vld [vmem:[#allocation26_spill] sm:$0xff] }
0x645d   :  { %v7102_v10 = vpop.permute.xlu0 %7101 }
0x645e   :  { %v7104_v59 = vadd.f32 %v7102_v10, %v7094_v34  ;;  %v12924_v10 = vld [vmem:[#allocation15_spill] sm:$0xff] }
0x6460   :  { %10296 = vtanh.f32 %v7104_v59 }
0x646a   :  { %v10297_v28 = vpop.eup %10296 }
0x646b   :  { %7107 = vrot.lane.b32.xlu0 %v10297_v28, %s10516_s1 }
0x646f   :  { %7115 = vrot.lane.b32.xlu0 %v12321_v18, %s10516_s1 }
0x64dd   :  { %v7108_v2 = vpop.permute.xlu0 %7107 }
0x64de   :  { %v7110_v17 = vmul.f32 %v10295_v25, %v7108_v2  ;;  %v12922_v25 = vld [vmem:[#allocation25_spill] sm:$0xff] }
0x64e0   :  { %7112 = vrot.lane.b32.xlu1 %v7110_v17, %s10518_s23  ;;  %v12925_v17 = vld [vmem:[#allocation37_spill] sm:$0xff] }
0x64e1   :  { %v7116_v37 = vpop.permute.xlu0 %7115 }
0x6552   :  { %v7113_v63 = vpop.permute.xlu1 %7112 }
0x6553   :  { %v7118_v22 = vsel %vm161_vm1, %v7113_v63, %v7116_v37 }
0x6554   :  { %9280 = vmatmul.mubr.msk.f32.vlgmr.msra.gmra.mrb[58].mxu1 %vm362_vm2, %v7118_v22 }
0x6555   :  { %9874 = vmatpush3.bf16.msra.mxu1 %v10981_v3  ;;  %9301 = vmatprep.mubr.msk.f32.mxu1 %vm10514_vm0, %v12834_v1 }
0x6556   :  { %9875 = vmatprep.subr.bf16.mxu1 %v12835_v0 }
0x6559   :  { %9877 = vmatpush3.bf16.msra.mxu1 %v10990_v4 }
0x655a   :  { %9884 = vmatprep.subr.bf16.mxu1 %v12835_v0 }
0x6627   :  { %v7188_v47 = vpop.f32.mrb[58].mxu1 }
0x6628   :  { %v7189_v18 = vadd.f32 %v12311_v43, %v7188_v47  ;;  %v9281_v27 = vpop.f32.mrb[59].mxu1 }
0x662a   :  { %10298 = vtanh.f32 %v7189_v18  ;;  %v7965_v49 = vmul.f32 -1.442695, %v7189_v18 }
0x662c   :  { %10300 = vpow2.f32 %v7965_v49 }
0x6634   :  { %v10299_v39 = vpop.eup %10298 }
0x6635   :  { %7201 = vrot.lane.b32.xlu0 %v10299_v39, %s10516_s1 }
0x6636   :  { %v10301_v3 = vpop.eup %10300 }
0x6637   :  { %v7195_v12 = vadd.f32 1.0, %v10301_v3 }
0x6639   :  { %10302 = vrcp.f32 %v7195_v12 }
0x6643   :  { %v10303_v48 = vpop.eup %10302 }
0x6644   :  { %v7199_v4 = vmul.f32 %v10303_v48, %v12317_v51  ;;  %v12914_v51 = vld [vmem:[#allocation16_spill] sm:$0xff] }
0x66a7   :  { %v7202_v8 = vpop.permute.xlu0 %7201 }
0x66a8   :  { %v7204_v35 = vmul.f32 %v10303_v48, %v7202_v8 }
0x66aa   :  { %7206 = vrot.lane.b32.xlu0 %v7204_v35, %s10518_s23 }
0x671c   :  { %v7207_v30 = vpop.permute.xlu0 %7206 }
0x671d   :  { %v7209_v44 = vadd.f32 %v7207_v30, %v7199_v4 }
0x671f   :  { %10304 = vtanh.f32 %v7209_v44 }
0x6729   :  { %v10305_v43 = vpop.eup %10304 }
0x672a   :  { %7212 = vrot.lane.b32.xlu0 %v10305_v43, %s10516_s1  ;;  %s7870_s1 = sshll.u32 %s10522_s4, 4  ;;  %s7871_s1 = int_to_ptr.vmem [resolvable:$true] %s7870_s1 }
0x672b   :  { %s10480_s30 = scalar_lea.vmem %s7871_s1, 256  ;;  %p10485_p11 = scmp.lt.s32.totalorder %s7871_s1, %s7871_s1 }
0x672c   :  { %p10481_p10 = scmp.ne.s32.totalorder %s7871_s1, %s10480_s30  ;;  %p10486_p12 = scmp.lt.s32.totalorder %s10480_s30, %s10480_s30 }
0x672e   :  { %p10487_p13 = por %p10486_p12, %p10485_p11 }
0x6730   :  { %p10488_p0 = pnand %p10487_p13, %p10481_p10 }
0x679c   :  { %v7213_v54 = vpop.permute.xlu0 %7212 }
0x679d   :  { %v7215_v36 = vmul.f32 %v10303_v48, %v7213_v54 }
0x679f   :  { %7217 = vrot.lane.b32.xlu1 %v7215_v36, %s10518_s23 }
0x6811   :  { %v7218_v11 = vpop.permute.xlu1 %7217 }
0x6812   :  { %9291 = vmatmul.mubr.msk.f32.vlgmr.msra.gmra.mrb[46].mxu0 %vm161_vm1, %v7218_v11 }
0x6813   :  { %9880 = vmatpush3.bf16.msra.mxu0 %v12900_v45  ;;  %9312 = vmatprep.mubr.msk.f32.mxu0 %vm10514_vm0, %v12834_v1 }
0x6814   :  { %9881 = vmatprep.subr.bf16.mxu0 %v12835_v0 }
0x6817   :  { %9883 = vmatpush3.bf16.msra.mxu0 %v12914_v51 }
0x68e5   :  { %v7287_v55 = vpop.f32.mrb[46].mxu0 }
0x68e6   :  { %v7288_v7 = vadd.f32 %v12915_v56, %v7287_v55  ;;  %v9292_v62 = vpop.f32.mrb[47].mxu0 }
0x68e8   :  { %v7298_v40 = vrot.slane %v7288_v7, %v12916_v61 }
0x68ea   :  { %v7299_v20 = vcombine.high %v7298_v40, %v7298_v40  ;;  %v7306_v60 = vrot.slane %v7298_v40, %v12916_v61 }
0x68ec   :  { %v7313_v32 = vrot.slane %v7299_v20, %v12916_v61  ;;  %v7317_v45 = vrot.slane %v7306_v60, %v10709_v38  ;;  %v12926_v60 = vld [vmem:[#allocation14_spill] sm:$0xff] }
0x68ee   :  { %v7321_v31 = vrot.slane %v7313_v32, %v10709_v38  ;;  %v7324_v53 = vadd.f32 %v12917_v5, %v7317_v45  ;;  %v7325_v29 = vadd.f32 %v12918_v50, %v7317_v45  ;;  %v7326_v21 = vadd.f32 %v12919_v52, %v7317_v45 }
0x68ef   :  { %v7327_v33 = vadd.f32 %v12920_v26, %v7317_v45 }
0x68f0   :  { %10306 = vtanh.f32 %v7325_v29  ;;  %v7328_v23 = vadd.f32 %v12921_v13, %v7321_v31  ;;  %v7329_v15 = vadd.f32 %v12922_v25, %v7321_v31  ;;  %v7330_v34 = vadd.f32 %v12923_v9, %v7321_v31 }
0x68f1   :  { %10308 = vtanh.f32 %v7324_v53  ;;  %v7331_v59 = vadd.f32 %v12924_v10, %v7321_v31 }
0x68f2   :  { %10310 = vtanh.f32 %v7326_v21 }
0x68f3   :  { %10312 = vtanh.f32 %v7328_v23 }
0x68f4   :  { %10314 = vtanh.f32 %v7327_v33 }
0x68f5   :  { %10316 = vtanh.f32 %v7329_v15 }
0x68f6   :  { %10318 = vtanh.f32 %v7330_v34 }
0x68f7   :  { %10320 = vtanh.f32 %v7331_v59 }
0x68fa   :  { %v10307_v28 = vpop.eup %10306 }
0x68fb   :  { %v10309_v2 = vpop.eup %10308  ;;  %v7341_v37 = vmul.f32 %v12925_v17, %v10307_v28 }
0x68fc   :  { %v10311_v63 = vpop.eup %10310  ;;  %v7340_v22 = vmul.f32 %v12925_v17, %v10309_v2 }
0x68fd   :  { %v10313_v47 = vpop.eup %10312  ;;  %v7351_v18 = vsel %vm161_vm1, %v7341_v37, 0.0  ;;  %v7342_v27 = vmul.f32 %v12925_v17, %v10311_v63 }
0x68fe   :  { %v10315_v39 = vpop.eup %10314  ;;  %7352 = vadd.xlane.f32.xlu1 %v7351_v18  ;;  %v7348_v49 = vsel %vm161_vm1, %v7340_v22, 0.0  ;;  %v7344_v3 = vmul.f32 %v12925_v17, %v10313_v47 }
0x68ff   :  { %v10317_v12 = vpop.eup %10316  ;;  %7349 = vadd.xlane.f32.xlu0 %v7348_v49  ;;  %v7354_v48 = vsel %vm161_vm1, %v7342_v27, 0.0  ;;  %v7343_v8 = vmul.f32 %v12925_v17, %v10315_v39 }
0x6900   :  { %v7360_v35 = vsel %vm161_vm1, %v7344_v3, 0.0  ;;  %v7345_v4 = vmul.f32 %v12925_v17, %v10317_v12  ;;  %v10319_v30 = vpop.eup %10318 }
0x6901   :  { %v7357_v44 = vsel %vm161_vm1, %v7343_v8, 0.0  ;;  %v7346_v54 = vmul.f32 %v12925_v17, %v10319_v30  ;;  %v10321_v36 = vpop.eup %10320 }
0x6902   :  { %7355 = vadd.xlane.f32.xlu1 %v7354_v48  ;;  %v7363_v43 = vsel %vm161_vm1, %v7345_v4, 0.0  ;;  %v7347_v51 = vmul.f32 %v12925_v17, %v10321_v36 }
0x6903   :  { %7361 = vadd.xlane.f32.xlu0 %v7360_v35  ;;  %v7366_v11 = vsel %vm161_vm1, %v7346_v54, 0.0 }
0x6904   :  { %v7369_v55 = vsel %vm161_vm1, %v7347_v51, 0.0 }
0x6906   :  { %7358 = vadd.xlane.f32.xlu1 %v7357_v44 }
0x6907   :  { %7364 = vadd.xlane.f32.xlu0 %v7363_v43 }
0x690b   :  { %7367 = vadd.xlane.f32.xlu0 %v7366_v11 }
0x690f   :  { %7370 = vadd.xlane.f32.xlu0 %v7369_v55 }
0x698b   :  { %v7353_v56 = vpop.xlane.xlu1 %7352 }
0x698c   :  { %v7350_v7 = vpop.xlane.xlu0 %7349  ;;  %v7373_v32 = vadd.f32 %v7353_v56, %v12926_v60 }
0x698d   :  { %v7372_v45 = vadd.f32 %v7350_v7, %v12926_v60 }
0x698e   :  { %v7395_v21 = vrot.slane %v7373_v32, %v10891_v42 }
0x698f   :  { %v7356_v62 = vpop.xlane.xlu1 %7355  ;;  %v7391_v26 = vrot.slane %v7372_v45, %v10888_v41 }
0x6990   :  { %v7362_v61 = vpop.xlane.xlu0 %7361  ;;  %v7374_v5 = vadd.f32 %v7356_v62, %v12926_v60 }
0x6991   :  { %v7376_v50 = vadd.f32 %v7362_v61, %v12926_v60  ;;  %v7396_v10 = vsel %vm768_vm3, %v7395_v21, %v7391_v26  ;;  %v12929_v21 = vld [vmem:[#allocation20_spill] sm:$0xff]  ;;  %v12930_v26 = vld [vmem:[#allocation19_spill] sm:$0xff] }
0x6992   :  { %v7400_v13 = vrot.slane %v7374_v5, %v10897_v46 }
0x6993   :  { %v7359_v20 = vpop.xlane.xlu1 %7358  ;;  %v7410_v15 = vrot.slane %v7376_v50, %v10888_v41 }
0x6994   :  { %v7365_v40 = vpop.xlane.xlu0 %7364  ;;  %v7375_v29 = vadd.f32 %v7359_v20, %v12926_v60  ;;  %v7401_v2 = vsel %vm775_vm4, %v7400_v13, %v7396_v10 }
0x6995   :  { %v7377_v31 = vadd.f32 %v7365_v40, %v12926_v60 }
0x6996   :  { %v7405_v9 = vrot.slane %v7375_v29, %v10904_v57 }
0x6997   :  { %v7414_v33 = vrot.slane %v7377_v31, %v10891_v42 }
0x6998   :  { %v7368_v53 = vpop.xlane.xlu0 %7367  ;;  %v7406_v37 = vsel %vm782_vm5, %v7405_v9, %v7401_v2  ;;  %v12932_v9 = vld [vmem:[#allocation31_spill] sm:$0xff] }
0x6999   :  { %v7378_v52 = vadd.f32 %v7368_v53, %v12926_v60  ;;  %v7415_v59 = vsel %vm768_vm3, %v7414_v33, %v7410_v15  ;;  %v12928_v53 = vld [vmem:[#allocation17_spill] sm:$0xff]  ;;  %v2275_v33 = vsub.f32 %v12930_v26, %v12929_v21  ;;  %v12931_v15 = vld [vmem:[#allocation32_spill] sm:$0xff] }
0x699b   :  { %v7419_v23 = vrot.slane %v7378_v52, %v10897_v46 }
0x699c   :  { %v7371_v25 = vpop.xlane.xlu0 %7370 }
0x699d   :  { %v7379_v34 = vadd.f32 %v7371_v25, %v12926_v60  ;;  %v7420_v17 = vsel %vm775_vm4, %v7419_v23, %v7415_v59  ;;  %v2276_v25 = vmul.f32 1.442695, %v2275_v33  ;;  %v7000_v33 = vsub.f32 %v12514_v14, %v12518_v24 }
0x699f   :  { %v7424_v28 = vrot.slane %v7379_v34, %v10904_v57 }
0x69a1   :  { %v7425_v63 = vsel %vm782_vm5, %v7424_v28, %v7420_v17 }
0x69a2   :  { %v7426_v22 = vsel %vm803_vm6, %v7425_v63, %v7406_v37 }
0x69a3   :  { %v7428_v47 = vsel %vm806_vm7, %v7426_v22, -inf }
0x69a4   :  { %7429 = vmax.xlane.f32.xlu1 %v7428_v47 }
0x6a31   :  { %v7430_v18 = vpop.xlane.xlu1 %7429 }
0x6a32   :  { %v7435_v27 = vrot.slane %v7430_v18, %v10709_v38  ;;  %v7439_v39 = vrot.slane %v7430_v18, %v10925_v58  ;;  %v12933_v18 = vld [vmem:[#allocation22_spill] sm:$0xff] }
0x6a34   :  { %v7442_v49 = vsub.f32 %v7372_v45, %v7435_v27  ;;  %v7443_v3 = vsub.f32 %v7373_v32, %v7435_v27  ;;  %v7446_v12 = vsub.f32 %v7376_v50, %v7439_v39  ;;  %v7447_v48 = vsub.f32 %v7377_v31, %v7439_v39 }
0x6a35   :  { %v7444_v4 = vsub.f32 %v7374_v5, %v7435_v27  ;;  %v7448_v44 = vsub.f32 %v7378_v52, %v7439_v39  ;;  %v7445_v54 = vsub.f32 %v7375_v29, %v7435_v27  ;;  %v7449_v11 = vsub.f32 %v7379_v34, %v7439_v39  ;;  %v12927_v5 = vld [vmem:[#allocation18_spill] sm:$0xff]  ;;  %v12934_v27 = vld [vmem:[#allocation21_spill] sm:$0xff] }
0x6a36   :  { %v7450_v8 = vmul.f32 1.442695, %v7442_v49  ;;  %v7452_v35 = vmul.f32 1.442695, %v7443_v3  ;;  %v7458_v30 = vmul.f32 1.442695, %v7446_v12  ;;  %v1331_v50 = vsub.f32 %v12928_v53, %v12927_v5 }
0x6a37   :  { %v7460_v43 = vmul.f32 1.442695, %v7447_v48  ;;  %v7454_v36 = vmul.f32 1.442695, %v7444_v4  ;;  %v7462_v51 = vmul.f32 1.442695, %v7448_v44  ;;  %v3220_v34 = vsub.f32 %v12932_v9, %v12931_v15 }
0x6a38   :  { %10322 = vpow2.f32 %v7450_v8  ;;  %v7456_v55 = vmul.f32 1.442695, %v7445_v54  ;;  %v7464_v56 = vmul.f32 1.442695, %v7449_v11  ;;  %v1332_v52 = vmul.f32 1.442695, %v1331_v50 }
0x6a39   :  { %10324 = vpow2.f32 %v7452_v35  ;;  %v3221_v47 = vmul.f32 1.442695, %v3220_v34  ;;  %v4165_v39 = vsub.f32 %v12934_v27, %v12933_v18  ;;  %v12936_v11 = vld [vmem:[#allocation35_spill] sm:$0xff]  ;;  %v12937_v53 = vld [vmem:[#allocation24_spill] sm:$0xff] }
0x6a3a   :  { %10326 = vpow2.f32 %v7458_v30  ;;  %v12938_v50 = vld [vmem:[#allocation23_spill] sm:$0xff] }
0x6a3b   :  { %10328 = vpow2.f32 %v7460_v43  ;;  %v4166_v54 = vmul.f32 1.442695, %v4165_v39 }
0x6a3c   :  { %10330 = vpow2.f32 %v7454_v36  ;;  %v12935_v36 = vld [vmem:[#allocation36_spill] sm:$0xff] }
0x6a3d   :  { %10332 = vpow2.f32 %v7462_v51  ;;  %v5110_v51 = vsub.f32 %v12936_v11, %v12935_v36 }
0x6a3e   :  { %10334 = vpow2.f32 %v7456_v55 }
0x6a3f   :  { %10336 = vpow2.f32 %v7464_v56  ;;  %v5111_v5 = vmul.f32 1.442695, %v5110_v51 }
0x6a40   :  { %10338 = vpow2.f32 %v1332_v52 }
0x6a41   :  { %10340 = vpow2.f32 %v2276_v25  ;;  %v7001_v25 = vmul.f32 1.442695, %v7000_v33 }
0x6a42   :  { %v12632_v7 = vpop.eup %10322  ;;  %10342 = vpow2.f32 %v3221_v47 }
0x6a43   :  { %v12634_v62 = vpop.eup %10324  ;;  %7475 = vperm.xlu0 %9909, %v12632_v7   ;;  %10344 = vpow2.f32 %v4166_v54 }
0x6a44   :  { %7478 = vperm.xlu1 %9908, %v12634_v62   ;;  %v12638_v61 = vpop.eup %10326  ;;  %10346 = vpow2.f32 %v5111_v5 }
0x6a45   :  { %v12640_v40 = vpop.eup %10328 }
0x6a46   :  { %v12644_v20 = vpop.eup %10330 }
0x6a47   :  { %7490 = vperm.xlu0 %9909, %v12640_v40   ;;  %v12646_v60 = vpop.eup %10332 }
0x6a48   :  { %7487 = vperm.xlu1 %9908, %v12638_v61   ;;  %v12650_v32 = vpop.eup %10334 }
0x6a49   :  { %v12652_v45 = vpop.eup %10336 }
0x6a4b   :  { %7493 = vperm.xlu0 %9909, %v12646_v60  }
0x6a4c   :  { %7481 = vperm.xlu1 %9908, %v12644_v20  }
0x6a4f   :  { %7496 = vperm.xlu0 %9909, %v12652_v45  }
0x6a50   :  { %7484 = vperm.xlu1 %9908, %v12650_v32  }
0x6ac2   :  { %v7476_v31 = vpop.permute.xlu0 %7475 }
0x6ac3   :  { %v7479_v29 = vpop.permute.xlu1 %7478  ;;  %v7501_v2 = vrot.slane %v7476_v31, %v10888_v41  ;;  %v10339_v31 = vpop.eup %10338 }
0x6ac4   :  { %v7505_v28 = vrot.slane %v7479_v29, %v10891_v42  ;;  %v6055_v29 = vsub.f32 %v12938_v50, %v12937_v53  ;;  %v1334_v52 = vsel %vm1237_vm8, %v10339_v31, 0.0  ;;  %v10341_v21 = vpop.eup %10340 }
0x6ac6   :  { %v7491_v23 = vpop.permute.xlu0 %7490  ;;  %v7506_v12 = vsel %vm768_vm3, %v7505_v28, %v7501_v2  ;;  %v6056_v26 = vmul.f32 1.442695, %v6055_v29 }
0x6ac7   :  { %v7488_v13 = vpop.permute.xlu1 %7487  ;;  %v7524_v37 = vrot.slane %v7491_v23, %v10891_v42  ;;  %v10343_v23 = vpop.eup %10342 }
0x6ac8   :  { %v7520_v17 = vrot.slane %v7488_v13, %v10888_v41  ;;  %v2278_v13 = vsel %vm1237_vm8, %v10341_v21, 0.0  ;;  %10348 = vpow2.f32 %v6056_v26  ;;  %v3223_v15 = vsel %vm1237_vm8, %v10343_v23, 0.0  ;;  %v10345_v9 = vpop.eup %10344 }
0x6ac9   :  { %10350 = vpow2.f32 %v7001_v25  ;;  %v4168_v34 = vsel %vm1237_vm8, %v10345_v9, 0.0 }
0x6aca   :  { %v7494_v59 = vpop.permute.xlu0 %7493  ;;  %v7525_v48 = vsel %vm768_vm3, %v7524_v37, %v7520_v17 }
0x6acb   :  { %v7482_v10 = vpop.permute.xlu1 %7481  ;;  %v7529_v22 = vrot.slane %v7494_v59, %v10897_v46 }
0x6acc   :  { %v7510_v63 = vrot.slane %v7482_v10, %v10897_v46  ;;  %v10347_v10 = vpop.eup %10346 }
0x6acd   :  { %v7530_v30 = vsel %vm775_vm4, %v7529_v22, %v7525_v48  ;;  %v5113_v59 = vsel %vm1237_vm8, %v10347_v10, 0.0 }
0x6ace   :  { %v7497_v3 = vpop.permute.xlu0 %7496  ;;  %v7511_v4 = vsel %vm775_vm4, %v7510_v63, %v7506_v12 }
0x6acf   :  { %v7485_v49 = vpop.permute.xlu1 %7484  ;;  %v7534_v35 = vrot.slane %v7497_v3, %v10904_v57 }
0x6ad0   :  { %v7515_v8 = vrot.slane %v7485_v49, %v10904_v57 }
0x6ad1   :  { %v7535_v43 = vsel %vm782_vm5, %v7534_v35, %v7530_v30 }
0x6ad2   :  { %v7516_v44 = vsel %vm782_vm5, %v7515_v8, %v7511_v4  ;;  %v10349_v28 = vpop.eup %10348 }
0x6ad3   :  { %v7536_v55 = vsel %vm803_vm6, %v7535_v43, %v7516_v44  ;;  %v6058_v14 = vsel %vm1237_vm8, %v10349_v28, 0.0  ;;  %v10351_v24 = vpop.eup %10350 }
0x6ad4   :  { %v7538_v56 = vsel %vm806_vm7, %v7536_v55, 0.0  ;;  %v7003_v2 = vsel %vm1237_vm8, %v10351_v24, 0.0 }
0x6ad5   :  { %7539 = vadd.xlane.f32.xlu1 %v7538_v56 }
0x6ad9   :  { %1335 = vadd.xlane.f32.xlu1 %v1334_v52 }
0x6add   :  { %2279 = vadd.xlane.f32.xlu1 %v2278_v13 }
0x6ae1   :  { %3224 = vadd.xlane.f32.xlu1 %v3223_v15 }
0x6ae5   :  { %4169 = vadd.xlane.f32.xlu1 %v4168_v34 }
0x6ae9   :  { %5114 = vadd.xlane.f32.xlu1 %v5113_v59 }
0x6aed   :  { %6059 = vadd.xlane.f32.xlu1 %v6058_v14 }
0x6af1   :  { %7004 = vadd.xlane.f32.xlu1 %v7003_v2 }
0x6b62   :  { %v7540_v17 = vpop.xlane.xlu1 %7539 }
0x6b63   :  { %v7549_v37 = vrot.slane %v7540_v17, %v10925_v58  ;;  %v7545_v47 = vrot.slane %v7540_v17, %v10709_v38 }
0x6b65   :  { %10352 = vrcp.f32 %v7549_v37 }
0x6b66   :  { %v1336_v63 = vpop.xlane.xlu1 %1335 }
0x6b67   :  { %10354 = vrcp.f32 %v1336_v63 }
0x6b6a   :  { %v2280_v22 = vpop.xlane.xlu1 %2279 }
0x6b6b   :  { %10356 = vrcp.f32 %v2280_v22 }
0x6b6e   :  { %v3225_v18 = vpop.xlane.xlu1 %3224 }
0x6b6f   :  { %10358 = vrcp.f32 %v3225_v18  ;;  %v10353_v27 = vpop.eup %10352 }
0x6b70   :  { %10360 = vrcp.f32 %v7545_v47  ;;  %v7558_v49 = vmul.f32 %v10353_v27, %v12638_v61  ;;  %v7559_v48 = vmul.f32 %v10353_v27, %v12640_v40  ;;  %v7560_v4 = vmul.f32 %v10353_v27, %v12646_v60 }
0x6b71   :  { %v10355_v39 = vpop.eup %10354  ;;  %v7561_v56 = vmul.f32 %v10353_v27, %v12652_v45 }
0x6b72   :  { %v1338_v3 = vmul.f32 %v10355_v39, %v10339_v31  ;;  %v4170_v12 = vpop.xlane.xlu1 %4169  ;;  %7674 = vperm.xlu0 %9909, %v7558_v49  }
0x6b73   :  { %10362 = vrcp.f32 %v4170_v12 }
0x6b74   :  { %1339 = vst [vmem:[#allocation9] sm:$0x3] %v1338_v3 }
0x6b75   :  { %v10357_v58 = vpop.eup %10356 }
0x6b76   :  { %v2282_v8 = vmul.f32 %v10357_v58, %v10341_v21  ;;  %v5115_v35 = vpop.xlane.xlu1 %5114  ;;  %7677 = vperm.xlu0 %9909, %v7559_v48  }
0x6b77   :  { %10364 = vrcp.f32 %v5115_v35 }
0x6b78   :  { %2284 = vst [vmem:[#allocation9 + $0x2] sm:$0x3] %v2282_v8 }
0x6b79   :  { %v10359_v38 = vpop.eup %10358 }
0x6b7a   :  { %v10361_v30 = vpop.eup %10360  ;;  %v3227_v44 = vmul.f32 %v10359_v38, %v10343_v23  ;;  %v6060_v43 = vpop.xlane.xlu1 %6059  ;;  %7680 = vperm.xlu0 %9909, %v7560_v4  }
0x6b7b   :  { %10366 = vrcp.f32 %v6060_v43  ;;  %v7553_v54 = vmul.f32 %v10361_v30, %v12632_v7  ;;  %v7554_v51 = vmul.f32 %v10361_v30, %v12634_v62  ;;  %v7555_v7 = vmul.f32 %v10361_v30, %v12644_v20 }
0x6b7c   :  { %3229 = vst [vmem:[#allocation9 + $0x4] sm:$0x3] %v3227_v44  ;;  %v7556_v50 = vmul.f32 %v10361_v30, %v12650_v32 }
0x6b7d   :  { %v10363_v61 = vpop.eup %10362 }
0x6b7e   :  { %v4172_v36 = vmul.f32 %v10363_v61, %v10345_v9  ;;  %v7005_v11 = vpop.xlane.xlu1 %7004  ;;  %7567 = vperm.xlu0 %9909, %v7553_v54  }
0x6b7f   :  { %10368 = vrcp.f32 %v7005_v11 }
0x6b80   :  { %4174 = vst [vmem:[#allocation9 + $0x6] sm:$0x3] %v4172_v36 }
0x6b81   :  { %v10365_v40 = vpop.eup %10364 }
0x6b82   :  { %v5117_v55 = vmul.f32 %v10365_v40, %v10347_v10  ;;  %7570 = vperm.xlu0 %9909, %v7554_v51  }
0x6b84   :  { %5119 = vst [vmem:[#allocation9 + $0x8] sm:$0x3] %v5117_v55 }
0x6b85   :  { %v10367_v60 = vpop.eup %10366 }
0x6b86   :  { %v6062_v31 = vmul.f32 %v10367_v60, %v10349_v28  ;;  %7683 = vperm.xlu0 %9909, %v7561_v56  }
0x6b88   :  { %6064 = vst [vmem:[#allocation9 + $0xa] sm:$0x3] %v6062_v31 }
0x6b89   :  { %v10369_v5 = vpop.eup %10368 }
0x6b8a   :  { %v7007_v53 = vmul.f32 %v10369_v5, %v10351_v24  ;;  %7573 = vperm.xlu0 %9909, %v7555_v7  }
0x6b8c   :  { %7009 = vst [vmem:[#allocation9 + $0xc] sm:$0x3] %v7007_v53 }
0x6b8e   :  { %7576 = vperm.xlu0 %9909, %v7556_v50  }
0x6bf1   :  { %v7675_v29 = vpop.permute.xlu0 %7674 }
0x6bf2   :  { %v7688_v13 = vrot.slane %v7675_v29, %v10888_v41 }
0x6bf5   :  { %v7678_v62 = vpop.permute.xlu0 %7677 }
0x6bf6   :  { %v7692_v33 = vrot.slane %v7678_v62, %v10891_v42 }
0x6bf8   :  { %v7693_v20 = vsel %vm768_vm3, %v7692_v33, %v7688_v13 }
0x6bf9   :  { %v7681_v52 = vpop.permute.xlu0 %7680 }
0x6bfa   :  { %v7697_v45 = vrot.slane %v7681_v52, %v10897_v46 }
0x6bfc   :  { %v7698_v15 = vsel %vm775_vm4, %v7697_v45, %v7693_v20 }
0x6bfd   :  { %v7568_v21 = vpop.permute.xlu0 %7567 }
0x6bfe   :  { %v7581_v59 = vrot.slane %v7568_v21, %v10888_v41 }
0x6c01   :  { %v7571_v26 = vpop.permute.xlu0 %7570 }
0x6c02   :  { %v7585_v34 = vrot.slane %v7571_v26, %v10891_v42 }
0x6c04   :  { %v7586_v14 = vsel %vm768_vm3, %v7585_v34, %v7581_v59 }
0x6c05   :  { %v7684_v23 = vpop.permute.xlu0 %7683 }
0x6c06   :  { %v7702_v25 = vrot.slane %v7684_v23, %v10904_v57 }
0x6c08   :  { %v7703_v32 = vsel %vm782_vm5, %v7702_v25, %v7698_v15 }
0x6c09   :  { %9313 = vmatmul.mubr.msk.f32.vlgmr.msra.gmra.mrb[48].mxu0 %vm161_vm1, %v7703_v32  ;;  %v7574_v9 = vpop.permute.xlu0 %7573 }
0x6c0a   :  { %v7590_v10 = vrot.slane %v7574_v9, %v10897_v46 }
0x6c0c   :  { %v7591_v2 = vsel %vm775_vm4, %v7590_v10, %v7586_v14 }
0x6c0d   :  { %v7577_v28 = vpop.permute.xlu0 %7576 }
0x6c0e   :  { %v7595_v24 = vrot.slane %v7577_v28, %v10904_v57 }
0x6c10   :  { %v7596_v17 = vsel %vm782_vm5, %v7595_v24, %v7591_v2 }
0x6c11   :  { %9302 = vmatmul.mubr.msk.f32.vlgmr.msra.gmra.mrb[60].mxu1 %vm161_vm1, %v7596_v17 }
0x6c12   :  { %9886 = vmatpush3.bf16.msra.mxu1 %v11023_v16  ;;  %9323 = vmatprep.mubr.msk.f32.mxu1 %vm10514_vm0, %v12834_v1 }
0x6c13   :  { %9887 = vmatprep.subr.bf16.mxu1 %v12835_v0 }
0x6c16   :  { %9889 = vmatpush3.bf16.msra.mxu1 %v11026_v19 }
0x6cdc   :  { %v7772_v41 = vpop.f32.mrb[48].mxu0 }
0x6cdd   :  { %v9314_v42 = vpop.f32.mrb[49].mxu0  ;;  %v7778_v46 = vrot.slane %v7772_v41, 7 }
0x6ce4   :  { %v7665_v37 = vpop.f32.mrb[60].mxu1 }
0x6ce5   :  { %v7779_v57 = vsel %vm803_vm6, %v7778_v46, %v7665_v37  ;;  %v9303_v63 = vpop.f32.mrb[61].mxu1 }
0x6ce6   :  { %9324 = vmatmul.mubr.msk.f32.vlgmr.msra.gmra.mrb[62].mxu1 %vm161_vm1, %v7779_v57 }
0x6db9   :  { %v7848_v22 = vpop.f32.mrb[62].mxu1 }
0x6dba   :  { %v7849_v47 = vadd.f32 %v12511_v6, %v7848_v22  ;;  %v9325_v16 = vpop.f32.mrb[63].mxu1 }
0x6dbc   :  { %v7852_v18 = vsel %vm1237_vm8, %v7849_v47, -inf }
0x6dbd   :  { %7853 = vmax.xlane.f32.xlu0 %v7852_v18 }
0x6e4a   :  { %v7854_v1 = vpop.xlane.xlu0 %7853 }
0x6e4b   :  { %v7855_v0 = vsub.f32 %v7849_v47, %v7854_v1 }
0x6e4d   :  { %v7856_v27 = vmul.f32 1.442695, %v7855_v0 }
0x6e4f   :  { %10370 = vpow2.f32 %v7856_v27 }
0x6e59   :  { %v10371_v19 = vpop.eup %10370 }
0x6e5a   :  { %v7858_v39 = vsel %vm1237_vm8, %v10371_v19, 0.0 }
0x6e5b   :  { %7859 = vadd.xlane.f32.xlu1 %v7858_v39 }
0x6ee8   :  { %v7860_v49 = vpop.xlane.xlu1 %7859 }
0x6ee9   :  { %10372 = vrcp.f32 %v7860_v49 }
0x6ef3   :  { %v10373_v3 = vpop.eup %10372 }
0x6ef4   :  { %v7862_v12 = vmul.f32 %v10373_v3, %v10371_v19 }
0x6ef6   :  { %7864 = vst [vmem:[#allocation9 + $0xe] sm:$0x3] %v7862_v12 }
0x6ef7   :  { %10491 = shalt.err (!%p10488_p0)
}
0x6ef8   :  { %s10492_s6 = scalar_lea.hbm %s12757_s14, 256 }
0x6ef9   :  { %p10493_p1 = scmp.ne.s32.totalorder %s12757_s14, %s10492_s6  ;;  %p10496_p2 = scmp.lt.u32.totalorder %s10492_s6, %s12757_s14 }
0x6efb   :  { %p10498_p3 = pnand %p10496_p2, %p10493_p1 }
0x6efd   :  { %10501 = shalt.err (!%p10498_p3)
}
0x6efe   :  { %s10523_s7 = smov 2  }
0x6eff   :  { %7876 = dma.vmem_to_hbm [thread:$0]  %s7871_s1, 256, %s12757_s14, [#allocation5], %s10518_s23, %s10518_s23, %s10523_s7  }
0x6f00   :  { %10506 = dma.done.wait [#allocation5], 256  }
0x6f01   :  { %10507 = vsyncadd [#allocation5], 4294967040 }
0x6f02   :  { %7880 = vsyncpa [#allocation4], 1 }
0x6f03   :  { %7881 = vsyncpa [#allocation7], 1 }
0x6f04   :  { %7882 = vsyncpa [#allocation5], 1 }

</bundles_post_ra>
